<compile_context>
chip_gen: v6e
topology: v6e:2x2x1
jax: 0.10.0
libtpu: 0.0.40
codegen_flags: <defaults>
</compile_context>

<pallas_src>
import jax
import jax.numpy as jnp
from jax import lax
from jax.experimental import pallas as pl
from jax.experimental.pallas import tpu as pltpu


def _silu(v):
    # x * sigmoid(x) with sigmoid(v) = 0.5*tanh(0.5*v) + 0.5:
    # one EUP op per element (tanh) plus cheap VPU mul/adds.
    return v * (0.5 * jnp.tanh(0.5 * v) + 0.5)


# ----------------------------------------------------------------------------
# Fused SPP kernel: conv1(1x1)+BN+SiLU -> pools 5/9/13 -> concat -> conv2+BN+SiLU
# One grid step processes one batch element (full spatial map in VMEM).
# ----------------------------------------------------------------------------
def _spp_fused_kernel(x_ref, w1_ref, b1_ref, w2_ref, b2_ref, o_ref, cat_ref):
    _, H, W, Cin = x_ref.shape
    mid = w1_ref.shape[1]
    Cout = w2_ref.shape[1]
    HW = H * W

    # ---- conv1: 1x1 conv == [HW, Cin] @ [Cin, mid] on the MXU (bf16, f32 acc)
    x = x_ref[0].reshape(HW, Cin)                                     # bf16
    y = jnp.dot(x, w1_ref[...], preferred_element_type=jnp.float32)   # [HW, mid]
    y = _silu(y + b1_ref[...])                                        # f32

    # Edge masks for the 5-tap shifted maxima (shared by all three pools).
    flat = lax.broadcasted_iota(jnp.int32, (HW, mid), 0)   # flat row index
    col = flat % W                                          # position within a row

    def pool5(a):
        """5x5 / stride 1 / pad 2 max pool (implicit -inf padding) on the flat
        [HW, C] map.  Separable (W taps, then H taps); shifts are pltpu.roll
        along the sublane axis with boundary masks (no padded copies, no
        unaligned slices)."""
        neg = jnp.array(-jnp.inf, a.dtype)
        m = a                                       # W direction (within-row)
        for d in (1, 2):
            m = jnp.maximum(m, jnp.where(col < W - d, pltpu.roll(a, HW - d, 0), neg))
            m = jnp.maximum(m, jnp.where(col >= d, pltpu.roll(a, d, 0), neg))
        r = m                                       # H direction (whole rows)
        for d in (1, 2):
            r = jnp.maximum(r, jnp.where(flat < (H - d) * W,
                                         pltpu.roll(m, HW - d * W, 0), neg))
            r = jnp.maximum(r, jnp.where(flat >= d * W,
                                         pltpu.roll(m, d * W, 0), neg))
        return r

    # ---- pool cascade interleaved with bf16 stores into the concat operand.
    # MaxPool(9,pad 4) = MaxPool(5) o MaxPool(5); MaxPool(13,pad 6) adds one
    # more 5x5 stage.  Each map dies as soon as its successor is computed.
    cat_ref[:, 0:mid] = y.astype(jnp.bfloat16)
    p5 = pool5(y)                                    # y no longer needed
    cat_ref[:, mid:2 * mid] = p5.astype(jnp.bfloat16)
    p9 = pool5(p5)                                   # p5 no longer needed
    cat_ref[:, 2 * mid:3 * mid] = p9.astype(jnp.bfloat16)
    p13 = pool5(p9)                                  # p9 no longer needed
    cat_ref[:, 3 * mid:4 * mid] = p13.astype(jnp.bfloat16)

    # ---- conv2: ONE [HW, 4*mid] @ [4*mid, Cout] MXU matmul (full-depth K).
    z = jnp.dot(cat_ref[...], w2_ref[...], preferred_element_type=jnp.float32)
    z = _silu(z + b2_ref[...])                                        # [HW, Cout]
    o_ref[0] = z.reshape(H, W, Cout).astype(o_ref.dtype)              # lane-dense store


def spp_forward(x_nhwc, params):
    """SPPModule forward in NHWC / bf16 (the recommended layout around this
    module).  x_nhwc: [N, H, W, Cin] -> [N, H, W, Cout] bf16."""
    w1, b1, w2, b2 = params["w1"], params["b1"], params["w2"], params["b2"]
    Cin, mid = w1.shape
    Cout = w2.shape[1]
    N, H, W, _ = x_nhwc.shape

    return pl.pallas_call(
        _spp_fused_kernel,
        out_shape=jax.ShapeDtypeStruct((N, H, W, Cout), jnp.bfloat16),
        grid_spec=pltpu.PrefetchScalarGridSpec(
            num_scalar_prefetch=0,
            grid=(N,),
            in_specs=[
                pl.BlockSpec((1, H, W, Cin), lambda n: (n, 0, 0, 0)),
                pl.BlockSpec((Cin, mid), lambda n: (0, 0)),
                pl.BlockSpec((1, mid), lambda n: (0, 0)),
                pl.BlockSpec((4 * mid, Cout), lambda n: (0, 0)),
                pl.BlockSpec((1, Cout), lambda n: (0, 0)),
            ],
            out_specs=pl.BlockSpec((1, H, W, Cout), lambda n: (n, 0, 0, 0)),
            # bf16 concat operand for conv2, built in place during the cascade.
            scratch_shapes=[pltpu.VMEM((H * W, 4 * mid), jnp.bfloat16)],
        ),
        compiler_params=pltpu.CompilerParams(
            dimension_semantics=("parallel",),
        ),
    )(x_nhwc.astype(jnp.bfloat16), w1, b1, w2, b2)


def spp_forward_nchw(x_nchw, params):
    """PyTorch-layout adapter (NCHW f32 in / out).  Costs 3 extra HBM passes;
    prefer keeping the surrounding model in NHWC/bf16 and calling spp_forward."""
    out = spp_forward(jnp.transpose(x_nchw, (0, 2, 3, 1)), params)
    return jnp.transpose(out, (0, 3, 1, 2)).astype(jnp.float32)


# ----------------------------------------------------------------------------
# Deterministic synthetic parameters with BN folded at init (eval mode).
# ----------------------------------------------------------------------------
def init_spp_params(key, in_channels, out_channels):
    mid = in_channels // 2
    eps = 1e-5

    def conv_bn(subkey, cin, cout):
        kw, kg, kb, km, kv = jax.random.split(subkey, 5)
        w = jax.random.normal(kw, (cin, cout), jnp.float32) / jnp.sqrt(jnp.float32(cin))
        gamma = 1.0 + 0.1 * jax.random.normal(kg, (cout,), jnp.float32)
        beta = 0.1 * jax.random.normal(kb, (cout,), jnp.float32)
        rmean = 0.1 * jax.random.normal(km, (cout,), jnp.float32)
        rvar = 1.0 + 0.1 * jnp.abs(jax.random.normal(kv, (cout,), jnp.float32))
        scale = gamma / jnp.sqrt(rvar + eps)
        w_folded = w * scale[None, :]              # fold BN scale into the weights
        bias = (beta - rmean * scale).reshape(1, cout)
        return w_folded, bias

    k1, k2 = jax.random.split(key)
    w1f, b1 = conv_bn(k1, in_channels, mid)
    w2f, b2 = conv_bn(k2, 4 * mid, out_channels)

    kernel_params = {
        "w1": w1f.astype(jnp.bfloat16), "b1": b1,   # bf16 weights, f32 biases
        "w2": w2f.astype(jnp.bfloat16), "b2": b2,
    }
    ref_params = {"w1": w1f, "b1": b1, "w2": w2f, "b2": b2}  # f32 for the reference
    return kernel_params, ref_params


# ----------------------------------------------------------------------------
# Pure-JAX f32 reference (direct 5/9/13 reduce_windows, like PyTorch), NHWC.
# ----------------------------------------------------------------------------
def spp_reference(x_nhwc_f32, ref_params):
    def cbs(t, w, b):
        y = jnp.einsum("nhwc,cd->nhwd", t, w) + b.reshape(1, 1, 1, -1)
        return y * jax.nn.sigmoid(y)

    def pool(t, k, p):
        return lax.reduce_window(
            t, -jnp.inf, lax.max,
            (1, k, k, 1), (1, 1, 1, 1),
            ((0, 0), (p, p), (p, p), (0, 0)))

    y = cbs(x_nhwc_f32, ref_params["w1"], ref_params["b1"])
    cat = jnp.concatenate([y, pool(y, 5, 2), pool(y, 9, 4), pool(y, 13, 6)], axis=-1)
    return cbs(cat, ref_params["w2"], ref_params["b2"])


if __name__ == "__main__":
    key = jax.random.PRNGKey(0)
    pkey, xkey = jax.random.split(key)

    in_channels, out_channels = 64, 128          # SPPModule(64, 128): mid = 32
    batch, hw = 2, 16
    params, ref_params = init_spp_params(pkey, in_channels, out_channels)

    # NHWC / bf16 activations (no layout transposes around the kernel).
    x = jax.random.normal(
        xkey, (batch, hw, hw, in_channels), jnp.float32).astype(jnp.bfloat16)

    fwd = jax.jit(spp_forward)
    out = fwd(x, params)
    jax.block_until_ready(out)

    assert out.shape == (batch, hw, hw, out_channels), out.shape
    assert out.dtype == jnp.bfloat16, out.dtype
    out_f32 = out.astype(jnp.float32)
    assert bool(jnp.all(jnp.isfinite(out_f32)))

    # Numerical check against the f32 reference (bf16 MXU path => loose tol).
    ref = spp_reference(x.astype(jnp.float32), ref_params)
    err = float(jnp.max(jnp.abs(out_f32 - ref)))
    scale = float(jnp.max(jnp.abs(ref))) + 1.0
    assert err <= 0.05 * scale, (err, scale)

    print("KERNEL_OK")
</pallas_src>

<mosaic_0001>
module attributes {stable_mosaic.version = 11 : i64} {
  func.func @_spp_fused_kernel(%arg0: i32, %arg1: memref<1x16x16x64xbf16, #tpu.memory_space<vmem>>, %arg2: memref<64x32xbf16, #tpu.memory_space<vmem>>, %arg3: memref<1x32xf32, #tpu.memory_space<vmem>>, %arg4: memref<128x128xbf16, #tpu.memory_space<vmem>>, %arg5: memref<1x128xf32, #tpu.memory_space<vmem>>, %arg6: memref<1x16x16x128xbf16, #tpu.memory_space<vmem>>, %arg7: memref<256x128xbf16, #tpu.memory_space<vmem>>) attributes {dimension_semantics = [#tpu.dimension_semantics<parallel>], iteration_bounds = array<i64: 2>, scalar_prefetch = 0 : i64, scratch_operands = 1 : i64, tpu.core_type = #tpu.core_type<tc>, window_params = [{transform_indices = @transform_0, window_bounds = array<i64: 1, 16, 16, 64>}, {pipeline_mode = #tpu.pipeline_mode<synchronous>, transform_indices = @transform_1, window_bounds = array<i64: 64, 32>}, {pipeline_mode = #tpu.pipeline_mode<synchronous>, transform_indices = @transform_2, window_bounds = array<i64: 1, 32>}, {pipeline_mode = #tpu.pipeline_mode<synchronous>, transform_indices = @transform_3, window_bounds = array<i64: 128, 128>}, {pipeline_mode = #tpu.pipeline_mode<synchronous>, transform_indices = @transform_4, window_bounds = array<i64: 1, 128>}, {transform_indices = @transform_5, window_bounds = array<i64: 1, 16, 16, 128>}]} {
    %c0 = arith.constant 0 : index
    %c0_0 = arith.constant 0 : index
    %c0_1 = arith.constant 0 : index
    %c0_2 = arith.constant 0 : index
    %0 = vector.load %arg1[%c0, %c0_0, %c0_1, %c0_2] : memref<1x16x16x64xbf16, #tpu.memory_space<vmem>>, vector<1x16x16x64xbf16>
    %1 = vector.shape_cast %0 : vector<1x16x16x64xbf16> to vector<16x16x64xbf16>
    %2 = vector.shape_cast %1 : vector<16x16x64xbf16> to vector<256x64xbf16>
    %c0_3 = arith.constant 0 : index
    %c0_4 = arith.constant 0 : index
    %3 = vector.load %arg2[%c0_3, %c0_4] : memref<64x32xbf16, #tpu.memory_space<vmem>>, vector<64x32xbf16>
    %cst = arith.constant dense<0.000000e+00> : vector<256x32xf32>
    %4 = tpu.matmul %2, %3, %cst {dimension_numbers = #tpu.dot_dimension_numbers<[1], [0], [0], [1], [0, 0, 1, 1], [], []>} : vector<256x64xbf16>, vector<64x32xbf16>, vector<256x32xf32> -> vector<256x32xf32>
    %c0_5 = arith.constant 0 : index
    %c0_6 = arith.constant 0 : index
    %5 = vector.load %arg3[%c0_5, %c0_6] : memref<1x32xf32, #tpu.memory_space<vmem>>, vector<1x32xf32>
    %6 = vector.broadcast %5 : vector<1x32xf32> to vector<256x32xf32>
    %7 = arith.addf %4, %6 : vector<256x32xf32>
    %cst_7 = arith.constant 5.000000e-01 : f32
    %8 = vector.broadcast %cst_7 : f32 to vector<256x32xf32>
    %9 = arith.mulf %8, %7 : vector<256x32xf32>
    %10 = math.tanh %9 : vector<256x32xf32>
    %cst_8 = arith.constant 5.000000e-01 : f32
    %11 = vector.broadcast %cst_8 : f32 to vector<256x32xf32>
    %12 = arith.mulf %11, %10 : vector<256x32xf32>
    %cst_9 = arith.constant 5.000000e-01 : f32
    %13 = vector.broadcast %cst_9 : f32 to vector<256x32xf32>
    %14 = arith.addf %12, %13 : vector<256x32xf32>
    %15 = arith.mulf %7, %14 : vector<256x32xf32>
    %16 = tpu.iota {dimensions = array<i32: 0>} : vector<256x32xi32>
    %c16_i32 = arith.constant 16 : i32
    %c0_i32 = arith.constant 0 : i32
    %17 = arith.cmpi eq, %c16_i32, %c0_i32 : i32
    %c1_i32 = arith.constant 1 : i32
    %18 = arith.select %17, %c1_i32, %c16_i32 : i32
    %19 = vector.broadcast %18 : i32 to vector<256x32xi32>
    %20 = arith.remsi %16, %19 : vector<256x32xi32>
    %c0_i32_10 = arith.constant 0 : i32
    %21 = vector.broadcast %c0_i32_10 : i32 to vector<256x32xi32>
    %22 = arith.cmpi ne, %20, %21 : vector<256x32xi32>
    %c0_i32_11 = arith.constant 0 : i32
    %23 = vector.broadcast %c0_i32_11 : i32 to vector<256x32xi32>
    %24 = arith.cmpi slt, %20, %23 : vector<256x32xi32>
    %c0_i32_12 = arith.constant 0 : i32
    %25 = arith.cmpi slt, %18, %c0_i32_12 : i32
    %26 = vector.broadcast %25 : i1 to vector<256x32xi1>
    %27 = vector.broadcast %26 : vector<256x32xi1> to vector<256x32xi1>
    %28 = arith.xori %24, %27 : vector<256x32xi1>
    %29 = arith.andi %28, %22 : vector<256x32xi1>
    %30 = vector.broadcast %18 : i32 to vector<256x32xi32>
    %31 = arith.addi %20, %30 : vector<256x32xi32>
    %32 = arith.select %29, %31, %20 : vector<256x32xi1>, vector<256x32xi32>
    %33 = arith.truncf %15 : vector<256x32xf32> to vector<256x32xbf16>
    %c0_13 = arith.constant 0 : index
    %c0_14 = arith.constant 0 : index
    %34 = vector.load %arg7[%c0_13, %c0_14] : memref<256x128xbf16, #tpu.memory_space<vmem>>, vector<256x32xbf16>
    tpu.vector_store %arg7[%c0_13, %c0_14], %33 {strides = array<i32>} : memref<256x128xbf16, #tpu.memory_space<vmem>>, vector<256x32xbf16>,
    %c15_i32 = arith.constant 15 : i32
    %35 = vector.broadcast %c15_i32 : i32 to vector<256x32xi32>
    %36 = arith.cmpi slt, %32, %35 : vector<256x32xi32>
    %c255_i32 = arith.constant 255 : i32
    %37 = tpu.dynamic_rotate %15 by %c255_i32 dim 0 : vector<256x32xf32>, i32 -> vector<256x32xf32>
    %cst_15 = arith.constant 0xFF800000 : f32
    %38 = vector.broadcast %cst_15 : f32 to vector<256x32xf32>
    %39 = arith.select %36, %37, %38 : vector<256x32xi1>, vector<256x32xf32>
    %40 = arith.maximumf %15, %39 : vector<256x32xf32>
    %c1_i32_16 = arith.constant 1 : i32
    %41 = vector.broadcast %c1_i32_16 : i32 to vector<256x32xi32>
    %42 = arith.cmpi sge, %32, %41 : vector<256x32xi32>
    %c1_i32_17 = arith.constant 1 : i32
    %43 = tpu.dynamic_rotate %15 by %c1_i32_17 dim 0 : vector<256x32xf32>, i32 -> vector<256x32xf32>
    %cst_18 = arith.constant 0xFF800000 : f32
    %44 = vector.broadcast %cst_18 : f32 to vector<256x32xf32>
    %45 = arith.select %42, %43, %44 : vector<256x32xi1>, vector<256x32xf32>
    %46 = arith.maximumf %40, %45 : vector<256x32xf32>
    %c14_i32 = arith.constant 14 : i32
    %47 = vector.broadcast %c14_i32 : i32 to vector<256x32xi32>
    %48 = arith.cmpi slt, %32, %47 : vector<256x32xi32>
    %c254_i32 = arith.constant 254 : i32
    %49 = tpu.dynamic_rotate %15 by %c254_i32 dim 0 : vector<256x32xf32>, i32 -> vector<256x32xf32>
    %cst_19 = arith.constant 0xFF800000 : f32
    %50 = vector.broadcast %cst_19 : f32 to vector<256x32xf32>
    %51 = arith.select %48, %49, %50 : vector<256x32xi1>, vector<256x32xf32>
    %52 = arith.maximumf %46, %51 : vector<256x32xf32>
    %c2_i32 = arith.constant 2 : i32
    %53 = vector.broadcast %c2_i32 : i32 to vector<256x32xi32>
    %54 = arith.cmpi sge, %32, %53 : vector<256x32xi32>
    %c2_i32_20 = arith.constant 2 : i32
    %55 = tpu.dynamic_rotate %15 by %c2_i32_20 dim 0 : vector<256x32xf32>, i32 -> vector<256x32xf32>
    %cst_21 = arith.constant 0xFF800000 : f32
    %56 = vector.broadcast %cst_21 : f32 to vector<256x32xf32>
    %57 = arith.select %54, %55, %56 : vector<256x32xi1>, vector<256x32xf32>
    %58 = arith.maximumf %52, %57 : vector<256x32xf32>
    %c240_i32 = arith.constant 240 : i32
    %59 = vector.broadcast %c240_i32 : i32 to vector<256x32xi32>
    %60 = arith.cmpi slt, %16, %59 : vector<256x32xi32>
    %c240_i32_22 = arith.constant 240 : i32
    %61 = tpu.dynamic_rotate %58 by %c240_i32_22 dim 0 : vector<256x32xf32>, i32 -> vector<256x32xf32>
    %cst_23 = arith.constant 0xFF800000 : f32
    %62 = vector.broadcast %cst_23 : f32 to vector<256x32xf32>
    %63 = arith.select %60, %61, %62 : vector<256x32xi1>, vector<256x32xf32>
    %64 = arith.maximumf %58, %63 : vector<256x32xf32>
    %c16_i32_24 = arith.constant 16 : i32
    %65 = vector.broadcast %c16_i32_24 : i32 to vector<256x32xi32>
    %66 = arith.cmpi sge, %16, %65 : vector<256x32xi32>
    %c16_i32_25 = arith.constant 16 : i32
    %67 = tpu.dynamic_rotate %58 by %c16_i32_25 dim 0 : vector<256x32xf32>, i32 -> vector<256x32xf32>
    %cst_26 = arith.constant 0xFF800000 : f32
    %68 = vector.broadcast %cst_26 : f32 to vector<256x32xf32>
    %69 = arith.select %66, %67, %68 : vector<256x32xi1>, vector<256x32xf32>
    %70 = arith.maximumf %64, %69 : vector<256x32xf32>
    %c224_i32 = arith.constant 224 : i32
    %71 = vector.broadcast %c224_i32 : i32 to vector<256x32xi32>
    %72 = arith.cmpi slt, %16, %71 : vector<256x32xi32>
    %c224_i32_27 = arith.constant 224 : i32
    %73 = tpu.dynamic_rotate %58 by %c224_i32_27 dim 0 : vector<256x32xf32>, i32 -> vector<256x32xf32>
    %cst_28 = arith.constant 0xFF800000 : f32
    %74 = vector.broadcast %cst_28 : f32 to vector<256x32xf32>
    %75 = arith.select %72, %73, %74 : vector<256x32xi1>, vector<256x32xf32>
    %76 = arith.maximumf %70, %75 : vector<256x32xf32>
    %c32_i32 = arith.constant 32 : i32
    %77 = vector.broadcast %c32_i32 : i32 to vector<256x32xi32>
    %78 = arith.cmpi sge, %16, %77 : vector<256x32xi32>
    %c32_i32_29 = arith.constant 32 : i32
    %79 = tpu.dynamic_rotate %58 by %c32_i32_29 dim 0 : vector<256x32xf32>, i32 -> vector<256x32xf32>
    %cst_30 = arith.constant 0xFF800000 : f32
    %80 = vector.broadcast %cst_30 : f32 to vector<256x32xf32>
    %81 = arith.select %78, %79, %80 : vector<256x32xi1>, vector<256x32xf32>
    %82 = arith.maximumf %76, %81 : vector<256x32xf32>
    %83 = arith.truncf %82 : vector<256x32xf32> to vector<256x32xbf16>
    %c0_31 = arith.constant 0 : index
    %c32 = arith.constant 32 : index
    %84 = vector.load %arg7[%c0_31, %c32] : memref<256x128xbf16, #tpu.memory_space<vmem>>, vector<256x32xbf16>
    tpu.vector_store %arg7[%c0_31, %c32], %83 {strides = array<i32>} : memref<256x128xbf16, #tpu.memory_space<vmem>>, vector<256x32xbf16>,
    %c15_i32_32 = arith.constant 15 : i32
    %85 = vector.broadcast %c15_i32_32 : i32 to vector<256x32xi32>
    %86 = arith.cmpi slt, %32, %85 : vector<256x32xi32>
    %c255_i32_33 = arith.constant 255 : i32
    %87 = tpu.dynamic_rotate %82 by %c255_i32_33 dim 0 : vector<256x32xf32>, i32 -> vector<256x32xf32>
    %cst_34 = arith.constant 0xFF800000 : f32
    %88 = vector.broadcast %cst_34 : f32 to vector<256x32xf32>
    %89 = arith.select %86, %87, %88 : vector<256x32xi1>, vector<256x32xf32>
    %90 = arith.maximumf %82, %89 : vector<256x32xf32>
    %c1_i32_35 = arith.constant 1 : i32
    %91 = vector.broadcast %c1_i32_35 : i32 to vector<256x32xi32>
    %92 = arith.cmpi sge, %32, %91 : vector<256x32xi32>
    %c1_i32_36 = arith.constant 1 : i32
    %93 = tpu.dynamic_rotate %82 by %c1_i32_36 dim 0 : vector<256x32xf32>, i32 -> vector<256x32xf32>
    %cst_37 = arith.constant 0xFF800000 : f32
    %94 = vector.broadcast %cst_37 : f32 to vector<256x32xf32>
    %95 = arith.select %92, %93, %94 : vector<256x32xi1>, vector<256x32xf32>
    %96 = arith.maximumf %90, %95 : vector<256x32xf32>
    %c14_i32_38 = arith.constant 14 : i32
    %97 = vector.broadcast %c14_i32_38 : i32 to vector<256x32xi32>
    %98 = arith.cmpi slt, %32, %97 : vector<256x32xi32>
    %c254_i32_39 = arith.constant 254 : i32
    %99 = tpu.dynamic_rotate %82 by %c254_i32_39 dim 0 : vector<256x32xf32>, i32 -> vector<256x32xf32>
    %cst_40 = arith.constant 0xFF800000 : f32
    %100 = vector.broadcast %cst_40 : f32 to vector<256x32xf32>
    %101 = arith.select %98, %99, %100 : vector<256x32xi1>, vector<256x32xf32>
    %102 = arith.maximumf %96, %101 : vector<256x32xf32>
    %c2_i32_41 = arith.constant 2 : i32
    %103 = vector.broadcast %c2_i32_41 : i32 to vector<256x32xi32>
    %104 = arith.cmpi sge, %32, %103 : vector<256x32xi32>
    %c2_i32_42 = arith.constant 2 : i32
    %105 = tpu.dynamic_rotate %82 by %c2_i32_42 dim 0 : vector<256x32xf32>, i32 -> vector<256x32xf32>
    %cst_43 = arith.constant 0xFF800000 : f32
    %106 = vector.broadcast %cst_43 : f32 to vector<256x32xf32>
    %107 = arith.select %104, %105, %106 : vector<256x32xi1>, vector<256x32xf32>
    %108 = arith.maximumf %102, %107 : vector<256x32xf32>
    %c240_i32_44 = arith.constant 240 : i32
    %109 = vector.broadcast %c240_i32_44 : i32 to vector<256x32xi32>
    %110 = arith.cmpi slt, %16, %109 : vector<256x32xi32>
    %c240_i32_45 = arith.constant 240 : i32
    %111 = tpu.dynamic_rotate %108 by %c240_i32_45 dim 0 : vector<256x32xf32>, i32 -> vector<256x32xf32>
    %cst_46 = arith.constant 0xFF800000 : f32
    %112 = vector.broadcast %cst_46 : f32 to vector<256x32xf32>
    %113 = arith.select %110, %111, %112 : vector<256x32xi1>, vector<256x32xf32>
    %114 = arith.maximumf %108, %113 : vector<256x32xf32>
    %c16_i32_47 = arith.constant 16 : i32
    %115 = vector.broadcast %c16_i32_47 : i32 to vector<256x32xi32>
    %116 = arith.cmpi sge, %16, %115 : vector<256x32xi32>
    %c16_i32_48 = arith.constant 16 : i32
    %117 = tpu.dynamic_rotate %108 by %c16_i32_48 dim 0 : vector<256x32xf32>, i32 -> vector<256x32xf32>
    %cst_49 = arith.constant 0xFF800000 : f32
    %118 = vector.broadcast %cst_49 : f32 to vector<256x32xf32>
    %119 = arith.select %116, %117, %118 : vector<256x32xi1>, vector<256x32xf32>
    %120 = arith.maximumf %114, %119 : vector<256x32xf32>
    %c224_i32_50 = arith.constant 224 : i32
    %121 = vector.broadcast %c224_i32_50 : i32 to vector<256x32xi32>
    %122 = arith.cmpi slt, %16, %121 : vector<256x32xi32>
    %c224_i32_51 = arith.constant 224 : i32
    %123 = tpu.dynamic_rotate %108 by %c224_i32_51 dim 0 : vector<256x32xf32>, i32 -> vector<256x32xf32>
    %cst_52 = arith.constant 0xFF800000 : f32
    %124 = vector.broadcast %cst_52 : f32 to vector<256x32xf32>
    %125 = arith.select %122, %123, %124 : vector<256x32xi1>, vector<256x32xf32>
    %126 = arith.maximumf %120, %125 : vector<256x32xf32>
    %c32_i32_53 = arith.constant 32 : i32
    %127 = vector.broadcast %c32_i32_53 : i32 to vector<256x32xi32>
    %128 = arith.cmpi sge, %16, %127 : vector<256x32xi32>
    %c32_i32_54 = arith.constant 32 : i32
    %129 = tpu.dynamic_rotate %108 by %c32_i32_54 dim 0 : vector<256x32xf32>, i32 -> vector<256x32xf32>
    %cst_55 = arith.constant 0xFF800000 : f32
    %130 = vector.broadcast %cst_55 : f32 to vector<256x32xf32>
    %131 = arith.select %128, %129, %130 : vector<256x32xi1>, vector<256x32xf32>
    %132 = arith.maximumf %126, %131 : vector<256x32xf32>
    %133 = arith.truncf %132 : vector<256x32xf32> to vector<256x32xbf16>
    %c0_56 = arith.constant 0 : index
    %c64 = arith.constant 64 : index
    %134 = vector.load %arg7[%c0_56, %c64] : memref<256x128xbf16, #tpu.memory_space<vmem>>, vector<256x32xbf16>
    tpu.vector_store %arg7[%c0_56, %c64], %133 {strides = array<i32>} : memref<256x128xbf16, #tpu.memory_space<vmem>>, vector<256x32xbf16>,
    %c15_i32_57 = arith.constant 15 : i32
    %135 = vector.broadcast %c15_i32_57 : i32 to vector<256x32xi32>
    %136 = arith.cmpi slt, %32, %135 : vector<256x32xi32>
    %c255_i32_58 = arith.constant 255 : i32
    %137 = tpu.dynamic_rotate %132 by %c255_i32_58 dim 0 : vector<256x32xf32>, i32 -> vector<256x32xf32>
    %cst_59 = arith.constant 0xFF800000 : f32
    %138 = vector.broadcast %cst_59 : f32 to vector<256x32xf32>
    %139 = arith.select %136, %137, %138 : vector<256x32xi1>, vector<256x32xf32>
    %140 = arith.maximumf %132, %139 : vector<256x32xf32>
    %c1_i32_60 = arith.constant 1 : i32
    %141 = vector.broadcast %c1_i32_60 : i32 to vector<256x32xi32>
    %142 = arith.cmpi sge, %32, %141 : vector<256x32xi32>
    %c1_i32_61 = arith.constant 1 : i32
    %143 = tpu.dynamic_rotate %132 by %c1_i32_61 dim 0 : vector<256x32xf32>, i32 -> vector<256x32xf32>
    %cst_62 = arith.constant 0xFF800000 : f32
    %144 = vector.broadcast %cst_62 : f32 to vector<256x32xf32>
    %145 = arith.select %142, %143, %144 : vector<256x32xi1>, vector<256x32xf32>
    %146 = arith.maximumf %140, %145 : vector<256x32xf32>
    %c14_i32_63 = arith.constant 14 : i32
    %147 = vector.broadcast %c14_i32_63 : i32 to vector<256x32xi32>
    %148 = arith.cmpi slt, %32, %147 : vector<256x32xi32>
    %c254_i32_64 = arith.constant 254 : i32
    %149 = tpu.dynamic_rotate %132 by %c254_i32_64 dim 0 : vector<256x32xf32>, i32 -> vector<256x32xf32>
    %cst_65 = arith.constant 0xFF800000 : f32
    %150 = vector.broadcast %cst_65 : f32 to vector<256x32xf32>
    %151 = arith.select %148, %149, %150 : vector<256x32xi1>, vector<256x32xf32>
    %152 = arith.maximumf %146, %151 : vector<256x32xf32>
    %c2_i32_66 = arith.constant 2 : i32
    %153 = vector.broadcast %c2_i32_66 : i32 to vector<256x32xi32>
    %154 = arith.cmpi sge, %32, %153 : vector<256x32xi32>
    %c2_i32_67 = arith.constant 2 : i32
    %155 = tpu.dynamic_rotate %132 by %c2_i32_67 dim 0 : vector<256x32xf32>, i32 -> vector<256x32xf32>
    %cst_68 = arith.constant 0xFF800000 : f32
    %156 = vector.broadcast %cst_68 : f32 to vector<256x32xf32>
    %157 = arith.select %154, %155, %156 : vector<256x32xi1>, vector<256x32xf32>
    %158 = arith.maximumf %152, %157 : vector<256x32xf32>
    %c240_i32_69 = arith.constant 240 : i32
    %159 = vector.broadcast %c240_i32_69 : i32 to vector<256x32xi32>
    %160 = arith.cmpi slt, %16, %159 : vector<256x32xi32>
    %c240_i32_70 = arith.constant 240 : i32
    %161 = tpu.dynamic_rotate %158 by %c240_i32_70 dim 0 : vector<256x32xf32>, i32 -> vector<256x32xf32>
    %cst_71 = arith.constant 0xFF800000 : f32
    %162 = vector.broadcast %cst_71 : f32 to vector<256x32xf32>
    %163 = arith.select %160, %161, %162 : vector<256x32xi1>, vector<256x32xf32>
    %164 = arith.maximumf %158, %163 : vector<256x32xf32>
    %c16_i32_72 = arith.constant 16 : i32
    %165 = vector.broadcast %c16_i32_72 : i32 to vector<256x32xi32>
    %166 = arith.cmpi sge, %16, %165 : vector<256x32xi32>
    %c16_i32_73 = arith.constant 16 : i32
    %167 = tpu.dynamic_rotate %158 by %c16_i32_73 dim 0 : vector<256x32xf32>, i32 -> vector<256x32xf32>
    %cst_74 = arith.constant 0xFF800000 : f32
    %168 = vector.broadcast %cst_74 : f32 to vector<256x32xf32>
    %169 = arith.select %166, %167, %168 : vector<256x32xi1>, vector<256x32xf32>
    %170 = arith.maximumf %164, %169 : vector<256x32xf32>
    %c224_i32_75 = arith.constant 224 : i32
    %171 = vector.broadcast %c224_i32_75 : i32 to vector<256x32xi32>
    %172 = arith.cmpi slt, %16, %171 : vector<256x32xi32>
    %c224_i32_76 = arith.constant 224 : i32
    %173 = tpu.dynamic_rotate %158 by %c224_i32_76 dim 0 : vector<256x32xf32>, i32 -> vector<256x32xf32>
    %cst_77 = arith.constant 0xFF800000 : f32
    %174 = vector.broadcast %cst_77 : f32 to vector<256x32xf32>
    %175 = arith.select %172, %173, %174 : vector<256x32xi1>, vector<256x32xf32>
    %176 = arith.maximumf %170, %175 : vector<256x32xf32>
    %c32_i32_78 = arith.constant 32 : i32
    %177 = vector.broadcast %c32_i32_78 : i32 to vector<256x32xi32>
    %178 = arith.cmpi sge, %16, %177 : vector<256x32xi32>
    %c32_i32_79 = arith.constant 32 : i32
    %179 = tpu.dynamic_rotate %158 by %c32_i32_79 dim 0 : vector<256x32xf32>, i32 -> vector<256x32xf32>
    %cst_80 = arith.constant 0xFF800000 : f32
    %180 = vector.broadcast %cst_80 : f32 to vector<256x32xf32>
    %181 = arith.select %178, %179, %180 : vector<256x32xi1>, vector<256x32xf32>
    %182 = arith.maximumf %176, %181 : vector<256x32xf32>
    %183 = arith.truncf %182 : vector<256x32xf32> to vector<256x32xbf16>
    %c0_81 = arith.constant 0 : index
    %c96 = arith.constant 96 : index
    %184 = vector.load %arg7[%c0_81, %c96] : memref<256x128xbf16, #tpu.memory_space<vmem>>, vector<256x32xbf16>
    tpu.vector_store %arg7[%c0_81, %c96], %183 {strides = array<i32>} : memref<256x128xbf16, #tpu.memory_space<vmem>>, vector<256x32xbf16>,
    %c0_82 = arith.constant 0 : index
    %c0_83 = arith.constant 0 : index
    %185 = vector.load %arg7[%c0_82, %c0_83] : memref<256x128xbf16, #tpu.memory_space<vmem>>, vector<256x128xbf16>
    %c0_84 = arith.constant 0 : index
    %c0_85 = arith.constant 0 : index
    %186 = vector.load %arg4[%c0_84, %c0_85] : memref<128x128xbf16, #tpu.memory_space<vmem>>, vector<128x128xbf16>
    %cst_86 = arith.constant dense<0.000000e+00> : vector<256x128xf32>
    %187 = tpu.matmul %185, %186, %cst_86 {dimension_numbers = #tpu.dot_dimension_numbers<[1], [0], [0], [1], [0, 0, 1, 1], [], []>} : vector<256x128xbf16>, vector<128x128xbf16>, vector<256x128xf32> -> vector<256x128xf32>
    %c0_87 = arith.constant 0 : index
    %c0_88 = arith.constant 0 : index
    %188 = vector.load %arg5[%c0_87, %c0_88] : memref<1x128xf32, #tpu.memory_space<vmem>>, vector<1x128xf32>
    %189 = vector.broadcast %188 : vector<1x128xf32> to vector<256x128xf32>
    %190 = arith.addf %187, %189 : vector<256x128xf32>
    %cst_89 = arith.constant 5.000000e-01 : f32
    %191 = vector.broadcast %cst_89 : f32 to vector<256x128xf32>
    %192 = arith.mulf %191, %190 : vector<256x128xf32>
    %193 = math.tanh %192 : vector<256x128xf32>
    %cst_90 = arith.constant 5.000000e-01 : f32
    %194 = vector.broadcast %cst_90 : f32 to vector<256x128xf32>
    %195 = arith.mulf %194, %193 : vector<256x128xf32>
    %cst_91 = arith.constant 5.000000e-01 : f32
    %196 = vector.broadcast %cst_91 : f32 to vector<256x128xf32>
    %197 = arith.addf %195, %196 : vector<256x128xf32>
    %198 = arith.mulf %190, %197 : vector<256x128xf32>
    %199 = vector.shape_cast %198 : vector<256x128xf32> to vector<16x16x128xf32>
    %200 = arith.truncf %199 : vector<16x16x128xf32> to vector<16x16x128xbf16>
    %c0_92 = arith.constant 0 : index
    %c0_93 = arith.constant 0 : index
    %c0_94 = arith.constant 0 : index
    %c0_95 = arith.constant 0 : index
    %201 = vector.load %arg6[%c0_92, %c0_93, %c0_94, %c0_95] : memref<1x16x16x128xbf16, #tpu.memory_space<vmem>>, vector<1x16x16x128xbf16>
    %202 = vector.shape_cast %201 : vector<1x16x16x128xbf16> to vector<16x16x128xbf16>
    %203 = vector.shape_cast %200 : vector<16x16x128xbf16> to vector<1x16x16x128xbf16>
    tpu.vector_store %arg6[%c0_92, %c0_93, %c0_94, %c0_95], %203 {strides = array<i32>} : memref<1x16x16x128xbf16, #tpu.memory_space<vmem>>, vector<1x16x16x128xbf16>,
    return
  }
  func.func @transform_0(%arg0: i32) -> (i32, i32, i32, i32) {
    %c0_i32 = arith.constant 0 : i32
    %c0_i32_0 = arith.constant 0 : i32
    %c0_i32_1 = arith.constant 0 : i32
    %c0_i32_2 = arith.constant 0 : i32
    return %arg0, %c0_i32, %c0_i32_0, %c0_i32_1 : i32, i32, i32, i32
  }
  func.func @transform_1(%arg0: i32) -> (i32, i32) {
    %c0_i32 = arith.constant 0 : i32
    %c0_i32_0 = arith.constant 0 : i32
    %c0_i32_1 = arith.constant 0 : i32
    return %c0_i32, %c0_i32_0 : i32, i32
  }
  func.func @transform_2(%arg0: i32) -> (i32, i32) {
    %c0_i32 = arith.constant 0 : i32
    %c0_i32_0 = arith.constant 0 : i32
    %c0_i32_1 = arith.constant 0 : i32
    return %c0_i32, %c0_i32_0 : i32, i32
  }
  func.func @transform_3(%arg0: i32) -> (i32, i32) {
    %c0_i32 = arith.constant 0 : i32
    %c0_i32_0 = arith.constant 0 : i32
    %c0_i32_1 = arith.constant 0 : i32
    return %c0_i32, %c0_i32_0 : i32, i32
  }
  func.func @transform_4(%arg0: i32) -> (i32, i32) {
    %c0_i32 = arith.constant 0 : i32
    %c0_i32_0 = arith.constant 0 : i32
    %c0_i32_1 = arith.constant 0 : i32
    return %c0_i32, %c0_i32_0 : i32, i32
  }
  func.func @transform_5(%arg0: i32) -> (i32, i32, i32, i32) {
    %c0_i32 = arith.constant 0 : i32
    %c0_i32_0 = arith.constant 0 : i32
    %c0_i32_1 = arith.constant 0 : i32
    %c0_i32_2 = arith.constant 0 : i32
    return %arg0, %c0_i32, %c0_i32_0, %c0_i32_1 : i32, i32, i32, i32
  }
}

</mosaic_0001>

<bundles_post_ra>
// kernel: spp_forward.1
= control target key start
LH: loop header
LB: loop body
LE: loop exit
PB: predicated region body
PF: predicated region fallthrough
CT: control target
= control target key end

     0   :  { %10 = vsyncpa [#allocation4], 0  ;;  %s11919_s0 = inlined_call_operand.hbm [shape: bf16[2,16,16,64], index: 0, kind: input, shape index: {}]   ;;  %s11920_s1 = inlined_call_operand.vmem [shape: bf16[64,32], index: 1, kind: input, shape index: {}]   ;;  %s11921_s2 = inlined_call_operand.vmem [shape: f32[1,32], index: 2, kind: input, shape index: {}]   ;;  %s11922_s3 = inlined_call_operand.hbm [shape: bf16[128,128], index: 3, kind: input, shape index: {}]   ;;  %s11923_s4 = inlined_call_operand.vmem [shape: f32[1,128], index: 4, kind: input, shape index: {}]   ;;  %s11924_s5 = inlined_call_operand.hbm [shape: bf16[2,16,16,128], index: 5, kind: output, shape index: {}]  }
   0x1   :  { %12 = vsyncpa [#allocation4 + $0x1], 0 }
   0x2   :  { %13 = vsyncpa [#allocation7], 0 }
   0x3   :  { %14 = vsyncpa [#allocation5], 0 }
   0x4   :  { %16 = vsyncpa [#allocation5 + $0x1], 0  ;;  %s6416_s18 = smov 0   ;;  %s6418_s19 = smov 0  }
   0x5   :  { %s6420_s20 = smov 0   ;;  %s6422_s21 = smov 0  }
   0x6 LB: > { %s6437_s22 = sadd.s32 4294967295, %s6375_s21   ;;  %s5374_s23 = sadd.s32 4294967294, %s6375_s21   ;;  %s6375_s21 = sphi %s6422_s21, %s13975_s21   ;;  %s6371_s20 = sphi %s6420_s20, %s13974_s20   ;;  %s6367_s19 = sphi %s6418_s19, %s13973_s19   ;;  %s6363_s18 = sphi %s6416_s18, %s13972_s18  }
   0x7   : > { %p42_p0 = scmp.ne.s32.totalorder %s6367_s19, %s6363_s18  ;;  %p11925_p1 = scmp.eq.s32.totalorder %s6437_s22, 0 }
   0x8   : > { %p156_p3 = scmp.eq.s32.totalorder %s5374_s23, 1  ;;  %p5375_p5 = scmp.ge.s32.totalorder %s6375_s21, 1 }
   0x9   : > { %p6446_p4 = por %p11925_p1, %p42_p0  ;;  %p163_p7 = scmp.lt.s32.totalorder %s6375_s21, 3 }
   0xa   : > { %p6451_p6 = por %p156_p3, %p42_p0  ;;  %s6377_s27 = smov [#allocation6]  }
   0xb   : > { %s12421_s24 = scalar_select %p6446_p4, 1, 0 }
   0xc   : > { %s12422_s25 = scalar_select %p6451_p6, 1, 0 }
   0xd   : > { %p6456_p8 = pnand %p5375_p5, %p163_p7  ;;  %s181_s28 = sshll.u32 %s6377_s27, 4  ;;  %s182_s28 = int_to_ptr.vmem [resolvable:$true] %s181_s28 }
   0xe   : > { %s6470_s30 = sadd.s32 1, %s6375_s21   ;;  %s29_s6 = sadd.s32 1, %s6371_s20 }
   0xf   : > { %s12423_s26 = scalar_select %p6456_p8, 1, 0 }
  0x10   : > { %p6025_p9 = pneg %p6456_p8  ;;  %s26_s7 = ssub.s32 %s6375_s21, %s6470_s30 }
  0x11   : > { %s6264_s8 = scalar_lea.vmem %s182_s28, 1024  ;;  %p6272_p5 = scmp.lt.s32.totalorder %s182_s28, %s182_s28 }
  0x12   : > { %p6465_p11 = pnand %p6025_p9, %p11925_p1  ;;  %p6265_p13 = scmp.ne.s32.totalorder %s182_s28, %s6264_s8 }
  0x13   : > { %p6273_p7 = scmp.lt.s32.totalorder %s6264_s8, %s6264_s8 }
  0x14   : > { %p6255_p12 = pneg %p6465_p11 }
  0x15   : > { %p6274_p10 = por %p6273_p7, %p6272_p5 }
  0x16   : > { %p6267_p0 = pnand %p6265_p13, %p6255_p12 }
  0x18   : > { %p6268_p3 = pneg %p6267_p0 }
  0x1a   : > { %p6275_p2 = pnand %p6274_p10, %p6268_p3 }
  0x1c   : > { %6278 = shalt.err (!%p6275_p2)
}
  0x1d   : > { %s11926_s9 = smov 64   ;;  %s6379_s10 = smov 4  }
  0x1e   : > { %6028 = dma.hbm_to_vmem [thread:$0]  (!%p6465_p11), %s11922_s3, 1024, %s182_s28, [#allocation7], %s11926_s9, %s11926_s9, %s6379_s10  }
  0x1f   : > { %p27_p2 = scmp.eq.s32.totalorder %s26_s7, 0  ;;  %p36_p9 = scmp.ne.s32.totalorder %s6371_s20, %s6367_s19 }
  0x20   : > { %p37_p10 = scmp.eq.s32.totalorder %s6375_s21, 0  ;;  %p6038_p12 = scmp.lt.s32.totalorder %s6375_s21, 2 }
  0x21   : > { %s6490_s13 = scalar_select %p27_p2, %s6371_s20, %s29_s6  }
  0x22   : > { %p38_p13 = por %p37_p10, %p36_p9  ;;  %p12425_p0 = scmp.eq.s32.totalorder %s6437_s22, 1 }
  0x23   : > { %s198_s15 = sand.u32 1, %s6371_s20   ;;  %s5612_s16 = sshll.u32 %s6375_s21, 11 }
  0x24   : > { %p6494_p3 = por %p12425_p0, %p36_p9  ;;  %s5378_s17 = sshll.u32 %s198_s15, 7 }
  0x25   : > { %s6503_s29 = scalar_lea.hbm %s11919_s0, %s5612_s16  ;;  %s202_s28 = scalar_lea.vmem [#allocation3], %s5378_s17 }
  0x26   : > { %s12426_s14 = scalar_select %p6494_p3, 1, 0 }
  0x27   : > { %s209_s6 = sshll.u32 %s202_s28, 4  ;;  %p6505_p11 = pnand %p6038_p12, %p38_p13  ;;  %s6509_s6 = int_to_ptr.vmem [resolvable:$true] %s209_s6 }
  0x28   : > { %s6511_s8 = scalar_lea.sflag [#allocation4], %s198_s15  ;;  %s6279_s11 = scalar_lea.hbm %s6503_s29, 2048 }
  0x29   : > { %p6280_p5 = scmp.ne.s32.totalorder %s6503_s29, %s6279_s11  ;;  %p6281_p7 = pneg %p6505_p11 }
  0x2a   : > { %s6284_s17 = scalar_lea.hbm %s11919_s0, 4096  ;;  %p6285_p10 = scmp.lt.s32.totalorder %s6503_s29, %s11919_s0 }
  0x2b   : > { %p6282_p2 = pnand %p6281_p7, %p6280_p5  ;;  %p6286_p12 = scmp.lt.s32.totalorder %s6284_s17, %s6279_s11 }
  0x2d   : > { %p6283_p9 = pneg %p6282_p2  ;;  %p6287_p13 = por %p6286_p12, %p6285_p10 }
  0x2f   : > { %p6288_p0 = pnand %p6287_p13, %p6283_p9 }
  0x31   : > { %6291 = shalt.err (!%p6288_p0)
}
  0x32   : > { %s6292_s15 = scalar_lea.vmem %s6509_s6, 2048  ;;  %s6380_s28 = smov [#allocation3]  }
  0x33   : > { %p6293_p1 = scmp.ne.s32.totalorder %s6509_s6, %s6292_s15  ;;  %s6297_s9 = sshll.u32 %s6380_s28, 4  ;;  %s6298_s9 = int_to_ptr.vmem [resolvable:$false] %s6297_s9 }
  0x34   : > { %s6299_s12 = scalar_lea.vmem %s6298_s9, 4096  ;;  %p6300_p2 = scmp.lt.s32.totalorder %s6509_s6, %s6298_s9 }
  0x35   : > { %p6295_p6 = pnand %p6293_p1, %p6281_p7  ;;  %p6301_p3 = scmp.lt.s32.totalorder %s6299_s12, %s6292_s15 }
  0x37   : > { %p6296_p5 = pneg %p6295_p6  ;;  %p6302_p4 = por %p6301_p3, %p6300_p2 }
  0x39   : > { %p6303_p8 = pnand %p6302_p4, %p6296_p5 }
  0x3b   : > { %6306 = shalt.err (!%p6303_p8)
}
  0x3c   : > { %s12428_s11 = smov 64   ;;  %p12429_p1 = scmp.ne.s32.totalorder %s12423_s26, 0 }
  0x3d   : > { %6032 = dma.hbm_to_vmem [thread:$0]  (!%p6505_p11), %s6503_s29, 2048, %s6509_s6, %s6511_s8, %s12428_s11, %s12428_s11, %s6379_s10  }
  0x3e   : > { %221 = sbr.rel (%p12429_p1) target bundleno = 1398 (0x576), region = 40 }
  0x43   : > { %s6538_s16 = sand.u32 1, %s6367_s19   ;;  %p12430_p4 = scmp.ne.s32.totalorder %s12421_s24, 0 }
  0x44   : > { %s5382_s9 = sshll.u32 %s6538_s16, 7  ;;  %s224_s17 = scalar_lea.sflag [#allocation4], %s6538_s16 }
  0x45   : > { %s6544_s7 = scalar_lea.vmem [#allocation3], %s5382_s9 }
  0x46   : > { %6350 = dma.done.wait (%p12430_p4), %s224_s17, 2048  }
  0x47   : > { %6352 = vsyncadd (%p12430_p4), %s224_s17, 4294965248  ;;  %p12431_p6 = scmp.eq.s32.totalorder %s6437_s22, 0 }
  0x49   : > { %6354 = dma.done.wait (%p12431_p6), [#allocation7], 1024   ;;  %p12432_p8 = pmov %p12431_p6 }
  0x4a   : > { %v6080_v0 = vld [vmem:[%s11920_s1 + $0x18] sm:$0xff]   ;;  %v6081_v1 = vld [vmem:[%s11920_s1 + $0x10] sm:$0xff]   ;;  %v6082_v2 = vld [vmem:[%s11920_s1 + $0x8] sm:$0xff]   ;;  %vm410_vm0 = vcmask 523264   ;;  %v780_v21 = vlaneseq  ;;  %s6381_s17 = smov 32   ;;  %s6383_s26 = smov 96  }
  0x4b   : > { %6356 = vsyncadd (%p12432_p8), [#allocation7], 4294966272  ;;  %5913 = vmatprep.subr.bf16.mxu0 %v6080_v0  ;;  %v6084_v3 = vld [vmem:[%s6544_s7] sm:$0xff]   ;;  %v6085_v5 = vld [vmem:[%s6544_s7 + $0x8] sm:$0xff]   ;;  %s11761_s6 = scalar_lea.vmem [#allocation8], %s5382_s9  ;;  %s5773_s9 = sshll.u32 %s6437_s22, 11 }
  0x4c   : > { %5914 = vmatpush3.bf16.msra.mxu0 %v6080_v0  ;;  %5921 = vmatprep.mubr.msk.bf16.mxu0 %vm410_vm0, %v6084_v3  ;;  %v6083_v4 = vld [vmem:[%s11920_s1] sm:$0xff]   ;;  %v6086_v6 = vld [vmem:[%s6544_s7 + $0x10] sm:$0xff]   ;;  %v6087_v7 = vld [vmem:[%s6544_s7 + $0x18] sm:$0xff]   ;;  %v6606_v25 = vshrl.u32 %v780_v21, 7  ;;  %v12453_v0 = vmov 0  ;;  %s5291_s24 = sshll.u32 %s11761_s6, 4  ;;  %s11870_s27 = scalar_lea.hbm %s11924_s5, %s5773_s9  ;;  %s11873_s24 = int_to_ptr.vmem [resolvable:$true] %s5291_s24 }
  0x4d   : > { %5915 = vmatprep.subr.bf16.mxu0 %v6081_v1  ;;  %v6088_v8 = vld [vmem:[%s6544_s7 + $0x20] sm:$0xff]   ;;  %v6089_v9 = vld [vmem:[%s6544_s7 + $0x28] sm:$0xff]   ;;  %v6090_v10 = vld [vmem:[%s6544_s7 + $0x30] sm:$0xff]   ;;  %s5278_s22 = scalar_lea.sflag [#allocation5], %s6538_s16  ;;  %s6307_s15 = scalar_lea.vmem %s11873_s24, 2048 }
  0x4e   : > { %v6091_v11 = vld [vmem:[%s6544_s7 + $0x38] sm:$0xff]   ;;  %v6092_v12 = vld [vmem:[%s6544_s7 + $0x40] sm:$0xff]   ;;  %v6093_v13 = vld [vmem:[%s6544_s7 + $0x48] sm:$0xff]   ;;  %v6617_v32 = vadd.s32 8, %v6606_v25  ;;  %v6628_v38 = vadd.s32 16, %v6606_v25  ;;  %v6632_v41 = vadd.s32 24, %v6606_v25  ;;  %p6308_p3 = scmp.ne.s32.totalorder %s11873_s24, %s6307_s15 }
  0x4f   : > { %v6094_v14 = vld [vmem:[%s6544_s7 + $0x50] sm:$0xff]   ;;  %v6095_v15 = vld [vmem:[%s6544_s7 + $0x58] sm:$0xff]   ;;  %v6096_v16 = vld [vmem:[%s6544_s7 + $0x60] sm:$0xff]   ;;  %v6635_v42 = vadd.s32 32, %v6606_v25  ;;  %v6642_v45 = vadd.s32 40, %v6606_v25  ;;  %v6645_v47 = vadd.s32 48, %v6606_v25 }
  0x50   : > { %5916 = vmatpush3.bf16.msra.mxu0 %v6081_v1  ;;  %v6097_v17 = vld [vmem:[%s6544_s7 + $0x68] sm:$0xff]   ;;  %v6098_v18 = vld [vmem:[%s6544_s7 + $0x70] sm:$0xff]   ;;  %v6099_v19 = vld [vmem:[%s6544_s7 + $0x78] sm:$0xff]   ;;  %v824_v39 = vand.u32 15, %v6617_v32  ;;  %v6648_v48 = vadd.s32 56, %v6606_v25  ;;  %v6651_v49 = vadd.s32 64, %v6606_v25 }
  0x51   : > { %5917 = vmatprep.subr.bf16.mxu0 %v6082_v2  ;;  %v6601_v20 = vld [vmem:[%s11921_s2] ss:$0 sm:$0xff]  ;;  %v6654_v50 = vadd.s32 72, %v6606_v25  ;;  %v6661_v53 = vadd.s32 80, %v6606_v25  ;;  %v11931_v54 = vand.u32 15, %v6628_v38  ;;  %v11930_v55 = vand.u32 15, %v6632_v41 }
  0x52   : > { %v6666_v57 = vadd.s32 88, %v6606_v25  ;;  %v6669_v58 = vadd.s32 96, %v6606_v25  ;;  %v6672_v59 = vadd.s32 104, %v6606_v25  ;;  %v6675_v60 = vadd.s32 112, %v6606_v25  ;;  %s6382_s7 = smov 64   ;;  %p13969_p11 = scmp.ne.s32.totalorder %s12426_s14, 0 }
  0x53   : > { %v6678_v61 = vadd.s32 120, %v6606_v25  ;;  %v6703_v21 = vadd.s32 136, %v6606_v25  ;;  %vm11972_vm1 = vcmp.lt.s32.totalorder %v6606_v25, 7  ;;  %vm11976_vm2 = vcmp.lt.s32.totalorder %v6606_v25, 1  ;;  %s6384_s28 = smov [#allocation8]  }
  0x54   : > { %5918 = vmatpush3.bf16.msra.mxu0 %v6082_v2  ;;  %vm11980_vm3 = vcmp.lt.s32.totalorder %v6606_v25, 6  ;;  %vm6748_vm4 = vcmp.lt.s32.totalorder %v824_v39, 15  ;;  %vm11967_vm5 = vcmp.lt.s32.totalorder %v6606_v25, 2  ;;  %vm6771_vm6 = vcmp.ge.s32.totalorder %v11931_v54, 1  ;;  %p6309_p7 = pnand %p6308_p3, %p13969_p11  ;;  %s6311_s12 = sshll.u32 %s6384_s28, 4  ;;  %s6312_s12 = int_to_ptr.vmem [resolvable:$false] %s6311_s12 }
  0x55   : > { %5919 = vmatprep.subr.bf16.mxu0 %v6083_v4  ;;  %12434 = vst [vmem:[#allocation13_spill] sm:$0xff] %v6703_v21  ;;  %vm6792_vm7 = vcmp.lt.s32.totalorder %v11930_v55, 15  ;;  %vm6811_vm8 = vcmp.lt.s32.totalorder %v824_v39, 14  ;;  %v12461_v54 = vmov 0  ;;  %s6313_s11 = scalar_lea.vmem %s6312_s12, 4096  ;;  %p6314_p10 = scmp.lt.s32.totalorder %s11873_s24, %s6312_s12 }
  0x56   : > { %v12454_v0 = vsel %vm6792_vm7, 4294967295, %v12453_v0  ;;  %p6310_p9 = pneg %p6309_p7  ;;  %p6315_p12 = scmp.lt.s32.totalorder %s6313_s11, %s6307_s15 }
  0x57   : > { %12455 = vst [vmem:[#allocation28_spill] sm:$0xff] %v12454_v0 }
  0x58   : > { %5920 = vmatpush3.bf16.msra.mxu0 %v6083_v4  ;;  %p6316_p13 = por %p6315_p12, %p6314_p10 }
  0x5a   : > { %p6317_p0 = pnand %p6316_p13, %p6310_p9 }
  0x5b   : > { %5922 = vmatmul.mubr.msk.bf16.vlgmr.msra.gmra.mxu0 %vm410_vm0, %v6085_v5 }
  0x5c   : > { %5925 = vmatprep.mubr.msk.bf16.mxu0 %vm410_vm0, %v6086_v6 }
  0x63   : > { %5926 = vmatmul.mubr.msk.bf16.gmra.mxu0 %vm410_vm0, %v6087_v7 }
  0x64   : > { %5929 = vmatprep.mubr.msk.bf16.mxu0 %vm410_vm0, %v6088_v8 }
  0x6b   : > { %5930 = vmatmul.mubr.msk.bf16.gmra.mxu0 %vm410_vm0, %v6089_v9 }
  0x6c   : > { %5933 = vmatprep.mubr.msk.bf16.mxu0 %vm410_vm0, %v6090_v10 }
  0x73   : > { %5934 = vmatmul.mubr.msk.bf16.gmra.mxu0 %vm410_vm0, %v6091_v11 }
  0x74   : > { %5937 = vmatprep.mubr.msk.bf16.mxu0 %vm410_vm0, %v6092_v12  ;;  %v6694_v12 = vadd.s32 128, %v6606_v25 }
  0x76   : > { %12433 = vst [vmem:[#allocation12_spill] sm:$0xff] %v6694_v12 }
  0x7b   : > { %5938 = vmatmul.mubr.msk.bf16.gmra.mxu0 %vm410_vm0, %v6093_v13 }
  0x7c   : > { %5941 = vmatprep.mubr.msk.bf16.mxu0 %vm410_vm0, %v6094_v14 }
  0x83   : > { %5942 = vmatmul.mubr.msk.bf16.gmra.mxu0 %vm410_vm0, %v6095_v15 }
  0x84   : > { %5945 = vmatprep.mubr.msk.bf16.mxu0 %vm410_vm0, %v6096_v16 }
  0x8b   : > { %5946 = vmatmul.mubr.msk.bf16.gmra.mxu0 %vm410_vm0, %v6097_v17 }
  0x8c   : > { %5949 = vmatprep.mubr.msk.bf16.mxu0 %vm410_vm0, %v6098_v18 }
  0x93   : > { %5950 = vmatmul.mubr.msk.bf16.gmra.mxu0 %vm410_vm0, %v6099_v19 }
 0x11b   : > { %v5923_v22 = vpop.f32.mrf.mxu0 }
 0x11c   : > { %v6604_v23 = vadd.f32 %v5923_v22, %v6601_v20  ;;  %v6706_v22 = vadd.s32 144, %v6606_v25 }
 0x11d   : > { %v493_v24 = vpop.f32.mrf.mxu0 }
 0x11e   : > { %v622_v26 = vmul.f32 0.5, %v6604_v23  ;;  %v6610_v27 = vadd.f32 %v6601_v20, %v493_v24  ;;  %12435 = vst [vmem:[#allocation14_spill] sm:$0xff] %v6706_v22 }
 0x11f   : > { %v5924_v28 = vpop.f32.mrf.mxu0 }
 0x120   : > { %6124 = vtanh.f32 %v622_v26  ;;  %v620_v29 = vmul.f32 0.5, %v6610_v27  ;;  %v6614_v30 = vadd.f32 %v5924_v28, %v6601_v20  ;;  %v6712_v28 = vadd.s32 152, %v6606_v25 }
 0x121   : > { %v496_v31 = vpop.f32.mrf.mxu0 }
 0x122   : > { %6126 = vtanh.f32 %v620_v29  ;;  %v623_v33 = vmul.f32 0.5, %v6614_v30  ;;  %v6621_v34 = vadd.f32 %v6601_v20, %v496_v31  ;;  %12436 = vst [vmem:[#allocation15_spill] sm:$0xff] %v6712_v28  ;;  %v6715_v29 = vadd.s32 160, %v6606_v25 }
 0x123   : > { %v5927_v35 = vpop.f32.mrf.mxu0 }
 0x124   : > { %6128 = vtanh.f32 %v623_v33  ;;  %v621_v36 = vmul.f32 0.5, %v6621_v34  ;;  %v6625_v37 = vadd.f32 %v5927_v35, %v6601_v20  ;;  %12437 = vst [vmem:[#allocation16_spill] sm:$0xff] %v6715_v29 }
 0x125   : > { %v509_v40 = vpop.f32.mrf.mxu0 }
 0x126   : > { %6130 = vtanh.f32 %v621_v36  ;;  %v626_v43 = vmul.f32 0.5, %v6625_v37  ;;  %v6639_v44 = vadd.f32 %v6601_v20, %v509_v40 }
 0x127   : > { %v5928_v46 = vpop.f32.mrf.mxu0 }
 0x128   : > { %6132 = vtanh.f32 %v626_v43  ;;  %v624_v51 = vmul.f32 0.5, %v6639_v44  ;;  %v6658_v52 = vadd.f32 %v5928_v46, %v6601_v20  ;;  %v6720_v43 = vadd.s32 168, %v6606_v25 }
 0x129   : > { %v512_v56 = vpop.f32.mrf.mxu0 }
 0x12a   : > { %6134 = vtanh.f32 %v624_v51  ;;  %v627_v63 = vmul.f32 0.5, %v6658_v52  ;;  %v6689_v8 = vadd.f32 %v6601_v20, %v512_v56  ;;  %12438 = vst [vmem:[#allocation17_spill] sm:$0xff] %v6720_v43  ;;  %v6726_v56 = vadd.s32 176, %v6606_v25 }
 0x12b   : > { %v5931_v2 = vpop.f32.mrf.mxu0 }
 0x12c   : > { %6136 = vtanh.f32 %v627_v63  ;;  %v6700_v18 = vadd.f32 %v5931_v2, %v6601_v20  ;;  %v625_v35 = vmul.f32 0.5, %v6689_v8  ;;  %12439 = vst [vmem:[#allocation18_spill] sm:$0xff] %v6726_v56  ;;  %v6729_v63 = vadd.s32 184, %v6606_v25 }
 0x12d   : > { %v6125_v7 = vpop.eup %6124  ;;  %v525_v9 = vpop.f32.mrf.mxu0 }
 0x12e   : > { %v686_v13 = vmul.f32 0.5, %v6125_v7  ;;  %v6709_v26 = vadd.f32 %v6601_v20, %v525_v9  ;;  %12440 = vst [vmem:[#allocation19_spill] sm:$0xff] %v6729_v63  ;;  %v630_v7 = vmul.f32 0.5, %v6700_v18  ;;  %6138 = vtanh.f32 %v625_v35 }
 0x12f   : > { %v6127_v17 = vpop.eup %6126  ;;  %v5932_v19 = vpop.f32.mrf.mxu0 }
 0x130   : > { %v684_v24 = vmul.f32 0.5, %v6127_v17  ;;  %v718_v33 = vadd.f32 0.5, %v686_v13  ;;  %v6723_v51 = vadd.f32 %v5932_v19, %v6601_v20  ;;  %v6735_v17 = vadd.s32 192, %v6606_v25 }
 0x131   : > { %v6129_v31 = vpop.eup %6128  ;;  %v528_v36 = vpop.f32.mrf.mxu0  ;;  %v628_v19 = vmul.f32 0.5, %v6709_v26  ;;  %6140 = vtanh.f32 %v630_v7  ;;  %v6776_v7 = vadd.s32 200, %v6606_v25 }
 0x132   : > { %v687_v46 = vmul.f32 0.5, %v6129_v31  ;;  %12441 = vst [vmem:[#allocation20_spill] sm:$0xff] %v6735_v17  ;;  %v716_v31 = vadd.f32 0.5, %v684_v24  ;;  %v6742_v14 = vmul.f32 %v718_v33, %v6604_v23  ;;  %v12443_v24 = vmov 0 }
 0x133   : > { %v6131_v2 = vpop.eup %6130  ;;  %v5935_v13 = vpop.f32.mrf.mxu0  ;;  %v12444_v24 = vsel %vm6748_vm4, 4294967295, %v12443_v24  ;;  %v631_v16 = vmul.f32 0.5, %v6723_v51  ;;  %6142 = vtanh.f32 %v628_v19 }
 0x134   : > { %12442 = vst [vmem:[#allocation21_spill] sm:$0xff] %v6742_v14  ;;  %v719_v11 = vadd.f32 0.5, %v687_v46  ;;  %v685_v9 = vmul.f32 0.5, %v6131_v2  ;;  %12445 = vst [vmem:[#allocation22_spill] sm:$0xff] %v12444_v24  ;;  %v6758_v2 = vadd.f32 %v6601_v20, %v528_v36  ;;  %v6762_v6 = vmul.f32 %v716_v31, %v6610_v27 }
 0x135   : > { %v6133_v15 = vpop.eup %6132  ;;  %v1392_v33 = vrot.slane %v6742_v14, 1  ;;  %v1553_v23 = vrot.slane %v6742_v14, 7  ;;  %v541_v36 = vpop.f32.mrf.mxu0  ;;  %v6779_v27 = vadd.s32 208, %v6606_v25  ;;  %6144 = vtanh.f32 %v631_v16 }
 0x136   : > { %v690_v46 = vmul.f32 0.5, %v6133_v15  ;;  %12446 = vst [vmem:[#allocation23_spill] sm:$0xff] %v6762_v6  ;;  %v6765_v5 = vmul.f32 %v719_v11, %v6614_v30  ;;  %v717_v40 = vadd.f32 0.5, %v685_v9  ;;  %v12448_v15 = vmov 0 }
 0x137   : > { %v6135_v35 = vpop.eup %6134  ;;  %v12449_v15 = vsel %vm6771_vm6, 4294967295, %v12448_v15  ;;  %12451 = vst [vmem:[#allocation26_spill] sm:$0xff] %v6779_v27  ;;  %v1714_v30 = vrot.slane %v6742_v14, 2  ;;  %v629_v4 = vmul.f32 0.5, %v6758_v2  ;;  %v6797_v16 = vadd.f32 %v5935_v13, %v6601_v20  ;;  %v5936_v62 = vpop.f32.mrf.mxu0 }
 0x138   : > { %12447 = vst [vmem:[#allocation24_spill] sm:$0xff] %v6765_v5  ;;  %12450 = vst [vmem:[#allocation25_spill] sm:$0xff] %v12449_v15  ;;  %v688_v9 = vmul.f32 0.5, %v6135_v35  ;;  %v1393_v31 = vrot.slane %v6765_v5, 1  ;;  %v6785_v19 = vmul.f32 %v717_v40, %v6621_v34  ;;  %v722_v10 = vadd.f32 0.5, %v690_v46 }
 0x139   : > { %v6137_v3 = vpop.eup %6136  ;;  %v6800_v34 = vadd.f32 %v6601_v20, %v541_v36  ;;  %v12456_v13 = vmov 0  ;;  %v12460_v11 = vand.u32 15, %v6628_v38  ;;  %6146 = vtanh.f32 %v629_v4  ;;  %v6885_v12 = vpop.f32.mrf.mxu0 }
 0x13a   : > { %12452 = vst [vmem:[#allocation27_spill] sm:$0xff] %v6785_v19  ;;  %v1391_v46 = vrot.slane %v6785_v19, 1  ;;  %v1552_v1 = vrot.slane %v6785_v19, 7  ;;  %v12457_v13 = vsel %vm6811_vm8, 4294967295, %v12456_v13  ;;  %v720_v36 = vadd.f32 0.5, %v688_v9 }
 0x13b   : > { %12458 = vst [vmem:[#allocation29_spill] sm:$0xff] %v12457_v13  ;;  %v1451_v35 = vsel %vm11972_vm1, %v1392_v33, %v1393_v31  ;;  %v6820_v17 = vmul.f32 %v722_v10, %v6625_v37  ;;  %v691_v55 = vmul.f32 0.5, %v6137_v3  ;;  %vm6824_vm9 = vcmp.ge.s32.totalorder %v12460_v11, 2 }
 0x13c   : > { %v1452_v40 = vsel %vm11972_vm1, %v1391_v46, %v1392_v33  ;;  %v12462_v54 = vsel %vm6824_vm9, 4294967295, %v12461_v54  ;;  %v6829_v32 = vmul.f32 0.5, %v6797_v16  ;;  %v6832_v39 = vmul.f32 0.5, %v6800_v34 }
 0x13d   : > { %12459 = vst [vmem:[#allocation30_spill] sm:$0xff] %v6820_v17  ;;  %12463 = vst [vmem:[#allocation31_spill] sm:$0xff] %v12462_v54  ;;  %v6835_v9 = vadd.f32 %v5936_v62, %v6601_v20  ;;  %v12464_v37 = vrot.slane %v6765_v5, 7  ;;  %v12465_v38 = vrot.slane %v6765_v5, 2  ;;  %v1456_v10 = vsel %vm6748_vm4, %v1452_v40, -inf  ;;  %v6139_v62 = vpop.eup %6138 }
 0x13e   : > { %v1613_v33 = vsel %vm11976_vm2, %v1552_v1, %v1553_v23  ;;  %v1489_v11 = vmax.f32 %v6742_v14, %v1451_v35  ;;  %v12466_v63 = vrot.slane %v6765_v5, 6  ;;  %v6864_v56 = vmul.f32 %v720_v36, %v6639_v44  ;;  %v6141_v28 = vpop.eup %6140 }
 0x13f   : > { %v6841_v3 = vsel %vm11976_vm2, %v1553_v23, %v12464_v37  ;;  %v6847_v4 = vsel %vm11980_vm3, %v1714_v30, %v12465_v38  ;;  %v12467_v37 = vrot.slane %v6742_v14, 6  ;;  %v1713_v38 = vrot.slane %v6785_v19, 2 }
 0x140   : > { %12468 = vst [vmem:[#allocation32_spill] sm:$0xff] %v6864_v56  ;;  %v12469_v40 = vand.u32 15, %v6632_v41  ;;  %v12470_v23 = vmov 0  ;;  %v12473_v35 = vrot.slane %v6762_v6, 1  ;;  %v723_v43 = vadd.f32 0.5, %v691_v55  ;;  %v6143_v22 = vpop.eup %6142 }
 0x141   : > { %v6860_v29 = vsel %vm11967_vm5, %v12467_v37, %v12466_v63  ;;  %v1874_v63 = vrot.slane %v6785_v19, 6  ;;  %v1396_v37 = vrot.slane %v6820_v17, 1  ;;  %v1488_v44 = vmax.f32 %v6785_v19, %v1456_v10 }
 0x142   : > { %vm6868_vm10 = vcmp.lt.s32.totalorder %v12469_v40, 14  ;;  %v6876_v24 = vsel %vm11972_vm1, %v12473_v35, %v1391_v46  ;;  %v1618_v41 = vsel %vm6771_vm6, %v1613_v33, -inf  ;;  %v1394_v40 = vrot.slane %v6864_v56, 1 }
 0x143   : > { %v12471_v23 = vsel %vm6868_vm10, 4294967295, %v12470_v23  ;;  %12474 = vst [vmem:[#allocation34_spill] sm:$0xff] %v6876_v24  ;;  %v12475_v46 = vrot.slane %v6762_v6, 7  ;;  %v6893_v21 = vmul.f32 %v723_v43, %v6658_v52  ;;  %v689_v10 = vmul.f32 0.5, %v6139_v62 }
 0x144   : > { %12472 = vst [vmem:[#allocation33_spill] sm:$0xff] %v12471_v23  ;;  %v12477_v33 = vand.u32 15, %v6642_v45  ;;  %v12478_v36 = vmov 0  ;;  %v12481_v19 = vand.u32 15, %v6645_v47  ;;  %v12482_v15 = vmov 0 }
 0x145   : > { %v1614_v35 = vsel %vm11976_vm2, %v12475_v46, %v1552_v1  ;;  %12476 = vst [vmem:[#allocation35_spill] sm:$0xff] %v6893_v21  ;;  %v1774_v52 = vsel %vm11980_vm3, %v1713_v38, %v1714_v30  ;;  %v1450_v43 = vsel %vm11972_vm1, %v1393_v31, %v1394_v40  ;;  %v6145_v46 = vpop.eup %6144  ;;  %v12485_v55 = vrot.slane %v6762_v6, 2 }
 0x146   : > { %vm6897_vm11 = vcmp.lt.s32.totalorder %v12477_v33, 15  ;;  %vm6903_vm12 = vcmp.ge.s32.totalorder %v12481_v19, 1  ;;  %v1650_v33 = vmax.f32 %v1489_v11, %v1618_v41  ;;  %v12487_v27 = vrot.slane %v6742_v14, 6 }
 0x147   : > { %v12479_v36 = vsel %vm6897_vm11, 4294967295, %v12478_v36  ;;  %v12483_v15 = vsel %vm6903_vm12, 4294967295, %v12482_v15  ;;  %v6918_v19 = vsel %vm11980_vm3, %v12485_v55, %v1713_v38  ;;  %v1458_v30 = vsel %vm6792_vm7, %v1450_v43, -inf  ;;  %v6941_v43 = vpop.f32.mrf.mxu0 }
 0x148   : > { %12480 = vst [vmem:[#allocation36_spill] sm:$0xff] %v12479_v36  ;;  %12484 = vst [vmem:[#allocation37_spill] sm:$0xff] %v12483_v15  ;;  %v1935_v1 = vsel %vm11967_vm5, %v1874_v63, %v12487_v27  ;;  %v12488_v31 = vand.u32 15, %v6635_v42  ;;  %v12489_v62 = vmov 0  ;;  %v12493_v41 = vmov 0 }
 0x149   : > { %12486 = vst [vmem:[#allocation38_spill] sm:$0xff] %v6918_v19  ;;  %v1649_v38 = vmax.f32 %v1488_v44, %v1614_v35  ;;  %v1555_v55 = vrot.slane %v6864_v56, 7  ;;  %v12496_v0 = vrot.slane %v6762_v6, 6  ;;  %v692_v19 = vmul.f32 0.5, %v6143_v22 }
 0x14a   : > { %vm6928_vm13 = vcmp.ge.s32.totalorder %v12488_v31, 1  ;;  %v12492_v11 = vmov %v12488_v31  ;;  %v1778_v31 = vsel %vm6811_vm8, %v1774_v52, -inf  ;;  %v1879_v44 = vrot.slane %v6820_v17, 6 }
 0x14b   : > { %v12490_v62 = vsel %vm6928_vm13, 4294967295, %v12489_v62  ;;  %vm6934_vm14 = vcmp.ge.s32.totalorder %v12492_v11, 2  ;;  %v6949_v42 = vsel %vm11967_vm5, %v12496_v0, %v1874_v63  ;;  %v721_v11 = vadd.f32 0.5, %v689_v10 }
 0x14c   : > { %12491 = vst [vmem:[#allocation39_spill] sm:$0xff] %v12490_v62  ;;  %v12494_v41 = vsel %vm6934_vm14, 4294967295, %v12493_v41  ;;  %v1490_v35 = vmax.f32 %v6765_v5, %v1458_v30  ;;  %v12497_v27 = vrot.slane %v6864_v56, 2  ;;  %v12498_v14 = vrot.slane %v6765_v5, 2 }
 0x14d   : > { %12495 = vst [vmem:[#allocation40_spill] sm:$0xff] %v12494_v41  ;;  %v694_v52 = vmul.f32 0.5, %v6141_v28  ;;  %v1811_v24 = vmax.f32 %v1650_v33, %v6847_v4  ;;  %v1940_v0 = vsel %vm6824_vm9, %v1935_v1, -inf  ;;  %v12499_v63 = vrot.slane %v6893_v21, 1 }
 0x14e   : > { %v1772_v13 = vsel %vm11980_vm3, %v12498_v14, %v12497_v27  ;;  %v6967_v10 = vmul.f32 %v721_v11, %v6689_v8  ;;  %v6969_v30 = vmax.f32 %v1649_v38, %v1778_v31  ;;  %v12502_v6 = vrot.slane %v6765_v5, 7  ;;  %v6989_v27 = vpop.f32.mrf.mxu0  ;;  %v6147_v31 = vpop.eup %6146 }
 0x14f   : > { %v1447_v22 = vsel %vm11972_vm1, %v1396_v37, %v12499_v63  ;;  %v12503_v28 = vrot.slane %v6864_v56, 6  ;;  %v12504_v4 = vrot.slane %v6765_v5, 6  ;;  %v12505_v33 = vand.u32 15, %v6642_v45 }
 0x150   : > { %12500 = vst [vmem:[#allocation41_spill] sm:$0xff] %v6967_v10  ;;  %12501 = vst [vmem:[#allocation42_spill] sm:$0xff] %v6969_v30  ;;  %v1611_v14 = vsel %vm11976_vm2, %v12502_v6, %v1555_v55  ;;  %v12506_v8 = vmov 0  ;;  %v724_v38 = vadd.f32 0.5, %v692_v19  ;;  %v1780_v6 = vsel %vm6868_vm10, %v1772_v13, -inf }
 0x151   : > { %v6981_v1 = vsel %vm11967_vm5, %v12504_v4, %v12503_v28  ;;  %vm6985_vm15 = vcmp.lt.s32.totalorder %v12505_v33, 14  ;;  %v1395_v63 = vrot.slane %v6967_v10, 1  ;;  %v1556_v28 = vrot.slane %v6967_v10, 7 }
 0x152   : > { %v12507_v8 = vsel %vm6985_vm15, 4294967295, %v12506_v8  ;;  %v12509_v4 = vand.u32 15, %v6645_v47  ;;  %v12510_v45 = vmov 0  ;;  %v1651_v19 = vmax.f32 %v1490_v35, %v6841_v3 }
 0x153   : > { %12508 = vst [vmem:[#allocation43_spill] sm:$0xff] %v12507_v8  ;;  %v1493_v33 = vmax.f32 %v6820_v17, %v1447_v22  ;;  %v726_v5 = vadd.f32 0.5, %v694_v52  ;;  %v12513_v54 = vand.u32 15, %v6648_v48  ;;  %v12514_v13 = vmov 0  ;;  %v7027_v22 = vpop.f32.mrf.mxu0 }
 0x154   : > { %vm6998_vm0 = vcmp.ge.s32.totalorder %v12509_v4, 2  ;;  %v695_v11 = vmul.f32 0.5, %v6145_v46  ;;  %v1448_v23 = vsel %vm11972_vm1, %v1395_v63, %v1396_v37  ;;  %v1449_v47 = vsel %vm11972_vm1, %v1394_v40, %v1395_v63 }
 0x155   : > { %v12511_v45 = vsel %vm6998_vm0, 4294967295, %v12510_v45  ;;  %vm7006_vm5 = vcmp.lt.s32.totalorder %v12513_v54, 15  ;;  %v12517_v4 = vrot.slane %v6820_v17, 7  ;;  %v1717_v35 = vrot.slane %v6967_v10, 2 }
 0x156   : > { %12512 = vst [vmem:[#allocation44_spill] sm:$0xff] %v12511_v45  ;;  %v12515_v13 = vsel %vm7006_vm5, 4294967295, %v12514_v13  ;;  %v1460_v54 = vsel %vm6897_vm11, %v1448_v23, -inf  ;;  %v1491_v52 = vmax.f32 %v6864_v56, %v1449_v47  ;;  %v7025_v37 = vmul.f32 %v724_v38, %v6709_v26 }
 0x157   : > { %12516 = vst [vmem:[#allocation45_spill] sm:$0xff] %v12515_v13  ;;  %v1609_v3 = vsel %vm11976_vm2, %v1556_v28, %v12517_v4  ;;  %v1719_v40 = vrot.slane %v6893_v21, 2  ;;  %v1492_v4 = vmax.f32 %v6967_v10, %v1460_v54  ;;  %v1878_v30 = vrot.slane %v6967_v10, 6 }
 0x158   : > { %v1622_v46 = vsel %vm6903_vm12, %v1609_v3, -inf  ;;  %12518 = vst [vmem:[#allocation46_spill] sm:$0xff] %v7025_v37  ;;  %v7033_v36 = vmax.f32 %v1811_v24, %v1940_v0  ;;  %v1620_v23 = vsel %vm6928_vm13, %v1611_v14, -inf  ;;  %v1812_v47 = vmax.f32 %v1651_v19, %v1780_v6 }
 0x159   : > { %v1942_v26 = vsel %vm6934_vm14, %v6981_v1, -inf  ;;  %v12520_v38 = vrot.slane %v6893_v21, 7  ;;  %v12521_v3 = vrot.slane %v6820_v17, 7  ;;  %v1654_v54 = vmax.f32 %v1493_v33, %v1622_v46 }
 0x15a   : > { %12519 = vst [vmem:[#allocation47_spill] sm:$0xff] %v7033_v36  ;;  %v7049_v24 = vmul.f32 %v726_v5, %v6700_v18  ;;  %v12523_v0 = vand.u32 15, %v6651_v49  ;;  %v12524_v14 = vmov 0  ;;  %v727_v6 = vadd.f32 0.5, %v695_v11  ;;  %v7064_v5 = vpop.f32.mrf.mxu0 }
 0x15b   : > { %v7046_v63 = vsel %vm11976_vm2, %v12521_v3, %v12520_v38  ;;  %v1610_v1 = vsel %vm11976_vm2, %v1555_v55, %v1556_v28  ;;  %v1652_v19 = vmax.f32 %v1491_v52, %v1620_v23  ;;  %v12527_v10 = vrot.slane %v6820_v17, 2 }
 0x15c   : > { %12522 = vst [vmem:[#allocation48_spill] sm:$0xff] %v7049_v24  ;;  %vm7053_vm1 = vcmp.ge.s32.totalorder %v12523_v0, 1  ;;  %v1398_v33 = vrot.slane %v7025_v37, 1  ;;  %v12529_v11 = vrot.slane %v6893_v21, 6  ;;  %vm12530_vm9 = vcmp.lt.s32.totalorder %v6606_v25, 2 }
 0x15d   : > { %v12525_v14 = vsel %vm7053_vm1, 4294967295, %v12524_v14  ;;  %v1770_v38 = vsel %vm11980_vm3, %v1717_v35, %v12527_v10  ;;  %v12528_v18 = vmov %v12527_v10  ;;  %v1653_v28 = vmax.f32 %v1492_v4, %v1610_v1  ;;  %vm12531_vm2 = vmmov %vm12530_vm9 }
 0x15e   : > { %12526 = vst [vmem:[#allocation49_spill] sm:$0xff] %v12525_v14  ;;  %v1769_v46 = vsel %vm11980_vm3, %v12528_v18, %v1719_v40  ;;  %v7074_v55 = vsel %vm12530_vm9, %v1879_v44, %v12529_v11  ;;  %v1931_v52 = vsel %vm12531_vm2, %v1878_v30, %v1879_v44  ;;  %v7079_v10 = vmax.f32 %v1812_v47, %v6860_v29 }
 0x15f   : > { %v12532_v23 = vrot.slane %v6864_v56, 2  ;;  %v12533_v0 = vrot.slane %v6893_v21, 1  ;;  %vm12534_vm6 = vcmp.lt.s32.totalorder %v6606_v25, 7  ;;  %v693_v17 = vmul.f32 0.5, %v6147_v31 }
 0x160   : > { %v12535_v11 = vand.u32 15, %v6654_v50  ;;  %v12536_v4 = vmov 0  ;;  %v1782_v29 = vsel %vm6985_vm15, %v1770_v38, -inf  ;;  %v1815_v44 = vmax.f32 %v1654_v54, %v1769_v46 }
 0x161   : > { %v1771_v3 = vsel %vm11980_vm3, %v12532_v23, %v1717_v35  ;;  %v1446_v18 = vsel %vm12534_vm6, %v12533_v0, %v1398_v33  ;;  %v12539_v35 = vand.u32 15, %v6648_v48  ;;  %v12540_v1 = vmov 0 }
 0x162   : > { %vm7091_vm9 = vcmp.lt.s32.totalorder %v12535_v11, 15  ;;  %v7105_v31 = vmul.f32 %v727_v6, %v6723_v51  ;;  %v1813_v23 = vmax.f32 %v1652_v19, %v1771_v3  ;;  %v12544_v0 = vrot.slane %v6864_v56, 6 }
 0x163   : > { %v12537_v4 = vsel %vm7091_vm9, 4294967295, %v12536_v4  ;;  %vm7100_vm2 = vcmp.lt.s32.totalorder %v12539_v35, 14  ;;  %vm12545_vm6 = vcmp.lt.s32.totalorder %v6606_v25, 2  ;;  %v1944_v54 = vsel %vm6998_vm0, %v1931_v52, -inf  ;;  %v7120_v35 = vpop.f32.mrf.mxu0 }
 0x164   : > { %12538 = vst [vmem:[#allocation50_spill] sm:$0xff] %v12537_v4  ;;  %v12541_v1 = vsel %vm7100_vm2, 4294967295, %v12540_v1  ;;  %12543 = vst [vmem:[#allocation52_spill] sm:$0xff] %v7105_v31  ;;  %v1932_v11 = vsel %vm12545_vm6, %v12544_v0, %v1878_v30  ;;  %v1400_v38 = vrot.slane %v7049_v24, 1  ;;  %v12546_v48 = vand.u32 15, %v6661_v53 }
 0x165   : > { %12542 = vst [vmem:[#allocation51_spill] sm:$0xff] %v12541_v1  ;;  %v12547_v46 = vmov 0  ;;  %v1814_v51 = vmax.f32 %v1653_v28, %v1782_v29  ;;  %v1561_v6 = vrot.slane %v7049_v24, 7  ;;  %v1722_v19 = vrot.slane %v7049_v24, 2 }
 0x166   : > { %vm7116_vm3 = vcmp.ge.s32.totalorder %v12546_v48, 1  ;;  %v1462_v30 = vsel %vm7006_vm5, %v1446_v18, -inf  ;;  %v12550_v52 = vand.u32 15, %v6651_v49  ;;  %v12551_v3 = vmov 0 }
 0x167   : > { %v12548_v46 = vsel %vm7116_vm3, 4294967295, %v12547_v46  ;;  %v725_v47 = vadd.f32 0.5, %v693_v17  ;;  %6148 = vtanh.f32 %v6829_v32  ;;  %v7135_v28 = vmax.f32 %v1815_v44, %v1944_v54  ;;  %v7152_v44 = vpop.f32.mrf.mxu0 }
 0x168   : > { %12549 = vst [vmem:[#allocation53_spill] sm:$0xff] %v12548_v46  ;;  %vm7128_vm6 = vcmp.ge.s32.totalorder %v12550_v52, 2  ;;  %v12555_v29 = vrot.slane %v7025_v37, 7  ;;  %v12556_v56 = vrot.slane %v6893_v21, 7  ;;  %vm12557_vm8 = vcmp.lt.s32.totalorder %v6606_v25, 1 }
 0x169   : > { %v12552_v3 = vsel %vm7128_vm6, 4294967295, %v12551_v3  ;;  %12554 = vst [vmem:[#allocation55_spill] sm:$0xff] %v7135_v28  ;;  %v11992_v18 = vrot.slane %v7105_v31, 1  ;;  %6150 = vtanh.f32 %v6832_v39  ;;  %v7145_v52 = vmax.f32 %v1813_v23, %v1942_v26 }
 0x16a   : > { %12553 = vst [vmem:[#allocation54_spill] sm:$0xff] %v12552_v3  ;;  %v1607_v49 = vsel %vm12557_vm8, %v12556_v56, %v12555_v29  ;;  %v1494_v0 = vmax.f32 %v6893_v21, %v1462_v30  ;;  %v11994_v17 = vrot.slane %v7025_v37, 6  ;;  %v7150_v32 = vmul.f32 %v725_v47, %v6758_v2 }
 0x16b   : > { %12558 = vst [vmem:[#allocation56_spill] sm:$0xff] %v7145_v52  ;;  %v7154_v54 = vmax.f32 %v1814_v51, %v1932_v11  ;;  %v635_v48 = vmul.f32 0.5, %v6835_v9  ;;  %v7159_v56 = vadd.f32 %v6601_v20, %v6885_v12  ;;  %v7163_v39 = vadd.f32 %v6941_v43, %v6601_v20 }
 0x16c   : > { %12559 = vst [vmem:[#allocation57_spill] sm:$0xff] %v7150_v32  ;;  %v1624_v26 = vsel %vm7053_vm1, %v1607_v49, -inf  ;;  %v12560_v2 = vrot.slane %v7025_v37, 2  ;;  %vm12561_vm8 = vcmp.lt.s32.totalorder %v6606_v25, 6  ;;  %v1399_v23 = vrot.slane %v7150_v32, 1 }
 0x16d   : > { %v1560_v11 = vrot.slane %v7150_v32, 7  ;;  %v12562_v51 = vand.u32 15, %v6654_v50  ;;  %v12563_v12 = vmov 0  ;;  %vm12566_vm14 = vcmp.lt.s32.totalorder %v6606_v25, 7 }
 0x16e   : > { %v1768_v47 = vsel %vm12561_vm8, %v1719_v40, %v12560_v2  ;;  %v1443_v43 = vsel %vm12566_vm14, %v1400_v38, %v11992_v18  ;;  %6152 = vtanh.f32 %v635_v48  ;;  %v633_v40 = vmul.f32 0.5, %v7159_v56  ;;  %vm12567_vm8 = vmmov %vm12566_vm14 }
 0x16f   : > { %vm7175_vm4 = vcmp.lt.s32.totalorder %v12562_v51, 14  ;;  %v1655_v29 = vmax.f32 %v1494_v0, %v7046_v63  ;;  %v1444_v49 = vsel %vm12567_vm8, %v1399_v23, %v1400_v38  ;;  %vm12568_vm13 = vmmov %vm12567_vm8  ;;  %vm12569_vm10 = vcmp.lt.s32.totalorder %v6606_v25, 1  ;;  %v5944_v51 = vpop.f32.mrf.mxu0 }
 0x170   : > { %v12564_v12 = vsel %vm7175_vm4, 4294967295, %v12563_v12  ;;  %v1445_v50 = vsel %vm12568_vm13, %v1398_v33, %v1399_v23  ;;  %v1605_v2 = vsel %vm12569_vm10, %v1560_v11, %v1561_v6  ;;  %v12570_v18 = vrot.slane %v6893_v21, 6 }
 0x171   : > { %12565 = vst [vmem:[#allocation58_spill] sm:$0xff] %v12564_v12  ;;  %vm12571_vm14 = vcmp.lt.s32.totalorder %v6606_v25, 2  ;;  %v1464_v63 = vsel %vm7091_vm9, %v1444_v49, -inf  ;;  %v638_v38 = vmul.f32 0.5, %v7163_v39  ;;  %v7205_v33 = vadd.f32 %v6601_v20, %v6989_v27  ;;  %v576_v49 = vpop.f32.mrf.mxu0 }
 0x172   : > { %v7198_v48 = vsel %vm12571_vm14, %v12570_v18, %v11994_v17  ;;  %v1784_v0 = vsel %vm7100_vm2, %v1768_v47, -inf  ;;  %v1497_v23 = vmax.f32 %v7049_v24, %v1443_v43  ;;  %v1495_v30 = vmax.f32 %v7025_v37, %v1445_v50 }
 0x173   : > { %v1721_v21 = vrot.slane %v7150_v32, 2  ;;  %v12572_v18 = vand.u32 15, %v6661_v53  ;;  %v12573_v17 = vmov 0  ;;  %v1496_v27 = vmax.f32 %v7150_v32, %v1464_v63 }
 0x174   : > { %v1626_v41 = vsel %vm7116_vm3, %v1605_v2, -inf  ;;  %6154 = vtanh.f32 %v633_v40  ;;  %v1816_v47 = vmax.f32 %v1655_v29, %v1784_v0  ;;  %v1946_v43 = vsel %vm7128_vm6, %v7198_v48, -inf }
 0x175   : > { %vm7214_vm10 = vcmp.ge.s32.totalorder %v12572_v18, 2  ;;  %v12576_v50 = vrot.slane %v7105_v31, 7  ;;  %vm12577_vm13 = vcmp.lt.s32.totalorder %v6606_v25, 1  ;;  %v1882_v63 = vrot.slane %v7150_v32, 6  ;;  %v6149_v18 = vpop.eup %6148 }
 0x176   : > { %v12574_v17 = vsel %vm7214_vm10, 4294967295, %v12573_v17  ;;  %6156 = vtanh.f32 %v638_v38  ;;  %v636_v2 = vmul.f32 0.5, %v7205_v33  ;;  %v7236_v40 = vadd.f32 %v7027_v22, %v6601_v20  ;;  %vm12579_vm8 = vmmov %vm12577_vm13 }
 0x177   : > { %12575 = vst [vmem:[#allocation59_spill] sm:$0xff] %v12574_v17  ;;  %v7229_v53 = vsel %vm12577_vm13, %v1561_v6, %v12576_v50  ;;  %v12578_v29 = vrot.slane %v7025_v37, 7  ;;  %v1656_v0 = vmax.f32 %v1495_v30, %v1624_v26  ;;  %v1658_v6 = vmax.f32 %v1497_v23, %v1626_v41  ;;  %v6151_v26 = vpop.eup %6150 }
 0x178   : > { %vm12580_vm14 = vcmp.lt.s32.totalorder %v6606_v25, 6  ;;  %v12581_v32 = vrot.slane %v7105_v31, 2  ;;  %v12583_v22 = vand.u32 15, %v6666_v57  ;;  %v12584_v8 = vmov 0 }
 0x179   : > { %v1606_v48 = vsel %vm12579_vm8, %v12578_v29, %v1560_v11  ;;  %v1766_v50 = vsel %vm12580_vm14, %v1721_v21, %v1722_v19  ;;  %vm12582_vm13 = vmmov %vm12580_vm14  ;;  %6158 = vtanh.f32 %v636_v2  ;;  %v7256_v41 = vadd.f32 %v6601_v20, %v7064_v5  ;;  %v5947_v2 = vpop.f32.mrf.mxu0 }
 0x17a   : > { %v1765_v38 = vsel %vm12582_vm13, %v1722_v19, %v12581_v32  ;;  %v1657_v62 = vmax.f32 %v1496_v27, %v1606_v48  ;;  %vm7250_vm7 = vcmp.lt.s32.totalorder %v12583_v22, 15  ;;  %v12587_v11 = vrot.slane %v7105_v31, 6  ;;  %vm12591_vm14 = vmmov %vm12582_vm13 }
 0x17b   : > { %v12585_v8 = vsel %vm7250_vm7, 4294967295, %v12584_v8  ;;  %v12588_v30 = vrot.slane %v7049_v24, 6  ;;  %vm12589_vm8 = vcmp.lt.s32.totalorder %v6606_v25, 2  ;;  %v698_v32 = vmul.f32 0.5, %v6149_v18 }
 0x17c   : > { %12586 = vst [vmem:[#allocation60_spill] sm:$0xff] %v12585_v8  ;;  %v639_v23 = vmul.f32 0.5, %v7236_v40  ;;  %v7269_v27 = vadd.f32 %v7120_v35, %v6601_v20  ;;  %v7272_v5 = vmax.f32 %v1816_v47, %v7074_v55  ;;  %v12590_v29 = vrot.slane %v7025_v37, 2  ;;  %vm12593_vm13 = vmmov %vm12589_vm8 }
 0x17d   : > { %v7264_v19 = vsel %vm12589_vm8, %v12588_v30, %v12587_v11  ;;  %v1786_v22 = vsel %vm7175_vm4, %v1766_v50, -inf  ;;  %v696_v11 = vmul.f32 0.5, %v6151_v26  ;;  %v1819_v30 = vmax.f32 %v1658_v6, %v1765_v38  ;;  %v589_v26 = vpop.f32.mrf.mxu0 }
 0x17e   : > { %v1767_v48 = vsel %vm12591_vm14, %v12590_v29, %v1721_v21  ;;  %v12592_v1 = vrot.slane %v7049_v24, 6  ;;  %v7286_v55 = vadd.f32 %v6601_v20, %v7152_v44  ;;  %v1818_v47 = vmax.f32 %v1657_v62, %v1786_v22 }
 0x17f   : > { %v1817_v18 = vmax.f32 %v1656_v0, %v1767_v48  ;;  %v12594_v45 = vrot.slane %v7025_v37, 6  ;;  %v728_v29 = vadd.f32 0.5, %v696_v11  ;;  %v637_v50 = vmul.f32 0.5, %v7256_v41  ;;  %v6153_v0 = vpop.eup %6152 }
 0x180   : > { %v1927_v35 = vsel %vm12593_vm13, %v1882_v63, %v12592_v1  ;;  %v730_v6 = vadd.f32 0.5, %v698_v32  ;;  %6160 = vtanh.f32 %v639_v23  ;;  %v642_v38 = vmul.f32 0.5, %v7269_v27 }
 0x181   : > { %v1928_v21 = vsel %vm12589_vm8, %v12594_v45, %v1882_v63  ;;  %v7295_v1 = vadd.f32 %v5944_v51, %v6601_v20  ;;  %v1948_v62 = vsel %vm7214_vm10, %v1927_v35, -inf  ;;  %v7300_v44 = vmul.f32 %v728_v29, %v6800_v34 }
 0x182   : > { %v12596_v45 = vand.u32 15, %v6669_v58  ;;  %v12597_v63 = vmov 0  ;;  %v12600_v32 = vand.u32 15, %v6666_v57  ;;  %v12601_v23 = vmov 0 }
 0x183   : > { %12595 = vst [vmem:[#allocation61_spill] sm:$0xff] %v7300_v44  ;;  %v699_v51 = vmul.f32 0.5, %v6153_v0  ;;  %v7315_v48 = vadd.f32 %v6601_v20, %v576_v49  ;;  %v7317_v22 = vmax.f32 %v1817_v18, %v1946_v43  ;;  %v7319_v34 = vmax.f32 %v1819_v30, %v1948_v62  ;;  %v6155_v18 = vpop.eup %6154  ;;  %v5948_v62 = vpop.f32.mrf.mxu0 }
 0x184   : > { %vm7304_vm14 = vcmp.ge.s32.totalorder %v12596_v45, 1  ;;  %vm7310_vm13 = vcmp.lt.s32.totalorder %v12600_v32, 14  ;;  %v12606_v11 = vmov %v12596_v45  ;;  %v12607_v35 = vmov 0 }
 0x185   : > { %v12598_v63 = vsel %vm7304_vm14, 4294967295, %v12597_v63  ;;  %v12602_v23 = vsel %vm7310_vm13, 4294967295, %v12601_v23  ;;  %12604 = vst [vmem:[#allocation64_spill] sm:$0xff] %v7317_v22  ;;  %12605 = vst [vmem:[#allocation65_spill] sm:$0xff] %v7319_v34  ;;  %vm7323_vm8 = vcmp.ge.s32.totalorder %v12606_v11, 2  ;;  %v640_v57 = vmul.f32 0.5, %v7286_v55 }
 0x186   : > { %12599 = vst [vmem:[#allocation62_spill] sm:$0xff] %v12598_v63  ;;  %12603 = vst [vmem:[#allocation63_spill] sm:$0xff] %v12602_v23  ;;  %v12608_v35 = vsel %vm7323_vm8, 4294967295, %v12607_v35  ;;  %v7329_v29 = vadd.f32 %v5947_v2, %v6601_v20  ;;  %v7331_v45 = vmax.f32 %v1818_v47, %v1928_v21  ;;  %v12012_v49 = vrot.slane %v7300_v44, 1 }
 0x187   : > { %12609 = vst [vmem:[#allocation66_spill] sm:$0xff] %v12608_v35  ;;  %6162 = vtanh.f32 %v637_v50  ;;  %v7335_v43 = vadd.f32 %v6601_v20, %v589_v26  ;;  %v7338_v58 = vmul.f32 %v730_v6, %v6797_v16  ;;  %v731_v30 = vadd.f32 0.5, %v699_v51  ;;  %v6157_v16 = vpop.eup %6156 }
 0x188   : > { %12610 = vst [vmem:[#allocation67_spill] sm:$0xff] %v7331_v45  ;;  %6164 = vtanh.f32 %v642_v38  ;;  %v643_v0 = vmul.f32 0.5, %v7295_v1  ;;  %v12612_v2 = vrot.slane %v7105_v31, 1  ;;  %vm12613_vm15 = vcmp.lt.s32.totalorder %v6606_v25, 7  ;;  %v6159_v38 = vpop.eup %6158 }
 0x189   : > { %12611 = vst [vmem:[#allocation68_spill] sm:$0xff] %v7338_v58  ;;  %v641_v26 = vmul.f32 0.5, %v7315_v48  ;;  %v12614_v32 = vand.u32 15, %v6672_v59  ;;  %v12615_v51 = vmov 0  ;;  %6166 = vtanh.f32 %v640_v57 }
 0x18a   : > { %v1442_v47 = vsel %vm12613_vm15, %v12612_v2, %v12012_v49  ;;  %v646_v11 = vmul.f32 0.5, %v7329_v29  ;;  %v7362_v49 = vmul.f32 %v731_v30, %v6835_v9  ;;  %v697_v50 = vmul.f32 0.5, %v6155_v18  ;;  %v592_v9 = vpop.f32.mrf.mxu0 }
 0x18b   : > { %v1466_v6 = vsel %vm7250_vm7, %v1442_v47, -inf  ;;  %vm7355_vm11 = vcmp.lt.s32.totalorder %v12614_v32, 15  ;;  %v12619_v21 = vand.u32 15, %v6675_v60  ;;  %v12620_v47 = vmov 0 }
 0x18c   : > { %v12616_v51 = vsel %vm7355_vm11, 4294967295, %v12615_v51  ;;  %v1498_v2 = vmax.f32 %v7105_v31, %v1466_v6  ;;  %12618 = vst [vmem:[#allocation70_spill] sm:$0xff] %v7362_v49  ;;  %v7371_v32 = vmul.f32 0.5, %v7335_v43  ;;  %v1404_v57 = vrot.slane %v7338_v58, 1 }
 0x18d   : > { %12617 = vst [vmem:[#allocation69_spill] sm:$0xff] %v12616_v51  ;;  %vm7366_vm15 = vcmp.ge.s32.totalorder %v12619_v21, 1  ;;  %v1565_v24 = vrot.slane %v7338_v58, 7  ;;  %6168 = vtanh.f32 %v643_v0  ;;  %v7376_v6 = vadd.f32 %v5948_v62, %v6601_v20 }
 0x18e   : > { %v12621_v47 = vsel %vm7366_vm15, 4294967295, %v12620_v47  ;;  %v12623_v30 = vrot.slane %v7300_v44, 7  ;;  %v12624_v21 = vrot.slane %v7105_v31, 7  ;;  %vm12625_vm2 = vcmp.lt.s32.totalorder %v6606_v25, 1 }
 0x18f   : > { %12622 = vst [vmem:[#allocation71_spill] sm:$0xff] %v12621_v47  ;;  %v12626_v12 = vrot.slane %v7300_v44, 2  ;;  %v12627_v17 = vrot.slane %v7105_v31, 2  ;;  %vm12628_vm4 = vcmp.lt.s32.totalorder %v6606_v25, 6  ;;  %v702_v62 = vmul.f32 0.5, %v6157_v16 }
 0x190   : > { %v7385_v37 = vsel %vm12625_vm2, %v12624_v21, %v12623_v30  ;;  %v12629_v18 = vrot.slane %v7300_v44, 6  ;;  %v12630_v15 = vrot.slane %v7105_v31, 6  ;;  %vm12631_vm0 = vcmp.lt.s32.totalorder %v6606_v25, 2 }
 0x191   : > { %v1764_v0 = vsel %vm12628_vm4, %v12627_v17, %v12626_v12  ;;  %v12035_v30 = vrot.slane %v7362_v49, 1  ;;  %v729_v21 = vadd.f32 0.5, %v697_v50  ;;  %v1659_v14 = vmax.f32 %v1498_v2, %v7229_v53  ;;  %v6161_v50 = vpop.eup %6160 }
 0x192   : > { %v7400_v46 = vsel %vm12631_vm0, %v12630_v15, %v12629_v18  ;;  %v700_v8 = vmul.f32 0.5, %v6159_v38  ;;  %6170 = vtanh.f32 %v641_v26  ;;  %v7405_v17 = vadd.f32 %v6601_v20, %v592_v9 }
 0x193   : > { %v1628_v12 = vsel %vm7304_vm14, %v7385_v37, -inf  ;;  %v1788_v16 = vsel %vm7310_vm13, %v1764_v0, -inf  ;;  %v7413_v15 = vmul.f32 %v729_v21, %v7159_v56  ;;  %v7416_v18 = vmul.f32 0.5, %v7376_v6 }
 0x194   : > { %12632 = vst [vmem:[#allocation72_spill] sm:$0xff] %v7405_v17  ;;  %v734_v26 = vadd.f32 0.5, %v702_v62  ;;  %v12634_v38 = vand.u32 15, %v6678_v61  ;;  %v12635_v37 = vmov 0  ;;  %6172 = vtanh.f32 %v646_v11 }
 0x195   : > { %12633 = vst [vmem:[#allocation73_spill] sm:$0xff] %v7413_v15  ;;  %vm12638_vm0 = vcmp.lt.s32.totalorder %v6606_v25, 7  ;;  %v1403_v9 = vrot.slane %v7413_v15, 1  ;;  %v1564_v0 = vrot.slane %v7413_v15, 7  ;;  %v1820_v21 = vmax.f32 %v1659_v14, %v1788_v16 }
 0x196   : > { %vm7424_vm4 = vcmp.lt.s32.totalorder %v12634_v38, 15  ;;  %v1439_v56 = vsel %vm12638_vm0, %v1404_v57, %v12035_v30  ;;  %v12639_v38 = vand.u32 15, %v6672_v59  ;;  %v12640_v53 = vmov 0  ;;  %v6163_v30 = vpop.eup %6162  ;;  %vm12644_vm13 = vmmov %vm12638_vm0 }
 0x197   : > { %v12636_v37 = vsel %vm7424_vm4, 4294967295, %v12635_v37  ;;  %v732_v11 = vadd.f32 0.5, %v700_v8  ;;  %v7443_v3 = vmul.f32 0.5, %v7405_v17  ;;  %v1440_v2 = vsel %vm12638_vm0, %v1403_v9, %v1404_v57  ;;  %v6165_v62 = vpop.eup %6164 }
 0x198   : > { %12637 = vst [vmem:[#allocation74_spill] sm:$0xff] %v12636_v37  ;;  %vm7438_vm2 = vcmp.lt.s32.totalorder %v12639_v38, 14  ;;  %v12643_v20 = vrot.slane %v7300_v44, 1  ;;  %vm12645_vm10 = vcmp.lt.s32.totalorder %v6606_v25, 1  ;;  %v12646_v16 = vand.u32 15, %v6675_v60 }
 0x199   : > { %v12641_v53 = vsel %vm7438_vm2, 4294967295, %v12640_v53  ;;  %v1601_v59 = vsel %vm12645_vm10, %v1564_v0, %v1565_v24  ;;  %v12647_v38 = vmov 0  ;;  %v703_v8 = vmul.f32 0.5, %v6161_v50 }
 0x19a   : > { %12642 = vst [vmem:[#allocation75_spill] sm:$0xff] %v12641_v53  ;;  %v1441_v14 = vsel %vm12644_vm13, %v12643_v20, %v1403_v9  ;;  %vm7455_vm6 = vcmp.ge.s32.totalorder %v12646_v16, 2  ;;  %v1501_v31 = vmax.f32 %v7338_v58, %v1439_v56  ;;  %v1468_v57 = vsel %vm7355_vm11, %v1440_v2, -inf  ;;  %v12659_v20 = vld [vmem:[#allocation26_spill] sm:$0xff] }
 0x19b   : > { %v12648_v38 = vsel %vm7455_vm6, 4294967295, %v12647_v38  ;;  %v7463_v23 = vmul.f32 %v734_v26, %v7163_v39  ;;  %v12651_v9 = vrot.slane %v7362_v49, 7  ;;  %v12652_v16 = vrot.slane %v7362_v49, 2 }
 0x19c   : > { %12649 = vst [vmem:[#allocation76_spill] sm:$0xff] %v12648_v38  ;;  %v12653_v50 = vrot.slane %v7338_v58, 2  ;;  %vm12654_vm13 = vcmp.lt.s32.totalorder %v6606_v25, 6  ;;  %v1630_v2 = vsel %vm7366_vm15, %v1601_v59, -inf  ;;  %v12655_v39 = vand.u32 15, %v6678_v61 }
 0x19d   : > { %12650 = vst [vmem:[#allocation77_spill] sm:$0xff] %v7463_v23  ;;  %v7470_v60 = vsel %vm12645_vm10, %v1565_v24, %v12651_v9  ;;  %v12656_v26 = vmov 0  ;;  %v6167_v24 = vpop.eup %6166  ;;  %v12660_v9 = vrot.slane %v7362_v49, 6  ;;  %v12661_v51 = vrot.slane %v7338_v58, 6 }
 0x19e   : > { %v1761_v56 = vsel %vm12654_vm13, %v12653_v50, %v12652_v16  ;;  %vm7482_vm0 = vcmp.lt.s32.totalorder %v12655_v39, 14  ;;  %vm12662_vm10 = vcmp.lt.s32.totalorder %v6606_v25, 2  ;;  %v1499_v16 = vmax.f32 %v7300_v44, %v1441_v14  ;;  %v6169_v13 = vpop.eup %6168 }
 0x19f   : > { %v12657_v26 = vsel %vm7482_vm0, 4294967295, %v12656_v26  ;;  %v7493_v4 = vsel %vm12662_vm10, %v12661_v51, %v12660_v9  ;;  %v1725_v59 = vrot.slane %v7413_v15, 2  ;;  %v7498_v61 = vmul.f32 %v732_v11, %v7205_v33 }
 0x1a0   : > { %12658 = vst [vmem:[#allocation78_spill] sm:$0xff] %v12657_v26  ;;  %v7501_v50 = vmax.f32 %v1820_v21, %v7264_v19  ;;  %v1500_v39 = vmax.f32 %v7413_v15, %v1468_v57  ;;  %v1886_v63 = vrot.slane %v7413_v15, 6  ;;  %v735_v47 = vadd.f32 0.5, %v703_v8  ;;  %v12666_v21 = vld [vmem:[#allocation13_spill] sm:$0xff] }
 0x1a1   : > { %12663 = vst [vmem:[#allocation26_spill] sm:$0xff] %v7498_v61  ;;  %v1662_v36 = vmax.f32 %v1501_v31, %v1630_v2  ;;  %v1408_v51 = vrot.slane %v7463_v23, 1  ;;  %v1406_v9 = vrot.slane %v7498_v61, 1  ;;  %v701_v14 = vmul.f32 0.5, %v6163_v30  ;;  %v12671_v31 = vld [vmem:[#allocation14_spill] sm:$0xff] }
 0x1a2   : > { %12664 = vst [vmem:[#allocation79_spill] sm:$0xff] %v7501_v50  ;;  %v7511_v19 = vmul.f32 %v735_v47, %v7236_v40  ;;  %v12667_v57 = vand.u32 15, %v12666_v21  ;;  %v12668_v8 = vmov 0  ;;  %v12672_v2 = vand.u32 15, %v12671_v31 }
 0x1a3   : > { %v12673_v15 = vmov 0  ;;  %v12676_v30 = vrot.slane %v7300_v44, 7  ;;  %vm12677_vm15 = vcmp.lt.s32.totalorder %v6606_v25, 1  ;;  %v1660_v45 = vmax.f32 %v1499_v16, %v1628_v12  ;;  %v12684_v16 = vld [vmem:[#allocation12_spill] sm:$0xff] }
 0x1a4   : > { %12665 = vst [vmem:[#allocation80_spill] sm:$0xff] %v7511_v19  ;;  %vm7515_vm13 = vcmp.lt.s32.totalorder %v12667_v57, 15  ;;  %vm7521_vm10 = vcmp.ge.s32.totalorder %v12672_v2, 1  ;;  %v12678_v40 = vrot.slane %v7338_v58, 2  ;;  %vm12679_vm12 = vcmp.lt.s32.totalorder %v6606_v25, 6  ;;  %v7537_v2 = vpop.eup %6170 }
 0x1a5   : > { %v12669_v8 = vsel %vm7515_vm13, 4294967295, %v12668_v8  ;;  %v12674_v15 = vsel %vm7521_vm10, 4294967295, %v12673_v15  ;;  %v1602_v33 = vsel %vm12677_vm15, %v12676_v30, %v1564_v0  ;;  %v12680_v57 = vrot.slane %v7362_v49, 1 }
 0x1a6   : > { %12670 = vst [vmem:[#allocation13_spill] sm:$0xff] %v12669_v8  ;;  %12675 = vst [vmem:[#allocation14_spill] sm:$0xff] %v12674_v15  ;;  %v1762_v47 = vsel %vm12679_vm12, %v1725_v59, %v12678_v40  ;;  %vm12681_vm14 = vcmp.lt.s32.totalorder %v6606_v25, 7  ;;  %v1661_v50 = vmax.f32 %v1500_v39, %v1602_v33  ;;  %v12682_v34 = vrot.slane %v7338_v58, 6 }
 0x1a7   : > { %v1438_v11 = vsel %vm12681_vm14, %v12680_v57, %v1406_v9  ;;  %vm12683_vm3 = vcmp.lt.s32.totalorder %v6606_v25, 2  ;;  %v12685_v30 = vand.u32 15, %v12684_v16  ;;  %v12686_v40 = vmov 0 }
 0x1a8   : > { %v1923_v52 = vsel %vm12683_vm3, %v1886_v63, %v12682_v34  ;;  %v1470_v0 = vsel %vm7424_vm4, %v1438_v11, -inf  ;;  %v12689_v57 = vrot.slane %v7300_v44, 2  ;;  %vm12690_vm14 = vcmp.lt.s32.totalorder %v6606_v25, 6 }
 0x1a9   : > { %vm7548_vm12 = vcmp.ge.s32.totalorder %v12685_v30, 1  ;;  %v1823_v33 = vmax.f32 %v1662_v36, %v1761_v56  ;;  %v1567_v58 = vrot.slane %v7498_v61, 7  ;;  %v12691_v34 = vmov %v12685_v30  ;;  %v7564_v30 = vpop.eup %6172  ;;  %vm12697_vm15 = vmmov %vm12690_vm14 }
 0x1aa   : > { %v12687_v40 = vsel %vm7548_vm12, 4294967295, %v12686_v40  ;;  %v1763_v39 = vsel %vm12690_vm14, %v12689_v57, %v1725_v59  ;;  %vm7559_vm3 = vcmp.ge.s32.totalorder %v12691_v34, 2  ;;  %v12692_v12 = vmov 0 }
 0x1ab   : > { %12688 = vst [vmem:[#allocation12_spill] sm:$0xff] %v12687_v40  ;;  %v12693_v12 = vsel %vm7559_vm3, 4294967295, %v12692_v12  ;;  %v1790_v37 = vsel %vm7438_vm2, %v1762_v47, -inf  ;;  %v1502_v28 = vmax.f32 %v7362_v49, %v1470_v0  ;;  %v12695_v59 = vrot.slane %v7498_v61, 2 }
 0x1ac   : > { %12694 = vst [vmem:[#allocation81_spill] sm:$0xff] %v12693_v12  ;;  %v12696_v36 = vrot.slane %v7362_v49, 2  ;;  %v733_v16 = vadd.f32 0.5, %v701_v14  ;;  %v1821_v57 = vmax.f32 %v1660_v45, %v1763_v39  ;;  %v12698_v34 = vrot.slane %v7300_v44, 6 }
 0x1ad   : > { %vm12699_vm14 = vcmp.lt.s32.totalorder %v6606_v25, 2  ;;  %v1952_v53 = vsel %vm7455_vm6, %v1923_v52, -inf  ;;  %v1889_v47 = vrot.slane %v7498_v61, 6  ;;  %v1822_v0 = vmax.f32 %v1661_v50, %v1790_v37 }
 0x1ae   : > { %v1760_v56 = vsel %vm12697_vm15, %v12696_v36, %v12695_v59  ;;  %v1924_v11 = vsel %vm12699_vm14, %v12698_v34, %v1886_v63  ;;  %v12700_v22 = vrot.slane %v7511_v19, 1  ;;  %vm12701_vm2 = vcmp.lt.s32.totalorder %v6606_v25, 7 }
 0x1af   : > { %v7587_v59 = vmul.f32 %v733_v16, %v7256_v41  ;;  %v706_v45 = vmul.f32 0.5, %v6165_v62  ;;  %v7589_v14 = vmax.f32 %v1823_v33, %v1952_v53  ;;  %v12703_v39 = vrot.slane %v7362_v49, 7 }
 0x1b0   : > { %v1435_v17 = vsel %vm12701_vm2, %v1408_v51, %v12700_v22  ;;  %vm12704_vm15 = vcmp.lt.s32.totalorder %v6606_v25, 1  ;;  %v1792_v52 = vsel %vm7482_vm0, %v1760_v56, -inf  ;;  %v12705_v37 = vand.u32 15, %v12666_v21 }
 0x1b1   : > { %12702 = vst [vmem:[#allocation82_spill] sm:$0xff] %v7587_v59  ;;  %v1599_v63 = vsel %vm12704_vm15, %v12703_v39, %v1567_v58  ;;  %v12706_v50 = vmov 0  ;;  %v704_v22 = vmul.f32 0.5, %v6167_v24  ;;  %v1663_v41 = vmax.f32 %v1502_v28, %v7470_v60  ;;  %v12715_v60 = vld [vmem:[#allocation15_spill] sm:$0xff] }
 0x1b2   : > { %vm7599_vm14 = vcmp.lt.s32.totalorder %v12705_v37, 14  ;;  %v1407_v53 = vrot.slane %v7587_v59, 1  ;;  %v1568_v62 = vrot.slane %v7587_v59, 7  ;;  %v707_v33 = vmul.f32 0.5, %v6169_v13 }
 0x1b3   : > { %v12707_v50 = vsel %vm7599_vm14, 4294967295, %v12706_v50  ;;  %v12709_v36 = vrot.slane %v7362_v49, 6  ;;  %vm12710_vm2 = vcmp.lt.s32.totalorder %v6606_v25, 2  ;;  %v1505_v21 = vmax.f32 %v7463_v23, %v1435_v17 }
 0x1b4   : > { %12708 = vst [vmem:[#allocation83_spill] sm:$0xff] %v12707_v50  ;;  %v1731_v34 = vrot.slane %v7511_v19, 2  ;;  %v12711_v24 = vand.u32 15, %v12671_v31  ;;  %v12712_v28 = vmov 0  ;;  %v12716_v13 = vand.u32 15, %v12715_v60 }
 0x1b5   : > { %v7610_v16 = vsel %vm12710_vm2, %v12709_v36, %v1889_v47  ;;  %v12717_v39 = vmov 0  ;;  %vm12720_vm2 = vcmp.lt.s32.totalorder %v6606_v25, 7  ;;  %v12722_v36 = vrot.slane %v7463_v23, 7 }
 0x1b6   : > { %vm7617_vm15 = vcmp.ge.s32.totalorder %v12711_v24, 2  ;;  %vm7623_vm0 = vcmp.lt.s32.totalorder %v12716_v13, 15  ;;  %v1436_v37 = vsel %vm12720_vm2, %v1407_v53, %v1408_v51  ;;  %vm12721_vm6 = vmmov %vm12720_vm2  ;;  %vm12723_vm1 = vcmp.lt.s32.totalorder %v6606_v25, 1 }
 0x1b7   : > { %v12713_v28 = vsel %vm7617_vm15, 4294967295, %v12712_v28  ;;  %v12718_v39 = vsel %vm7623_vm0, 4294967295, %v12717_v39  ;;  %v1437_v17 = vsel %vm12721_vm6, %v1406_v9, %v1407_v53  ;;  %v1597_v31 = vsel %vm12723_vm1, %v1568_v62, %v12722_v36 }
 0x1b8   : > { %12714 = vst [vmem:[#allocation84_spill] sm:$0xff] %v12713_v28  ;;  %12719 = vst [vmem:[#allocation15_spill] sm:$0xff] %v12718_v39  ;;  %v738_v24 = vadd.f32 0.5, %v706_v45  ;;  %v1472_v56 = vsel %vm7515_vm13, %v1436_v37, -inf  ;;  %v1634_v13 = vsel %vm7521_vm10, %v1597_v31, -inf  ;;  %v1729_v49 = vrot.slane %v7587_v59, 2 }
 0x1b9   : > { %v736_v44 = vadd.f32 0.5, %v704_v22  ;;  %v1824_v26 = vmax.f32 %v1663_v41, %v1792_v52  ;;  %v12097_v51 = vrot.slane %v7511_v19, 6  ;;  %v1503_v9 = vmax.f32 %v7498_v61, %v1437_v17 }
 0x1ba   : > { %v739_v53 = vadd.f32 0.5, %v707_v33  ;;  %v12724_v36 = vsel %vm7323_vm8, %v7400_v46, -inf  ;;  %v7648_v38 = vmax.f32 %v1822_v0, %v1924_v11  ;;  %v1632_v37 = vsel %vm7548_vm12, %v1599_v63, -inf }
 0x1bb   : > { %v7646_v45 = vmax.f32 %v1821_v57, %v12724_v36  ;;  %v1890_v31 = vrot.slane %v7587_v59, 6  ;;  %v1954_v52 = vsel %vm7559_vm3, %v7610_v16, -inf  ;;  %v12725_v22 = vrot.slane %v7511_v19, 7 }
 0x1bc   : > { %v12726_v41 = vrot.slane %v7463_v23, 7  ;;  %v1504_v11 = vmax.f32 %v7587_v59, %v1472_v56  ;;  %v1666_v57 = vmax.f32 %v1505_v21, %v1634_v13  ;;  %v12727_v0 = vrot.slane %v7463_v23, 2 }
 0x1bd   : > { %vm12728_vm6 = vcmp.lt.s32.totalorder %v6606_v25, 6  ;;  %v7674_v17 = vmul.f32 %v738_v24, %v7269_v27  ;;  %v7677_v36 = vmul.f32 %v736_v44, %v7286_v55  ;;  %v12734_v21 = vmov 0 }
 0x1be   : > { %v7662_v46 = vsel %vm12723_vm1, %v12726_v41, %v12725_v22  ;;  %v1757_v63 = vsel %vm12728_vm6, %v12727_v0, %v1731_v34  ;;  %v12729_v33 = vmov %v12727_v0  ;;  %vm12730_vm2 = vmmov %vm12728_vm6  ;;  %v12733_v22 = vand.u32 15, %v12715_v60 }
 0x1bf   : > { %v1758_v16 = vsel %vm12730_vm2, %v1729_v49, %v12729_v33  ;;  %12731 = vst [vmem:[#allocation85_spill] sm:$0xff] %v7674_v17  ;;  %12732 = vst [vmem:[#allocation86_spill] sm:$0xff] %v7677_v36  ;;  %v7686_v56 = vmax.f32 %v1824_v26, %v7493_v4  ;;  %v12737_v13 = vrot.slane %v7463_v23, 6  ;;  %vm12738_vm6 = vcmp.lt.s32.totalorder %v6606_v25, 2 }
 0x1c0   : > { %vm7681_vm1 = vcmp.lt.s32.totalorder %v12733_v22, 14  ;;  %v1664_v24 = vmax.f32 %v1503_v9, %v1632_v37  ;;  %v7697_v55 = vmul.f32 %v739_v53, %v7295_v1  ;;  %vm12740_vm2 = vcmp.lt.s32.totalorder %v6606_v25, 1  ;;  %vm12744_vm3 = vmmov %vm12738_vm6 }
 0x1c1   : > { %v12735_v21 = vsel %vm7681_vm1, 4294967295, %v12734_v21  ;;  %v7694_v27 = vsel %vm12738_vm6, %v12737_v13, %v12097_v51  ;;  %v1598_v44 = vsel %vm12740_vm2, %v1567_v58, %v1568_v62  ;;  %v12741_v60 = vrot.slane %v7498_v61, 2  ;;  %v12745_v58 = vld [vmem:[#allocation17_spill] sm:$0xff] }
 0x1c2   : > { %12736 = vst [vmem:[#allocation87_spill] sm:$0xff] %v12735_v21  ;;  %12739 = vst [vmem:[#allocation88_spill] sm:$0xff] %v7697_v55  ;;  %vm12742_vm10 = vcmp.lt.s32.totalorder %v6606_v25, 6  ;;  %v12743_v26 = vmov %v12737_v13  ;;  %v1410_v0 = vrot.slane %v7677_v36, 1  ;;  %v1665_v33 = vmax.f32 %v1504_v11, %v1598_v44 }
 0x1c3   : > { %v1759_v4 = vsel %vm12742_vm10, %v12741_v60, %v1729_v49  ;;  %v1919_v41 = vsel %vm12744_vm3, %v1890_v31, %v12743_v26  ;;  %v1794_v1 = vsel %vm7599_vm14, %v1758_v16, -inf  ;;  %v1827_v9 = vmax.f32 %v1666_v57, %v1757_v63  ;;  %v12750_v49 = vld [vmem:[#allocation18_spill] sm:$0xff]  ;;  %v12757_v63 = vld [vmem:[#allocation16_spill] sm:$0xff] }
 0x1c4   : > { %v705_v53 = vmul.f32 0.5, %v7537_v2  ;;  %v12746_v62 = vand.u32 15, %v12745_v58  ;;  %v12747_v37 = vmov 0  ;;  %v12751_v22 = vand.u32 15, %v12750_v49 }
 0x1c5   : > { %v12752_v13 = vmov 0  ;;  %v1920_v11 = vsel %vm12744_vm3, %v1889_v47, %v1890_v31  ;;  %v1412_v16 = vrot.slane %v7674_v17, 1  ;;  %v12755_v57 = vrot.slane %v7511_v19, 1 }
 0x1c6   : > { %vm7715_vm6 = vcmp.lt.s32.totalorder %v12746_v62, 15  ;;  %vm7721_vm10 = vcmp.ge.s32.totalorder %v12751_v22, 1  ;;  %vm12756_vm2 = vcmp.lt.s32.totalorder %v6606_v25, 7  ;;  %v12758_v44 = vand.u32 15, %v12757_v63 }
 0x1c7   : > { %v12748_v37 = vsel %vm7715_vm6, 4294967295, %v12747_v37  ;;  %v12753_v13 = vsel %vm7721_vm10, 4294967295, %v12752_v13  ;;  %v1434_v2 = vsel %vm12756_vm2, %v12755_v57, %v1410_v0  ;;  %v12759_v60 = vmov 0 }
 0x1c8   : > { %12749 = vst [vmem:[#allocation17_spill] sm:$0xff] %v12748_v37  ;;  %12754 = vst [vmem:[#allocation18_spill] sm:$0xff] %v12753_v13  ;;  %vm7734_vm14 = vcmp.ge.s32.totalorder %v12758_v44, 1  ;;  %v1825_v62 = vmax.f32 %v1664_v24, %v1759_v4  ;;  %v1956_v22 = vsel %vm7617_vm15, %v1919_v41, -inf  ;;  %v1474_v47 = vsel %vm7623_vm0, %v1434_v2, -inf  ;;  %v12845_v37 = vld [vmem:[#allocation72_spill] sm:$0xff] }
 0x1c9   : > { %v12760_v60 = vsel %vm7734_vm14, 4294967295, %v12759_v60  ;;  %v12762_v31 = vmov %v12758_v44  ;;  %v12763_v51 = vmov 0  ;;  %v1573_v44 = vrot.slane %v7674_v17, 7 }
 0x1ca   : > { %12761 = vst [vmem:[#allocation16_spill] sm:$0xff] %v12760_v60  ;;  %vm7745_vm3 = vcmp.ge.s32.totalorder %v12762_v31, 2  ;;  %v1734_v59 = vrot.slane %v7674_v17, 2  ;;  %v1506_v24 = vmax.f32 %v7511_v19, %v1474_v47  ;;  %v1571_v4 = vrot.slane %v7677_v36, 7 }
 0x1cb   : > { %v12764_v51 = vsel %vm7745_vm3, 4294967295, %v12763_v51  ;;  %v1826_v41 = vmax.f32 %v1665_v33, %v1794_v1  ;;  %v7754_v26 = vmax.f32 %v1827_v9, %v1956_v22  ;;  %v1895_v2 = vrot.slane %v7674_v17, 6 }
 0x1cc   : > { %12765 = vst [vmem:[#allocation89_spill] sm:$0xff] %v12764_v51  ;;  %v737_v63 = vadd.f32 0.5, %v705_v53  ;;  %v12766_v31 = vrot.slane %v7677_v36, 2  ;;  %vm12767_vm2 = vcmp.lt.s32.totalorder %v6606_v25, 6  ;;  %v1893_v57 = vrot.slane %v7677_v36, 6 }
 0x1cd   : > { %v710_v61 = vmul.f32 0.5, %v7564_v30  ;;  %6174 = vtanh.f32 %v7371_v32  ;;  %v7764_v47 = vmax.f32 %v1825_v62, %v1954_v52  ;;  %v12768_v33 = vrot.slane %v7697_v55, 1 }
 0x1ce   : > { %v1756_v23 = vsel %vm12767_vm2, %v1731_v34, %v12766_v31  ;;  %vm12769_vm15 = vcmp.lt.s32.totalorder %v6606_v25, 7  ;;  %v7771_v9 = vmul.f32 %v737_v63, %v7315_v48  ;;  %v12771_v53 = vand.u32 15, %v12745_v58 }
 0x1cf   : > { %v1431_v1 = vsel %vm12769_vm15, %v1412_v16, %v12768_v33  ;;  %v12772_v34 = vmov 0  ;;  %6176 = vtanh.f32 %v7416_v18  ;;  %v12775_v32 = vrot.slane %v7511_v19, 7 }
 0x1d0   : > { %12770 = vst [vmem:[#allocation90_spill] sm:$0xff] %v7771_v9  ;;  %vm7775_vm12 = vcmp.lt.s32.totalorder %v12771_v53, 14  ;;  %vm12776_vm2 = vcmp.lt.s32.totalorder %v6606_v25, 1  ;;  %v1667_v52 = vmax.f32 %v1506_v24, %v7662_v46  ;;  %6178 = vtanh.f32 %v7443_v3  ;;  %v5951_v53 = vpop.f32.mrf.mxu0 }
 0x1d1   : > { %v12773_v34 = vsel %vm7775_vm12, 4294967295, %v12772_v34  ;;  %v1595_v30 = vsel %vm12776_vm2, %v12775_v32, %v1571_v4  ;;  %v1796_v48 = vsel %vm7681_vm1, %v1756_v23, -inf  ;;  %v1411_v22 = vrot.slane %v7771_v9, 1 }
 0x1d2   : > { %12774 = vst [vmem:[#allocation91_spill] sm:$0xff] %v12773_v34  ;;  %v1572_v18 = vrot.slane %v7771_v9, 7  ;;  %v12777_v63 = vand.u32 15, %v12750_v49  ;;  %v12778_v31 = vmov 0  ;;  %v12781_v46 = vrot.slane %v7511_v19, 6 }
 0x1d3   : > { %vm12782_vm2 = vcmp.lt.s32.totalorder %v6606_v25, 2  ;;  %v1509_v23 = vmax.f32 %v7674_v17, %v1431_v1  ;;  %v742_v33 = vadd.f32 0.5, %v710_v61  ;;  %vm12783_vm1 = vcmp.lt.s32.totalorder %v6606_v25, 7 }
 0x1d4   : > { %vm7794_vm15 = vcmp.ge.s32.totalorder %v12777_v63, 2  ;;  %v7802_v3 = vsel %vm12782_vm2, %v12781_v46, %v1893_v57  ;;  %v1432_v32 = vsel %vm12783_vm1, %v1411_v22, %v1412_v16  ;;  %vm12784_vm8 = vmmov %vm12783_vm1  ;;  %vm12785_vm0 = vcmp.lt.s32.totalorder %v6606_v25, 1 }
 0x1d5   : > { %v12779_v31 = vsel %vm7794_vm15, 4294967295, %v12778_v31  ;;  %v1433_v49 = vsel %vm12784_vm8, %v1410_v0, %v1411_v22  ;;  %v1593_v63 = vsel %vm12785_vm0, %v1572_v18, %v1573_v44  ;;  %v1733_v58 = vrot.slane %v7771_v9, 2  ;;  %vm12787_vm8 = vmmov %vm12785_vm0 }
 0x1d6   : > { %12780 = vst [vmem:[#allocation92_spill] sm:$0xff] %v12779_v31  ;;  %v1828_v62 = vmax.f32 %v1667_v52, %v1796_v48  ;;  %v1476_v46 = vsel %vm7715_vm6, %v1432_v32, -inf  ;;  %v1507_v1 = vmax.f32 %v7677_v36, %v1433_v49  ;;  %v1638_v61 = vsel %vm7721_vm10, %v1593_v63, -inf  ;;  %v605_v63 = vpop.f32.mrf.mxu0  ;;  %vm12792_vm1 = vmmov %vm12782_vm2 }
 0x1d7   : > { %v7818_v24 = vmax.f32 %v1826_v41, %v1920_v11  ;;  %v1636_v16 = vsel %vm7734_vm14, %v1595_v30, -inf  ;;  %v1508_v0 = vmax.f32 %v7771_v9, %v1476_v46  ;;  %v1894_v22 = vrot.slane %v7771_v9, 6  ;;  %v12790_v30 = vld [vmem:[#allocation42_spill] sm:$0xff] }
 0x1d8   : > { %v1958_v52 = vsel %vm7745_vm3, %v7802_v3, -inf  ;;  %v12786_v48 = vrot.slane %v7697_v55, 7  ;;  %v12788_v11 = vrot.slane %v7697_v55, 2  ;;  %vm12789_vm0 = vcmp.lt.s32.totalorder %v6606_v25, 6  ;;  %v5952_v51 = vpop.f32.mrf.mxu0 }
 0x1d9   : > { %v7839_v49 = vmax.f32 %v12790_v30, %v6949_v42  ;;  %v12791_v46 = vrot.slane %v7697_v55, 6  ;;  %v1670_v17 = vmax.f32 %v1509_v23, %v1638_v61  ;;  %vm12793_vm2 = vmmov %vm12789_vm0  ;;  %v1594_v42 = vsel %vm12787_vm8, %v1571_v4, %v1572_v18 }
 0x1da   : > { %v7831_v32 = vsel %vm12787_vm8, %v1573_v44, %v12786_v48  ;;  %v1753_v41 = vsel %vm12789_vm0, %v1734_v59, %v12788_v11  ;;  %v1754_v44 = vsel %vm12793_vm2, %v1733_v58, %v1734_v59  ;;  %v7850_v48 = vmul.f32 %v742_v33, %v7329_v29  ;;  %vm12795_vm0 = vmmov %vm12792_vm1  ;;  %v7864_v59 = vld [vmem:[%s11921_s2] ss:$0 sm:$0xff]  ;;  %v12799_v33 = vld [vmem:[#allocation19_spill] sm:$0xff] }
 0x1db   : > { %v7845_v3 = vsel %vm12792_vm1, %v1895_v2, %v12791_v46  ;;  %v7853_v11 = vmax.f32 %v1828_v62, %v7694_v27  ;;  %v1668_v30 = vmax.f32 %v1507_v1, %v1636_v16  ;;  %v2067_v9 = vmax.f32 %v7839_v49, %v7079_v10  ;;  %vm12797_vm1 = vmmov %vm12793_vm2  ;;  %v6175_v16 = vpop.eup %6174 }
 0x1dc   : > { %12794 = vst [vmem:[#allocation42_spill] sm:$0xff] %v7850_v48  ;;  %v1669_v19 = vmax.f32 %v1508_v0, %v1594_v42  ;;  %v1915_v23 = vsel %vm12795_vm0, %v1894_v22, %v1895_v2  ;;  %v7867_v29 = vadd.f32 %v7864_v59, %v5951_v53  ;;  %v7870_v27 = vadd.f32 %v7864_v59, %v605_v63  ;;  %vm12798_vm2 = vmmov %vm12795_vm0  ;;  %v12805_v63 = vld [vmem:[#allocation20_spill] sm:$0xff] }
 0x1dd   : > { %v12796_v4 = vrot.slane %v7677_v36, 2  ;;  %v1798_v18 = vsel %vm7775_vm12, %v1754_v44, -inf  ;;  %v1916_v2 = vsel %vm12798_vm2, %v1893_v57, %v1894_v22  ;;  %v12800_v1 = vand.u32 15, %v12799_v33  ;;  %v6177_v44 = vpop.eup %6176 }
 0x1de   : > { %v12801_v61 = vmov 0  ;;  %v7887_v53 = vmax.f32 %v2067_v9, %v7154_v54  ;;  %v1831_v0 = vmax.f32 %v1670_v17, %v1753_v41  ;;  %v2069_v46 = vmax.f32 %v7079_v10, %v7154_v54 }
 0x1df   : > { %v1755_v62 = vsel %vm12797_vm1, %v12796_v4, %v1733_v58  ;;  %vm7882_vm8 = vcmp.lt.s32.totalorder %v12800_v1, 15  ;;  %v650_v58 = vmul.f32 0.5, %v7867_v29  ;;  %v1960_v57 = vsel %vm7794_vm15, %v1915_v23, -inf  ;;  %v6179_v4 = vpop.eup %6178 }
 0x1e0   : > { %v12802_v61 = vsel %vm7882_vm8, 4294967295, %v12801_v61  ;;  %12804 = vst [vmem:[#allocation93_spill] sm:$0xff] %v7887_v53  ;;  %v708_v22 = vmul.f32 0.5, %v6175_v16  ;;  %v5646_v42 = vpack.c.bf16 %v7887_v53, %v7887_v53  ;;  %v648_v9 = vmul.f32 0.5, %v7870_v27 }
 0x1e1   : > { %12803 = vst [vmem:[#allocation19_spill] sm:$0xff] %v12802_v61  ;;  %v1829_v1 = vmax.f32 %v1668_v30, %v1755_v62  ;;  %v1830_v17 = vmax.f32 %v1669_v19, %v1798_v18  ;;  %v12806_v36 = vand.u32 15, %v12805_v63  ;;  %v12807_v13 = vmov 0 }
 0x1e2   : > { %v12810_v31 = vand.u32 15, %v12799_v33  ;;  %v12811_v23 = vmov 0  ;;  %v711_v16 = vmul.f32 0.5, %v6177_v44  ;;  %v740_v19 = vadd.f32 0.5, %v708_v22  ;;  %2484 = vrot.lane.b32.xlu1 %v5646_v42, %s6381_s17 }
 0x1e3   : > { %vm7901_vm0 = vcmp.ge.s32.totalorder %v12806_v36, 1  ;;  %v7915_v36 = vadd.s32 216, %v6606_v25  ;;  %v12814_v62 = vand.u32 15, %v12805_v63  ;;  %v12815_v18 = vmov 0 }
 0x1e4   : > { %v12808_v13 = vsel %vm7901_vm0, 4294967295, %v12807_v13  ;;  %vm7907_vm1 = vcmp.lt.s32.totalorder %v12810_v31, 14  ;;  %v743_v31 = vadd.f32 0.5, %v711_v16  ;;  %v709_v33 = vmul.f32 0.5, %v6179_v4 }
 0x1e5   : > { %12809 = vst [vmem:[#allocation20_spill] sm:$0xff] %v12808_v13  ;;  %v12812_v23 = vsel %vm7907_vm1, 4294967295, %v12811_v23  ;;  %vm7919_vm2 = vcmp.ge.s32.totalorder %v12814_v62, 2  ;;  %6180 = vtanh.f32 %v650_v58  ;;  %v2165_v44 = vmax.f32 %v2069_v46, %v7839_v49 }
 0x1e6   : > { %12813 = vst [vmem:[#allocation94_spill] sm:$0xff] %v12812_v23  ;;  %v12816_v18 = vsel %vm7919_vm2, 4294967295, %v12815_v18  ;;  %v7924_v30 = vmax.f32 %v1831_v0, %v1960_v57  ;;  %v7927_v22 = vmul.f32 %v740_v19, %v7335_v43  ;;  %6182 = vtanh.f32 %v648_v9 }
 0x1e7   : > { %12817 = vst [vmem:[#allocation95_spill] sm:$0xff] %v12816_v18  ;;  %v7930_v42 = vadd.s32 224, %v6606_v25  ;;  %v7932_v63 = vmax.f32 %v1829_v1, %v1958_v52  ;;  %v7934_v62 = vmax.f32 %v1830_v17, %v1916_v2  ;;  %v7937_v16 = vmul.f32 %v743_v31, %v7376_v6  ;;  %v608_v31 = vpop.f32.mrf.mxu0 }
 0x1e8   : > { %12818 = vst [vmem:[#allocation96_spill] sm:$0xff] %v7927_v22  ;;  %v12820_v58 = vand.u32 15, %v6776_v7  ;;  %v12821_v46 = vmov 0  ;;  %v12824_v43 = vand.u32 15, %v12659_v20  ;;  %v12825_v0 = vmov 0 }
 0x1e9   : > { %12819 = vst [vmem:[#allocation97_spill] sm:$0xff] %v7937_v16  ;;  %v1414_v2 = vrot.slane %v7927_v22, 1  ;;  %v1575_v57 = vrot.slane %v7927_v22, 7  ;;  %v1736_v6 = vrot.slane %v7927_v22, 2  ;;  %v1006_v9 = vand.u32 15, %v7915_v36 }
 0x1ea   : > { %vm7941_vm15 = vcmp.lt.s32.totalorder %v12820_v58, 15  ;;  %vm7947_vm10 = vcmp.ge.s32.totalorder %v12824_v43, 1  ;;  %v741_v17 = vadd.f32 0.5, %v709_v33  ;;  %v7959_v19 = vmax.f32 %v2165_v44, %v7272_v5 }
 0x1eb   : > { %v12822_v46 = vsel %vm7941_vm15, 4294967295, %v12821_v46  ;;  %v12826_v0 = vsel %vm7947_vm10, 4294967295, %v12825_v0  ;;  %v12829_v58 = vrot.slane %v7697_v55, 1  ;;  %vm12830_vm3 = vcmp.lt.s32.totalorder %v6606_v25, 7 }
 0x1ec   : > { %12823 = vst [vmem:[#allocation98_spill] sm:$0xff] %v12822_v46  ;;  %12827 = vst [vmem:[#allocation99_spill] sm:$0xff] %v12826_v0  ;;  %v12831_v52 = vand.u32 15, %v6776_v7  ;;  %v12832_v41 = vmov 0  ;;  %v1013_v36 = vand.u32 15, %v7930_v42  ;;  %v7973_v4 = vadd.f32 %v7864_v59, %v5952_v51 }
 0x1ed   : > { %12828 = vst [vmem:[#allocation100_spill] sm:$0xff] %v7959_v19  ;;  %v1430_v43 = vsel %vm12830_vm3, %v12829_v58, %v1414_v2  ;;  %v7976_v33 = vadd.s32 248, %v6606_v25  ;;  %v12835_v1 = vrot.slane %v7697_v55, 7  ;;  %vm12836_vm3 = vcmp.lt.s32.totalorder %v6606_v25, 1 }
 0x1ee   : > { %vm7967_vm14 = vcmp.lt.s32.totalorder %v12831_v52, 14  ;;  %v1478_v44 = vsel %vm7882_vm8, %v1430_v43, -inf  ;;  %v12837_v52 = vrot.slane %v7697_v55, 2  ;;  %vm12838_vm12 = vcmp.lt.s32.totalorder %v6606_v25, 6 }
 0x1ef   : > { %v12833_v41 = vsel %vm7967_vm14, 4294967295, %v12832_v41  ;;  %v1591_v7 = vsel %vm12836_vm3, %v12835_v1, %v1575_v57  ;;  %v1510_v51 = vmax.f32 %v7697_v55, %v1478_v44  ;;  %v12839_v60 = vrot.slane %v7937_v16, 1 }
 0x1f0   : > { %12834 = vst [vmem:[#allocation101_spill] sm:$0xff] %v12833_v41  ;;  %v1752_v58 = vsel %vm12838_vm12, %v12837_v52, %v1736_v6  ;;  %v12840_v53 = vrot.slane %v7850_v48, 1  ;;  %vm12841_vm8 = vcmp.lt.s32.totalorder %v6606_v25, 7  ;;  %v7998_v1 = vadd.f32 %v7864_v59, %v608_v31 }
 0x1f1   : > { %v12842_v34 = vrot.slane %v7927_v22, 6  ;;  %v12843_v52 = vrot.slane %v7697_v55, 6  ;;  %vm12844_vm12 = vcmp.lt.s32.totalorder %v6606_v25, 2  ;;  %v8008_v28 = vmul.f32 %v741_v17, %v12845_v37 }
 0x1f2   : > { %v1427_v43 = vsel %vm12841_vm8, %v12840_v53, %v12839_v60  ;;  %v5648_v60 = vpack.c.bf16 %v7959_v19, %v7959_v19  ;;  %v1640_v53 = vsel %vm7901_vm0, %v1591_v7, -inf  ;;  %v1800_v59 = vsel %vm7907_vm1, %v1752_v58, -inf }
 0x1f3   : > { %v1913_v42 = vsel %vm12844_vm12, %v12843_v52, %v12842_v34  ;;  %12846 = vst [vmem:[#allocation72_spill] sm:$0xff] %v8008_v28  ;;  %v12847_v61 = vand.u32 15, %v12659_v20  ;;  %v12848_v34 = vmov 0  ;;  %v651_v37 = vmul.f32 0.5, %v7973_v4 }
 0x1f4   : > { %v1513_v17 = vmax.f32 %v7850_v48, %v1427_v43  ;;  %v1415_v52 = vrot.slane %v8008_v28, 1  ;;  %v1576_v44 = vrot.slane %v8008_v28, 7  ;;  %v1737_v7 = vrot.slane %v8008_v28, 2  ;;  %2488 = vrot.lane.b32.xlu1 %v5648_v60, %s6381_s17 }
 0x1f5   : > { %vm8019_vm8 = vcmp.ge.s32.totalorder %v12847_v61, 2  ;;  %v1671_v58 = vmax.f32 %v1510_v51, %v7831_v32  ;;  %v1962_v20 = vsel %vm7919_vm2, %v1913_v42, -inf  ;;  %v12851_v61 = vrot.slane %v7937_v16, 7 }
 0x1f6   : > { %v12849_v34 = vsel %vm8019_vm8, 4294967295, %v12848_v34  ;;  %v12852_v31 = vrot.slane %v7850_v48, 7  ;;  %6184 = vtanh.f32 %v651_v37  ;;  %v12853_v55 = vrot.slane %v7937_v16, 2  ;;  %v6181_v37 = vpop.eup %6180 }
 0x1f7   : > { %12850 = vst [vmem:[#allocation102_spill] sm:$0xff] %v12849_v34  ;;  %v12854_v13 = vrot.slane %v7850_v48, 2  ;;  %vm12855_vm12 = vcmp.lt.s32.totalorder %v6606_v25, 6  ;;  %v12856_v32 = vrot.slane %v7850_v48, 1  ;;  %vm12857_vm2 = vcmp.lt.s32.totalorder %v6606_v25, 7 }
 0x1f8   : > { %v8038_v43 = vsel %vm12836_vm3, %v12852_v31, %v12851_v61  ;;  %vm12858_vm0 = vmmov %vm12857_vm2  ;;  %v12859_v18 = vmov %v12852_v31  ;;  %v12860_v15 = vrot.slane %v7937_v16, 6  ;;  %v12866_v50 = vmov 0 }
 0x1f9   : > { %v1749_v60 = vsel %vm12855_vm12, %v12854_v13, %v12853_v55  ;;  %v1428_v42 = vsel %vm12857_vm2, %v1415_v52, %v12856_v32  ;;  %v1429_v51 = vsel %vm12858_vm0, %v1414_v2, %v1415_v52  ;;  %v1589_v31 = vsel %vm12836_vm3, %v1576_v44, %v12859_v18  ;;  %v6183_v32 = vpop.eup %6182  ;;  %vm12864_vm2 = vmmov %vm12855_vm12 }
 0x1fa   : > { %v1480_v61 = vsel %vm7941_vm15, %v1428_v42, -inf  ;;  %v1511_v23 = vmax.f32 %v7927_v22, %v1429_v51  ;;  %v1642_v55 = vsel %vm7947_vm10, %v1589_v31, -inf  ;;  %v1898_v13 = vrot.slane %v8008_v28, 6  ;;  %vm12865_vm12 = vmmov %vm12836_vm3 }
 0x1fb   : > { %v12861_v2 = vrot.slane %v7850_v48, 6  ;;  %vm12862_vm0 = vcmp.lt.s32.totalorder %v6606_v25, 2  ;;  %v1512_v18 = vmax.f32 %v8008_v28, %v1480_v61  ;;  %v1674_v46 = vmax.f32 %v1513_v17, %v1642_v55 }
 0x1fc   : > { %v12863_v42 = vrot.slane %v7850_v48, 2  ;;  %v1832_v31 = vmax.f32 %v1671_v58, %v1800_v59  ;;  %v1590_v0 = vsel %vm12865_vm12, %v1575_v57, %v1576_v44  ;;  %v1672_v21 = vmax.f32 %v1511_v23, %v1640_v53 }
 0x1fd   : > { %v8068_v52 = vsel %vm12862_vm0, %v12861_v2, %v12860_v15  ;;  %vm8077_vm3 = vcmp.lt.s32.totalorder %v1006_v9, 15  ;;  %vm8081_vm10 = vcmp.ge.s32.totalorder %v1013_v36, 1  ;;  %v12869_v15 = vmov 0 }
 0x1fe   : > { %v1750_v51 = vsel %vm12864_vm2, %v1737_v7, %v12863_v42  ;;  %v12867_v50 = vsel %vm8077_vm3, 4294967295, %v12866_v50  ;;  %v12870_v15 = vsel %vm8081_vm10, 4294967295, %v12869_v15  ;;  %vm8085_vm0 = vcmp.lt.s32.totalorder %v1006_v9, 14 }
 0x1ff   : > { %12868 = vst [vmem:[#allocation103_spill] sm:$0xff] %v12867_v50  ;;  %12871 = vst [vmem:[#allocation104_spill] sm:$0xff] %v12870_v15  ;;  %v12872_v17 = vmov 0  ;;  %vm8089_vm15 = vcmp.ge.s32.totalorder %v1013_v36, 2  ;;  %v12875_v61 = vmov 0  ;;  %v1673_v57 = vmax.f32 %v1512_v18, %v1590_v0 }
 0x200   : > { %v12873_v17 = vsel %vm8085_vm0, 4294967295, %v12872_v17  ;;  %v12876_v61 = vsel %vm8089_vm15, 4294967295, %v12875_v61  ;;  %v1751_v23 = vsel %vm12864_vm2, %v1736_v6, %v1737_v7  ;;  %v1802_v44 = vsel %vm7967_vm14, %v1750_v51, -inf }
 0x201   : > { %12874 = vst [vmem:[#allocation105_spill] sm:$0xff] %v12873_v17  ;;  %12877 = vst [vmem:[#allocation106_spill] sm:$0xff] %v12876_v61  ;;  %v714_v53 = vmul.f32 0.5, %v6181_v37  ;;  %v1833_v58 = vmax.f32 %v1672_v21, %v1751_v23  ;;  %v1835_v55 = vmax.f32 %v1674_v46, %v1749_v60  ;;  %v12878_v9 = vmov %v12861_v2 }
 0x202   : > { %vm12879_vm12 = vcmp.lt.s32.totalorder %v6606_v25, 2  ;;  %v712_v2 = vmul.f32 0.5, %v6183_v32  ;;  %v1834_v42 = vmax.f32 %v1673_v57, %v1802_v44  ;;  %v1034_v59 = vand.u32 15, %v7976_v33  ;;  %v12885_v44 = vld [vmem:[#allocation64_spill] sm:$0xff] }
 0x203   : > { %v1911_v36 = vsel %vm12879_vm12, %v1898_v13, %v12878_v9  ;;  %v746_v28 = vadd.f32 0.5, %v714_v53  ;;  %v649_v0 = vmul.f32 0.5, %v7998_v1  ;;  %v8105_v6 = vmax.f32 %v1832_v31, %v7845_v3  ;;  %vm12881_vm2 = vmmov %vm12879_vm12 }
 0x204   : > { %v744_v7 = vadd.f32 0.5, %v712_v2  ;;  %v8108_v37 = vadd.s32 232, %v6606_v25  ;;  %v8111_v21 = vadd.s32 240, %v6606_v25  ;;  %v12880_v46 = vrot.slane %v7927_v22, 6  ;;  %v12911_v22 = vld [vmem:[#allocation67_spill] sm:$0xff] }
 0x205   : > { %v1964_v33 = vsel %vm8019_vm8, %v1911_v36, -inf  ;;  %v8120_v32 = vmul.f32 %v746_v28, %v7867_v29  ;;  %6186 = vtanh.f32 %v649_v0  ;;  %v8122_v3 = vmax.f32 %v1833_v58, %v1962_v20  ;;  %v12886_v28 = vld [vmem:[#allocation55_spill] sm:$0xff] }
 0x206   : > { %v1912_v60 = vsel %vm12881_vm2, %v12880_v46, %v1898_v13  ;;  %v8126_v51 = vmax.f32 %v1835_v55, %v1964_v33  ;;  %v8129_v31 = vmul.f32 %v744_v7, %v7870_v27  ;;  %v2071_v23 = vmax.f32 %v7154_v54, %v7272_v5  ;;  %v6185_v27 = vpop.eup %6184  ;;  %v12905_v13 = vld [vmem:[#allocation56_spill] sm:$0xff] }
 0x207   : > { %12882 = vst [vmem:[#allocation107_spill] sm:$0xff] %v8120_v32  ;;  %v8124_v18 = vmax.f32 %v1834_v42, %v1912_v60  ;;  %v2072_v29 = vmax.f32 %v12886_v28, %v12885_v44  ;;  %v12887_v0 = vrot.slane %v7937_v16, 1  ;;  %vm12888_vm12 = vcmp.lt.s32.totalorder %v6606_v25, 7 }
 0x208   : > { %12883 = vst [vmem:[#allocation108_spill] sm:$0xff] %v8126_v51  ;;  %12884 = vst [vmem:[#allocation109_spill] sm:$0xff] %v8129_v31  ;;  %v12175_v20 = vrot.slane %v8129_v31, 1  ;;  %v12176_v53 = vrot.slane %v8129_v31, 7  ;;  %v12177_v58 = vrot.slane %v8129_v31, 2  ;;  %v12178_v55 = vrot.slane %v8129_v31, 6 }
 0x209   : > { %v12889_v46 = vrot.slane %v7937_v16, 7  ;;  %vm12890_vm2 = vcmp.lt.s32.totalorder %v6606_v25, 1  ;;  %v12891_v33 = vrot.slane %v7937_v16, 2  ;;  %vm12892_vm8 = vcmp.lt.s32.totalorder %v6606_v25, 6 }
 0x20a   : > { %v1426_v7 = vsel %vm12888_vm12, %v12887_v0, %v12175_v20  ;;  %v12893_v2 = vrot.slane %v7937_v16, 6  ;;  %vm12894_vm12 = vcmp.lt.s32.totalorder %v6606_v25, 2  ;;  %vm8173_vm14 = vcmp.lt.s32.totalorder %v1034_v59, 15 }
 0x20b   : > { %v8157_v60 = vsel %vm12890_vm2, %v12889_v46, %v12176_v53  ;;  %v1748_v42 = vsel %vm12892_vm8, %v12891_v33, %v12177_v58  ;;  %v12895_v20 = vmov 0  ;;  %v12898_v46 = vand.u32 15, %v6606_v25 }
 0x20c   : > { %v8171_v0 = vsel %vm12894_vm12, %v12893_v2, %v12178_v55  ;;  %v12896_v20 = vsel %vm8173_vm14, 4294967295, %v12895_v20  ;;  %v12899_v53 = vmov 0  ;;  %v1482_v33 = vsel %vm8077_vm3, %v1426_v7, -inf }
 0x20d   : > { %12897 = vst [vmem:[#allocation64_spill] sm:$0xff] %v12896_v20  ;;  %vm8179_vm2 = vcmp.ge.s32.totalorder %v12898_v46, 1  ;;  %v1804_v2 = vsel %vm8085_vm0, %v1748_v42, -inf  ;;  %v1514_v36 = vmax.f32 %v7937_v16, %v1482_v33  ;;  %v715_v46 = vmul.f32 0.5, %v6185_v27  ;;  %v12910_v42 = vld [vmem:[#allocation65_spill] sm:$0xff]  ;;  %v12912_v33 = vld [vmem:[#allocation79_spill] sm:$0xff] }
 0x20e   : > { %v12900_v53 = vsel %vm8179_vm2, 4294967295, %v12899_v53  ;;  %vm8194_vm8 = vcmp.lt.s32.totalorder %v1034_v59, 14  ;;  %v12902_v9 = vmov 0  ;;  %v2167_v7 = vmax.f32 %v2071_v23, %v7079_v10 }
 0x20f   : > { %12901 = vst [vmem:[#allocation55_spill] sm:$0xff] %v12900_v53  ;;  %v12903_v9 = vsel %vm8194_vm8, 4294967295, %v12902_v9  ;;  %v2168_v57 = vmax.f32 %v2072_v29, %v12905_v13  ;;  %v12906_v58 = vand.u32 15, %v6606_v25  ;;  %v12907_v48 = vmov 0 }
 0x210   : > { %12904 = vst [vmem:[#allocation110_spill] sm:$0xff] %v12903_v9  ;;  %v2074_v55 = vmax.f32 %v12885_v44, %v12910_v42  ;;  %v2073_v27 = vmax.f32 %v7272_v5, %v12911_v22  ;;  %v2076_v59 = vmax.f32 %v12910_v42, %v7646_v45  ;;  %v2075_v23 = vmax.f32 %v12911_v22, %v12912_v33 }
 0x211   : > { %vm8202_vm12 = vcmp.ge.s32.totalorder %v12906_v58, 2  ;;  %v1675_v29 = vmax.f32 %v1514_v36, %v8038_v43  ;;  %v747_v16 = vadd.f32 0.5, %v715_v46  ;;  %v2263_v58 = vmax.f32 %v2167_v7, %v12911_v22  ;;  %v12914_v36 = vld [vmem:[#allocation47_spill] sm:$0xff] }
 0x212   : > { %v12908_v48 = vsel %vm8202_vm12, 4294967295, %v12907_v48  ;;  %v2264_v34 = vmax.f32 %v2168_v57, %v12910_v42  ;;  %v2170_v17 = vmax.f32 %v2074_v55, %v12886_v28  ;;  %v8219_v50 = vmax.f32 %v2073_v27, %v7154_v54  ;;  %v6187_v27 = vpop.eup %6186 }
 0x213   : > { %12909 = vst [vmem:[#allocation56_spill] sm:$0xff] %v12908_v48  ;;  %v8222_v41 = vmax.f32 %v2076_v59, %v12885_v44  ;;  %v8225_v19 = vmax.f32 %v2075_v23, %v7272_v5  ;;  %v1836_v12 = vmax.f32 %v1675_v29, %v1804_v2  ;;  %v8228_v40 = vmul.f32 %v747_v16, %v7973_v4 }
 0x214   : > { %v8231_v43 = vmax.f32 %v2263_v58, %v7839_v49  ;;  %v8234_v57 = vmax.f32 %v2264_v34, %v12914_v36  ;;  %v2266_v55 = vmax.f32 %v2170_v17, %v7646_v45  ;;  %v713_v59 = vmul.f32 0.5, %v6187_v27 }
 0x215   : > { %12913 = vst [vmem:[#allocation65_spill] sm:$0xff] %v8228_v40  ;;  %v8244_v16 = vmax.f32 %v1836_v12, %v8068_v52  ;;  %v1421_v49 = vrot.slane %v8228_v40, 1  ;;  %v1582_v4 = vrot.slane %v8228_v40, 7  ;;  %v1743_v34 = vrot.slane %v8228_v40, 2 }
 0x216   : > { %v1904_v17 = vrot.slane %v8228_v40, 6  ;;  %v12916_v23 = vand.u32 15, %v8108_v37  ;;  %v12917_v29 = vmov 0  ;;  %v12920_v58 = vand.u32 15, %v8111_v21 }
 0x217   : > { %12915 = vst [vmem:[#allocation67_spill] sm:$0xff] %v8244_v16  ;;  %v12921_v12 = vmov 0  ;;  %v5650_v52 = vpack.c.bf16 %v8231_v43, %v8231_v43  ;;  %v12924_v7 = vrot.slane %v8120_v32, 1  ;;  %vm12925_vm1 = vcmp.lt.s32.totalorder %v6606_v25, 7 }
 0x218   : > { %vm8252_vm0 = vcmp.lt.s32.totalorder %v12916_v23, 15  ;;  %vm8258_vm3 = vcmp.ge.s32.totalorder %v12920_v58, 1  ;;  %v12926_v23 = vld [vmem:[#allocation23_spill] sm:$0xff]  ;;  %vm12928_vm6 = vmmov %vm12925_vm1  ;;  %v12929_v58 = vrot.slane %v8120_v32, 7  ;;  %vm12930_vm13 = vcmp.lt.s32.totalorder %v6606_v25, 1 }
 0x219   : > { %v12918_v29 = vsel %vm8252_vm0, 4294967295, %v12917_v29  ;;  %v12922_v12 = vsel %vm8258_vm3, 4294967295, %v12921_v12  ;;  %v1423_v27 = vsel %vm12925_vm1, %v12924_v7, %v1421_v49  ;;  %v12927_v46 = vrot.slane %v12926_v23, 1  ;;  %vm12932_vm4 = vmmov %vm12930_vm13  ;;  %2492 = vrot.lane.b32.xlu0 %v5650_v52, %s6381_s17 }
 0x21a   : > { %12919 = vst [vmem:[#allocation79_spill] sm:$0xff] %v12918_v29  ;;  %12923 = vst [vmem:[#allocation111_spill] sm:$0xff] %v12922_v12  ;;  %v1584_v35 = vsel %vm12930_vm13, %v12929_v58, %v1582_v4  ;;  %v12931_v39 = vrot.slane %v12926_v23, 7  ;;  %v12933_v16 = vand.u32 15, %v8108_v37  ;;  %v12934_v8 = vmov 0  ;;  %v12939_v37 = vld [vmem:[#allocation34_spill] sm:$0xff] }
 0x21b   : > { %v1454_v51 = vsel %vm12928_vm6, %v1421_v49, %v12927_v46  ;;  %v1517_v46 = vmax.f32 %v8120_v32, %v1423_v27  ;;  %v12937_v58 = vrot.slane %v8120_v32, 2  ;;  %vm12938_vm13 = vcmp.lt.s32.totalorder %v6606_v25, 6 }
 0x21c   : > { %v1615_v2 = vsel %vm12932_vm4, %v1582_v4, %v12931_v39  ;;  %vm8283_vm11 = vcmp.lt.s32.totalorder %v12933_v16, 14  ;;  %v1486_v7 = vsel %vm8173_vm14, %v1454_v51, -inf  ;;  %v12940_v16 = vmax.f32 %v12926_v23, %v12939_v37  ;;  %vm12942_vm4 = vmmov %vm12938_vm13 }
 0x21d   : > { %v12935_v8 = vsel %vm8283_vm11, 4294967295, %v12934_v8  ;;  %v1616_v49 = vsel %vm8179_vm2, %v1615_v2, -inf  ;;  %v1745_v36 = vsel %vm12938_vm13, %v12937_v58, %v1743_v34  ;;  %v1518_v39 = vmax.f32 %v8228_v40, %v1486_v7 }
 0x21e   : > { %12936 = vst [vmem:[#allocation112_spill] sm:$0xff] %v12935_v8  ;;  %v8301_v4 = vmax.f32 %v12940_v16, %v1616_v49  ;;  %v12941_v51 = vrot.slane %v12926_v23, 2  ;;  %v12943_v2 = vrot.slane %v8120_v32, 6  ;;  %vm12944_vm6 = vcmp.lt.s32.totalorder %v6606_v25, 2 }
 0x21f   : > { %v12945_v58 = vand.u32 15, %v8111_v21  ;;  %v12946_v52 = vmov 0  ;;  %v12949_v49 = vrot.slane %v12926_v23, 6  ;;  %vm12950_vm13 = vmmov %vm12944_vm6  ;;  %v5651_v40 = vpack.c.bf16 %v8234_v57, %v8234_v57 }
 0x220   : > { %v1776_v27 = vsel %vm12942_vm4, %v1743_v34, %v12941_v51  ;;  %v1906_v20 = vsel %vm12944_vm6, %v12943_v2, %v1904_v17  ;;  %v745_v34 = vadd.f32 0.5, %v713_v59  ;;  %v1679_v51 = vmax.f32 %v1518_v39, %v1584_v35 }
 0x221   : > { %vm8313_vm1 = vcmp.ge.s32.totalorder %v12945_v58, 2  ;;  %v1808_v7 = vsel %vm8194_vm8, %v1776_v27, -inf  ;;  %v8323_v37 = vsel %vm12950_vm13, %v1904_v17, %v12949_v49  ;;  %v8341_v16 = vmax.f32 %v2266_v55, %v12905_v13  ;;  %2494 = vrot.lane.b32.xlu1 %v5651_v40, %s6381_s17 }
 0x222   : > { %v12947_v52 = vsel %vm8313_vm1, 4294967295, %v12946_v52  ;;  %v8332_v27 = vmul.f32 %v745_v34, %v7998_v1  ;;  %v1840_v49 = vmax.f32 %v1679_v51, %v1808_v7  ;;  %v12952_v39 = vrot.slane %v8120_v32, 1 }
 0x223   : > { %12948 = vst [vmem:[#allocation34_spill] sm:$0xff] %v12947_v52  ;;  %v5653_v7 = vpack.c.bf16 %v8341_v16, %v8341_v16  ;;  %v2619_v51 = vrot.slane %v8341_v16, 1  ;;  %vm12953_vm4 = vcmp.lt.s32.totalorder %v6606_v25, 7  ;;  %v12954_v59 = vrot.slane %v8129_v31, 1 }
 0x224   : > { %12951 = vst [vmem:[#allocation113_spill] sm:$0xff] %v8332_v27  ;;  %v1419_v2 = vrot.slane %v8332_v27, 1  ;;  %v1580_v1 = vrot.slane %v8332_v27, 7  ;;  %v1741_v34 = vrot.slane %v8332_v27, 2  ;;  %v1902_v58 = vrot.slane %v8332_v27, 6  ;;  %vm12955_vm6 = vmmov %vm12953_vm4 }
 0x225   : > { %v8348_v17 = vmax.f32 %v1840_v49, %v1906_v20  ;;  %v12956_v40 = vrot.slane %v8120_v32, 7  ;;  %vm12957_vm13 = vcmp.lt.s32.totalorder %v6606_v25, 1  ;;  %v12958_v49 = vrot.slane %v8129_v31, 7  ;;  %2498 = vrot.lane.b32.xlu0 %v5653_v7, %s6381_s17 }
 0x226   : > { %v1424_v35 = vsel %vm12953_vm4, %v1419_v2, %v12952_v39  ;;  %v1425_v21 = vsel %vm12955_vm6, %v12954_v59, %v1419_v2  ;;  %vm12959_vm8 = vmmov %vm12957_vm13  ;;  %v12960_v2 = vrot.slane %v8120_v32, 2  ;;  %vm12961_vm4 = vcmp.lt.s32.totalorder %v6606_v25, 6 }
 0x227   : > { %v1585_v20 = vsel %vm12957_vm13, %v1580_v1, %v12956_v40  ;;  %v1586_v55 = vsel %vm12959_vm8, %v12958_v49, %v1580_v1  ;;  %v1484_v23 = vsel %vm8252_vm0, %v1424_v35, -inf  ;;  %v1515_v39 = vmax.f32 %v8129_v31, %v1425_v21  ;;  %vm12963_vm8 = vmmov %vm12961_vm4 }
 0x228   : > { %v1646_v9 = vsel %vm8258_vm3, %v1585_v20, -inf  ;;  %v1746_v59 = vsel %vm12961_vm4, %v1741_v34, %v12960_v2  ;;  %v1516_v40 = vmax.f32 %v8332_v27, %v1484_v23  ;;  %v12962_v1 = vrot.slane %v8129_v31, 2 }
 0x229   : > { %v1678_v53 = vmax.f32 %v1517_v46, %v1646_v9  ;;  %v1806_v21 = vsel %vm8283_vm11, %v1746_v59, -inf  ;;  %v12964_v20 = vsel %vm8081_vm10, %v8157_v60, -inf  ;;  %v12965_v2 = vrot.slane %v8120_v32, 6 }
 0x22a   : > { %v1747_v35 = vsel %vm12963_vm8, %v12962_v1, %v1741_v34  ;;  %v1676_v49 = vmax.f32 %v1515_v39, %v12964_v20  ;;  %vm12966_vm6 = vcmp.lt.s32.totalorder %v6606_v25, 2  ;;  %v12967_v9 = vrot.slane %v8129_v31, 6 }
 0x22b   : > { %v1907_v7 = vsel %vm12966_vm6, %v1902_v58, %v12965_v2  ;;  %vm12968_vm13 = vmmov %vm12966_vm6  ;;  %v1677_v34 = vmax.f32 %v1516_v40, %v1586_v55  ;;  %v1839_v1 = vmax.f32 %v1678_v53, %v1745_v36  ;;  %v12969_v20 = vmax.f32 %v8219_v50, %v12912_v33 }
 0x22c   : > { %v1908_v23 = vsel %vm12968_vm13, %v12967_v9, %v1902_v58  ;;  %v1968_v59 = vsel %vm8313_vm1, %v1907_v7, -inf  ;;  %v1837_v39 = vmax.f32 %v1676_v49, %v1747_v35  ;;  %v12970_v58 = vmax.f32 %v8222_v41, %v7589_v14 }
 0x22d   : > { %v8407_v2 = vmax.f32 %v12969_v20, %v7079_v10  ;;  %v12971_v53 = vmax.f32 %v8225_v19, %v7648_v38  ;;  %v1838_v55 = vmax.f32 %v1677_v34, %v1806_v21  ;;  %v8421_v40 = vmax.f32 %v1839_v1, %v1968_v59 }
 0x22e   : > { %v8413_v9 = vmax.f32 %v12970_v58, %v12886_v28  ;;  %v2078_v50 = vmax.f32 %v7646_v45, %v7589_v14  ;;  %v2077_v10 = vmax.f32 %v12912_v33, %v7648_v38  ;;  %v12973_v41 = vsel %vm8089_vm15, %v8171_v0, -inf }
 0x22f   : > { %v8419_v36 = vmax.f32 %v12971_v53, %v7154_v54  ;;  %12972 = vst [vmem:[#allocation114_spill] sm:$0xff] %v8421_v40  ;;  %v8431_v35 = vmax.f32 %v1837_v39, %v12973_v41  ;;  %v5652_v19 = vpack.c.bf16 %v8407_v2, %v8407_v2  ;;  %v12228_v54 = vrot.slane %v8407_v2, 1 }
 0x230   : > { %v8437_v49 = vmax.f32 %v1838_v55, %v1908_v23  ;;  %v5655_v1 = vpack.c.bf16 %v8413_v9, %v8413_v9  ;;  %vm12974_vm4 = vcmp.lt.s32.totalorder %v6606_v25, 7  ;;  %v2621_v59 = vrot.slane %v8413_v9, 1 }
 0x231   : > { %v2666_v0 = vsel %vm12974_vm4, %v12228_v54, %v2619_v51  ;;  %2496 = vrot.lane.b32.xlu1 %v5652_v19, %s6381_s17  ;;  %v2749_v39 = vrot.slane %v8413_v9, 7  ;;  %v5654_v55 = vpack.c.bf16 %v8419_v36, %v8419_v36  ;;  %v2620_v41 = vrot.slane %v8419_v36, 1  ;;  %vm12976_vm8 = vmmov %vm12974_vm4 }
 0x232   : > { %v2682_v58 = vsel %vm7006_vm5, %v2666_v0, -inf  ;;  %2502 = vrot.lane.b32.xlu0 %v5655_v1, %s6381_s17  ;;  %v2748_v34 = vrot.slane %v8419_v36, 7  ;;  %vm12977_vm6 = vmmov %vm12974_vm4  ;;  %v2174_v53 = vmax.f32 %v2078_v50, %v12910_v42  ;;  %v2173_v46 = vmax.f32 %v2077_v10, %v12911_v22 }
 0x233   : > { %v8459_v19 = vmax.f32 %v8407_v2, %v2682_v58  ;;  %v2664_v0 = vsel %vm12976_vm8, %v2620_v41, %v2621_v59  ;;  %v8468_v1 = vsel %vm12977_vm6, %v2619_v51, %v2620_v41  ;;  %vm12979_vm13 = vcmp.lt.s32.totalorder %v6606_v25, 1  ;;  %vm12982_vm8 = vmmov %vm12977_vm6 }
 0x234   : > { %v2684_v58 = vsel %vm7091_vm9, %v2664_v0, -inf  ;;  %v8476_v21 = vsel %vm12979_vm13, %v2748_v34, %v2749_v39  ;;  %v12980_v7 = vrot.slane %v8341_v16, 7  ;;  %vm12981_vm4 = vmmov %vm12979_vm13  ;;  %v2080_v51 = vmax.f32 %v7589_v14, %v7764_v47 }
 0x235   : > { %2500 = vrot.lane.b32.xlu1 %v5654_v55, %s6381_s17  ;;  %v8488_v50 = vmax.f32 %v8419_v36, %v2684_v58  ;;  %v2270_v10 = vmax.f32 %v2174_v53, %v7764_v47  ;;  %v2269_v41 = vmax.f32 %v2173_v46, %v7686_v56  ;;  %v2079_v0 = vmax.f32 %v7648_v38, %v7686_v56  ;;  %vm12983_vm13 = vmmov %vm12981_vm4 }
 0x236   : > { %v8482_v60 = vsel %vm12981_vm4, %v12980_v7, %v2748_v34  ;;  %v2176_v54 = vmax.f32 %v2080_v51, %v7646_v45  ;;  %v2082_v7 = vmax.f32 %v7764_v47, %v7754_v26  ;;  %v2081_v34 = vmax.f32 %v7686_v56, %v7818_v24 }
 0x237   : > { %v2084_v55 = vmax.f32 %v7754_v26, %v7932_v63  ;;  %v8504_v53 = vmax.f32 %v2270_v10, %v12885_v44  ;;  %v8507_v46 = vmax.f32 %v2269_v41, %v7272_v5  ;;  %v2175_v51 = vmax.f32 %v2079_v0, %v12912_v33 }
 0x238   : > { %v2272_v31 = vmax.f32 %v2176_v54, %v7754_v26  ;;  %v2178_v32 = vmax.f32 %v2082_v7, %v7589_v14  ;;  %v2177_v27 = vmax.f32 %v2081_v34, %v7648_v38  ;;  %v2083_v34 = vmax.f32 %v7818_v24, %v7853_v11 }
 0x239   : > { %v2180_v52 = vmax.f32 %v2084_v55, %v7764_v47  ;;  %v5657_v12 = vpack.c.bf16 %v8504_v53, %v8504_v53  ;;  %v2623_v58 = vrot.slane %v8504_v53, 1  ;;  %v2751_v10 = vrot.slane %v8504_v53, 7 }
 0x23a   : > { %v5656_v54 = vpack.c.bf16 %v8507_v46, %v8507_v46  ;;  %v2622_v0 = vrot.slane %v8507_v46, 1  ;;  %v2750_v7 = vrot.slane %v8507_v46, 7  ;;  %v8528_v61 = vmax.f32 %v2272_v31, %v12910_v42 }
 0x23b   : > { %2506 = vrot.lane.b32.xlu0 %v5657_v12, %s6381_s17  ;;  %v2271_v5 = vmax.f32 %v2175_v51, %v7818_v24  ;;  %v2273_v51 = vmax.f32 %v2177_v27, %v7853_v11  ;;  %v13021_v48 = vrot.slane %v8234_v57, 7  ;;  %vm13144_vm0 = vcmp.lt.s32.totalorder %v6606_v25, 2 }
 0x23c   : > { %v2662_v41 = vsel %vm12982_vm8, %v2622_v0, %v2623_v58  ;;  %v8535_v15 = vsel %vm12977_vm6, %v2621_v59, %v2622_v0  ;;  %v8539_v8 = vsel %vm12983_vm13, %v2750_v7, %v2751_v10  ;;  %v8543_v12 = vsel %vm12981_vm4, %v2749_v39, %v2750_v7  ;;  %2504 = vrot.lane.b32.xlu1 %v5656_v54, %s6381_s17  ;;  %vm12986_vm8 = vmmov %vm12977_vm6 }
 0x23d   : > { %v2686_v42 = vsel %vm7250_vm7, %v2662_v41, -inf  ;;  %v5659_v59 = vpack.c.bf16 %v8528_v61, %v8528_v61  ;;  %v8561_v41 = vmax.f32 %v2271_v5, %v12911_v22  ;;  %v2274_v7 = vmax.f32 %v2178_v32, %v7932_v63  ;;  %vm12988_vm13 = vmmov %vm12981_vm4 }
 0x23e   : > { %v8554_v55 = vmax.f32 %v8507_v46, %v2686_v42  ;;  %v2276_v0 = vmax.f32 %v2180_v52, %v7924_v30  ;;  %v2086_v54 = vmax.f32 %v7932_v63, %v7924_v30  ;;  %v8584_v39 = vmax.f32 %v2273_v51, %v12912_v33  ;;  %v12989_v33 = vld [vmem:[#allocation69_spill] sm:$0xff] }
 0x23f   : > { %2510 = vrot.lane.b32.xlu0 %v5659_v59, %s6381_s17  ;;  %v2085_v59 = vmax.f32 %v7853_v11, %v7934_v62  ;;  %v5658_v22 = vpack.c.bf16 %v8561_v41, %v8561_v41  ;;  %v2624_v32 = vrot.slane %v8561_v41, 1  ;;  %v8581_v42 = vmax.f32 %v2274_v7, %v7646_v45 }
 0x240   : > { %v8587_v29 = vmax.f32 %v2276_v0, %v7589_v14  ;;  %v12985_v31 = vrot.slane %v8528_v61, 1  ;;  %v12987_v5 = vrot.slane %v8561_v41, 7  ;;  %v2179_v14 = vmax.f32 %v2083_v34, %v7686_v56 }
 0x241   : > { %v8595_v27 = vsel %vm12977_vm6, %v2623_v58, %v2624_v32  ;;  %2508 = vrot.lane.b32.xlu1 %v5658_v22, %s6381_s17  ;;  %vm12990_vm4 = vnez %v12989_v33  ;;  %v5661_v58 = vpack.c.bf16 %v8581_v42, %v8581_v42  ;;  %v12245_v0 = vrot.slane %v8581_v42, 1 }
 0x242   : > { %v2660_v23 = vsel %vm12986_vm8, %v2624_v32, %v12985_v31  ;;  %v8601_v45 = vsel %vm12988_vm13, %v2751_v10, %v12987_v5  ;;  %v2626_v32 = vrot.slane %v8584_v39, 1  ;;  %v5663_v22 = vpack.c.bf16 %v8587_v29, %v8587_v29  ;;  %vm12991_vm8 = vmmov %vm12977_vm6  ;;  %v12992_v31 = vld [vmem:[#allocation74_spill] sm:$0xff] }
 0x243   : > { %v2688_v51 = vsel %vm12990_vm4, %v2660_v23, -inf  ;;  %2514 = vrot.lane.b32.xlu0 %v5661_v58, %s6381_s17  ;;  %v5660_v23 = vpack.c.bf16 %v8584_v39, %v8584_v39  ;;  %vm12993_vm6 = vnez %v12992_v31  ;;  %v2275_v33 = vmax.f32 %v2179_v14, %v7934_v62  ;;  %v12994_v5 = vld [vmem:[#allocation38_spill] sm:$0xff]  ;;  %vm12998_vm13 = vmmov %vm12991_vm8 }
 0x244   : > { %v8613_v7 = vmax.f32 %v8561_v41, %v2688_v51  ;;  %v2658_v58 = vsel %vm12991_vm8, %v2626_v32, %v12245_v0  ;;  %v2182_v34 = vmax.f32 %v2086_v54, %v7754_v26  ;;  %v2181_v20 = vmax.f32 %v2085_v59, %v7818_v24 }
 0x245   : > { %2512 = vrot.lane.b32.xlu1 %v5660_v23, %s6381_s17  ;;  %v2690_v10 = vsel %vm12993_vm6, %v2658_v58, -inf  ;;  %v2087_v23 = vmax.f32 %v7934_v62, %v8105_v6  ;;  %v1809_v51 = vmax.f32 %v8301_v4, %v12994_v5  ;;  %v2070_v58 = vmax.f32 %v12905_v13, %v12886_v28  ;;  %v12996_v5 = vld [vmem:[#allocation47_spill] sm:$0xff] }
 0x246   : > { %v8644_v40 = vmax.f32 %v8584_v39, %v2690_v10  ;;  %v8654_v14 = vmax.f32 %v2275_v33, %v7648_v38  ;;  %v2278_v54 = vmax.f32 %v2182_v34, %v8122_v3  ;;  %v2277_v59 = vmax.f32 %v2181_v20, %v8105_v6 }
 0x247   : > { %2518 = vrot.lane.b32.xlu0 %v5663_v22, %s6381_s17  ;;  %v2089_v10 = vmax.f32 %v8105_v6, %v8124_v18  ;;  %v2183_v22 = vmax.f32 %v2087_v23, %v7853_v11  ;;  %v12995_v52 = vsel %vm8202_vm12, %v8323_v37, -inf  ;;  %v2166_v0 = vmax.f32 %v2070_v58, %v12996_v5 }
 0x248   : > { %v8665_v4 = vmax.f32 %v1809_v51, %v12995_v52  ;;  %v12997_v38 = vrot.slane %v8528_v61, 1  ;;  %v5662_v20 = vpack.c.bf16 %v8654_v14, %v8654_v14  ;;  %v12248_v34 = vrot.slane %v8654_v14, 1 }
 0x249   : > { %v8681_v52 = vmax.f32 %v2278_v54, %v7764_v47  ;;  %v8684_v51 = vmax.f32 %v2277_v59, %v7686_v56  ;;  %v13001_v58 = vrot.slane %v8587_v29, 1  ;;  %v2262_v23 = vmax.f32 %v2166_v0, %v12885_v44  ;;  %v13005_v59 = vld [vmem:[#allocation13_spill] sm:$0xff]  ;;  %v13009_v0 = vld [vmem:[#allocation67_spill] sm:$0xff] }
 0x24a   : > { %v8672_v33 = vsel %vm12998_vm13, %v12997_v38, %v2626_v32  ;;  %v2279_v32 = vmax.f32 %v2183_v22, %v8124_v18  ;;  %2516 = vrot.lane.b32.xlu1 %v5662_v20, %s6381_s17  ;;  %v2185_v37 = vmax.f32 %v2089_v10, %v7934_v62  ;;  %v13002_v47 = vrot.slane %v8407_v2, 1  ;;  %vm13004_vm13 = vmmov %vm12991_vm8 }
 0x24b   : > { %12999 = vst [vmem:[#allocation38_spill] sm:$0xff] %v8681_v52  ;;  %13000 = vst [vmem:[#allocation47_spill] sm:$0xff] %v8684_v51  ;;  %v2656_v38 = vsel %vm12991_vm8, %v12248_v34, %v13001_v58  ;;  %v13003_v56 = vrot.slane %v8234_v57, 1  ;;  %vm13006_vm1 = vnez %v13005_v59  ;;  %v5665_v31 = vpack.c.bf16 %v8681_v52, %v8681_v52 }
 0x24c   : > { %v2692_v22 = vsel %vm13006_vm1, %v2656_v38, -inf  ;;  %v8725_v10 = vmax.f32 %v2262_v23, %v8665_v4  ;;  %v2281_v58 = vmax.f32 %v2185_v37, %v13009_v0  ;;  %v13010_v38 = vrot.slane %v8681_v52, 1 }
 0x24d   : > { %v2667_v54 = vsel %vm13004_vm13, %v13003_v56, %v13002_v47  ;;  %v8709_v44 = vmax.f32 %v8654_v14, %v2692_v22  ;;  %v5664_v47 = vpack.c.bf16 %v8684_v51, %v8684_v51  ;;  %2522 = vrot.lane.b32.xlu0 %v5665_v31, %s6381_s17  ;;  %v8722_v22 = vmax.f32 %v2279_v32, %v7818_v24 }
 0x24e   : > { %13008 = vst [vmem:[#allocation116_spill] sm:$0xff] %v8725_v10  ;;  %v2713_v31 = vmax.f32 %v8234_v57, %v2667_v54  ;;  %v13011_v56 = vrot.slane %v8684_v51, 1  ;;  %v2721_v24 = vmax.f32 %v8528_v61, %v8672_v33  ;;  %v13012_v23 = vrot.slane %v8528_v61, 7  ;;  %v13015_v54 = vld [vmem:[#allocation15_spill] sm:$0xff] }
 0x24f   : > { %2520 = vrot.lane.b32.xlu1 %v5664_v47, %s6381_s17  ;;  %13007 = vst [vmem:[#allocation115_spill] sm:$0xff] %v8722_v22  ;;  %v2715_v47 = vmax.f32 %v8341_v16, %v8468_v1  ;;  %v13013_v32 = vrot.slane %v8561_v41, 7  ;;  %vm13014_vm13 = vcmp.lt.s32.totalorder %v6606_v25, 1  ;;  %vm13016_vm1 = vnez %v13015_v54 }
 0x250   : > { %v2654_v34 = vsel %vm12991_vm8, %v13011_v56, %v13010_v38  ;;  %v5666_v59 = vpack.c.bf16 %v8722_v22, %v8722_v22  ;;  %v8762_v38 = vmax.f32 %v2281_v58, %v7853_v11  ;;  %v13018_v1 = vrot.slane %v8341_v16, 7  ;;  %vm13020_vm8 = vmmov %vm13014_vm13  ;;  %v13026_v58 = vld [vmem:[#allocation53_spill] sm:$0xff]  ;;  %v13028_v22 = vld [vmem:[#allocation62_spill] sm:$0xff] }
 0x251   : > { %v2788_v37 = vsel %vm13014_vm13, %v13013_v32, %v13012_v23  ;;  %v2694_v20 = vsel %vm13016_vm1, %v2654_v34, -inf  ;;  %v5649_v23 = vpack.c.bf16 %v8725_v10, %v8725_v10  ;;  %vm13023_vm13 = vmmov %vm13020_vm8  ;;  %v13024_v32 = vld [vmem:[#allocation49_spill] sm:$0xff]  ;;  %vm13027_vm3 = vnez %v13026_v58 }
 0x252   : > { %v8752_v56 = vmax.f32 %v8684_v51, %v2694_v20  ;;  %v13019_v20 = vrot.slane %v8407_v2, 7  ;;  %vm13025_vm1 = vnez %v13024_v32  ;;  %v2813_v54 = vsel %vm13027_vm3, %v8476_v21, -inf  ;;  %v13034_v58 = vld [vmem:[#allocation37_spill] sm:$0xff] }
 0x253   : > { %2524 = vrot.lane.b32.xlu1 %v5666_v59, %s6381_s17  ;;  %2490 = vrot.lane.b32.xlu0 %v5649_v23, %s6381_s17  ;;  %v13022_v59 = vrot.slane %v8231_v43, 7  ;;  %vm13029_vm15 = vnez %v13028_v22  ;;  %v13030_v23 = vrot.slane %v8231_v43, 1  ;;  %v13039_v21 = vmax.f32 %v8504_v53, %v8595_v27 }
 0x254   : > { %13017 = vst [vmem:[#allocation67_spill] sm:$0xff] %v8752_v56  ;;  %v2794_v33 = vsel %vm13020_vm8, %v13019_v20, %v13018_v1  ;;  %v2815_v1 = vsel %vm13029_vm15, %v8539_v8, -inf  ;;  %v13031_v20 = vrot.slane %v8725_v10, 1  ;;  %vm13032_vm8 = vcmp.lt.s32.totalorder %v6606_v25, 7 }
 0x255   : > { %v2796_v34 = vsel %vm13023_vm13, %v13022_v59, %v13021_v48  ;;  %v2811_v11 = vsel %vm13025_vm1, %v2794_v33, -inf  ;;  %v5668_v48 = vpack.c.bf16 %v8762_v38, %v8762_v38  ;;  %vm13035_vm13 = vnez %v13034_v58 }
 0x256   : > { %v8791_v56 = vsel %vm13032_vm8, %v13031_v20, %v13030_v23  ;;  %v2809_v32 = vsel %vm13035_vm13, %v2796_v34, -inf  ;;  %v13036_v23 = vld [vmem:[#allocation71_spill] sm:$0xff]  ;;  %v2843_v51 = vmax.f32 %v2715_v47, %v2811_v11  ;;  %v13038_v59 = vmax.f32 %v8413_v9, %v8535_v15 }
 0x257   : > { %13033 = vst [vmem:[#allocation117_spill] sm:$0xff] %v8791_v56  ;;  %2528 = vrot.lane.b32.xlu1 %v5668_v48, %s6381_s17  ;;  %vm13037_vm8 = vnez %v13036_v23  ;;  %v2841_v52 = vmax.f32 %v2713_v31, %v2809_v32  ;;  %v2847_v8 = vmax.f32 %v13039_v21, %v2815_v1  ;;  %v13040_v22 = vrot.slane %v8584_v39, 2 }
 0x258   : > { %v2817_v20 = vsel %vm13037_vm8, %v2788_v37, -inf  ;;  %v2845_v33 = vmax.f32 %v13038_v59, %v2813_v54  ;;  %v13041_v34 = vrot.slane %v8528_v61, 2  ;;  %vm13042_vm15 = vcmp.lt.s32.totalorder %v6606_v25, 6 }
 0x259   : > { %v2849_v56 = vmax.f32 %v2721_v24, %v2817_v20  ;;  %v13043_v37 = vrot.slane %v8561_v41, 2  ;;  %v13044_v31 = vrot.slane %v8504_v53, 2  ;;  %vm13045_vm8 = vmmov %vm13042_vm15  ;;  %v13046_v47 = vrot.slane %v8507_v46, 2 }
 0x25a   : > { %v2915_v48 = vsel %vm13042_vm15, %v13041_v34, %v13040_v22  ;;  %v13047_v27 = vrot.slane %v8413_v9, 2  ;;  %vm13048_vm13 = vmmov %vm13045_vm8  ;;  %v13049_v54 = vrot.slane %v8419_v36, 2  ;;  %v13050_v32 = vrot.slane %v8341_v16, 2 }
 0x25b   : > { %v2917_v15 = vsel %vm13045_vm8, %v13044_v31, %v13043_v37  ;;  %vm13051_vm15 = vmmov %vm13045_vm8  ;;  %v13052_v11 = vrot.slane %v8407_v2, 2  ;;  %v13053_v1 = vrot.slane %v8234_v57, 2  ;;  %v13054_v21 = vrot.slane %v8528_v61, 6 }
 0x25c   : > { %v2919_v24 = vsel %vm13048_vm13, %v13047_v27, %v13046_v47  ;;  %v2921_v22 = vsel %vm13051_vm15, %v13050_v32, %v13049_v54  ;;  %v13055_v20 = vrot.slane %v8561_v41, 6  ;;  %vm13056_vm13 = vcmp.lt.s32.totalorder %v6606_v25, 2 }
 0x25d   : > { %v2923_v59 = vsel %vm13045_vm8, %v13053_v1, %v13052_v11  ;;  %v2971_v31 = vmax.f32 %v2843_v51, %v2921_v22  ;;  %v2973_v47 = vmax.f32 %v2845_v33, %v2919_v24  ;;  %v2975_v27 = vmax.f32 %v2847_v8, %v2917_v15  ;;  %vm13059_vm15 = vmmov %vm13056_vm13  ;;  %v13069_v15 = vld [vmem:[#allocation54_spill] sm:$0xff]  ;;  %v13071_v22 = vld [vmem:[#allocation59_spill] sm:$0xff] }
 0x25e   : > { %v3044_v34 = vsel %vm13056_vm13, %v13055_v20, %v13054_v21  ;;  %v2969_v37 = vmax.f32 %v2841_v52, %v2923_v59  ;;  %v2977_v23 = vmax.f32 %v2849_v56, %v2915_v48  ;;  %v13057_v54 = vrot.slane %v8504_v53, 6  ;;  %vm13062_vm8 = vmmov %vm13056_vm13  ;;  %v13073_v21 = vld [vmem:[#allocation66_spill] sm:$0xff] }
 0x25f   : > { %v13058_v32 = vrot.slane %v8507_v46, 6  ;;  %v13060_v11 = vrot.slane %v8413_v9, 6  ;;  %v13061_v1 = vrot.slane %v8419_v36, 6  ;;  %v13063_v52 = vrot.slane %v8341_v16, 6  ;;  %vm13065_vm13 = vmmov %vm13062_vm8 }
 0x260   : > { %v13064_v51 = vrot.slane %v8407_v2, 6  ;;  %v13066_v33 = vrot.slane %v8234_v57, 6  ;;  %v13067_v8 = vrot.slane %v8231_v43, 6  ;;  %vm13070_vm3 = vnez %v13069_v15 }
 0x261   : > { %v3046_v58 = vsel %vm13059_vm15, %v13058_v32, %v13057_v54  ;;  %v3048_v10 = vsel %vm13062_vm8, %v13061_v1, %v13060_v11  ;;  %vm13068_vm15 = vmmov %vm13062_vm8  ;;  %vm13072_vm1 = vnez %v13071_v22  ;;  %vm13074_vm8 = vnez %v13073_v21  ;;  %v13075_v54 = vld [vmem:[#allocation44_spill] sm:$0xff]  ;;  %v13105_v21 = vld [vmem:[#allocation51_spill] sm:$0xff] }
 0x262   : > { %v3050_v56 = vsel %vm13065_vm13, %v13064_v51, %v13063_v52  ;;  %v3052_v48 = vsel %vm13068_vm15, %v13067_v8, %v13066_v33  ;;  %v3069_v59 = vsel %vm13072_vm1, %v3048_v10, -inf  ;;  %v3071_v20 = vsel %vm13074_vm8, %v3046_v58, -inf  ;;  %v13077_v11 = vld [vmem:[#allocation76_spill] sm:$0xff] }
 0x263   : > { %v3067_v24 = vsel %vm13070_vm3, %v3050_v56, -inf  ;;  %vm13076_vm10 = vnez %v13075_v54  ;;  %vm13078_vm13 = vnez %v13077_v11  ;;  %v8884_v51 = vmax.f32 %v2973_v47, %v3069_v59 }
 0x264   : > { %v3065_v32 = vsel %vm13076_vm10, %v3052_v48, -inf  ;;  %v3073_v1 = vsel %vm13078_vm13, %v3044_v34, -inf  ;;  %v8882_v52 = vmax.f32 %v2971_v31, %v3067_v24  ;;  %v8888_v8 = vmax.f32 %v2975_v27, %v3071_v20 }
 0x265   : > { %v8886_v33 = vmax.f32 %v2969_v37, %v3065_v32  ;;  %v8890_v56 = vmax.f32 %v2977_v23, %v3073_v1  ;;  %v13079_v10 = vrot.slane %v8584_v39, 7  ;;  %v13080_v58 = vrot.slane %v8528_v61, 7 }
 0x266   : > { %vm13081_vm15 = vcmp.lt.s32.totalorder %v6606_v25, 1  ;;  %v13082_v11 = vrot.slane %v8407_v2, 7  ;;  %v13083_v34 = vrot.slane %v8234_v57, 7  ;;  %v13085_v47 = vrot.slane %v8581_v42, 2 }
 0x267   : > { %v2787_v48 = vsel %vm13081_vm15, %v13080_v58, %v13079_v10  ;;  %vm13084_vm13 = vmmov %vm13081_vm15  ;;  %v13086_v23 = vrot.slane %v8584_v39, 2  ;;  %vm13087_vm3 = vcmp.lt.s32.totalorder %v6606_v25, 6  ;;  %v13088_v24 = vrot.slane %v8528_v61, 2 }
 0x268   : > { %v2795_v31 = vsel %vm13084_vm13, %v13083_v34, %v13082_v11  ;;  %v2850_v37 = vmax.f32 %v8644_v40, %v2787_v48  ;;  %v13089_v59 = vrot.slane %v8561_v41, 2  ;;  %vm13090_vm15 = vmmov %vm13087_vm3  ;;  %v3165_v32 = vmax.f32 %v8884_v51, %v8888_v8 }
 0x269   : > { %v2914_v27 = vsel %vm13087_vm3, %v13086_v23, %v13085_v47  ;;  %v2842_v11 = vmax.f32 %v8459_v19, %v2795_v31  ;;  %v13091_v40 = vrot.slane %v8504_v53, 2  ;;  %v13092_v1 = vrot.slane %v8507_v46, 2  ;;  %vm13093_vm13 = vmmov %vm13087_vm3  ;;  %v13099_v31 = vld [vmem:[#allocation58_spill] sm:$0xff] }
 0x26a   : > { %v2916_v20 = vsel %vm13090_vm15, %v13089_v59, %v13088_v24  ;;  %v13094_v58 = vrot.slane %v8413_v9, 2  ;;  %v13095_v48 = vrot.slane %v8419_v36, 2  ;;  %v13096_v47 = vrot.slane %v8341_v16, 2  ;;  %vm13098_vm15 = vmmov %vm13087_vm3  ;;  %v13101_v59 = vld [vmem:[#allocation63_spill] sm:$0xff] }
 0x26b   : > { %v2918_v10 = vsel %vm13093_vm13, %v13092_v1, %v13091_v40  ;;  %v13097_v23 = vrot.slane %v8407_v2, 2  ;;  %vm13100_vm10 = vnez %v13099_v31  ;;  %vm13102_vm8 = vnez %v13101_v59  ;;  %v13103_v1 = vld [vmem:[#allocation75_spill] sm:$0xff] }
 0x26c   : > { %v2920_v34 = vsel %vm13087_vm3, %v13095_v48, %v13094_v58  ;;  %v2942_v40 = vsel %vm13102_vm8, %v2918_v10, -inf  ;;  %vm13104_vm13 = vnez %v13103_v1  ;;  %v3229_v54 = vmax.f32 %v3165_v32, %v8882_v52  ;;  %v13107_v48 = vld [vmem:[#allocation78_spill] sm:$0xff] }
 0x26d   : > { %v2922_v19 = vsel %vm13098_vm15, %v13097_v23, %v13096_v47  ;;  %v2940_v24 = vsel %vm13100_vm10, %v2920_v34, -inf  ;;  %v2944_v15 = vsel %vm13104_vm13, %v2916_v20, -inf  ;;  %vm13106_vm3 = vnez %v13105_v21 }
 0x26e   : > { %v2938_v58 = vsel %vm13106_vm3, %v2922_v19, -inf  ;;  %vm13108_vm1 = vnez %v13107_v48  ;;  %v13109_v47 = vmax.f32 %v8488_v50, %v8482_v60  ;;  %v13110_v34 = vmax.f32 %v8554_v55, %v8543_v12 }
 0x26f   : > { %v2946_v22 = vsel %vm13108_vm1, %v2914_v27, -inf  ;;  %v2970_v31 = vmax.f32 %v2842_v11, %v2938_v58  ;;  %v13111_v20 = vmax.f32 %v8613_v7, %v8601_v45  ;;  %v3293_v59 = vmax.f32 %v3229_v54, %v8890_v56 }
 0x270   : > { %v2972_v23 = vmax.f32 %v13109_v47, %v2940_v24  ;;  %v2974_v10 = vmax.f32 %v13110_v34, %v2942_v40  ;;  %v2978_v32 = vmax.f32 %v2850_v37, %v2946_v22  ;;  %v13112_v19 = vrot.slane %v8584_v39, 6 }
 0x271   : > { %v2976_v1 = vmax.f32 %v13111_v20, %v2944_v15  ;;  %v13113_v27 = vrot.slane %v8528_v61, 6  ;;  %vm13114_vm15 = vcmp.lt.s32.totalorder %v6606_v25, 2  ;;  %v13115_v50 = vrot.slane %v8561_v41, 6 }
 0x272   : > { %v13116_v11 = vrot.slane %v8504_v53, 6  ;;  %vm13117_vm14 = vmmov %vm13114_vm15  ;;  %v13118_v12 = vrot.slane %v8507_v46, 6  ;;  %v13119_v45 = vrot.slane %v8413_v9, 6  ;;  %v13121_v15 = vrot.slane %v8419_v36, 6 }
 0x273   : > { %v3043_v60 = vsel %vm13114_vm15, %v13113_v27, %v13112_v19  ;;  %vm13120_vm11 = vmmov %vm13117_vm14  ;;  %v13122_v61 = vrot.slane %v8341_v16, 6  ;;  %v13124_v41 = vrot.slane %v8407_v2, 6  ;;  %v13125_v53 = vrot.slane %v8234_v57, 6 }
 0x274   : > { %v3045_v55 = vsel %vm13117_vm14, %v13116_v11, %v13115_v50  ;;  %v3047_v7 = vsel %vm13120_vm11, %v13119_v45, %v13118_v12  ;;  %vm13123_vm15 = vmmov %vm13120_vm11  ;;  %v8994_v37 = vmax.f32 %v3293_v59, %v8886_v33  ;;  %v9000_v24 = vmax.f32 %v2978_v32, %v3043_v60 }
 0x275   : > { %v3049_v22 = vsel %vm13123_vm15, %v13122_v61, %v13121_v15  ;;  %vm13126_vm14 = vmmov %vm13120_vm11  ;;  %v8989_v46 = vmax.f32 %v2974_v10, %v3047_v7  ;;  %v8991_v9 = vmax.f32 %v2976_v1, %v3045_v55  ;;  %v2088_v40 = vmax.f32 %v7924_v30, %v8122_v3  ;;  %v13130_v55 = vld [vmem:[#allocation108_spill] sm:$0xff] }
 0x276   : > { %v3051_v54 = vsel %vm13126_vm14, %v13125_v53, %v13124_v41  ;;  %v8998_v16 = vmax.f32 %v2972_v23, %v3049_v22  ;;  %v2091_v58 = vmax.f32 %v8124_v18, %v13009_v0  ;;  %v2066_v1 = vmax.f32 %v8665_v4, %v12996_v5 }
 0x277   : > { %v8996_v36 = vmax.f32 %v2970_v31, %v3051_v54  ;;  %v3166_v2 = vmax.f32 %v8989_v46, %v8991_v9  ;;  %v5687_v31 = vpack.c.bf16 %v8994_v37, %v8994_v37  ;;  %v2193_v59 = vmax.f32 %v8348_v17, %v8437_v49 }
 0x278   : > { %v2068_v47 = vmax.f32 %v12996_v5, %v12905_v13  ;;  %v2095_v23 = vmax.f32 %v8437_v49, %v8348_v17  ;;  %v2184_v10 = vmax.f32 %v2088_v40, %v7932_v63  ;;  %v2187_v20 = vmax.f32 %v2091_v58, %v8105_v6 }
 0x279   : > { %v3230_v34 = vmax.f32 %v3166_v2, %v8998_v16  ;;  %v9022_v32 = vmax.f32 %v2066_v1, %v12905_v13  ;;  %3495 = vrot.lane.b32.xlu0 %v5687_v31, %s6382_s7  ;;  %v9026_v19 = vmax.f32 %v2193_v59, %v13009_v0  ;;  %v13127_v60 = vrot.slane %v8654_v14, 1  ;;  %v13140_v1 = vld [vmem:[#allocation12_spill] sm:$0xff] }
 0x27a   : > { %v2164_v5 = vmax.f32 %v2068_v47, %v8665_v4  ;;  %v2191_v27 = vmax.f32 %v2095_v23, %v13009_v0  ;;  %v13128_v50 = vrot.slane %v8581_v42, 1  ;;  %vm13129_vm11 = vcmp.lt.s32.totalorder %v6606_v25, 7 }
 0x27b   : > { %v3294_v13 = vmax.f32 %v3230_v34, %v9000_v24  ;;  %v2280_v12 = vmax.f32 %v2184_v10, %v13130_v55  ;;  %v2283_v45 = vmax.f32 %v2187_v20, %v8437_v49  ;;  %v5645_v7 = vpack.c.bf16 %v9022_v32, %v9022_v32  ;;  %vm13133_vm15 = vmmov %vm13129_vm11 }
 0x27c   : > { %v2657_v11 = vsel %vm13129_vm11, %v13128_v50, %v13127_v60  ;;  %v5676_v4 = vpack.c.bf16 %v9026_v19, %v9026_v19  ;;  %v9045_v61 = vmax.f32 %v2164_v5, %v12886_v28  ;;  %v9048_v22 = vmax.f32 %v2191_v27, %v8124_v18 }
 0x27d   : > { %v9051_v41 = vmax.f32 %v3294_v13, %v8996_v36  ;;  %v9054_v53 = vmax.f32 %v2280_v12, %v7754_v26  ;;  %v9057_v54 = vmax.f32 %v2283_v45, %v7934_v62  ;;  %v2723_v2 = vmax.f32 %v8581_v42, %v2657_v11  ;;  %v13147_v11 = vld [vmem:[#allocation81_spill] sm:$0xff] }
 0x27e   : > { %13131 = vst [vmem:[#allocation108_spill] sm:$0xff] %v9048_v22  ;;  %v5647_v40 = vpack.c.bf16 %v9045_v61, %v9045_v61  ;;  %v5674_v28 = vpack.c.bf16 %v9048_v22, %v9048_v22  ;;  %v13132_v20 = vrot.slane %v8762_v38, 1  ;;  %v13134_v12 = vrot.slane %v8581_v42, 7 }
 0x27f   : > { %v5688_v31 = vpack.c.bf16 %v9051_v41, %v9051_v41  ;;  %v5667_v26 = vpack.c.bf16 %v9054_v53, %v9054_v53  ;;  %v12272_v62 = vrot.slane %v9054_v53, 1  ;;  %v5670_v34 = vpack.c.bf16 %v9057_v54, %v9057_v54 }
 0x280   : > { %v12273_v10 = vrot.slane %v9057_v54, 1  ;;  %v13135_v45 = vrot.slane %v8584_v39, 7  ;;  %vm13136_vm14 = vcmp.lt.s32.totalorder %v6606_v25, 1  ;;  %vm13139_vm11 = vcmp.lt.s32.totalorder %v6606_v25, 6 }
 0x281   : > { %3497 = vrot.lane.b32.xlu1 %v5688_v31, %s6382_s7  ;;  %v9084_v5 = vsel %vm13133_vm15, %v12272_v62, %v13132_v20  ;;  %2526 = vrot.lane.b32.xlu0 %v5667_v26, %s6381_s17  ;;  %v13137_v26 = vrot.slane %v8654_v14, 2  ;;  %v13138_v20 = vrot.slane %v8581_v42, 2  ;;  %vm13141_vm15 = vnez %v13140_v1  ;;  %v13189_v1 = vld [vmem:[#allocation67_spill] sm:$0xff] }
 0x282   : > { %v2786_v31 = vsel %vm13136_vm14, %v13135_v45, %v13134_v12  ;;  %v13142_v50 = vrot.slane %v8581_v42, 6  ;;  %v13143_v13 = vrot.slane %v8584_v39, 6  ;;  %v3167_v12 = vmax.f32 %v8888_v8, %v8890_v56 }
 0x283   : > { %v2913_v15 = vsel %vm13139_vm11, %v13138_v20, %v13137_v26  ;;  %v2819_v58 = vsel %vm13141_vm15, %v2786_v31, -inf  ;;  %v13145_v45 = vrot.slane %v8654_v14, 7  ;;  %v13146_v27 = vrot.slane %v8581_v42, 7 }
 0x284   : > { %v3042_v60 = vsel %vm13144_vm0, %v13143_v13, %v13142_v50  ;;  %v2851_v20 = vmax.f32 %v2723_v2, %v2819_v58  ;;  %vm13148_vm11 = vnez %v13147_v11  ;;  %v13149_v39 = vrot.slane %v8587_v29, 2 }
 0x285   : > { %v2785_v26 = vsel %vm13136_vm14, %v13146_v27, %v13145_v45  ;;  %v3075_v31 = vsel %vm13148_vm11, %v3042_v60, -inf  ;;  %v13150_v50 = vrot.slane %v8654_v14, 2  ;;  %vm13151_vm0 = vcmp.lt.s32.totalorder %v6606_v25, 6  ;;  %2532 = vrot.lane.b32.xlu1 %v5670_v34, %s6381_s17  ;;  %2482 = vrot.lane.b32.xlu0 %v5645_v7, %s6381_s17  ;;  %v13152_v27 = vld [vmem:[#allocation83_spill] sm:$0xff] }
 0x286   : > { %v2852_v23 = vmax.f32 %v8709_v44, %v2785_v26  ;;  %v3231_v59 = vmax.f32 %v3167_v12, %v8884_v51  ;;  %vm13153_vm14 = vnez %v13152_v27  ;;  %v13154_v58 = vrot.slane %v8654_v14, 6 }
 0x287   : > { %v2912_v13 = vsel %vm13151_vm0, %v13150_v50, %v13149_v39  ;;  %v13155_v44 = vrot.slane %v8581_v42, 6  ;;  %vm13156_vm11 = vcmp.lt.s32.totalorder %v6606_v25, 2  ;;  %v3168_v45 = vmax.f32 %v8991_v9, %v9000_v24  ;;  %v13157_v50 = vld [vmem:[#allocation114_spill] sm:$0xff] }
 0x288   : > { %v2948_v2 = vsel %vm13153_vm14, %v2912_v13, -inf  ;;  %v2979_v26 = vmax.f32 %v2851_v20, %v2913_v15  ;;  %v2090_v7 = vmax.f32 %v8122_v3, %v13130_v55  ;;  %v2093_v34 = vmax.f32 %v13009_v0, %v8437_v49 }
 0x289   : > { %v3041_v60 = vsel %vm13156_vm11, %v13155_v44, %v13154_v58  ;;  %v2980_v39 = vmax.f32 %v2852_v23, %v2948_v2  ;;  %v3232_v12 = vmax.f32 %v3168_v45, %v8989_v46  ;;  %v2192_v13 = vmax.f32 %v13157_v50, %v8431_v35  ;;  %v13162_v23 = vld [vmem:[#allocation116_spill] sm:$0xff]  ;;  %2544 = vrot.lane.b32.xlu1 %v5676_v4, %s6381_s17 }
 0x28a   : > { %v13158_v42 = vrot.slane %v8234_v57, 1  ;;  %v13159_v58 = vrot.slane %v8231_v43, 1  ;;  %vm13160_vm11 = vcmp.lt.s32.totalorder %v6606_v25, 7  ;;  %v13161_v15 = vrot.slane %v8231_v43, 7  ;;  %2486 = vrot.lane.b32.xlu0 %v5647_v40, %s6381_s17 }
 0x28b   : > { %v13163_v20 = vrot.slane %v13162_v23, 7  ;;  %vm13164_vm0 = vcmp.lt.s32.totalorder %v6606_v25, 1  ;;  %v9162_v49 = vmax.f32 %v2979_v26, %v3075_v31  ;;  %v9164_v0 = vmax.f32 %v2980_v39, %v3041_v60 }
 0x28c   : > { %v2668_v44 = vsel %vm13160_vm11, %v13159_v58, %v13158_v42  ;;  %v2186_v45 = vmax.f32 %v2090_v7, %v7924_v30  ;;  %v2189_v47 = vmax.f32 %v2093_v34, %v8124_v18  ;;  %v9171_v42 = vmax.f32 %v2192_v13, %v13130_v55  ;;  %v13166_v58 = vld [vmem:[#allocation36_spill] sm:$0xff] }
 0x28d   : > { %v2797_v2 = vsel %vm13164_vm0, %v13163_v20, %v13161_v15  ;;  %vm13167_vm11 = vnez %v13166_v58  ;;  %v13168_v15 = vrot.slane %v8234_v57, 2  ;;  %v13169_v31 = vrot.slane %v8231_v43, 2  ;;  %2540 = vrot.lane.b32.xlu1 %v5674_v28, %s6381_s17  ;;  %v13172_v20 = vld [vmem:[#allocation43_spill] sm:$0xff] }
 0x28e   : > { %13165 = vst [vmem:[#allocation114_spill] sm:$0xff] %v9171_v42  ;;  %v2680_v62 = vsel %vm13167_vm11, %v2668_v44, -inf  ;;  %vm13170_vm0 = vcmp.lt.s32.totalorder %v6606_v25, 6  ;;  %v12275_v26 = vrot.slane %v13162_v23, 6  ;;  %v3295_v18 = vmax.f32 %v3231_v59, %v9162_v49 }
 0x28f   : > { %v2924_v60 = vsel %vm13170_vm0, %v13169_v31, %v13168_v15  ;;  %v3296_v4 = vmax.f32 %v3232_v12, %v9164_v0  ;;  %v2282_v40 = vmax.f32 %v2186_v45, %v8431_v35  ;;  %v2285_v39 = vmax.f32 %v2189_v47, %v8348_v17 }
 0x290   : > { %v5675_v7 = vpack.c.bf16 %v9171_v42, %v9171_v42  ;;  %v2712_v13 = vmax.f32 %v8231_v43, %v2680_v62  ;;  %v9192_v44 = vmax.f32 %v3295_v18, %v8882_v52  ;;  %vm13173_vm0 = vnez %v13172_v20  ;;  %v13178_v18 = vld [vmem:[#allocation47_spill] sm:$0xff]  ;;  %v13224_v42 = vld [vmem:[#allocation17_spill] sm:$0xff] }
 0x291   : > { %v9195_v59 = vmax.f32 %v3296_v4, %v8998_v16  ;;  %v9198_v12 = vmax.f32 %v2282_v40, %v7932_v63  ;;  %v9201_v17 = vmax.f32 %v2285_v39, %v8105_v6  ;;  %v2936_v62 = vsel %vm13173_vm0, %v2924_v60, -inf }
 0x292   : > { %v2840_v47 = vmax.f32 %v2712_v13, %v2797_v2  ;;  %v13174_v45 = vrot.slane %v8231_v43, 6  ;;  %vm13175_vm15 = vcmp.lt.s32.totalorder %v6606_v25, 2  ;;  %v3164_v6 = vmax.f32 %v8998_v16, %v8989_v46 }
 0x293   : > { %13171 = vst [vmem:[#allocation116_spill] sm:$0xff] %v9201_v17  ;;  %v5689_v15 = vpack.c.bf16 %v9192_v44, %v9192_v44  ;;  %v5690_v28 = vpack.c.bf16 %v9195_v59, %v9195_v59  ;;  %v5669_v2 = vpack.c.bf16 %v9198_v12, %v9198_v12  ;;  %v12274_v31 = vrot.slane %v9198_v12, 1 }
 0x294   : > { %v3053_v63 = vsel %vm13175_vm15, %v12275_v26, %v13174_v45  ;;  %v5672_v40 = vpack.c.bf16 %v9201_v17, %v9201_v17  ;;  %vm13176_vm15 = vcmp.lt.s32.totalorder %v6606_v25, 7  ;;  %v2968_v4 = vmax.f32 %v2840_v47, %v2936_v62  ;;  %v13182_v45 = vld [vmem:[#allocation38_spill] sm:$0xff] }
 0x295   : > { %3499 = vrot.lane.b32.xlu0 %v5689_v15, %s6382_s7  ;;  %v9236_v39 = vsel %vm13176_vm15, %v12274_v31, %v12273_v10  ;;  %3501 = vrot.lane.b32.xlu1 %v5690_v28, %s6382_s7  ;;  %v3228_v60 = vmax.f32 %v3164_v6, %v8996_v36  ;;  %v2094_v10 = vmax.f32 %v8431_v35, %v13157_v50  ;;  %v13179_v31 = vrot.slane %v13178_v18, 7 }
 0x296   : > { %13177 = vst [vmem:[#allocation118_spill] sm:$0xff] %v9236_v39  ;;  %v13180_v13 = vrot.slane %v8587_v29, 7  ;;  %vm13181_vm15 = vcmp.lt.s32.totalorder %v6606_v25, 1  ;;  %v13183_v28 = vrot.slane %v13182_v45, 2  ;;  %v13184_v26 = vrot.slane %v13178_v18, 2 }
 0x297   : > { %vm13185_vm14 = vcmp.lt.s32.totalorder %v6606_v25, 6  ;;  %v13186_v47 = vrot.slane %v13178_v18, 6  ;;  %v13187_v62 = vrot.slane %v8587_v29, 6  ;;  %vm13188_vm0 = vcmp.lt.s32.totalorder %v6606_v25, 2 }
 0x298   : > { %v2783_v34 = vsel %vm13181_vm15, %v13180_v13, %v13179_v31  ;;  %v2910_v57 = vsel %vm13185_vm14, %v13184_v26, %v13183_v28  ;;  %v9266_v15 = vmax.f32 %v2968_v4, %v3053_v63  ;;  %v3292_v11 = vmax.f32 %v3228_v60, %v8991_v9  ;;  %v13190_v13 = vld [vmem:[#allocation87_spill] sm:$0xff]  ;;  %v13198_v4 = vld [vmem:[#allocation14_spill] sm:$0xff] }
 0x299   : > { %v3039_v6 = vsel %vm13188_vm0, %v13187_v62, %v13186_v47  ;;  %v2854_v31 = vmax.f32 %v13189_v1, %v2783_v34  ;;  %vm13191_vm15 = vnez %v13190_v13  ;;  %2530 = vrot.lane.b32.xlu0 %v5669_v2, %s6381_s17  ;;  %v2190_v26 = vmax.f32 %v2094_v10, %v13130_v55  ;;  %2536 = vrot.lane.b32.xlu1 %v5672_v40, %s6381_s17 }
 0x29a   : > { %v2950_v27 = vsel %vm13191_vm15, %v2910_v57, -inf  ;;  %v3170_v28 = vmax.f32 %v9000_v24, %v9164_v0  ;;  %v13192_v20 = vrot.slane %v13178_v18, 1  ;;  %v13193_v47 = vrot.slane %v8587_v29, 1 }
 0x29b   : > { %vm13194_vm14 = vcmp.lt.s32.totalorder %v6606_v25, 7  ;;  %v13195_v60 = vrot.slane %v8587_v29, 7  ;;  %v13196_v1 = vrot.slane %v8654_v14, 7  ;;  %vm13197_vm0 = vcmp.lt.s32.totalorder %v6606_v25, 1 }
 0x29c   : > { %v2655_v63 = vsel %vm13194_vm14, %v13193_v47, %v13192_v20  ;;  %v9290_v10 = vmax.f32 %v3292_v11, %v9266_v15  ;;  %v2982_v34 = vmax.f32 %v2854_v31, %v2950_v27  ;;  %vm13199_vm15 = vnez %v13198_v4 }
 0x29d   : > { %v2784_v57 = vsel %vm13197_vm0, %v13196_v1, %v13195_v60  ;;  %v2725_v2 = vmax.f32 %v8587_v29, %v2655_v63  ;;  %v9296_v20 = vmax.f32 %v2190_v26, %v8122_v3  ;;  %v3234_v47 = vmax.f32 %v3170_v28, %v8991_v9  ;;  %v13207_v1 = vld [vmem:[#allocation84_spill] sm:$0xff]  ;;  %2542 = vrot.lane.b32.xlu0 %v5675_v7, %s6381_s17 }
 0x29e   : > { %v2821_v62 = vsel %vm13199_vm15, %v2784_v57, -inf  ;;  %v13201_v13 = vrot.slane %v13178_v18, 2  ;;  %v13202_v60 = vrot.slane %v8587_v29, 2  ;;  %vm13203_vm14 = vcmp.lt.s32.totalorder %v6606_v25, 6  ;;  %v13210_v7 = vld [vmem:[#allocation100_spill] sm:$0xff] }
 0x29f   : > { %13200 = vst [vmem:[#allocation47_spill] sm:$0xff] %v9296_v20  ;;  %v13204_v11 = vrot.slane %v8587_v29, 6  ;;  %v13205_v27 = vrot.slane %v8654_v14, 6  ;;  %vm13206_vm0 = vcmp.lt.s32.totalorder %v6606_v25, 2  ;;  %v5686_v26 = vpack.c.bf16 %v9290_v10, %v9290_v10 }
 0x2a0   : > { %v2911_v40 = vsel %vm13203_vm14, %v13202_v60, %v13201_v13  ;;  %v9313_v63 = vmax.f32 %v2982_v34, %v3039_v6  ;;  %v2853_v28 = vmax.f32 %v2725_v2, %v2821_v62  ;;  %vm13208_vm15 = vnez %v13207_v1 }
 0x2a1   : > { %v3040_v31 = vsel %vm13206_vm0, %v13205_v27, %v13204_v11  ;;  %v5673_v13 = vpack.c.bf16 %v9296_v20, %v9296_v20  ;;  %3493 = vrot.lane.b32.xlu1 %v5686_v26, %s6382_s7  ;;  %v3169_v2 = vmax.f32 %v8890_v56, %v9162_v49  ;;  %v13209_v62 = vrot.slane %v13162_v23, 1 }
 0x2a2   : > { %v3077_v57 = vsel %vm13208_vm15, %v3040_v31, -inf  ;;  %v3298_v6 = vmax.f32 %v3234_v47, %v9313_v63  ;;  %v2981_v34 = vmax.f32 %v2853_v28, %v2911_v40  ;;  %v13211_v11 = vrot.slane %v13210_v7, 1  ;;  %v13213_v31 = vld [vmem:[#allocation28_spill] sm:$0xff] }
 0x2a3   : > { %vm13212_vm14 = vcmp.lt.s32.totalorder %v6606_v25, 7  ;;  %vm13214_vm0 = vnez %v13213_v31  ;;  %v12276_v60 = vrot.slane %v9045_v61, 7  ;;  %v2742_v26 = vrot.slane %v13210_v7, 7  ;;  %2538 = vrot.lane.b32.xlu0 %v5673_v13, %s6381_s17 }
 0x2a4   : > { %v2670_v27 = vsel %vm13212_vm14, %v13211_v11, %v13209_v62  ;;  %v12277_v47 = vrot.slane %v13210_v7, 2  ;;  %v9339_v40 = vmax.f32 %v3298_v6, %v8989_v46  ;;  %v9341_v28 = vmax.f32 %v2981_v34, %v3077_v57 }
 0x2a5   : > { %v2678_v14 = vsel %vm13214_vm0, %v2670_v27, -inf  ;;  %v3233_v29 = vmax.f32 %v3169_v2, %v8888_v8  ;;  %vm13215_vm14 = vcmp.lt.s32.totalorder %v6606_v25, 1  ;;  %v2871_v11 = vrot.slane %v13162_v23, 2 }
 0x2a6   : > { %v2710_v1 = vmax.f32 %v13210_v7, %v2678_v14  ;;  %v2799_v62 = vsel %vm13215_vm14, %v12276_v60, %v2742_v26  ;;  %v12280_v27 = vrot.slane %v9045_v61, 6  ;;  %v2998_v6 = vrot.slane %v13210_v7, 6 }
 0x2a7   : > { %v5692_v57 = vpack.c.bf16 %v9339_v40, %v9339_v40  ;;  %v3297_v34 = vmax.f32 %v3233_v29, %v9341_v28  ;;  %v3162_v13 = vmax.f32 %v8996_v36, %v8998_v16  ;;  %vm13216_vm15 = vcmp.lt.s32.totalorder %v6606_v25, 6  ;;  %v13219_v29 = vld [vmem:[#allocation115_spill] sm:$0xff] }
 0x2a8   : > { %v2838_v2 = vmax.f32 %v2710_v1, %v2799_v62  ;;  %v2926_v14 = vsel %vm13216_vm15, %v12277_v47, %v2871_v11  ;;  %vm13217_vm14 = vcmp.lt.s32.totalorder %v6606_v25, 2  ;;  %v2092_v4 = vmax.f32 %v13130_v55, %v8431_v35  ;;  %v13222_v47 = vld [vmem:[#allocation33_spill] sm:$0xff] }
 0x2a9   : > { %v3055_v60 = vsel %vm13217_vm14, %v12280_v27, %v2998_v6  ;;  %v13218_v31 = vrot.slane %v9054_v53, 1  ;;  %v13220_v1 = vrot.slane %v13219_v29, 1  ;;  %vm13221_vm0 = vcmp.lt.s32.totalorder %v6606_v25, 7  ;;  %3505 = vrot.lane.b32.xlu1 %v5692_v57, %s6382_s7 }
 0x2aa   : > { %v9376_v58 = vmax.f32 %v3297_v34, %v8884_v51  ;;  %vm13223_vm15 = vnez %v13222_v47  ;;  %v3226_v27 = vmax.f32 %v3162_v13, %v9266_v15  ;;  %vm13225_vm14 = vnez %v13224_v42 }
 0x2ab   : > { %v2652_v62 = vsel %vm13221_vm0, %v13220_v1, %v13218_v31  ;;  %v2934_v22 = vsel %vm13223_vm15, %v2926_v14, -inf  ;;  %v2188_v39 = vmax.f32 %v2092_v4, %v8122_v3  ;;  %v13226_v31 = vrot.slane %v13219_v29, 7 }
 0x2ac   : > { %v2696_v35 = vsel %vm13225_vm14, %v2652_v62, -inf  ;;  %v2966_v55 = vmax.f32 %v2838_v2, %v2934_v22  ;;  %v13227_v57 = vrot.slane %v13182_v45, 7  ;;  %vm13228_vm0 = vcmp.lt.s32.totalorder %v6606_v25, 1 }
 0x2ad   : > { %v2728_v20 = vmax.f32 %v13219_v29, %v2696_v35  ;;  %v5691_v14 = vpack.c.bf16 %v9376_v58, %v9376_v58  ;;  %v3290_v13 = vmax.f32 %v3226_v27, %v8989_v46  ;;  %v13229_v1 = vrot.slane %v9054_v53, 2  ;;  %v13235_v46 = vld [vmem:[#allocation91_spill] sm:$0xff] }
 0x2ae   : > { %v2781_v34 = vsel %vm13228_vm0, %v13227_v57, %v13226_v31  ;;  %v13230_v22 = vrot.slane %v13219_v29, 2  ;;  %vm13231_vm14 = vcmp.lt.s32.totalorder %v6606_v25, 6  ;;  %v13232_v4 = vrot.slane %v13219_v29, 6 }
 0x2af   : > { %v13233_v2 = vrot.slane %v13182_v45, 6  ;;  %vm13234_vm15 = vcmp.lt.s32.totalorder %v6606_v25, 2  ;;  %v9406_v35 = vmax.f32 %v2966_v55, %v3055_v60  ;;  %v2284_v31 = vmax.f32 %v2188_v39, %v13157_v50  ;;  %3503 = vrot.lane.b32.xlu0 %v5691_v14, %s6382_s7  ;;  %v13243_v14 = vld [vmem:[#allocation39_spill] sm:$0xff] }
 0x2b0   : > { %v2908_v3 = vsel %vm13231_vm14, %v13230_v22, %v13229_v1  ;;  %v2856_v57 = vmax.f32 %v2728_v20, %v2781_v34  ;;  %vm13236_vm0 = vnez %v13235_v46  ;;  %v3172_v1 = vmax.f32 %v9164_v0, %v9313_v63 }
 0x2b1   : > { %v3037_v62 = vsel %vm13234_vm15, %v13233_v2, %v13232_v4  ;;  %v2952_v27 = vsel %vm13236_vm0, %v2908_v3, -inf  ;;  %v13237_v22 = vrot.slane %v13162_v23, 7  ;;  %vm13238_vm14 = vcmp.lt.s32.totalorder %v6606_v25, 1  ;;  %v13245_v3 = vld [vmem:[#allocation117_spill] sm:$0xff] }
 0x2b2   : > { %v13239_v4 = vrot.slane %v8231_v43, 2  ;;  %vm13240_vm15 = vcmp.lt.s32.totalorder %v6606_v25, 6  ;;  %v13241_v50 = vrot.slane %v13162_v23, 6  ;;  %vm13242_vm11 = vcmp.lt.s32.totalorder %v6606_v25, 2 }
 0x2b3   : > { %v2798_v42 = vsel %vm13238_vm14, %v2742_v26, %v13237_v22  ;;  %v9427_v20 = vmax.f32 %v3290_v13, %v9406_v35  ;;  %v9430_v55 = vmax.f32 %v2284_v31, %v7924_v30  ;;  %v2984_v34 = vmax.f32 %v2856_v57, %v2952_v27  ;;  %v13247_v22 = vld [vmem:[#allocation40_spill] sm:$0xff] }
 0x2b4   : > { %v2925_v60 = vsel %vm13240_vm15, %v2871_v11, %v13239_v4  ;;  %v3054_v39 = vsel %vm13242_vm11, %v2998_v6, %v13241_v50  ;;  %vm13244_vm0 = vnez %v13243_v14  ;;  %v3236_v43 = vmax.f32 %v3172_v1, %v9000_v24 }
 0x2b5   : > { %v2807_v26 = vsel %vm13244_vm0, %v2798_v42, -inf  ;;  %v13246_v11 = vmax.f32 %v13162_v23, %v13245_v3  ;;  %vm13248_vm14 = vnez %v13247_v22  ;;  %v3163_v6 = vmax.f32 %v8882_v52, %v8884_v51 }
 0x2b6   : > { %v3063_v4 = vsel %vm13248_vm14, %v3054_v39, -inf  ;;  %v5684_v30 = vpack.c.bf16 %v9427_v20, %v9427_v20  ;;  %v5671_v13 = vpack.c.bf16 %v9430_v55, %v9430_v55  ;;  %v12286_v42 = vrot.slane %v9430_v55, 1 }
 0x2b7   : > { %v2839_v2 = vmax.f32 %v13246_v11, %v2807_v26  ;;  %v9450_v27 = vmax.f32 %v2984_v34, %v3037_v62  ;;  %v13249_v50 = vrot.slane %v9201_v17, 1  ;;  %vm13250_vm11 = vcmp.lt.s32.totalorder %v6606_v25, 7 }
 0x2b8   : > { %3489 = vrot.lane.b32.xlu1 %v5684_v30, %s6382_s7  ;;  %2534 = vrot.lane.b32.xlu0 %v5671_v13, %s6381_s17  ;;  %v3227_v26 = vmax.f32 %v3163_v6, %v8886_v33  ;;  %v2613_v3 = vrot.slane %v9045_v61, 1  ;;  %v12287_v62 = vrot.slane %v9022_v32, 7  ;;  %vm13254_vm15 = vmmov %vm13250_vm11  ;;  %v2869_v31 = vrot.slane %v9045_v61, 2 }
 0x2b9   : > { %v2967_v1 = vmax.f32 %v2839_v2, %v2925_v60  ;;  %v9459_v39 = vsel %vm13250_vm11, %v12286_v42, %v13249_v50  ;;  %v3300_v34 = vmax.f32 %v3236_v43, %v9450_v27  ;;  %v13252_v2 = vld [vmem:[#allocation93_spill] sm:$0xff]  ;;  %v13256_v60 = vld [vmem:[#allocation22_spill] sm:$0xff]  ;;  %vm13258_vm14 = vcmp.lt.s32.totalorder %v6606_v25, 1 }
 0x2ba   : > { %13251 = vst [vmem:[#allocation38_spill] sm:$0xff] %v9459_v39  ;;  %v2740_v30 = vrot.slane %v13252_v2, 7  ;;  %v3291_v50 = vmax.f32 %v3227_v26, %v8888_v8  ;;  %v13253_v23 = vrot.slane %v13252_v2, 1  ;;  %v12288_v13 = vrot.slane %v13252_v2, 2  ;;  %v13260_v42 = vld [vmem:[#allocation29_spill] sm:$0xff] }
 0x2bb   : > { %v9468_v11 = vmax.f32 %v2967_v1, %v3063_v4  ;;  %v9479_v57 = vmax.f32 %v3300_v34, %v8991_v9  ;;  %vm13257_vm11 = vnez %v13256_v60  ;;  %v2996_v34 = vrot.slane %v13252_v2, 6 }
 0x2bc   : > { %v2672_v6 = vsel %vm13254_vm15, %v13253_v23, %v2613_v3  ;;  %v2801_v4 = vsel %vm13258_vm14, %v12287_v62, %v2740_v30  ;;  %vm13259_vm15 = vcmp.lt.s32.totalorder %v6606_v25, 6  ;;  %v3158_v1 = vmax.f32 %v9406_v35, %v9266_v15 }
 0x2bd   : > { %13255 = vst [vmem:[#allocation67_spill] sm:$0xff] %v9479_v57  ;;  %v2676_v43 = vsel %vm13257_vm11, %v2672_v6, -inf  ;;  %v9489_v26 = vmax.f32 %v3291_v50, %v9468_v11  ;;  %v2928_v9 = vsel %vm13259_vm15, %v12288_v13, %v2869_v31  ;;  %v5694_v6 = vpack.c.bf16 %v9479_v57, %v9479_v57 }
 0x2be   : > { %v2708_v23 = vmax.f32 %v13252_v2, %v2676_v43  ;;  %vm13261_vm11 = vnez %v13260_v42  ;;  %v3160_v50 = vmax.f32 %v9266_v15, %v8996_v36  ;;  %v13262_v13 = vrot.slane %v9022_v32, 6 }
 0x2bf   : > { %v2932_v62 = vsel %vm13261_vm11, %v2928_v9, -inf  ;;  %v5685_v43 = vpack.c.bf16 %v9489_v26, %v9489_v26  ;;  %vm13263_vm14 = vcmp.lt.s32.totalorder %v6606_v25, 2  ;;  %v13264_v22 = vrot.slane %v13219_v29, 1  ;;  %3509 = vrot.lane.b32.xlu1 %v5694_v6, %s6382_s7  ;;  %v13273_v6 = vld [vmem:[#allocation16_spill] sm:$0xff] }
 0x2c0   : > { %v2836_v46 = vmax.f32 %v2708_v23, %v2801_v4  ;;  %v3057_v60 = vsel %vm13263_vm14, %v13262_v13, %v2996_v34  ;;  %v13265_v42 = vrot.slane %v13182_v45, 1  ;;  %vm13266_vm15 = vcmp.lt.s32.totalorder %v6606_v25, 7 }
 0x2c1   : > { %v3224_v14 = vmax.f32 %v3160_v50, %v9406_v35  ;;  %v13267_v4 = vrot.slane %v13182_v45, 7  ;;  %v13268_v23 = vrot.slane %v13178_v18, 7  ;;  %vm13269_vm11 = vcmp.lt.s32.totalorder %v6606_v25, 1  ;;  %3491 = vrot.lane.b32.xlu0 %v5685_v43, %s6382_s7 }
 0x2c2   : > { %v2653_v9 = vsel %vm13266_vm15, %v13265_v42, %v13264_v22  ;;  %v13270_v57 = vrot.slane %v13219_v29, 2  ;;  %v13271_v39 = vrot.slane %v13182_v45, 2  ;;  %vm13272_vm14 = vcmp.lt.s32.totalorder %v6606_v25, 6 }
 0x2c3   : > { %v2727_v47 = vmax.f32 %v13182_v45, %v2653_v9  ;;  %v2782_v13 = vsel %vm13269_vm11, %v13268_v23, %v13267_v4  ;;  %v2964_v42 = vmax.f32 %v2836_v46, %v2932_v62  ;;  %vm13274_vm15 = vnez %v13273_v6 }
 0x2c4   : > { %v2909_v22 = vsel %vm13272_vm14, %v13271_v39, %v13270_v57  ;;  %v2823_v50 = vsel %vm13274_vm15, %v2782_v13, -inf  ;;  %v13275_v9 = vrot.slane %v13182_v45, 6  ;;  %v13276_v17 = vrot.slane %v13178_v18, 6  ;;  %v13278_v57 = vld [vmem:[#allocation89_spill] sm:$0xff] }
 0x2c5   : > { %vm13277_vm0 = vcmp.lt.s32.totalorder %v6606_v25, 2  ;;  %v3171_v23 = vmax.f32 %v9162_v49, %v9341_v28  ;;  %v3288_v48 = vmax.f32 %v3224_v14, %v8998_v16  ;;  %v2855_v21 = vmax.f32 %v2727_v47, %v2823_v50  ;;  %v9556_v16 = vpop.permute.xlu1 %2484  ;;  %v13284_v14 = vld [vmem:[#allocation25_spill] sm:$0xff] }
 0x2c6   : > { %v3038_v4 = vsel %vm13277_vm0, %v13276_v17, %v13275_v9  ;;  %vm13279_vm11 = vnez %v13278_v57  ;;  %v13280_v46 = vrot.slane %v13210_v7, 1  ;;  %vm13281_vm14 = vcmp.lt.s32.totalorder %v6606_v25, 7 }
 0x2c7   : > { %v3079_v39 = vsel %vm13279_vm11, %v3038_v4, -inf  ;;  %v3092_v45 = vmax.f32 %v2964_v42, %v3057_v60  ;;  %v3235_v18 = vmax.f32 %v3171_v23, %v8890_v56  ;;  %v13282_v17 = vrot.slane %v9045_v61, 7 }
 0x2c8   : > { %v2671_v62 = vsel %vm13281_vm14, %v2613_v3, %v13280_v46  ;;  %vm13283_vm0 = vcmp.lt.s32.totalorder %v6606_v25, 1  ;;  %v2983_v47 = vmax.f32 %v2855_v21, %v2909_v22  ;;  %vm13285_vm11 = vnez %v13284_v14  ;;  %v13290_v22 = vld [vmem:[#allocation31_spill] sm:$0xff] }
 0x2c9   : > { %v2709_v43 = vmax.f32 %v9045_v61, %v2671_v62  ;;  %v2800_v13 = vsel %vm13283_vm0, %v2740_v30, %v13282_v17  ;;  %v13286_v9 = vrot.slane %v13210_v7, 2  ;;  %vm13287_vm14 = vcmp.lt.s32.totalorder %v6606_v25, 6  ;;  %v13296_v17 = vld [vmem:[#allocation19_spill] sm:$0xff] }
 0x2ca   : > { %v2805_v50 = vsel %vm13285_vm11, %v2800_v13, -inf  ;;  %v13288_v60 = vrot.slane %v9045_v61, 6  ;;  %vm13289_vm15 = vcmp.lt.s32.totalorder %v6606_v25, 2  ;;  %v9568_v4 = vmax.f32 %v3288_v48, %v3092_v45 }
 0x2cb   : > { %v2927_v3 = vsel %vm13287_vm14, %v2869_v31, %v13286_v9  ;;  %v3222_v23 = vmax.f32 %v3158_v1, %v3092_v45  ;;  %v3156_v30 = vmax.f32 %v3092_v45, %v9406_v35  ;;  %v2837_v46 = vmax.f32 %v2709_v43, %v2805_v50 }
 0x2cc   : > { %v3056_v42 = vsel %vm13289_vm15, %v2996_v34, %v13288_v60  ;;  %v9571_v21 = vmax.f32 %v2983_v47, %v3079_v39  ;;  %vm13291_vm0 = vnez %v13290_v22  ;;  %v3161_v7 = vmax.f32 %v8886_v33, %v8882_v52 }
 0x2cd   : > { %v3061_v62 = vsel %vm13291_vm0, %v3056_v42, -inf  ;;  %v13292_v31 = vrot.slane %v9198_v12, 1  ;;  %v13293_v61 = vrot.slane %v8762_v38, 1  ;;  %vm13294_vm15 = vcmp.lt.s32.totalorder %v6606_v25, 7 }
 0x2ce   : > { %v5682_v1 = vpack.c.bf16 %v9568_v4, %v9568_v4  ;;  %v9586_v35 = vmax.f32 %v3222_v23, %v8996_v36  ;;  %v9589_v34 = vmax.f32 %v3156_v30, %v9266_v15  ;;  %v2965_v39 = vmax.f32 %v2837_v46, %v2927_v3  ;;  %v9613_v23 = vpop.permute.xlu1 %2488 }
 0x2cf   : > { %v2650_v48 = vsel %vm13294_vm15, %v13293_v61, %v13292_v31  ;;  %v3299_v45 = vmax.f32 %v3235_v18, %v9571_v21  ;;  %v3225_v43 = vmax.f32 %v3161_v7, %v9468_v11  ;;  %vm13297_vm14 = vnez %v13296_v17  ;;  %v13304_v7 = vld [vmem:[#allocation94_spill] sm:$0xff] }
 0x2d0   : > { %13295 = vst [vmem:[#allocation100_spill] sm:$0xff] %v9589_v34  ;;  %v2698_v13 = vsel %vm13297_vm14, %v2650_v48, -inf  ;;  %v13298_v47 = vrot.slane %v8762_v38, 7  ;;  %v13299_v50 = vrot.slane %v9054_v53, 7  ;;  %vm13300_vm15 = vcmp.lt.s32.totalorder %v6606_v25, 1  ;;  %3485 = vrot.lane.b32.xlu1 %v5682_v1, %s6382_s7 }
 0x2d1   : > { %v5678_v36 = vpack.c.bf16 %v9589_v34, %v9589_v34  ;;  %v9604_v15 = vmax.f32 %v2965_v39, %v3061_v62  ;;  %v2730_v18 = vmax.f32 %v8762_v38, %v2698_v13  ;;  %v13301_v3 = vrot.slane %v9198_v12, 2 }
 0x2d2   : > { %v2779_v9 = vsel %vm13300_vm15, %v13299_v50, %v13298_v47  ;;  %v13302_v60 = vrot.slane %v8762_v38, 2  ;;  %vm13303_vm14 = vcmp.lt.s32.totalorder %v6606_v25, 6  ;;  %v9616_v30 = vmax.f32 %v3299_v45, %v8888_v8 }
 0x2d3   : > { %v3289_v46 = vmax.f32 %v3225_v43, %v8884_v51  ;;  %vm13305_vm15 = vnez %v13304_v7  ;;  %v13306_v31 = vrot.slane %v8762_v38, 6  ;;  %v13307_v61 = vrot.slane %v9054_v53, 6 }
 0x2d4   : > { %v2906_v42 = vsel %vm13303_vm14, %v13302_v60, %v13301_v3  ;;  %vm13308_vm0 = vcmp.lt.s32.totalorder %v6606_v25, 2  ;;  %v2858_v1 = vmax.f32 %v2730_v18, %v2779_v9  ;;  %v3174_v39 = vmax.f32 %v9313_v63, %v9450_v27  ;;  %v13315_v18 = vld [vmem:[#allocation18_spill] sm:$0xff]  ;;  %3477 = vrot.lane.b32.xlu1 %v5678_v36, %s6382_s7 }
 0x2d5   : > { %v2954_v62 = vsel %vm13305_vm15, %v2906_v42, -inf  ;;  %v3035_v48 = vsel %vm13308_vm0, %v13307_v61, %v13306_v31  ;;  %v13309_v13 = vmov %v13299_v50  ;;  %v13310_v8 = vrot.slane %v13219_v29, 7 }
 0x2d6   : > { %vm13311_vm14 = vcmp.lt.s32.totalorder %v6606_v25, 1  ;;  %v13312_v45 = vmov %v13302_v60  ;;  %v13313_v43 = vrot.slane %v9054_v53, 2  ;;  %vm13314_vm15 = vcmp.lt.s32.totalorder %v6606_v25, 6 }
 0x2d7   : > { %v2780_v51 = vsel %vm13311_vm14, %v13310_v8, %v13309_v13  ;;  %v5693_v50 = vpack.c.bf16 %v9616_v30, %v9616_v30  ;;  %v9644_v9 = vmax.f32 %v3289_v46, %v9604_v15  ;;  %vm13316_vm0 = vnez %v13315_v18 }
 0x2d8   : > { %v2907_v47 = vsel %vm13314_vm15, %v13313_v43, %v13312_v45  ;;  %v2825_v3 = vsel %vm13316_vm0, %v2780_v51, -inf  ;;  %v13317_v60 = vmov %v13307_v61  ;;  %v13318_v42 = vrot.slane %v13219_v29, 6  ;;  %v13321_v45 = vld [vmem:[#allocation92_spill] sm:$0xff]  ;;  %v9661_v51 = vpop.permute.xlu1 %2494 }
 0x2d9   : > { %vm13319_vm14 = vcmp.lt.s32.totalorder %v6606_v25, 2  ;;  %v2986_v61 = vmax.f32 %v2858_v1, %v2954_v62  ;;  %v3238_v13 = vmax.f32 %v3174_v39, %v9164_v0  ;;  %v13320_v8 = vmax.f32 %v9054_v53, %v9084_v5  ;;  %3507 = vrot.lane.b32.xlu0 %v5693_v50, %s6382_s7 }
 0x2da   : > { %v3036_v31 = vsel %vm13319_vm14, %v13318_v42, %v13317_v60  ;;  %vm13322_vm15 = vnez %v13321_v45  ;;  %v5683_v29 = vpack.c.bf16 %v9644_v9, %v9644_v9  ;;  %v3173_v36 = vmax.f32 %v9341_v28, %v9571_v21  ;;  %v13329_v42 = vld [vmem:[#allocation98_spill] sm:$0xff] }
 0x2db   : > { %v2857_v46 = vmax.f32 %v13320_v8, %v2825_v3  ;;  %v3081_v43 = vsel %vm13322_vm15, %v3036_v31, -inf  ;;  %v13323_v62 = vrot.slane %v9430_v55, 1  ;;  %v13324_v1 = vrot.slane %v9057_v54, 1 }
 0x2dc   : > { %vm13325_vm14 = vcmp.lt.s32.totalorder %v6606_v25, 7  ;;  %v13326_v5 = vrot.slane %v9057_v54, 7  ;;  %v13327_v39 = vrot.slane %v9198_v12, 7  ;;  %vm13328_vm15 = vcmp.lt.s32.totalorder %v6606_v25, 1 }
 0x2dd   : > { %v2648_v53 = vsel %vm13325_vm14, %v13324_v1, %v13323_v62  ;;  %v9680_v3 = vmax.f32 %v2986_v61, %v3035_v48  ;;  %v2985_v60 = vmax.f32 %v2857_v46, %v2907_v47  ;;  %vm13330_vm0 = vnez %v13329_v42  ;;  %v9690_v1 = vpop.permute.xlu0 %2492  ;;  %3487 = vrot.lane.b32.xlu0 %v5683_v29, %s6382_s7 }
 0x2de   : > { %v2777_v50 = vsel %vm13328_vm15, %v13327_v39, %v13326_v5  ;;  %v2700_v31 = vsel %vm13330_vm0, %v2648_v53, -inf  ;;  %v13331_v8 = vrot.slane %v9430_v55, 2  ;;  %v13332_v45 = vrot.slane %v9057_v54, 2  ;;  %v13334_v5 = vld [vmem:[#allocation101_spill] sm:$0xff] }
 0x2df   : > { %vm13333_vm11 = vcmp.lt.s32.totalorder %v6606_v25, 6  ;;  %v3237_v18 = vmax.f32 %v3173_v36, %v9162_v49  ;;  %v2732_v57 = vmax.f32 %v9057_v54, %v2700_v31  ;;  %vm13335_vm15 = vnez %v13334_v5 }
 0x2e0   : > { %v2904_v62 = vsel %vm13333_vm11, %v13332_v45, %v13331_v8  ;;  %v13336_v47 = vrot.slane %v9057_v54, 6  ;;  %v13337_v61 = vrot.slane %v9198_v12, 6  ;;  %vm13338_vm14 = vcmp.lt.s32.totalorder %v6606_v25, 2 }
 0x2e1   : > { %v2956_v48 = vsel %vm13335_vm15, %v2904_v62, -inf  ;;  %v3302_v53 = vmax.f32 %v3238_v13, %v9680_v3  ;;  %v9703_v39 = vmax.f32 %v2985_v60, %v3081_v43  ;;  %v3176_v45 = vmax.f32 %v9450_v27, %v9680_v3  ;;  %v9723_v29 = vpop.permute.xlu0 %2498 }
 0x2e2   : > { %v3033_v46 = vsel %vm13338_vm14, %v13337_v61, %v13336_v47  ;;  %v12294_v36 = vrot.slane %v9022_v32, 1  ;;  %v2860_v31 = vmax.f32 %v2732_v57, %v2777_v50  ;;  %v12295_v8 = vrot.slane %v9026_v19, 7  ;;  %13342 = vst [vmem:[#allocation117_spill] sm:$0xff] %v9723_v29  ;;  %v9725_v50 = vpop.permute.xlu1 %2496 }
 0x2e3   : > { %v12296_v62 = vrot.slane %v9022_v32, 2  ;;  %v9713_v47 = vmax.f32 %v3302_v53, %v9000_v24  ;;  %v3301_v13 = vmax.f32 %v3237_v18, %v9703_v39  ;;  %v3240_v43 = vmax.f32 %v3176_v45, %v9313_v63  ;;  %13343 = vst [vmem:[#allocation93_spill] sm:$0xff] %v9725_v50 }
 0x2e4   : > { %v13340_v60 = vrot.slane %v13252_v2, 1  ;;  %vm13341_vm11 = vcmp.lt.s32.totalorder %v6606_v25, 7  ;;  %v2988_v61 = vmax.f32 %v2860_v31, %v2956_v48  ;;  %v13344_v24 = vrot.slane %v9022_v32, 7 }
 0x2e5   : > { %13339 = vst [vmem:[#allocation115_spill] sm:$0xff] %v9713_v47  ;;  %vm13345_vm14 = vcmp.lt.s32.totalorder %v6606_v25, 1  ;;  %v13346_v53 = vrot.slane %v13252_v2, 2  ;;  %v9743_v48 = vmax.f32 %v3301_v13, %v8890_v56  ;;  %v3157_v56 = vmax.f32 %v9604_v15, %v9468_v11  ;;  %v9774_v42 = vpop.permute.xlu0 %2502 }
 0x2e6   : > { %v2673_v57 = vsel %vm13341_vm11, %v12294_v36, %v13340_v60  ;;  %v2802_v18 = vsel %vm13345_vm14, %v12295_v8, %v13344_v24  ;;  %vm13347_vm11 = vcmp.lt.s32.totalorder %v6606_v25, 6  ;;  %v5696_v60 = vpack.c.bf16 %v9713_v47, %v9713_v47  ;;  %13353 = vst [vmem:[#allocation119_spill] sm:$0xff] %v9774_v42 }
 0x2e7   : > { %v2707_v6 = vmax.f32 %v9022_v32, %v2673_v57  ;;  %v2929_v45 = vsel %vm13347_vm11, %v12296_v62, %v13346_v53  ;;  %v2803_v57 = vsel %vm8179_vm2, %v2802_v18, -inf  ;;  %v13349_v36 = vrot.slane %v9022_v32, 6 }
 0x2e8   : > { %v13350_v24 = vrot.slane %v9026_v19, 6  ;;  %vm13351_vm14 = vcmp.lt.s32.totalorder %v6606_v25, 2  ;;  %v9753_v8 = vmax.f32 %v2988_v61, %v3033_v46  ;;  %3513 = vrot.lane.b32.xlu1 %v5696_v60, %s6382_s7  ;;  %v5695_v13 = vpack.c.bf16 %v9743_v48, %v9743_v48  ;;  %v9776_v46 = vpop.permute.xlu1 %2500 }
 0x2e9   : > { %v2835_v5 = vmax.f32 %v2707_v6, %v2803_v57  ;;  %v3159_v18 = vmax.f32 %v9468_v11, %v8886_v33  ;;  %v12299_v57 = vrot.slane %v8994_v37, 1  ;;  %13354 = vst [vmem:[#allocation120_spill] sm:$0xff] %v9776_v46  ;;  %v12303_v61 = vrot.slane %v9616_v30, 1 }
 0x2ea   : > { %v3058_v2 = vsel %vm13351_vm14, %v13350_v24, %v13349_v36  ;;  %v3304_v6 = vmax.f32 %v3240_v43, %v9753_v8  ;;  %3511 = vrot.lane.b32.xlu0 %v5695_v13, %s6382_s7  ;;  %v12297_v24 = vrot.slane %v9051_v41, 1  ;;  %vm13356_vm11 = vcmp.lt.s32.totalorder %v6606_v25, 7 }
 0x2eb   : > { %v3059_v62 = vsel %vm8202_vm12, %v3058_v2, -inf  ;;  %v2963_v36 = vmax.f32 %v2835_v5, %v2929_v45  ;;  %v3223_v60 = vmax.f32 %v3159_v18, %v9604_v15  ;;  %v12298_v2 = vrot.slane %v9192_v44, 1  ;;  %vm13358_vm14 = vmmov %vm13356_vm11 }
 0x2ec   : > { %v9779_v5 = vmax.f32 %v3304_v6, %v9164_v0  ;;  %v12300_v45 = vrot.slane %v9376_v58, 1  ;;  %v13357_v0 = vrot.slane %v9290_v10, 1  ;;  %vm13360_vm15 = vmmov %vm13356_vm11  ;;  %v12308_v22 = vrot.slane %v9644_v9, 7 }
 0x2ed   : > { %v9781_v43 = vmax.f32 %v2963_v36, %v3059_v62  ;;  %v3287_v18 = vmax.f32 %v3223_v60, %v8882_v52  ;;  %v3655_v7 = vsel %vm13356_vm11, %v12297_v24, %v12298_v2  ;;  %v13359_v36 = vrot.slane %v9195_v59, 1 }
 0x2ee   : > { %13355 = vst [vmem:[#allocation121_spill] sm:$0xff] %v9779_v5  ;;  %v3657_v62 = vsel %vm13358_vm14, %v13357_v0, %v12299_v57  ;;  %v5698_v6 = vpack.c.bf16 %v9779_v5, %v9779_v5  ;;  %v13361_v24 = vrot.slane %v9489_v26, 1  ;;  %v13362_v2 = vrot.slane %v9427_v20, 1  ;;  %vm13364_vm14 = vmmov %vm13356_vm11 }
 0x2ef   : > { %v3221_v52 = vmax.f32 %v3157_v56, %v9781_v43  ;;  %v3653_v60 = vsel %vm13360_vm15, %v13359_v36, %v12300_v45  ;;  %v9815_v0 = vmax.f32 %v3287_v18, %v9781_v43  ;;  %v13363_v56 = vrot.slane %v9339_v40, 1 }
 0x2f0   : > { %v3659_v13 = vsel %vm13356_vm11, %v13362_v2, %v13361_v24  ;;  %v3677_v5 = vsel %vm7091_vm9, %v3657_v62, -inf  ;;  %3517 = vrot.lane.b32.xlu1 %v5698_v6, %s6382_s7  ;;  %v3679_v18 = vsel %vm7250_vm7, %v3655_v7, -inf  ;;  %v3681_v31 = vsel %vm12990_vm4, %v3653_v60, -inf  ;;  %v9844_v6 = vpop.permute.xlu1 %2504 }
 0x2f1   : > { %v3651_v57 = vsel %vm13364_vm14, %v13363_v56, %v12303_v61  ;;  %v3675_v36 = vsel %vm7006_vm5, %v3659_v13, -inf  ;;  %v9829_v24 = vmax.f32 %v3221_v52, %v8886_v33  ;;  %v5681_v17 = vpack.c.bf16 %v9815_v0, %v9815_v0  ;;  %v9842_v33 = vpop.permute.xlu0 %2506  ;;  %13371 = vst [vmem:[#allocation50_spill] sm:$0xff] %v9844_v6 }
 0x2f2   : > { %v3683_v56 = vsel %vm12993_vm6, %v3651_v57, -inf  ;;  %v3707_v45 = vmax.f32 %v9427_v20, %v3675_v36  ;;  %v3709_v13 = vmax.f32 %v9290_v10, %v3677_v5  ;;  %v3711_v62 = vmax.f32 %v9051_v41, %v3679_v18  ;;  %13370 = vst [vmem:[#allocation45_spill] sm:$0xff] %v9842_v33 }
 0x2f3   : > { %v3713_v7 = vmax.f32 %v9195_v59, %v3681_v31  ;;  %v3715_v53 = vmax.f32 %v9339_v40, %v3683_v56  ;;  %v12309_v57 = vrot.slane %v9427_v20, 7  ;;  %3483 = vrot.lane.b32.xlu0 %v5681_v17, %s6382_s7  ;;  %v12306_v52 = vrot.slane %v9489_v26, 7 }
 0x2f4   : > { %v12307_v5 = vrot.slane %v9290_v10, 7  ;;  %v12304_v60 = vrot.slane %v8994_v37, 7  ;;  %v12305_v36 = vrot.slane %v9051_v41, 7  ;;  %v12313_v18 = vrot.slane %v9376_v58, 7  ;;  %v9893_v46 = vpop.permute.xlu1 %2508 }
 0x2f5   : > { %v12312_v56 = vrot.slane %v9339_v40, 7  ;;  %vm13372_vm5 = vcmp.lt.s32.totalorder %v6606_v25, 1  ;;  %v12317_v31 = vrot.slane %v9489_v26, 2  ;;  %v9891_v34 = vpop.permute.xlu0 %2510  ;;  %13380 = vst [vmem:[#allocation69_spill] sm:$0xff] %v9893_v46  ;;  %v12319_v42 = vrot.slane %v9051_v41, 2 }
 0x2f6   : > { %v3784_v17 = vsel %vm13372_vm5, %v12304_v60, %v12305_v36  ;;  %vm13373_vm7 = vmmov %vm13372_vm5  ;;  %v13376_v36 = vrot.slane %v9195_v59, 7  ;;  %13379 = vst [vmem:[#allocation60_spill] sm:$0xff] %v9891_v34  ;;  %v12320_v47 = vrot.slane %v9192_v44, 2  ;;  %vm13381_vm15 = vcmp.lt.s32.totalorder %v6606_v25, 6 }
 0x2f7   : > { %v3786_v61 = vsel %vm13373_vm7, %v12306_v52, %v12307_v5  ;;  %vm13374_vm9 = vmmov %vm13372_vm5  ;;  %v13377_v52 = vrot.slane %v9192_v44, 7  ;;  %v3839_v33 = vmax.f32 %v3711_v62, %v3784_v17  ;;  %v12321_v62 = vrot.slane %v9616_v30, 2 }
 0x2f8   : > { %v3788_v2 = vsel %vm13374_vm9, %v12308_v22, %v12309_v57  ;;  %vm13375_vm4 = vmmov %vm13372_vm5  ;;  %v3837_v6 = vmax.f32 %v3709_v13, %v3786_v61  ;;  %v12324_v61 = vrot.slane %v9376_v58, 2  ;;  %v12322_v13 = vrot.slane %v9339_v40, 2 }
 0x2f9   : > { %v3780_v60 = vsel %vm13375_vm4, %v12313_v18, %v12312_v56  ;;  %vm13378_vm6 = vmmov %vm13375_vm4  ;;  %v3835_v14 = vmax.f32 %v3707_v45, %v3788_v2  ;;  %v12316_v56 = vrot.slane %v9290_v10, 2  ;;  %v12318_v18 = vrot.slane %v8994_v37, 2 }
 0x2fa   : > { %v3782_v5 = vsel %vm13378_vm6, %v13377_v52, %v13376_v36  ;;  %v3843_v57 = vmax.f32 %v3715_v53, %v3780_v60  ;;  %v12323_v45 = vrot.slane %v9195_v59, 2  ;;  %vm13382_vm11 = vmmov %vm13381_vm15  ;;  %v13383_v52 = vrot.slane %v9427_v20, 2 }
 0x2fb   : > { %v3841_v22 = vmax.f32 %v3713_v7, %v3782_v5  ;;  %v3911_v7 = vsel %vm13381_vm15, %v12319_v42, %v12320_v47  ;;  %v3913_v53 = vsel %vm13382_vm11, %v12316_v56, %v12318_v18  ;;  %vm13384_vm14 = vmmov %vm13382_vm11  ;;  %v12326_v18 = vrot.slane %v9489_v26, 6 }
 0x2fc   : > { %v3915_v5 = vsel %vm13384_vm14, %v13383_v52, %v12317_v31  ;;  %vm13385_vm5 = vmmov %vm13382_vm11  ;;  %v3933_v31 = vsel %vm13100_vm10, %v3913_v53, -inf  ;;  %v3935_v42 = vsel %vm13102_vm8, %v3911_v7, -inf  ;;  %v12325_v53 = vrot.slane %v9427_v20, 6 }
 0x2fd   : > { %v3907_v36 = vsel %vm13385_vm5, %v12322_v13, %v12321_v62  ;;  %vm13386_vm7 = vmmov %vm13385_vm5  ;;  %v3931_v56 = vsel %vm13106_vm3, %v3915_v5, -inf  ;;  %v3965_v34 = vmax.f32 %v3837_v6, %v3933_v31  ;;  %v3967_v50 = vmax.f32 %v3839_v33, %v3935_v42  ;;  %v9946_v5 = vpop.permute.xlu1 %2512 }
 0x2fe   : > { %v3909_v2 = vsel %vm13386_vm7, %v12323_v45, %v12324_v61  ;;  %v3939_v13 = vsel %vm13108_vm1, %v3907_v36, -inf  ;;  %v3963_v46 = vmax.f32 %v3835_v14, %v3931_v56  ;;  %v9944_v61 = vpop.permute.xlu0 %2514  ;;  %13393 = vst [vmem:[#allocation51_spill] sm:$0xff] %v9946_v5  ;;  %v12328_v7 = vrot.slane %v9290_v10, 6  ;;  %vm13412_vm6 = vmmov %vm13385_vm5 }
 0x2ff   : > { %v3937_v60 = vsel %vm13104_vm13, %v3909_v2, -inf  ;;  %v3971_v45 = vmax.f32 %v3843_v57, %v3939_v13  ;;  %13392 = vst [vmem:[#allocation74_spill] sm:$0xff] %v9944_v61  ;;  %v12329_v47 = vrot.slane %v8994_v37, 6  ;;  %v12330_v62 = vrot.slane %v9051_v41, 6  ;;  %vm13424_vm5 = vmmov %vm13375_vm4 }
 0x300   : > { %v3969_v29 = vmax.f32 %v3841_v22, %v3937_v60  ;;  %v12331_v14 = vrot.slane %v9192_v44, 6  ;;  %v12332_v42 = vrot.slane %v9195_v59, 6  ;;  %v12333_v33 = vrot.slane %v9376_v58, 6 }
 0x301   : > { %v12327_v6 = vrot.slane %v9339_v40, 6  ;;  %vm13394_vm10 = vcmp.lt.s32.totalorder %v6606_v25, 2  ;;  %v13395_v57 = vrot.slane %v9644_v9, 6  ;;  %v3155_v56 = vmax.f32 %v9781_v43, %v9604_v15 }
 0x302   : > { %v4042_v22 = vsel %vm13394_vm10, %v12326_v18, %v12328_v7  ;;  %vm13396_vm1 = vmmov %vm13394_vm10  ;;  %vm13407_vm9 = vcmp.lt.s32.totalorder %v6606_v25, 7 }
 0x303   : > { %v4044_v31 = vsel %vm13396_vm1, %v13395_v57, %v12325_v53  ;;  %vm13397_vm8 = vmmov %vm13396_vm1  ;;  %v9985_v2 = vmax.f32 %v3965_v34, %v4042_v22  ;;  %v9998_v52 = vmax.f32 %v3155_v56, %v9468_v11  ;;  %v13405_v34 = vld [vmem:[#allocation116_spill] sm:$0xff]  ;;  %v10020_v56 = vpop.permute.xlu0 %2518 }
 0x304   : > { %v4038_v13 = vsel %vm13397_vm8, %v12331_v14, %v12332_v42  ;;  %vm13398_vm13 = vmmov %vm13396_vm1  ;;  %v9983_v36 = vmax.f32 %v3963_v46, %v4044_v31  ;;  %v13403_v46 = vld [vmem:[#allocation47_spill] sm:$0xff]  ;;  %v13406_v22 = vrot.slane %v13405_v34, 1  ;;  %v13408_v18 = vrot.slane %v13405_v34, 7  ;;  %13413 = vst [vmem:[#allocation78_spill] sm:$0xff] %v10020_v56 }
 0x305   : > { %v4040_v60 = vsel %vm13398_vm13, %v12329_v47, %v12330_v62  ;;  %vm13400_vm3 = vmmov %vm13396_vm1  ;;  %v9995_v17 = vmax.f32 %v3969_v29, %v4038_v13  ;;  %13402 = vst [vmem:[#allocation75_spill] sm:$0xff] %v9998_v52  ;;  %v13404_v31 = vrot.slane %v13403_v46, 1  ;;  %v13411_v11 = vrot.slane %v13405_v34, 2  ;;  %v10022_v13 = vpop.permute.xlu1 %2516  ;;  %v13434_v56 = vld [vmem:[#allocation95_spill] sm:$0xff] }
 0x306   : > { %13399 = vst [vmem:[#allocation58_spill] sm:$0xff] %v9983_v36  ;;  %v4036_v15 = vsel %vm13400_vm3, %v12333_v33, %v12327_v6  ;;  %v9993_v43 = vmax.f32 %v3967_v50, %v4040_v60  ;;  %v13409_v6 = vrot.slane %v9430_v55, 7  ;;  %v13410_v50 = vrot.slane %v13403_v46, 2  ;;  %13414 = vst [vmem:[#allocation47_spill] sm:$0xff] %v10022_v13 }
 0x307   : > { %13401 = vst [vmem:[#allocation63_spill] sm:$0xff] %v9995_v17  ;;  %v10000_v57 = vmax.f32 %v3971_v45, %v4036_v15  ;;  %v2646_v53 = vsel %vm13407_vm9, %v13406_v22, %v13404_v31  ;;  %v5677_v15 = vpack.c.bf16 %v9998_v52, %v9998_v52  ;;  %v13415_v31 = vld [vmem:[#allocation103_spill] sm:$0xff]  ;;  %vm13421_vm14 = vmmov %vm13396_vm1  ;;  %v3178_v62 = vmax.f32 %v9680_v3, %v9753_v8 }
 0x308   : > { %v2775_v29 = vsel %vm13375_vm4, %v13409_v6, %v13408_v18  ;;  %v2902_v45 = vsel %vm13412_vm6, %v13411_v11, %v13410_v50  ;;  %v4159_v60 = vmax.f32 %v9993_v43, %v9995_v17  ;;  %vm13416_vm15 = vnez %v13415_v31  ;;  %v13417_v6 = vld [vmem:[#allocation105_spill] sm:$0xff]  ;;  %vm13429_vm10 = vmmov %vm13412_vm6 }
 0x309   : > { %v2702_v18 = vsel %vm13416_vm15, %v2646_v53, -inf  ;;  %vm13418_vm11 = vnez %v13417_v6  ;;  %v13419_v50 = vrot.slane %v13405_v34, 6  ;;  %v13420_v11 = vrot.slane %v9430_v55, 6  ;;  %3475 = vrot.lane.b32.xlu0 %v5677_v15, %s6382_s7  ;;  %v13432_v15 = vld [vmem:[#allocation118_spill] sm:$0xff]  ;;  %vm13447_vm6 = vmmov %vm13424_vm5 }
 0x30a   : > { %v2958_v22 = vsel %vm13418_vm11, %v2902_v45, -inf  ;;  %v2734_v7 = vmax.f32 %v13405_v34, %v2702_v18  ;;  %v13422_v14 = vrot.slane %v9198_v12, 7  ;;  %v13423_v42 = vrot.slane %v8762_v38, 7  ;;  %v13425_v18 = vld [vmem:[#allocation20_spill] sm:$0xff] }
 0x30b   : > { %v3031_v47 = vsel %vm13421_vm14, %v13420_v11, %v13419_v50  ;;  %v4223_v45 = vmax.f32 %v4159_v60, %v9985_v2  ;;  %vm13426_vm7 = vnez %v13425_v18  ;;  %v13427_v6 = vrot.slane %v9057_v54, 2  ;;  %vm13450_vm14 = vmmov %vm13429_vm10 }
 0x30c   : > { %v2778_v53 = vsel %vm13424_vm5, %v13423_v42, %v13422_v14  ;;  %v13428_v50 = vrot.slane %v9198_v12, 2  ;;  %v13430_v31 = vrot.slane %v9198_v12, 6  ;;  %v13431_v13 = vrot.slane %v8762_v38, 6 }
 0x30d   : > { %v2827_v33 = vsel %vm13426_vm7, %v2778_v53, -inf  ;;  %v2862_v42 = vmax.f32 %v2734_v7, %v2775_v29  ;;  %v3242_v60 = vmax.f32 %v3178_v62, %v9450_v27  ;;  %v13433_v53 = vmax.f32 %v9198_v12, %v13432_v15  ;;  %v13437_v62 = vld [vmem:[#allocation114_spill] sm:$0xff] }
 0x30e   : > { %v2905_v11 = vsel %vm13429_vm10, %v13428_v50, %v13427_v6  ;;  %v3034_v14 = vsel %vm13396_vm1, %v13431_v13, %v13430_v31  ;;  %vm13435_vm8 = vnez %v13434_v56  ;;  %v4287_v61 = vmax.f32 %v4223_v45, %v10000_v57  ;;  %v13436_v50 = vld [vmem:[#allocation27_spill] sm:$0xff]  ;;  %v13439_v31 = vld [vmem:[#allocation108_spill] sm:$0xff]  ;;  %v10082_v45 = vpop.permute.xlu1 %2520  ;;  %vm13453_vm10 = vmmov %vm13396_vm1 }
 0x30f   : > { %v2859_v18 = vmax.f32 %v13433_v53, %v2827_v33  ;;  %v3083_v5 = vsel %vm13435_vm8, %v3034_v14, -inf  ;;  %v3175_v6 = vmax.f32 %v9571_v21, %v9703_v39  ;;  %v5614_v38 = vpack.c.bf16 %v13436_v50, %v13436_v50  ;;  %v10080_v14 = vpop.permute.xlu0 %2522  ;;  %13442 = vst [vmem:[#allocation118_spill] sm:$0xff] %v10082_v45  ;;  %vm13456_vm1 = vmmov %vm13447_vm6 }
 0x310   : > { %vm12340_vm13 = vcmask 257024   ;;  %v2990_v13 = vmax.f32 %v2862_v42, %v2958_v22  ;;  %vm12337_vm3 = vcmask 519424   ;;  %v13438_v29 = vrot.slane %v13437_v62, 1  ;;  %13441 = vst [vmem:[#allocation116_spill] sm:$0xff] %v10080_v14  ;;  %v13443_v22 = vld [vmem:[#allocation79_spill] sm:$0xff] }
 0x311   : > { %v2987_v7 = vmax.f32 %v2859_v18, %v2905_v11  ;;  %v13440_v12 = vrot.slane %v13439_v31, 1  ;;  %v4351_v15 = vmax.f32 %v4287_v61, %v9983_v36  ;;  %v3239_v53 = vmax.f32 %v3175_v6, %v9341_v28  ;;  %1327 = vst.msk [vmem:[#allocation2 + $0x4] sm:$0xf] %vm12340_vm13, %v5614_v38 }
 0x312   : > { %vm13444_vm4 = vnez %v13443_v22  ;;  %v13445_v11 = vrot.slane %v13439_v31, 7  ;;  %v13446_v42 = vrot.slane %v13403_v46, 7  ;;  %2580 = vst.msk [vmem:[#allocation2 + $0x4] sm:$0xf] %vm12337_vm3, %v9556_v16  ;;  %v13448_v6 = vrot.slane %v13437_v62, 2  ;;  %v13451_v22 = vld [vmem:[#allocation112_spill] sm:$0xff]  ;;  %v10146_v45 = vpop.permute.xlu1 %2524 }
 0x313   : > { %v2644_v33 = vsel %vm13407_vm9, %v13440_v12, %v13438_v29  ;;  %v10095_v29 = vmax.f32 %v2990_v13, %v3031_v47  ;;  %v10097_v12 = vmax.f32 %v2987_v7, %v3083_v5  ;;  %v13449_v38 = vrot.slane %v13439_v31, 2  ;;  %vm13459_vm9 = vmmov %vm13450_vm14  ;;  %v10148_v14 = vpop.permute.xlu0 %2490 }
 0x314   : > { %v2704_v18 = vsel %vm13444_vm4, %v2644_v33, -inf  ;;  %v2773_v50 = vsel %vm13447_vm6, %v13446_v42, %v13445_v11  ;;  %v5720_v56 = vpack.c.bf16 %v4351_v15, %v4351_v15  ;;  %vm13452_vm5 = vnez %v13451_v22  ;;  %vm13462_vm6 = vmmov %vm13453_vm10 }
 0x315   : > { %v2736_v61 = vmax.f32 %v13439_v31, %v2704_v18  ;;  %v2900_v33 = vsel %vm13450_vm14, %v13449_v38, %v13448_v6  ;;  %v3023_v47 = vrot.slane %v13403_v46, 6  ;;  %v12334_v5 = vrot.slane %v13439_v31, 6 }
 0x316   : > { %v2960_v11 = vsel %vm13452_vm5, %v2900_v33, -inf  ;;  %v3306_v13 = vmax.f32 %v3242_v60, %v10095_v29  ;;  %v3303_v16 = vmax.f32 %v3239_v53, %v10097_v12  ;;  %v3180_v18 = vmax.f32 %v9753_v8, %v10095_v29  ;;  %4490 = vrot.lane.b32.xlu1 %v5720_v56, %s6383_s26 }
 0x317   : > { %v2864_v7 = vmax.f32 %v2736_v61, %v2773_v50  ;;  %v3029_v15 = vsel %vm13453_vm10, %v3023_v47, %v12334_v5  ;;  %v13454_v42 = vrot.slane %v9430_v55, 7  ;;  %v13455_v6 = vrot.slane %v9057_v54, 7 }
 0x318   : > { %v13457_v53 = vrot.slane %v13405_v34, 2  ;;  %v13458_v50 = vrot.slane %v9430_v55, 2  ;;  %v13460_v56 = vrot.slane %v9430_v55, 6  ;;  %v13461_v38 = vrot.slane %v9057_v54, 6  ;;  %v13466_v54 = vld [vmem:[#allocation102_spill] sm:$0xff] }
 0x319   : > { %v2776_v60 = vsel %vm13456_vm1, %v13455_v6, %v13454_v42  ;;  %v10140_v5 = vmax.f32 %v3306_v13, %v9313_v63  ;;  %v10143_v22 = vmax.f32 %v3303_v16, %v9162_v49  ;;  %v2992_v42 = vmax.f32 %v2864_v7, %v2960_v11  ;;  %v13468_v13 = vld [vmem:[#allocation24_spill] sm:$0xff] }
 0x31a   : > { %v2903_v61 = vsel %vm13459_vm9, %v13458_v50, %v13457_v53  ;;  %v3032_v33 = vsel %vm13462_vm6, %v13461_v38, %v13460_v56  ;;  %v3244_v6 = vmax.f32 %v3180_v18, %v9680_v3  ;;  %v13464_v53 = vld [vmem:[#allocation99_spill] sm:$0xff]  ;;  %vm13467_vm10 = vnez %v13466_v54  ;;  %v13469_v18 = vld [vmem:[#allocation38_spill] sm:$0xff] }
 0x31b   : > { %13463 = vst [vmem:[#allocation27_spill] sm:$0xff] %v10140_v5  ;;  %vm13465_vm14 = vnez %v13464_v53  ;;  %v3085_v52 = vsel %vm13467_vm10, %v3032_v33, -inf  ;;  %v3177_v63 = vmax.f32 %v9703_v39, %v10097_v12  ;;  %v5616_v49 = vpack.c.bf16 %v13468_v13, %v13468_v13 }
 0x31c   : > { %v2829_v50 = vsel %vm13465_vm14, %v2776_v60, -inf  ;;  %v5700_v11 = vpack.c.bf16 %v10140_v5, %v10140_v5  ;;  %v5697_v16 = vpack.c.bf16 %v10143_v22, %v10143_v22  ;;  %v10162_v7 = vmax.f32 %v2992_v42, %v3029_v15 }
 0x31d   : > { %v13470_v60 = vmax.f32 %v9430_v55, %v13469_v18  ;;  %v3241_v38 = vmax.f32 %v3177_v63, %v9571_v21  ;;  %1329 = vst.msk [vmem:[#allocation2 + $0xc] sm:$0xf] %vm12340_vm13, %v5616_v49  ;;  %v13471_v33 = vrot.slane %v9022_v32, 1  ;;  %v13472_v13 = vrot.slane %v9026_v19, 1 }
 0x31e   : > { %vm13473_vm1 = vcmp.lt.s32.totalorder %v6606_v25, 7  ;;  %v12341_v53 = vrot.slane %v13437_v62, 7  ;;  %v12338_v15 = vrot.slane %v9026_v19, 2  ;;  %3521 = vrot.lane.b32.xlu1 %v5700_v11, %s6382_s7  ;;  %3515 = vrot.lane.b32.xlu0 %v5697_v16, %s6382_s7  ;;  %v3308_v55 = vmax.f32 %v3244_v6, %v10162_v7  ;;  %2582 = vst.msk [vmem:[#allocation2 + $0xc] sm:$0xf] %vm12337_vm3, %v9613_v23 }
 0x31f   : > { %v2861_v56 = vmax.f32 %v13470_v60, %v2829_v50  ;;  %v2674_v54 = vsel %vm13473_vm1, %v13472_v13, %v13471_v33  ;;  %v13474_v50 = vld [vmem:[#allocation64_spill] sm:$0xff]  ;;  %v12339_v49 = vrot.slane %v13437_v62, 6  ;;  %v13476_v60 = vrot.slane %v9026_v19, 7 }
 0x320   : > { %vm13475_vm9 = vnez %v13474_v50  ;;  %vm13477_vm6 = vcmp.lt.s32.totalorder %v6606_v25, 1  ;;  %v13478_v6 = vrot.slane %v9022_v32, 2  ;;  %vm13479_vm1 = vcmp.lt.s32.totalorder %v6606_v25, 6 }
 0x321   : > { %v2989_v42 = vmax.f32 %v2861_v56, %v2903_v61  ;;  %v2706_v63 = vsel %vm13475_vm9, %v2674_v54, -inf  ;;  %v2771_v11 = vsel %vm13477_vm6, %v12341_v53, %v13476_v60  ;;  %v3182_v61 = vmax.f32 %v10095_v29, %v10162_v7  ;;  %v13481_v56 = vld [vmem:[#allocation110_spill] sm:$0xff]  ;;  %v10215_v60 = vpop.permute.xlu0 %3495 }
 0x322   : > { %v2738_v18 = vmax.f32 %v9026_v19, %v2706_v63  ;;  %v2930_v23 = vsel %vm13479_vm1, %v12338_v15, %v13478_v6  ;;  %v10201_v54 = vmax.f32 %v3308_v55, %v9450_v27  ;;  %vm13482_vm3 = vnez %v13481_v56  ;;  %v10213_v63 = vpop.permute.xlu1 %2528 }
 0x323   : > { %v10203_v16 = vmax.f32 %v2989_v42, %v3085_v52  ;;  %v2962_v33 = vsel %vm13482_vm3, %v2930_v23, -inf  ;;  %v13483_v13 = vrot.slane %v9026_v19, 6  ;;  %vm13484_vm6 = vcmp.lt.s32.totalorder %v6606_v25, 2  ;;  %13485 = vst [vmem:[#allocation108_spill] sm:$0xff] %v10213_v63 }
 0x324   : > { %13480 = vst [vmem:[#allocation114_spill] sm:$0xff] %v10201_v54  ;;  %v2866_v6 = vmax.f32 %v2738_v18, %v2771_v11  ;;  %v3246_v27 = vmax.f32 %v3182_v61, %v9753_v8  ;;  %v13486_v52 = vrot.slane %v13439_v31, 1  ;;  %v13487_v55 = vrot.slane %v13403_v46, 1  ;;  %v13492_v61 = vld [vmem:[#allocation104_spill] sm:$0xff] }
 0x325   : > { %v3027_v32 = vsel %vm13484_vm6, %v12339_v49, %v13483_v13  ;;  %vm13488_vm1 = vcmp.lt.s32.totalorder %v6606_v25, 7  ;;  %v13489_v23 = vrot.slane %v13403_v46, 7  ;;  %v13490_v15 = vrot.slane %v13405_v34, 7 }
 0x326   : > { %v2645_v42 = vsel %vm13488_vm1, %v13487_v55, %v13486_v52  ;;  %vm13491_vm6 = vcmp.lt.s32.totalorder %v6606_v25, 1  ;;  %v5702_v49 = vpack.c.bf16 %v10201_v54, %v10201_v54  ;;  %v3305_v18 = vmax.f32 %v3241_v38, %v10203_v16  ;;  %v13580_v54 = vld [vmem:[#allocation49_spill] sm:$0xff] }
 0x327   : > { %v2774_v13 = vsel %vm13491_vm6, %v13490_v15, %v13489_v23  ;;  %v2735_v11 = vmax.f32 %v13403_v46, %v2645_v42  ;;  %vm13493_vm13 = vnez %v13492_v61  ;;  %v2994_v56 = vmax.f32 %v2866_v6, %v2962_v33  ;;  %v13499_v6 = vld [vmem:[#allocation106_spill] sm:$0xff] }
 0x328   : > { %v2831_v53 = vsel %vm13493_vm13, %v2774_v13, -inf  ;;  %v13494_v52 = vrot.slane %v13439_v31, 2  ;;  %v13495_v55 = vrot.slane %v13403_v46, 2  ;;  %vm13496_vm1 = vcmp.lt.s32.totalorder %v6606_v25, 6  ;;  %3525 = vrot.lane.b32.xlu1 %v5702_v49, %s6382_s7  ;;  %v13501_v13 = vld [vmem:[#allocation41_spill] sm:$0xff] }
 0x329   : > { %v13497_v15 = vrot.slane %v13405_v34, 6  ;;  %vm13498_vm6 = vcmp.lt.s32.totalorder %v6606_v25, 2  ;;  %v3179_v38 = vmax.f32 %v10097_v12, %v10203_v16  ;;  %v10250_v42 = vmax.f32 %v3305_v18, %v9341_v28 }
 0x32a   : > { %v2901_v50 = vsel %vm13496_vm1, %v13495_v55, %v13494_v52  ;;  %v2863_v33 = vmax.f32 %v2735_v11, %v2831_v53  ;;  %vm13500_vm10 = vnez %v13499_v6  ;;  %v5618_v52 = vpack.c.bf16 %v13501_v13, %v13501_v13  ;;  %v10266_v11 = vpop.permute.xlu1 %3497 }
 0x32b   : > { %v3030_v23 = vsel %vm13498_vm6, %v13497_v15, %v3023_v47  ;;  %v10256_v55 = vmax.f32 %v2994_v56, %v3027_v32  ;;  %v3243_v34 = vmax.f32 %v3179_v38, %v9703_v39  ;;  %v12342_v47 = vrot.slane %v9568_v4, 1  ;;  %13503 = vst [vmem:[#allocation24_spill] sm:$0xff] %v10266_v11  ;;  %v10268_v56 = vpop.permute.xlu0 %2526 }
 0x32c   : > { %v3087_v46 = vsel %vm13500_vm10, %v3030_v23, -inf  ;;  %v12345_v15 = vrot.slane %v9644_v9, 1  ;;  %v5699_v49 = vpack.c.bf16 %v10250_v42, %v10250_v42  ;;  %v2991_v28 = vmax.f32 %v2863_v33, %v2901_v50  ;;  %13504 = vst [vmem:[#allocation38_spill] sm:$0xff] %v10268_v56 }
 0x32d   : > { %vm13502_vm1 = vcmask 257024   ;;  %v12343_v53 = vrot.slane %v9815_v0, 7  ;;  %v12344_v18 = vrot.slane %v9568_v4, 7  ;;  %v3310_v32 = vmax.f32 %v3246_v27, %v10256_v55  ;;  %v13507_v27 = vld [vmem:[#allocation36_spill] sm:$0xff] }
 0x32e   : > { %1331 = vst.msk [vmem:[#allocation2 + $0x14] sm:$0xf] %vm13502_vm1, %v5618_v52  ;;  %vm13505_vm6 = vcmask 519424   ;;  %vm13506_vm1 = vcmp.lt.s32.totalorder %v6606_v25, 7  ;;  %v12346_v38 = vrot.slane %v9568_v4, 2  ;;  %3519 = vrot.lane.b32.xlu0 %v5699_v49, %s6382_s7  ;;  %v10283_v33 = vmax.f32 %v2991_v28, %v3087_v46 }
 0x32f   : > { %2584 = vst.msk [vmem:[#allocation2 + $0x14] sm:$0xf] %vm13505_vm6, %v9690_v1  ;;  %v3661_v50 = vsel %vm13506_vm1, %v12342_v47, %v12345_v15  ;;  %vm13508_vm10 = vnez %v13507_v27  ;;  %vm13509_vm6 = vcmp.lt.s32.totalorder %v6606_v25, 1  ;;  %v12347_v52 = vrot.slane %v9644_v9, 2 }
 0x330   : > { %v3673_v13 = vsel %vm13508_vm10, %v3661_v50, -inf  ;;  %v3790_v1 = vsel %vm13509_vm6, %v12343_v53, %v12344_v18  ;;  %v10295_v23 = vmax.f32 %v3310_v32, %v9680_v3  ;;  %v12348_v46 = vrot.slane %v9815_v0, 6  ;;  %v13514_v18 = vld [vmem:[#allocation43_spill] sm:$0xff] }
 0x331   : > { %v3705_v47 = vmax.f32 %v9568_v4, %v3673_v13  ;;  %v12349_v49 = vrot.slane %v9568_v4, 6  ;;  %v3307_v28 = vmax.f32 %v3243_v34, %v10283_v33  ;;  %vm13511_vm10 = vcmp.lt.s32.totalorder %v6606_v25, 6 }
 0x332   : > { %13510 = vst [vmem:[#allocation41_spill] sm:$0xff] %v10295_v23  ;;  %v3917_v50 = vsel %vm13511_vm10, %v12346_v38, %v12347_v52  ;;  %v4157_v27 = vmax.f32 %v9985_v2, %v9993_v43  ;;  %v13512_v3 = vrot.slane %v9026_v19, 1  ;;  %v13513_v32 = vrot.slane %v13437_v62, 1 }
 0x333   : > { %v5704_v34 = vpack.c.bf16 %v10295_v23, %v10295_v23  ;;  %v3833_v53 = vmax.f32 %v3705_v47, %v3790_v1  ;;  %vm13515_vm6 = vnez %v13514_v18  ;;  %vm13516_vm10 = vcmp.lt.s32.totalorder %v6606_v25, 2  ;;  %v10336_v1 = vpop.permute.xlu1 %2532 }
 0x334   : > { %v2643_v13 = vsel %vm13506_vm1, %v13513_v32, %v13512_v3  ;;  %v3929_v15 = vsel %vm13515_vm6, %v3917_v50, -inf  ;;  %v4046_v38 = vsel %vm13516_vm10, %v12348_v46, %v12349_v49  ;;  %v10326_v52 = vmax.f32 %v3307_v28, %v9571_v21  ;;  %13521 = vst [vmem:[#allocation43_spill] sm:$0xff] %v10336_v1  ;;  %v10338_v50 = vpop.permute.xlu0 %2482  ;;  %v13523_v21 = vld [vmem:[#allocation111_spill] sm:$0xff] }
 0x335   : > { %v4221_v6 = vmax.f32 %v4157_v27, %v9983_v36  ;;  %v2737_v3 = vmax.f32 %v13437_v62, %v2643_v13  ;;  %v13518_v32 = vrot.slane %v13437_v62, 7  ;;  %v13519_v47 = vrot.slane %v13439_v31, 7  ;;  %13522 = vst [vmem:[#allocation122_spill] sm:$0xff] %v10338_v50  ;;  %3529 = vrot.lane.b32.xlu1 %v5704_v34, %s6382_s7 }
 0x336   : > { %13517 = vst [vmem:[#allocation36_spill] sm:$0xff] %v10326_v52  ;;  %vm13520_vm1 = vcmp.lt.s32.totalorder %v6606_v25, 1  ;;  %v3961_v46 = vmax.f32 %v3833_v53, %v3929_v15  ;;  %vm13524_vm6 = vnez %v13523_v21  ;;  %v13525_v27 = vrot.slane %v9026_v19, 2 }
 0x337   : > { %v2772_v18 = vsel %vm13520_vm1, %v13519_v47, %v13518_v32  ;;  %v13526_v13 = vrot.slane %v13437_v62, 2  ;;  %vm13527_vm10 = vcmp.lt.s32.totalorder %v6606_v25, 6  ;;  %v13528_v61 = vrot.slane %v13437_v62, 6  ;;  %v13533_v62 = vld [vmem:[#allocation30_spill] sm:$0xff] }
 0x338   : > { %v2833_v28 = vsel %vm13524_vm6, %v2772_v18, -inf  ;;  %v13529_v32 = vrot.slane %v13439_v31, 6  ;;  %vm13530_vm1 = vcmp.lt.s32.totalorder %v6606_v25, 2  ;;  %v5701_v15 = vpack.c.bf16 %v10326_v52, %v10326_v52  ;;  %v13531_v18 = vld [vmem:[#allocation34_spill] sm:$0xff] }
 0x339   : > { %v2899_v49 = vsel %vm13527_vm10, %v13526_v13, %v13525_v27  ;;  %v4285_v53 = vmax.f32 %v4221_v6, %v9995_v17  ;;  %v2865_v34 = vmax.f32 %v2737_v3, %v2833_v28  ;;  %vm13532_vm8 = vnez %v13531_v18  ;;  %v13534_v13 = vld [vmem:[#allocation67_spill] sm:$0xff] }
 0x33a   : > { %v3028_v47 = vsel %vm13530_vm1, %v13529_v32, %v13528_v61  ;;  %v10360_v21 = vmax.f32 %v3961_v46, %v4046_v38  ;;  %v3181_v27 = vmax.f32 %v10203_v16, %v10283_v33  ;;  %v5619_v31 = vpack.c.bf16 %v13533_v62, %v13533_v62  ;;  %3523 = vrot.lane.b32.xlu0 %v5701_v15, %s6382_s7 }
 0x33b   : > { %v3089_v19 = vsel %vm13532_vm8, %v3028_v47, -inf  ;;  %v12353_v50 = vrot.slane %v13534_v13, 1  ;;  %v2993_v61 = vmax.f32 %v2865_v34, %v2899_v49  ;;  %v12350_v32 = vrot.slane %v9743_v48, 1  ;;  %v10393_v34 = vpop.permute.xlu1 %2544 }
 0x33c   : > { %v12352_v6 = vrot.slane %v9616_v30, 7  ;;  %v12351_v3 = vrot.slane %v13534_v13, 7  ;;  %v4349_v38 = vmax.f32 %v4285_v53, %v10360_v21  ;;  %v3245_v46 = vmax.f32 %v3181_v27, %v10097_v12  ;;  %13539 = vst [vmem:[#allocation30_spill] sm:$0xff] %v10393_v34  ;;  %v13541_v27 = vld [vmem:[#allocation13_spill] sm:$0xff] }
 0x33d   : > { %vm13535_vm10 = vcmask 257024   ;;  %v12355_v28 = vrot.slane %v13534_v13, 2  ;;  %v12354_v47 = vrot.slane %v9743_v48, 2  ;;  %v10376_v62 = vmax.f32 %v2993_v61, %v3089_v19  ;;  %v10395_v19 = vpop.permute.xlu0 %2486 }
 0x33e   : > { %1332 = vst.msk [vmem:[#allocation2 + $0x18] sm:$0xf] %vm13535_vm10, %v5619_v31  ;;  %vm13536_vm1 = vcmask 519424   ;;  %vm13537_vm8 = vcmp.lt.s32.totalorder %v6606_v25, 7  ;;  %vm13538_vm10 = vcmp.lt.s32.totalorder %v6606_v25, 1  ;;  %13540 = vst [vmem:[#allocation67_spill] sm:$0xff] %v10395_v19 }
 0x33f   : > { %2585 = vst.msk [vmem:[#allocation2 + $0x18] sm:$0xf] %vm13536_vm1, %v9661_v51  ;;  %v3649_v49 = vsel %vm13537_vm8, %v12353_v50, %v12350_v32  ;;  %v3778_v15 = vsel %vm13538_vm10, %v12352_v6, %v12351_v3  ;;  %v5718_v51 = vpack.c.bf16 %v4349_v38, %v4349_v38  ;;  %vm13542_vm1 = vnez %v13541_v27  ;;  %v13544_v50 = vld [vmem:[#allocation83_spill] sm:$0xff] }
 0x340   : > { %v3685_v31 = vsel %vm13542_vm1, %v3649_v49, -inf  ;;  %vm13543_vm8 = vcmp.lt.s32.totalorder %v6606_v25, 6  ;;  %v12356_v32 = vrot.slane %v13534_v13, 6  ;;  %v3309_v3 = vmax.f32 %v3245_v46, %v10376_v62 }
 0x341   : > { %v3905_v61 = vsel %vm13543_vm8, %v12355_v28, %v12354_v47  ;;  %v3717_v6 = vmax.f32 %v13534_v13, %v3685_v31  ;;  %vm13545_vm10 = vnez %v13544_v50  ;;  %v4161_v38 = vmax.f32 %v9995_v17, %v10000_v57  ;;  %4486 = vrot.lane.b32.xlu1 %v5718_v51, %s6383_s26  ;;  %v10462_v56 = vpop.permute.xlu0 %3499 }
 0x342   : > { %v3941_v53 = vsel %vm13545_vm10, %v3905_v61, -inf  ;;  %v13546_v49 = vrot.slane %v9616_v30, 6  ;;  %vm13547_vm1 = vcmp.lt.s32.totalorder %v6606_v25, 2  ;;  %v13548_v47 = vrot.slane %v9339_v40, 1  ;;  %13565 = vst [vmem:[#allocation123_spill] sm:$0xff] %v10462_v56  ;;  %v13584_v56 = vld [vmem:[#allocation37_spill] sm:$0xff] }
 0x343   : > { %v13549_v46 = vrot.slane %v9376_v58, 1  ;;  %vm13550_vm8 = vcmp.lt.s32.totalorder %v6606_v25, 7  ;;  %v13551_v31 = vrot.slane %v9195_v59, 1  ;;  %v13552_v61 = vrot.slane %v9192_v44, 1 }
 0x344   : > { %v4034_v27 = vsel %vm13547_vm1, %v13546_v49, %v12356_v32  ;;  %vm13553_vm10 = vmmov %vm13550_vm8  ;;  %v13554_v28 = vrot.slane %v9051_v41, 1  ;;  %v13555_v18 = vrot.slane %v8994_v37, 1  ;;  %v10438_v32 = vmax.f32 %v3309_v3, %v9703_v39 }
 0x345   : > { %v3652_v50 = vsel %vm13550_vm8, %v13549_v46, %v13548_v47  ;;  %v3654_v51 = vsel %vm13553_vm10, %v13552_v61, %v13551_v31  ;;  %vm13556_vm1 = vmmov %vm13550_vm8  ;;  %v3845_v19 = vmax.f32 %v3717_v6, %v3778_v15  ;;  %v4225_v47 = vmax.f32 %v4161_v38, %v9993_v43 }
 0x346   : > { %v3656_v49 = vsel %vm13556_vm1, %v13555_v18, %v13554_v28  ;;  %13557 = vst [vmem:[#allocation13_spill] sm:$0xff] %v10438_v32  ;;  %v13558_v46 = vrot.slane %v9290_v10, 1  ;;  %v13559_v34 = vrot.slane %v9489_v26, 1  ;;  %vm13560_vm8 = vmmov %vm13556_vm1  ;;  %v13561_v61 = vrot.slane %v9427_v20, 1 }
 0x347   : > { %v13562_v1 = vrot.slane %v9644_v9, 1  ;;  %vm13563_vm10 = vmmov %vm13556_vm1  ;;  %v3710_v6 = vmax.f32 %v8994_v37, %v3656_v49  ;;  %v3712_v3 = vmax.f32 %v9192_v44, %v3654_v51  ;;  %v5703_v28 = vpack.c.bf16 %v10438_v32, %v10438_v32 }
 0x348   : > { %v3658_v31 = vsel %vm13560_vm8, %v13559_v34, %v13558_v46  ;;  %v3973_v15 = vmax.f32 %v3845_v19, %v3941_v53  ;;  %v3714_v34 = vmax.f32 %v9376_v58, %v3652_v50  ;;  %v10460_v46 = vpop.permute.xlu1 %2540  ;;  %vm13568_vm1 = vcmp.lt.s32.totalorder %v6606_v25, 1 }
 0x349   : > { %v3660_v18 = vsel %vm13563_vm10, %v13562_v1, %v13561_v61  ;;  %v3708_v39 = vmax.f32 %v9489_v26, %v3658_v31  ;;  %13564 = vst [vmem:[#allocation83_spill] sm:$0xff] %v10460_v46  ;;  %v13566_v1 = vrot.slane %v9376_v58, 7  ;;  %v13567_v31 = vrot.slane %v9195_v59, 7  ;;  %vm13571_vm8 = vmmov %vm13568_vm1  ;;  %3527 = vrot.lane.b32.xlu0 %v5703_v28, %s6382_s7  ;;  %v13588_v28 = vld [vmem:[#allocation71_spill] sm:$0xff] }
 0x34a   : > { %v3706_v38 = vmax.f32 %v9644_v9, %v3660_v18  ;;  %v13569_v51 = vrot.slane %v9192_v44, 7  ;;  %v13570_v61 = vrot.slane %v9051_v41, 7  ;;  %v13572_v19 = vrot.slane %v8994_v37, 7  ;;  %vm13574_vm10 = vmmov %vm13568_vm1 }
 0x34b   : > { %v3781_v49 = vsel %vm13568_vm1, %v13567_v31, %v13566_v1  ;;  %v13573_v50 = vrot.slane %v9290_v10, 7  ;;  %v13575_v46 = vrot.slane %v9489_v26, 7  ;;  %v13576_v23 = vrot.slane %v9427_v20, 7 }
 0x34c   : > { %v3783_v53 = vsel %vm13571_vm8, %v13570_v61, %v13569_v51  ;;  %v10489_v31 = vmax.f32 %v3973_v15, %v4034_v27  ;;  %v13577_v51 = vrot.slane %v9644_v9, 7  ;;  %v13578_v61 = vrot.slane %v9568_v4, 7  ;;  %vm13579_vm8 = vmmov %vm13568_vm1 }
 0x34d   : > { %v3785_v18 = vsel %vm13574_vm10, %v13573_v50, %v13572_v19  ;;  %v3787_v1 = vsel %vm13568_vm1, %v13576_v23, %v13575_v46  ;;  %vm13581_vm10 = vnez %v13580_v54  ;;  %v13582_v50 = vld [vmem:[#allocation53_spill] sm:$0xff]  ;;  %vm13585_vm13 = vnez %v13584_v56  ;;  %v13586_v46 = vld [vmem:[#allocation62_spill] sm:$0xff] }
 0x34e   : > { %v3789_v32 = vsel %vm13579_vm8, %v13578_v61, %v13577_v51  ;;  %v3804_v19 = vsel %vm13581_vm10, %v3787_v1, -inf  ;;  %vm13583_vm6 = vnez %v13582_v50  ;;  %vm13587_vm1 = vnez %v13586_v46 }
 0x34f   : > { %v3806_v63 = vsel %vm13583_vm6, %v3785_v18, -inf  ;;  %v3802_v23 = vsel %vm13585_vm13, %v3789_v32, -inf  ;;  %v3808_v27 = vsel %vm13587_vm1, %v3783_v53, -inf  ;;  %vm13589_vm14 = vnez %v13588_v28  ;;  %v10541_v28 = vpop.permute.xlu0 %2530 }
 0x350   : > { %v3810_v15 = vsel %vm13589_vm14, %v3781_v49, -inf  ;;  %v3836_v11 = vmax.f32 %v3708_v39, %v3804_v19  ;;  %v4289_v52 = vmax.f32 %v4225_v47, %v10489_v31  ;;  %v3834_v5 = vmax.f32 %v3706_v38, %v3802_v23  ;;  %13605 = vst [vmem:[#allocation49_spill] sm:$0xff] %v10541_v28 }
 0x351   : > { %v3838_v51 = vmax.f32 %v3710_v6, %v3806_v63  ;;  %v3840_v61 = vmax.f32 %v3712_v3, %v3808_v27  ;;  %v3842_v54 = vmax.f32 %v3714_v34, %v3810_v15  ;;  %v13590_v1 = vrot.slane %v9339_v40, 2  ;;  %v10539_v27 = vpop.permute.xlu1 %3501 }
 0x352   : > { %v13591_v18 = vrot.slane %v9376_v58, 2  ;;  %vm13592_vm6 = vcmp.lt.s32.totalorder %v6606_v25, 6  ;;  %v13593_v32 = vrot.slane %v9195_v59, 2  ;;  %v13594_v53 = vrot.slane %v9192_v44, 2 }
 0x353   : > { %vm13595_vm13 = vmmov %vm13592_vm6  ;;  %v13596_v47 = vrot.slane %v9051_v41, 2  ;;  %v13597_v63 = vrot.slane %v8994_v37, 2  ;;  %v4353_v3 = vmax.f32 %v4289_v52, %v9985_v2  ;;  %v13599_v38 = vrot.slane %v9290_v10, 2 }
 0x354   : > { %v3908_v56 = vsel %vm13592_vm6, %v13591_v18, %v13590_v1  ;;  %v3910_v39 = vsel %vm13595_vm13, %v13594_v53, %v13593_v32  ;;  %vm13598_vm14 = vmmov %vm13592_vm6  ;;  %v13600_v34 = vrot.slane %v9489_v26, 2  ;;  %v13602_v19 = vrot.slane %v9427_v20, 2 }
 0x355   : > { %v3912_v6 = vsel %vm13598_vm14, %v13597_v63, %v13596_v47  ;;  %vm13601_vm8 = vmmov %vm13592_vm6  ;;  %v13603_v50 = vrot.slane %v9644_v9, 2  ;;  %v3968_v1 = vmax.f32 %v3840_v61, %v3910_v39  ;;  %v3970_v18 = vmax.f32 %v3842_v54, %v3908_v56  ;;  %v13623_v39 = vld [vmem:[#allocation66_spill] sm:$0xff] }
 0x356   : > { %v3914_v49 = vsel %vm13601_vm8, %v13600_v34, %v13599_v38  ;;  %vm13604_vm10 = vmmov %vm13592_vm6  ;;  %v3966_v46 = vmax.f32 %v3838_v51, %v3912_v6  ;;  %v5722_v32 = vpack.c.bf16 %v4353_v3, %v4353_v3  ;;  %v13606_v53 = vrot.slane %v9376_v58, 6  ;;  %v13627_v34 = vld [vmem:[#allocation54_spill] sm:$0xff] }
 0x357   : > { %v3916_v23 = vsel %vm13604_vm10, %v13603_v50, %v13602_v19  ;;  %v3964_v15 = vmax.f32 %v3836_v11, %v3914_v49  ;;  %v13607_v47 = vrot.slane %v9195_v59, 6  ;;  %vm13608_vm1 = vcmp.lt.s32.totalorder %v6606_v25, 2 }
 0x358   : > { %v3962_v52 = vmax.f32 %v3834_v5, %v3916_v23  ;;  %v13609_v38 = vrot.slane %v9192_v44, 6  ;;  %v13610_v51 = vrot.slane %v9051_v41, 6  ;;  %vm13611_vm6 = vmmov %vm13608_vm1  ;;  %v13612_v5 = vrot.slane %v8994_v37, 6  ;;  %v13621_v37 = vld [vmem:[#allocation59_spill] sm:$0xff]  ;;  %4494 = vrot.lane.b32.xlu1 %v5722_v32, %s6383_s26  ;;  %v13631_v32 = vld [vmem:[#allocation46_spill] sm:$0xff] }
 0x359   : > { %v4037_v63 = vsel %vm13608_vm1, %v13607_v47, %v13606_v53  ;;  %v13613_v11 = vrot.slane %v9290_v10, 6  ;;  %vm13614_vm13 = vmmov %vm13608_vm1  ;;  %v13615_v58 = vrot.slane %v9489_v26, 6  ;;  %v13616_v59 = vrot.slane %v9427_v20, 6  ;;  %v13625_v26 = vld [vmem:[#allocation44_spill] sm:$0xff] }
 0x35a   : > { %v4039_v6 = vsel %vm13611_vm6, %v13610_v51, %v13609_v38  ;;  %vm13617_vm14 = vmmov %vm13608_vm1  ;;  %v13618_v44 = vrot.slane %v9644_v9, 6  ;;  %v13619_v41 = vrot.slane %v9568_v4, 6  ;;  %vm13622_vm10 = vnez %v13621_v37  ;;  %v13629_v9 = vld [vmem:[#allocation76_spill] sm:$0xff]  ;;  %v13640_v37 = vld [vmem:[#allocation93_spill] sm:$0xff] }
 0x35b   : > { %v4041_v61 = vsel %vm13614_vm13, %v13613_v11, %v13612_v5  ;;  %v4043_v54 = vsel %vm13617_vm14, %v13616_v59, %v13615_v58  ;;  %vm13620_vm8 = vmmov %vm13608_vm1  ;;  %vm13624_vm1 = vnez %v13623_v39  ;;  %vm13626_vm6 = vnez %v13625_v26 }
 0x35c   : > { %v4045_v56 = vsel %vm13620_vm8, %v13619_v41, %v13618_v44  ;;  %v4062_v10 = vsel %vm13622_vm10, %v4041_v61, -inf  ;;  %v4064_v3 = vsel %vm13624_vm1, %v4039_v6, -inf  ;;  %vm13628_vm13 = vnez %v13627_v34  ;;  %v13632_v6 = vld [vmem:[#allocation35_spill] sm:$0xff] }
 0x35d   : > { %v4058_v20 = vsel %vm13626_vm6, %v4045_v56, -inf  ;;  %v4060_v49 = vsel %vm13628_vm13, %v4043_v54, -inf  ;;  %vm13630_vm14 = vnez %v13629_v9  ;;  %v10584_v50 = vmax.f32 %v3966_v46, %v4062_v10  ;;  %v10600_v46 = vpop.permute.xlu1 %2536  ;;  %v13638_v56 = vld [vmem:[#allocation117_spill] sm:$0xff]  ;;  %v13642_v10 = vld [vmem:[#allocation28_spill] sm:$0xff] }
 0x35e   : > { %v4066_v19 = vsel %vm13630_vm14, %v4037_v63, -inf  ;;  %v10586_v23 = vmax.f32 %v3962_v52, %v4058_v20  ;;  %v10588_v53 = vmax.f32 %v3964_v15, %v4060_v49  ;;  %v10590_v47 = vmax.f32 %v3968_v1, %v4064_v3  ;;  %13633 = vst [vmem:[#allocation53_spill] sm:$0xff] %v10600_v46  ;;  %v10602_v52 = vpop.permute.xlu0 %2542 }
 0x35f   : > { %v10592_v38 = vmax.f32 %v3970_v18, %v4066_v19  ;;  %v5621_v51 = vpack.c.bf16 %v13631_v32, %v13631_v32  ;;  %v5620_v5 = vpack.c.bf16 %v13632_v6, %v13632_v6  ;;  %v12370_v11 = vrot.slane %v9586_v35, 1  ;;  %13634 = vst [vmem:[#allocation37_spill] sm:$0xff] %v10602_v52  ;;  %v6101_v6 = vld [vmem:[#allocation6 + $0x30] sm:$0xff]  }
 0x360   : > { %v3608_v63 = vrot.slane %v9815_v0, 1  ;;  %v4158_v15 = vmax.f32 %v10584_v50, %v10590_v47  ;;  %v12369_v1 = vrot.slane %v9829_v24, 7  ;;  %v3735_v18 = vrot.slane %v9586_v35, 7 }
 0x361   : > { %v12368_v61 = vrot.slane %v9586_v35, 2  ;;  %vm13635_vm8 = vcmask 257024   ;;  %vm13637_vm1 = vcmp.lt.s32.totalorder %v6606_v25, 7  ;;  %v12372_v59 = vrot.slane %v9815_v0, 2 }
 0x362   : > { %1334 = vst.msk [vmem:[#allocation2 + $0x20] sm:$0xf] %vm13635_vm8, %v5621_v51  ;;  %vm13636_vm10 = vmmov %vm13635_vm8  ;;  %v3663_v58 = vsel %vm13637_vm1, %v12370_v11, %v3608_v63  ;;  %v12367_v54 = vrot.slane %v9829_v24, 6  ;;  %v12371_v44 = vrot.slane %v9586_v35, 6  ;;  %v4222_v41 = vmax.f32 %v4158_v15, %v10588_v53  ;;  %v6100_v51 = vld [vmem:[#allocation6 + $0x38] sm:$0xff]   ;;  %v13650_v15 = vld [vmem:[#allocation33_spill] sm:$0xff] }
 0x363   : > { %1333 = vst.msk [vmem:[#allocation2 + $0x1c] sm:$0xf] %vm13636_vm10, %v5620_v5  ;;  %vm13639_vm6 = vcmask 519424   ;;  %vm13643_vm14 = vnez %v13642_v10  ;;  %vm13644_vm8 = vcmp.lt.s32.totalorder %v6606_v25, 1  ;;  %v4155_v26 = vmax.f32 %v9983_v36, %v9985_v2  ;;  %6001 = vmatprep.subr.bf16.mxu1 %v6100_v51  ;;  %5953 = vmatprep.subr.bf16.mxu0 %v6100_v51 }
 0x364   : > { %2587 = vst.msk [vmem:[#allocation2 + $0x20] sm:$0xf] %vm13639_vm6, %v13638_v56  ;;  %vm13641_vm13 = vmmov %vm13639_vm6  ;;  %v3671_v39 = vsel %vm13643_vm14, %v3663_v58, -inf  ;;  %v3792_v3 = vsel %vm13644_vm8, %v12369_v1, %v3735_v18  ;;  %vm13645_vm10 = vcmp.lt.s32.totalorder %v6606_v25, 6  ;;  %vm13646_vm1 = vcmp.lt.s32.totalorder %v6606_v25, 2  ;;  %6009 = vmatpush3.bf16.msra.mxu1 %v6100_v51  ;;  %5954 = vmatpush3.bf16.msra.mxu0 %v6100_v51 }
 0x365   : > { %2586 = vst.msk [vmem:[#allocation2 + $0x1c] sm:$0xf] %vm13641_vm13, %v13640_v37  ;;  %v3703_v20 = vmax.f32 %v9586_v35, %v3671_v39  ;;  %v3919_v34 = vsel %vm13645_vm10, %v12368_v61, %v12372_v59  ;;  %v4048_v49 = vsel %vm13646_vm1, %v12367_v54, %v12371_v44  ;;  %v13647_v9 = vrot.slane %v13534_v13, 1  ;;  %vm13654_vm14 = vmmov %vm13644_vm8  ;;  %6002 = vmatprep.subr.bf16.mxu1 %v6101_v6 }
 0x366   : > { %v13648_v19 = vrot.slane %v9616_v30, 1  ;;  %vm13649_vm6 = vcmp.lt.s32.totalorder %v6606_v25, 7  ;;  %v4286_v5 = vmax.f32 %v4222_v41, %v10592_v38  ;;  %vm13651_vm13 = vnez %v13650_v15  ;;  %vm13657_vm8 = vmmov %vm13645_vm10  ;;  %5955 = vmatprep.subr.bf16.mxu0 %v6101_v6 }
 0x367   : > { %v3927_v58 = vsel %vm13651_vm13, %v3919_v34, -inf  ;;  %v4219_v56 = vmax.f32 %v4155_v26, %v10360_v21  ;;  %v3831_v10 = vmax.f32 %v3703_v20, %v3792_v3  ;;  %v13652_v39 = vrot.slane %v9616_v30, 7  ;;  %vm13660_vm10 = vmmov %vm13646_vm1  ;;  %v10677_v20 = vpop.permute.xlu1 %3493 }
 0x368   : > { %v3650_v32 = vsel %vm13649_vm6, %v13648_v19, %v13647_v9  ;;  %v13653_v54 = vrot.slane %v9339_v40, 7  ;;  %v13655_v9 = vrot.slane %v13534_v13, 2  ;;  %v13656_v19 = vrot.slane %v9616_v30, 2  ;;  %6010 = vmatpush3.bf16.msra.mxu1 %v6101_v6  ;;  %5956 = vmatpush3.bf16.msra.mxu0 %v6101_v6 }
 0x369   : > { %v3716_v37 = vmax.f32 %v9616_v30, %v3650_v32  ;;  %v13658_v34 = vrot.slane %v9616_v30, 6  ;;  %v13659_v26 = vrot.slane %v9339_v40, 6  ;;  %v10679_v32 = vpop.permute.xlu0 %2538  ;;  %v4283_v15 = vmax.f32 %v4219_v56, %v9993_v43  ;;  %v13667_v56 = vld [vmem:[#allocation57_spill] sm:$0xff] }
 0x36a   : > { %v3779_v61 = vsel %vm13654_vm14, %v13653_v54, %v13652_v39  ;;  %v3906_v41 = vsel %vm13657_vm8, %v13656_v19, %v13655_v9  ;;  %13661 = vst [vmem:[#allocation62_spill] sm:$0xff] %v10679_v32  ;;  %v4350_v54 = vmax.f32 %v4286_v5, %v10586_v23  ;;  %v13662_v39 = vld [vmem:[#allocation12_spill] sm:$0xff]  ;;  %v13664_v9 = vld [vmem:[#allocation81_spill] sm:$0xff]  ;;  %v3959_v40 = vmax.f32 %v3831_v10, %v3927_v58  ;;  %v13670_v10 = vld [vmem:[#allocation119_spill] sm:$0xff] }
 0x36b   : > { %v4035_v3 = vsel %vm13660_vm10, %v13659_v26, %v13658_v34  ;;  %vm13663_vm1 = vnez %v13662_v39  ;;  %vm13665_vm6 = vnez %v13664_v9  ;;  %v4160_v34 = vmax.f32 %v10590_v47, %v10592_v38  ;;  %v13666_v26 = vld [vmem:[#allocation48_spill] sm:$0xff]  ;;  %v6102_v5 = vld [vmem:[#allocation6 + $0x28] sm:$0xff]  }
 0x36c   : > { %v3812_v1 = vsel %vm13663_vm1, %v3779_v61, -inf  ;;  %v4068_v30 = vsel %vm13665_vm6, %v4035_v3, -inf  ;;  %v5623_v11 = vpack.c.bf16 %v13666_v26, %v13666_v26  ;;  %v5719_v44 = vpack.c.bf16 %v4350_v54, %v4350_v54  ;;  %v13668_v61 = vld [vmem:[#allocation115_spill] sm:$0xff]  ;;  %6003 = vmatprep.subr.bf16.mxu1 %v6102_v5  ;;  %5957 = vmatprep.subr.bf16.mxu0 %v6102_v5 }
 0x36d   : > { %v3844_v19 = vmax.f32 %v3716_v37, %v3812_v1  ;;  %v5622_v39 = vpack.c.bf16 %v13667_v56, %v13667_v56  ;;  %v12380_v59 = vrot.slane %v13668_v61, 1  ;;  %v12373_v3 = vrot.slane %v10143_v22, 1  ;;  %v10721_v56 = vpop.permute.xlu1 %3505  ;;  %6011 = vmatpush3.bf16.msra.mxu1 %v6102_v5  ;;  %5958 = vmatpush3.bf16.msra.mxu0 %v6102_v5 }
 0x36e   : > { %v10695_v9 = vmax.f32 %v3959_v40, %v4048_v49  ;;  %v4224_v58 = vmax.f32 %v4160_v34, %v10584_v50  ;;  %vm13669_vm13 = vcmask 257024   ;;  %v12379_v37 = vrot.slane %v9743_v48, 7  ;;  %4488 = vrot.lane.b32.xlu0 %v5719_v44, %s6383_s26  ;;  %v13674_v40 = vld [vmem:[#allocation120_spill] sm:$0xff] }
 0x36f   : > { %v3972_v1 = vmax.f32 %v3844_v19, %v3906_v41  ;;  %1336 = vst.msk [vmem:[#allocation2 + $0x28] sm:$0xf] %vm13669_vm13, %v5623_v11  ;;  %vm13671_vm14 = vcmask 519424   ;;  %vm13672_vm8 = vmmov %vm13669_vm13  ;;  %vm13673_vm10 = vcmp.lt.s32.totalorder %v6606_v25, 7  ;;  %v12374_v51 = vrot.slane %v13668_v61, 7  ;;  %v13676_v19 = vld [vmem:[#allocation15_spill] sm:$0xff] }
 0x370   : > { %2589 = vst.msk [vmem:[#allocation2 + $0x28] sm:$0xf] %vm13671_vm14, %v13670_v10  ;;  %v3647_v49 = vsel %vm13673_vm10, %v12380_v59, %v12373_v3  ;;  %v12378_v11 = vrot.slane %v13668_v61, 2  ;;  %v12375_v41 = vrot.slane %v10143_v22, 2  ;;  %v4347_v44 = vmax.f32 %v4283_v15, %v10695_v9  ;;  %vm13675_vm1 = vmmov %vm13671_vm14 }
 0x371   : > { %1335 = vst.msk [vmem:[#allocation2 + $0x24] sm:$0xf] %vm13672_vm8, %v5622_v39  ;;  %v10714_v54 = vmax.f32 %v3972_v1, %v4068_v30  ;;  %vm13677_vm6 = vnez %v13676_v19  ;;  %v12377_v26 = vrot.slane %v9743_v48, 6  ;;  %v10723_v39 = vpop.permute.xlu0 %3503  ;;  %vm13678_vm13 = vcmp.lt.s32.totalorder %v6606_v25, 1  ;;  %v13680_v19 = vld [vmem:[#allocation87_spill] sm:$0xff] }
 0x372   : > { %2588 = vst.msk [vmem:[#allocation2 + $0x24] sm:$0xf] %vm13675_vm1, %v13674_v40  ;;  %v3687_v34 = vsel %vm13677_vm6, %v3647_v49, -inf  ;;  %v3776_v15 = vsel %vm13678_vm13, %v12379_v37, %v12374_v51  ;;  %vm13679_vm14 = vcmp.lt.s32.totalorder %v6606_v25, 6  ;;  %v12376_v1 = vrot.slane %v13668_v61, 6  ;;  %vm13686_vm6 = vmmov %vm13678_vm13 }
 0x373   : > { %v3719_v10 = vmax.f32 %v13668_v61, %v3687_v34  ;;  %v3903_v30 = vsel %vm13679_vm14, %v12378_v11, %v12375_v41  ;;  %v5716_v49 = vpack.c.bf16 %v4347_v44, %v4347_v44  ;;  %v4288_v40 = vmax.f32 %v4224_v58, %v10714_v54 }
 0x374   : > { %vm13681_vm8 = vnez %v13680_v19  ;;  %v4163_v3 = vmax.f32 %v10000_v57, %v10489_v31  ;;  %vm13682_vm10 = vcmp.lt.s32.totalorder %v6606_v25, 2  ;;  %v13683_v6 = vrot.slane %v9568_v4, 1 }
 0x375   : > { %v3943_v34 = vsel %vm13681_vm8, %v3903_v30, -inf  ;;  %v3847_v51 = vmax.f32 %v3719_v10, %v3776_v15  ;;  %v4032_v41 = vsel %vm13682_vm10, %v12377_v26, %v12376_v1  ;;  %vm13684_vm1 = vcmp.lt.s32.totalorder %v6606_v25, 7  ;;  %v6103_v15 = vld [vmem:[#allocation6 + $0x20] sm:$0xff]   ;;  %4482 = vrot.lane.b32.xlu1 %v5716_v49, %s6383_s26  ;;  %v13687_v26 = vld [vmem:[#allocation39_spill] sm:$0xff]  ;;  %vm13693_vm8 = vmmov %vm13682_vm10 }
 0x376   : > { %v3662_v58 = vsel %vm13684_vm1, %v3608_v63, %v13683_v6  ;;  %v13685_v44 = vrot.slane %v9815_v0, 7  ;;  %v4352_v30 = vmax.f32 %v4288_v40, %v10588_v53  ;;  %v4227_v19 = vmax.f32 %v4163_v3, %v9995_v17  ;;  %6004 = vmatprep.subr.bf16.mxu1 %v6103_v15  ;;  %5959 = vmatprep.subr.bf16.mxu0 %v6103_v15 }
 0x377   : > { %v3704_v1 = vmax.f32 %v9815_v0, %v3662_v58  ;;  %vm13688_vm13 = vnez %v13687_v26  ;;  %v3975_v6 = vmax.f32 %v3847_v51, %v3943_v34  ;;  %v13689_v11 = vrot.slane %v9568_v4, 2  ;;  %v13694_v34 = vld [vmem:[#allocation40_spill] sm:$0xff]  ;;  %v13696_v58 = vld [vmem:[#allocation61_spill] sm:$0xff]  ;;  %6012 = vmatpush3.bf16.msra.mxu1 %v6103_v15  ;;  %5960 = vmatpush3.bf16.msra.mxu0 %v6103_v15 }
 0x378   : > { %v3791_v10 = vsel %vm13686_vm6, %v3735_v18, %v13685_v44  ;;  %v13690_v37 = vrot.slane %v9815_v0, 2  ;;  %v13691_v44 = vrot.slane %v9815_v0, 6  ;;  %v13692_v49 = vrot.slane %v9586_v35, 6  ;;  %v10788_v0 = vpop.permute.xlu0 %2534 }
 0x379   : > { %v3800_v63 = vsel %vm13688_vm13, %v3791_v10, -inf  ;;  %v4156_v40 = vmax.f32 %v10588_v53, %v10584_v50  ;;  %v5721_v26 = vpack.c.bf16 %v4352_v30, %v4352_v30  ;;  %vm13695_vm10 = vnez %v13694_v34  ;;  %13697 = vst [vmem:[#allocation71_spill] sm:$0xff] %v10788_v0  ;;  %v13699_v30 = vld [vmem:[#allocation100_spill] sm:$0xff]  ;;  %v13701_v34 = vld [vmem:[#allocation75_spill] sm:$0xff] }
 0x37a   : > { %v3918_v18 = vsel %vm13679_vm14, %v13690_v37, %v13689_v11  ;;  %v4047_v3 = vsel %vm13693_vm8, %v13692_v49, %v13691_v44  ;;  %v3832_v51 = vmax.f32 %v3704_v1, %v3800_v63  ;;  %v5625_v10 = vpack.c.bf16 %v13696_v58, %v13696_v58  ;;  %v10786_v37 = vpop.permute.xlu1 %3489  ;;  %v13698_v49 = vld [vmem:[#allocation52_spill] sm:$0xff]  ;;  %v13702_v58 = vld [vmem:[#allocation45_spill] sm:$0xff] }
 0x37b   : > { %v4056_v4 = vsel %vm13695_vm10, %v4047_v3, -inf  ;;  %v10790_v11 = vmax.f32 %v3975_v6, %v4032_v41  ;;  %v4220_v44 = vmax.f32 %v4156_v40, %v10586_v23  ;;  %v5624_v59 = vpack.c.bf16 %v13698_v49, %v13698_v49  ;;  %4492 = vrot.lane.b32.xlu0 %v5721_v26, %s6383_s26 }
 0x37c   : > { %v12381_v1 = vrot.slane %v13699_v30, 1  ;;  %v3960_v63 = vmax.f32 %v3832_v51, %v3918_v18  ;;  %vm13700_vm1 = vcmask 257024   ;;  %v3606_v3 = vrot.slane %v9829_v24, 1 }
 0x37d   : > { %1338 = vst.msk [vmem:[#allocation2 + $0x30] sm:$0xf] %vm13700_vm1, %v5625_v10  ;;  %v12382_v5 = vrot.slane %v13701_v34, 7  ;;  %v3733_v41 = vrot.slane %v13699_v30, 7  ;;  %v4291_v6 = vmax.f32 %v4227_v19, %v10790_v11  ;;  %v4284_v40 = vmax.f32 %v4220_v44, %v10590_v47  ;;  %vm13704_vm13 = vmmov %vm13700_vm1  ;;  %v13705_v10 = vld [vmem:[#allocation50_spill] sm:$0xff] }
 0x37e   : > { %vm13703_vm6 = vcmask 519424   ;;  %1337 = vst.msk [vmem:[#allocation2 + $0x2c] sm:$0xf] %vm13704_vm13, %v5624_v59  ;;  %v12383_v26 = vrot.slane %v13699_v30, 2  ;;  %v3862_v18 = vrot.slane %v9829_v24, 2  ;;  %v10808_v51 = vmax.f32 %v3960_v63, %v4056_v4  ;;  %v13709_v4 = vld [vmem:[#allocation22_spill] sm:$0xff]  ;;  %v10835_v15 = vpop.permute.xlu1 %3509 }
 0x37f   : > { %2591 = vst.msk [vmem:[#allocation2 + $0x30] sm:$0xf] %vm13703_vm6, %v13702_v58  ;;  %vm13706_vm14 = vmmov %vm13703_vm6  ;;  %vm13707_vm8 = vcmp.lt.s32.totalorder %v6606_v25, 7  ;;  %vm13708_vm10 = vcmp.lt.s32.totalorder %v6606_v25, 1  ;;  %v4355_v49 = vmax.f32 %v4291_v6, %v9993_v43  ;;  %vm13710_vm1 = vnez %v13709_v4  ;;  %v10837_v6 = vpop.permute.xlu0 %3491 }
 0x380   : > { %2590 = vst.msk [vmem:[#allocation2 + $0x2c] sm:$0xf] %vm13706_vm14, %v13705_v10  ;;  %v3665_v19 = vsel %vm13707_vm8, %v12381_v1, %v3606_v3  ;;  %v3794_v44 = vsel %vm13708_vm10, %v12382_v5, %v3733_v41  ;;  %vm13711_vm6 = vcmp.lt.s32.totalorder %v6606_v25, 6  ;;  %v3989_v10 = vrot.slane %v13699_v30, 6  ;;  %v13712_v5 = vld [vmem:[#allocation29_spill] sm:$0xff] }
 0x381   : > { %v3669_v63 = vsel %vm13710_vm1, %v3665_v19, -inf  ;;  %v3921_v58 = vsel %vm13711_vm6, %v12383_v26, %v3862_v18  ;;  %v4348_v1 = vmax.f32 %v4284_v40, %v10808_v51  ;;  %vm13713_vm13 = vnez %v13712_v5 }
 0x382   : > { %v3701_v0 = vmax.f32 %v13699_v30, %v3669_v63  ;;  %v3925_v59 = vsel %vm13713_vm13, %v3921_v58, -inf  ;;  %v4153_v43 = vmax.f32 %v10360_v21, %v9983_v36  ;;  %v5724_v19 = vpack.c.bf16 %v4355_v49, %v4355_v49  ;;  %v6104_v36 = vld [vmem:[#allocation6 + $0x18] sm:$0xff]  }
 0x383   : > { %v13714_v4 = vrot.slane %v13701_v34, 6  ;;  %vm13715_vm14 = vcmp.lt.s32.totalorder %v6606_v25, 2  ;;  %v13716_v40 = vrot.slane %v9586_v35, 1  ;;  %v13717_v5 = vrot.slane %v9829_v24, 7  ;;  %6005 = vmatprep.subr.bf16.mxu1 %v6104_v36  ;;  %5961 = vmatprep.subr.bf16.mxu0 %v6104_v36 }
 0x384   : > { %v5717_v32 = vpack.c.bf16 %v4348_v1, %v4348_v1  ;;  %v3829_v52 = vmax.f32 %v3701_v0, %v3794_v44  ;;  %v4217_v49 = vmax.f32 %v4153_v43, %v10695_v9  ;;  %4498 = vrot.lane.b32.xlu1 %v5724_v19, %s6383_s26  ;;  %v13720_v17 = vrot.slane %v9586_v35, 2  ;;  %vm13722_vm13 = vmmov %vm13715_vm14  ;;  %v13723_v19 = vld [vmem:[#allocation31_spill] sm:$0xff]  ;;  %6013 = vmatpush3.bf16.msra.mxu1 %v6104_v36 }
 0x385   : > { %v4050_v26 = vsel %vm13715_vm14, %v13714_v4, %v3989_v10  ;;  %v3664_v63 = vsel %vm13707_vm8, %v3606_v3, %v13716_v40  ;;  %v3793_v58 = vsel %vm13708_vm10, %v3733_v41, %v13717_v5  ;;  %v13718_v4 = vld [vmem:[#allocation25_spill] sm:$0xff]  ;;  %v13721_v40 = vrot.slane %v9829_v24, 6  ;;  %5962 = vmatpush3.bf16.msra.mxu0 %v6104_v36 }
 0x386   : > { %v3702_v46 = vmax.f32 %v9829_v24, %v3664_v63  ;;  %vm13719_vm1 = vnez %v13718_v4  ;;  %v3920_v3 = vsel %vm13711_vm6, %v3862_v18, %v13720_v17  ;;  %v4154_v0 = vmax.f32 %v10586_v23, %v10588_v53  ;;  %4484 = vrot.lane.b32.xlu0 %v5717_v32, %s6383_s26  ;;  %v13725_v18 = vld [vmem:[#allocation68_spill] sm:$0xff]  ;;  %v13737_v36 = vld [vmem:[#allocation69_spill] sm:$0xff] }
 0x387   : > { %v3798_v28 = vsel %vm13719_vm1, %v3793_v58, -inf  ;;  %v4049_v1 = vsel %vm13722_vm13, %v3989_v10, %v13721_v40  ;;  %v3957_v41 = vmax.f32 %v3829_v52, %v3925_v59  ;;  %v4281_v44 = vmax.f32 %v4217_v49, %v9985_v2  ;;  %v13726_v10 = vld [vmem:[#allocation73_spill] sm:$0xff] }
 0x388   : > { %v3830_v43 = vmax.f32 %v3702_v46, %v3798_v28  ;;  %vm13724_vm14 = vnez %v13723_v19  ;;  %v4218_v17 = vmax.f32 %v4154_v0, %v10808_v51  ;;  %v5627_v5 = vpack.c.bf16 %v13725_v18, %v13725_v18  ;;  %v10893_v0 = vpop.permute.xlu0 %3507 }
 0x389   : > { %v4054_v63 = vsel %vm13724_vm14, %v4049_v1, -inf  ;;  %v5626_v58 = vpack.c.bf16 %v13726_v10, %v13726_v10  ;;  %v3184_v4 = vmax.f32 %v10162_v7, %v10256_v55  ;;  %v10877_v52 = vmax.f32 %v3957_v41, %v4050_v26  ;;  %v10891_v1 = vpop.permute.xlu1 %3485 }
 0x38a   : > { %v3958_v2 = vmax.f32 %v3830_v43, %v3920_v3  ;;  %v13727_v28 = vrot.slane %v13668_v61, 1  ;;  %v13728_v46 = vrot.slane %v9743_v48, 1  ;;  %v13729_v59 = vrot.slane %v9743_v48, 7  ;;  %v13733_v43 = vld [vmem:[#allocation14_spill] sm:$0xff] }
 0x38b   : > { %v13730_v49 = vrot.slane %v13534_v13, 7  ;;  %v4282_v26 = vmax.f32 %v4218_v17, %v10584_v50  ;;  %vm13731_vm1 = vcmask 257024   ;;  %v3248_v3 = vmax.f32 %v3184_v4, %v10095_v29 }
 0x38c   : > { %v3648_v32 = vsel %vm13707_vm8, %v13728_v46, %v13727_v28  ;;  %1340 = vst.msk [vmem:[#allocation2 + $0x38] sm:$0xf] %vm13731_vm1, %v5627_v5  ;;  %vm13732_vm6 = vmmov %vm13731_vm1  ;;  %vm13734_vm13 = vnez %v13733_v43  ;;  %v4345_v18 = vmax.f32 %v4281_v44, %v10877_v52  ;;  %v10903_v10 = vmax.f32 %v3958_v2, %v4054_v63  ;;  %v13735_v28 = vld [vmem:[#allocation60_spill] sm:$0xff]  ;;  %v6105_v63 = vld [vmem:[#allocation6 + $0x10] sm:$0xff]  }
 0x38d   : > { %v3777_v40 = vsel %vm13708_vm10, %v13730_v49, %v13729_v59  ;;  %1339 = vst.msk [vmem:[#allocation2 + $0x34] sm:$0xf] %vm13732_vm6, %v5626_v58  ;;  %v3718_v41 = vmax.f32 %v9743_v48, %v3648_v32  ;;  %vm13736_vm14 = vcmask 519424   ;;  %v13739_v17 = vrot.slane %v13668_v61, 2  ;;  %v13745_v59 = vld [vmem:[#allocation84_spill] sm:$0xff]  ;;  %6006 = vmatprep.subr.bf16.mxu1 %v6105_v63  ;;  %5963 = vmatprep.subr.bf16.mxu0 %v6105_v63 }
 0x38e   : > { %v3814_v19 = vsel %vm13734_vm13, %v3777_v40, -inf  ;;  %2593 = vst.msk [vmem:[#allocation2 + $0x38] sm:$0xf] %vm13736_vm14, %v13735_v28  ;;  %vm13738_vm8 = vmmov %vm13736_vm14  ;;  %v13740_v5 = vrot.slane %v9743_v48, 2  ;;  %vm13741_vm10 = vcmp.lt.s32.totalorder %v6606_v25, 6  ;;  %v13742_v4 = vrot.slane %v9743_v48, 6  ;;  %6014 = vmatpush3.bf16.msra.mxu1 %v6105_v63  ;;  %5964 = vmatpush3.bf16.msra.mxu0 %v6105_v63 }
 0x38f   : > { %2592 = vst.msk [vmem:[#allocation2 + $0x34] sm:$0xf] %vm13738_vm8, %v13737_v36  ;;  %v13743_v46 = vrot.slane %v13534_v13, 6  ;;  %vm13744_vm1 = vcmp.lt.s32.totalorder %v6606_v25, 2  ;;  %v10922_v2 = vmax.f32 %v3248_v3, %v9753_v8  ;;  %v3846_v32 = vmax.f32 %v3718_v41, %v3814_v19  ;;  %v13747_v48 = vld [vmem:[#allocation26_spill] sm:$0xff] }
 0x390   : > { %v3904_v58 = vsel %vm13741_vm10, %v13740_v5, %v13739_v17  ;;  %vm13746_vm6 = vnez %v13745_v59  ;;  %v4162_v40 = vmax.f32 %v10592_v38, %v10714_v54  ;;  %v5714_v43 = vpack.c.bf16 %v4345_v18, %v4345_v18  ;;  %v13748_v36 = vld [vmem:[#allocation70_spill] sm:$0xff]  ;;  %v13753_v59 = vld [vmem:[#allocation51_spill] sm:$0xff]  ;;  %vm13754_vm10 = vmmov %vm13738_vm8 }
 0x391   : > { %v4033_v44 = vsel %vm13744_vm1, %v13743_v46, %v13742_v4  ;;  %v4346_v28 = vmax.f32 %v4282_v26, %v10903_v10  ;;  %v5629_v13 = vpack.c.bf16 %v13747_v48, %v13747_v48  ;;  %v5628_v17 = vpack.c.bf16 %v13748_v36, %v13748_v36  ;;  %v10949_v46 = vpop.permute.xlu1 %3477 }
 0x392   : > { %v4070_v49 = vsel %vm13746_vm6, %v4033_v44, -inf  ;;  %v5706_v8 = vpack.c.bf16 %v10922_v2, %v10922_v2  ;;  %v3974_v3 = vmax.f32 %v3846_v32, %v3904_v58  ;;  %v4226_v41 = vmax.f32 %v4162_v40, %v10590_v47  ;;  %4478 = vrot.lane.b32.xlu1 %v5714_v43, %s6383_s26  ;;  %v13752_v32 = vld [vmem:[#allocation74_spill] sm:$0xff] }
 0x393   : > { %v5680_v19 = vpack.c.bf16 %v9586_v35, %v9586_v35  ;;  %v5715_v26 = vpack.c.bf16 %v4346_v28, %v4346_v28  ;;  %vm13749_vm13 = vcmask 257024   ;;  %v13751_v18 = vmax.f32 %v10256_v55, %v10162_v7  ;;  %v10951_v35 = vpop.permute.xlu0 %3487  ;;  %v13755_v7 = vld [vmem:[#allocation77_spill] sm:$0xff]  ;;  %v13756_v40 = vld [vmem:[#allocation82_spill] sm:$0xff] }
 0x394   : > { %1342 = vst.msk [vmem:[#allocation2 + $0x40] sm:$0xf] %vm13749_vm13, %v5629_v13  ;;  %vm13750_vm14 = vmmov %vm13749_vm13  ;;  %v12397_v58 = vrot.slane %v13701_v34, 1  ;;  %v12387_v4 = vrot.slane %v13701_v34, 2  ;;  %v10953_v44 = vmax.f32 %v3974_v3, %v4070_v49  ;;  %v5631_v55 = vpack.c.bf16 %v13755_v7, %v13755_v7  ;;  %v13766_v7 = vld [vmem:[#allocation78_spill] sm:$0xff] }
 0x395   : > { %1341 = vst.msk [vmem:[#allocation2 + $0x3c] sm:$0xf] %vm13750_vm14, %v5628_v17  ;;  %v10945_v5 = vmax.f32 %v13751_v18, %v10095_v29  ;;  %v4152_v29 = vmax.f32 %v10808_v51, %v10586_v23  ;;  %v5630_v43 = vpack.c.bf16 %v13756_v40, %v13756_v40  ;;  %4480 = vrot.lane.b32.xlu0 %v5715_v26, %s6383_s26  ;;  %v13757_v49 = vrot.slane %v13699_v30, 1  ;;  %vm13761_vm14 = vmmov %vm13749_vm13  ;;  %v6106_v18 = vld [vmem:[#allocation6 + $0x8] sm:$0xff]   ;;  %v13770_v40 = vld [vmem:[#allocation86_spill] sm:$0xff] }
 0x396   : > { %2595 = vst.msk [vmem:[#allocation2 + $0x40] sm:$0xf] %vm13738_vm8, %v13752_v32  ;;  %vm13758_vm1 = vcmp.lt.s32.totalorder %v6606_v25, 7  ;;  %v13759_v13 = vrot.slane %v13699_v30, 2  ;;  %vm13760_vm6 = vcmp.lt.s32.totalorder %v6606_v25, 6  ;;  %v4290_v17 = vmax.f32 %v4226_v41, %v10953_v44  ;;  %3533 = vrot.lane.b32.xlu1 %v5706_v8, %s6382_s7  ;;  %6007 = vmatprep.subr.bf16.mxu1 %v6106_v18 }
 0x397   : > { %2594 = vst.msk [vmem:[#allocation2 + $0x3c] sm:$0xf] %vm13754_vm10, %v13753_v59  ;;  %v3666_v28 = vsel %vm13758_vm1, %v12397_v58, %v13757_v49  ;;  %v12388_v48 = vrot.slane %v10945_v5, 7  ;;  %v12386_v63 = vrot.slane %v10945_v5, 6  ;;  %v4216_v26 = vmax.f32 %v4152_v29, %v10903_v10  ;;  %5965 = vmatprep.subr.bf16.mxu0 %v6106_v18  ;;  %6015 = vmatpush3.bf16.msra.mxu1 %v6106_v18  ;;  %v13796_v58 = vld [vmem:[#allocation24_spill] sm:$0xff] }
 0x398   : > { %v3922_v36 = vsel %vm13760_vm6, %v12387_v4, %v13759_v13  ;;  %v3700_v3 = vmax.f32 %v13701_v34, %v3666_v28  ;;  %1344 = vst.msk [vmem:[#allocation2 + $0x48] sm:$0xf] %vm13749_vm13, %v5631_v55  ;;  %v5708_v30 = vpack.c.bf16 %v10945_v5, %v10945_v5  ;;  %v13762_v32 = vrot.slane %v13701_v34, 7  ;;  %v13768_v55 = vld [vmem:[#allocation47_spill] sm:$0xff]  ;;  %v13773_v4 = vld [vmem:[#allocation80_spill] sm:$0xff]  ;;  %5966 = vmatpush3.bf16.msra.mxu0 %v6106_v18 }
 0x399   : > { %1343 = vst.msk [vmem:[#allocation2 + $0x44] sm:$0xf] %vm13761_vm14, %v5630_v43  ;;  %vm13763_vm8 = vcmp.lt.s32.totalorder %v6606_v25, 1  ;;  %v13764_v59 = vrot.slane %v13701_v34, 6  ;;  %vm13765_vm10 = vcmp.lt.s32.totalorder %v6606_v25, 2  ;;  %vm13767_vm1 = vcmask 519424  }
 0x39a   : > { %v3795_v41 = vsel %vm13763_vm8, %v12388_v48, %v13762_v32  ;;  %2597 = vst.msk [vmem:[#allocation2 + $0x48] sm:$0xf] %vm13767_vm1, %v13766_v7  ;;  %vm13769_vm6 = vmmov %vm13767_vm1  ;;  %v3183_v8 = vmax.f32 %v10283_v33, %v10376_v62  ;;  %v5633_v43 = vpack.c.bf16 %v13770_v40, %v13770_v40  ;;  %v4354_v49 = vmax.f32 %v4290_v17, %v10584_v50  ;;  %v11020_v17 = vpop.permute.xlu1 %3513  ;;  %v6107_v28 = vld [vmem:[#allocation6] sm:$0xff]  }
 0x39b   : > { %v4051_v29 = vsel %vm13765_vm10, %v12386_v63, %v13764_v59  ;;  %2596 = vst.msk [vmem:[#allocation2 + $0x44] sm:$0xf] %vm13769_vm6, %v13768_v55  ;;  %v3796_v13 = vsel %vm8179_vm2, %v3795_v41, -inf  ;;  %v4280_v63 = vmax.f32 %v4216_v26, %v10588_v53  ;;  %v5632_v40 = vpack.c.bf16 %v13773_v4, %v13773_v4  ;;  %v11022_v41 = vpop.permute.xlu0 %3511  ;;  %v13774_v53 = vld [vmem:[#allocation116_spill] sm:$0xff]  ;;  %vm13775_vm2 = vmmov %vm13767_vm1  ;;  %v13776_v26 = vld [vmem:[#allocation90_spill] sm:$0xff]  ;;  %3481 = vrot.lane.b32.xlu1 %v5680_v19, %s6382_s7 }
 0x39c   : > { %v4052_v59 = vsel %vm8202_vm12, %v4051_v29, -inf  ;;  %v3828_v7 = vmax.f32 %v3700_v3, %v3796_v13  ;;  %v3247_v55 = vmax.f32 %v3183_v8, %v10203_v16  ;;  %1346 = vst.msk [vmem:[#allocation2 + $0x50] sm:$0xf] %vm13749_vm13, %v5633_v43  ;;  %v4149_v50 = vmax.f32 %v10877_v52, %v10695_v9  ;;  %v13777_v43 = vld [vmem:[#allocation32_spill] sm:$0xff]  ;;  %vm13778_vm12 = vmmov %vm13749_vm13  ;;  %6008 = vmatprep.subr.bf16.mxu1 %v6107_v28 }
 0x39d   : > { %v5723_v29 = vpack.c.bf16 %v4354_v49, %v4354_v49  ;;  %2599 = vst.msk [vmem:[#allocation2 + $0x50] sm:$0xf] %vm13775_vm2, %v13774_v53  ;;  %v5679_v3 = vpack.c.bf16 %v9829_v24, %v9829_v24  ;;  %v5634_v8 = vpack.c.bf16 %v13776_v26, %v13776_v26  ;;  %v5617_v4 = vpack.c.bf16 %v13777_v43, %v13777_v43  ;;  %v13779_v53 = vld [vmem:[#allocation121_spill] sm:$0xff]  ;;  %v13780_v26 = vld [vmem:[#allocation118_spill] sm:$0xff]  ;;  %vm13781_vm14 = vmmov %vm13767_vm1 }
 0x39e   : > { %v3956_v13 = vmax.f32 %v3828_v7, %v3922_v36  ;;  %v11034_v32 = vmax.f32 %v3247_v55, %v10097_v12  ;;  %1345 = vst.msk [vmem:[#allocation2 + $0x4c] sm:$0xf] %vm13778_vm12, %v5632_v40  ;;  %v4277_v49 = vmax.f32 %v4149_v50, %v10360_v21  ;;  %v12394_v48 = vrot.slane %v13779_v53, 1  ;;  %vm13782_vm8 = vmmov %vm13778_vm12  ;;  %6016 = vmatpush3.bf16.msra.mxu1 %v6107_v28  ;;  %v13787_v43 = vld [vmem:[#allocation17_spill] sm:$0xff] }
 0x39f   : > { %4496 = vrot.lane.b32.xlu0 %v5723_v29, %s6383_s26  ;;  %2598 = vst.msk [vmem:[#allocation2 + $0x4c] sm:$0xf] %vm13781_vm14, %v13780_v26  ;;  %vm13783_vm10 = vmmov %vm13782_vm8  ;;  %v12391_v19 = vrot.slane %v10250_v42, 1  ;;  %v12393_v12 = vrot.slane %v10143_v22, 7  ;;  %v12389_v36 = vrot.slane %v13779_v53, 7  ;;  %v12392_v18 = vrot.slane %v13779_v53, 2  ;;  %5967 = vmatprep.subr.bf16.mxu0 %v6107_v28  ;;  %v3518_v26 = vpop.permute.xlu1 %3517 }
 0x3a0   : > { %1347 = vst.msk [vmem:[#allocation2 + $0x54] sm:$0xf] %vm13782_vm8, %v5634_v8  ;;  %v11048_v7 = vmax.f32 %v3956_v13, %v4052_v59  ;;  %v5705_v55 = vpack.c.bf16 %v11034_v32, %v11034_v32  ;;  %v5710_v40 = vpack.c.bf16 %v4277_v49, %v4277_v49  ;;  %vm13784_vm6 = vmmov %vm13767_vm1  ;;  %v12390_v50 = vrot.slane %v10250_v42, 2  ;;  %5968 = vmatpush3.bf16.msra.mxu0 %v6107_v28 }
 0x3a1   : > { %1330 = vst.msk [vmem:[#allocation2 + $0x10] sm:$0xf] %vm13783_vm10, %v5617_v4  ;;  %vm13785_vm13 = vcmp.lt.s32.totalorder %v6606_v25, 7  ;;  %vm13786_vm2 = vcmp.lt.s32.totalorder %v6606_v25, 1  ;;  %v12395_v29 = vrot.slane %v13779_v53, 6  ;;  %3537 = vrot.lane.b32.xlu1 %v5708_v30, %s6382_s7  ;;  %vm13788_vm12 = vnez %v13787_v43 }
 0x3a2   : > { %2600 = vst.msk [vmem:[#allocation2 + $0x54] sm:$0xf] %vm13767_vm1, %v10146_v45  ;;  %v3645_v59 = vsel %vm13785_vm13, %v12394_v48, %v12391_v19  ;;  %v3774_v45 = vsel %vm13786_vm2, %v12393_v12, %v12389_v36  ;;  %v4344_v8 = vmax.f32 %v4280_v63, %v11048_v7  ;;  %vm13789_vm14 = vcmp.lt.s32.totalorder %v6606_v25, 6  ;;  %v3484_v36 = vpop.permute.xlu0 %3483  ;;  %v13790_v63 = vld [vmem:[#allocation91_spill] sm:$0xff] }
 0x3a3   : > { %2583 = vst.msk [vmem:[#allocation2 + $0x10] sm:$0xf] %vm13784_vm6, %v10148_v14  ;;  %v12396_v14 = vrot.slane %v10143_v22, 6  ;;  %v3689_v4 = vsel %vm13788_vm12, %v3645_v59, -inf  ;;  %v3901_v13 = vsel %vm13789_vm14, %v12392_v18, %v12390_v50  ;;  %v4165_v49 = vmax.f32 %v10489_v31, %v10790_v11  ;;  %v13793_v18 = vld [vmem:[#allocation88_spill] sm:$0xff] }
 0x3a4   : > { %v3721_v28 = vmax.f32 %v13779_v53, %v3689_v4  ;;  %vm13791_vm8 = vnez %v13790_v63  ;;  %vm13792_vm10 = vcmp.lt.s32.totalorder %v6606_v25, 2  ;;  %v3249_v43 = vmax.f32 %v10376_v62, %v10283_v33  ;;  %v13794_v63 = vld [vmem:[#allocation27_spill] sm:$0xff] }
 0x3a5   : > { %v3945_v30 = vsel %vm13791_vm8, %v3901_v13, -inf  ;;  %v4030_v59 = vsel %vm13792_vm10, %v12396_v14, %v12395_v29  ;;  %v5713_v50 = vpack.c.bf16 %v4344_v8, %v4344_v8  ;;  %v4229_v19 = vmax.f32 %v4165_v49, %v10000_v57  ;;  %v13795_v29 = vld [vmem:[#allocation36_spill] sm:$0xff]  ;;  %v13797_v33 = vld [vmem:[#allocation123_spill] sm:$0xff]  ;;  %4470 = vrot.lane.b32.xlu1 %v5710_v40, %s6383_s26  ;;  %v13809_v40 = vld [vmem:[#allocation85_spill] sm:$0xff] }
 0x3a6   : > { %v5636_v12 = vpack.c.bf16 %v13793_v18, %v13793_v18  ;;  %vm3571_vm1 = vcmask 781824   ;;  %v3849_v4 = vmax.f32 %v3721_v28, %v3774_v45  ;;  %v11098_v13 = vmax.f32 %v3249_v43, %v10203_v16  ;;  %v13810_v45 = vld [vmem:[#allocation114_spill] sm:$0xff]  ;;  %v13811_v49 = vld [vmem:[#allocation13_spill] sm:$0xff] }
 0x3a7   : > { %3582 = vst.msk [vmem:[#allocation2 + $0x28] sm:$0xf] %vm3571_vm1, %v10215_v60  ;;  %v3627_v48 = vrot.slane %v13794_v63, 1  ;;  %v12406_v14 = vrot.slane %v13795_v29, 1  ;;  %3583 = vst.msk [vmem:[#allocation2 + $0x2c] sm:$0xf] %vm3571_vm1, %v13796_v58  ;;  %4476 = vrot.lane.b32.xlu0 %v5713_v50, %s6383_s26  ;;  %v5635_v50 = vpack.c.bf16 %v13809_v40, %v13809_v40 }
 0x3a8   : > { %3584 = vst.msk [vmem:[#allocation2 + $0x30] sm:$0xf] %vm3571_vm1, %v13797_v33  ;;  %3585 = vst.msk [vmem:[#allocation2 + $0x34] sm:$0xf] %vm3571_vm1, %v10539_v27  ;;  %vm13798_vm6 = vcmask 257024   ;;  %v3754_v16 = vrot.slane %v10250_v42, 7 }
 0x3a9   : > { %3581 = vst.msk [vmem:[#allocation2 + $0x24] sm:$0xf] %vm3571_vm1, %v10677_v20  ;;  %3587 = vst.msk [vmem:[#allocation2 + $0x3c] sm:$0xf] %vm3571_vm1, %v10721_v56  ;;  %v12400_v60 = vrot.slane %v13794_v63, 7  ;;  %v3883_v62 = vrot.slane %v13794_v63, 2  ;;  %v3977_v20 = vmax.f32 %v3849_v4, %v3945_v30  ;;  %v5707_v56 = vpack.c.bf16 %v11098_v13, %v11098_v13 }
 0x3aa   : > { %3586 = vst.msk [vmem:[#allocation2 + $0x38] sm:$0xf] %vm3571_vm1, %v10723_v39  ;;  %3579 = vst.msk [vmem:[#allocation2 + $0x1c] sm:$0xf] %vm3571_vm1, %v10786_v37  ;;  %v12399_v27 = vrot.slane %v13795_v29, 2  ;;  %v13799_v39 = vld [vmem:[#allocation108_spill] sm:$0xff] }
 0x3ab   : > { %3589 = vst.msk [vmem:[#allocation2 + $0x44] sm:$0xf] %vm3571_vm1, %v10835_v15  ;;  %3580 = vst.msk [vmem:[#allocation2 + $0x20] sm:$0xf] %vm3571_vm1, %v10837_v6  ;;  %vm13800_vm13 = vcmask 519424   ;;  %vm13801_vm2 = vcmp.lt.s32.totalorder %v6606_v25, 7  ;;  %3531 = vrot.lane.b32.xlu0 %v5705_v55, %s6382_s7 }
 0x3ac   : > { %3577 = vst.msk [vmem:[#allocation2 + $0x14] sm:$0xf] %vm3571_vm1, %v10891_v1  ;;  %3588 = vst.msk [vmem:[#allocation2 + $0x40] sm:$0xf] %vm3571_vm1, %v10893_v0  ;;  %v3643_v37 = vsel %vm13801_vm2, %v3627_v48, %v12406_v14  ;;  %v4010_v15 = vrot.slane %v10250_v42, 6  ;;  %v13802_v6 = vld [vmem:[#allocation19_spill] sm:$0xff] }
 0x3ad   : > { %3573 = vst.msk [vmem:[#allocation2 + $0x4] sm:$0xf] %vm3571_vm1, %v10949_v46  ;;  %3578 = vst.msk [vmem:[#allocation2 + $0x18] sm:$0xf] %vm3571_vm1, %v10951_v35  ;;  %vm13803_vm12 = vnez %v13802_v6  ;;  %vm13804_vm14 = vcmp.lt.s32.totalorder %v6606_v25, 1  ;;  %vm13805_vm8 = vcmp.lt.s32.totalorder %v6606_v25, 6  ;;  %v11169_v35 = vmax.f32 %v3977_v20, %v4030_v59 }
 0x3ae   : > { %3591 = vst.msk [vmem:[#allocation2 + $0x4c] sm:$0xf] %vm3571_vm1, %v11020_v17  ;;  %3590 = vst.msk [vmem:[#allocation2 + $0x48] sm:$0xf] %vm3571_vm1, %v11022_v41  ;;  %v3691_v1 = vsel %vm13803_vm12, %v3643_v37, -inf  ;;  %v3772_v0 = vsel %vm13804_vm14, %v3754_v16, %v12400_v60  ;;  %v3899_v58 = vsel %vm13805_vm8, %v3883_v62, %v12399_v27  ;;  %v12398_v46 = vrot.slane %v13794_v63, 6 }
 0x3af   : > { %3593 = vst.msk [vmem:[#allocation2 + $0x54] sm:$0xf] %vm3571_vm1, %v3518_v26  ;;  %3576 = vst.msk [vmem:[#allocation2 + $0x10] sm:$0xf] %vm3571_vm1, %v3484_v36  ;;  %v3723_v17 = vmax.f32 %v13794_v63, %v3691_v1  ;;  %v13806_v41 = vld [vmem:[#allocation94_spill] sm:$0xff]  ;;  %v4148_v36 = vmax.f32 %v11048_v7, %v10903_v10  ;;  %v12413_v8 = vrot.slane %v13810_v45, 1  ;;  %v4293_v28 = vmax.f32 %v4229_v19, %v11169_v35 }
 0x3b0   : > { %1349 = vst.msk [vmem:[#allocation2 + $0x5c] sm:$0xf] %vm13798_vm6, %v5636_v12  ;;  %vm13807_vm10 = vnez %v13806_v41  ;;  %vm13808_vm6 = vcmp.lt.s32.totalorder %v6606_v25, 2  ;;  %v12416_v26 = vrot.slane %v13811_v49, 1  ;;  %v4167_v55 = vmax.f32 %v10790_v11, %v11169_v35  ;;  %v13813_v43 = vld [vmem:[#allocation41_spill] sm:$0xff]  ;;  %v13814_v37 = vld [vmem:[#allocation63_spill] sm:$0xff]  ;;  %3479 = vrot.lane.b32.xlu0 %v5679_v3, %s6382_s7 }
 0x3b1   : > { %2602 = vst.msk [vmem:[#allocation2 + $0x5c] sm:$0xf] %vm13800_vm13, %v13799_v39  ;;  %v3947_v12 = vsel %vm13807_vm10, %v3899_v58, -inf  ;;  %v4028_v18 = vsel %vm13808_vm6, %v4010_v15, %v12398_v46  ;;  %v3851_v30 = vmax.f32 %v3723_v17, %v3772_v0  ;;  %v4276_v59 = vmax.f32 %v4148_v36, %v10808_v51  ;;  %v13815_v58 = vld [vmem:[#allocation38_spill] sm:$0xff] }
 0x3b2   : > { %vm13812_vm13 = vcmask 257024   ;;  %v12417_v4 = vrot.slane %v13813_v43, 1  ;;  %v3632_v33 = vrot.slane %v11034_v32, 1  ;;  %v3633_v20 = vrot.slane %v10922_v2, 1 }
 0x3b3   : > { %1348 = vst.msk [vmem:[#allocation2 + $0x58] sm:$0xf] %vm13812_vm13, %v5635_v50  ;;  %v3634_v39 = vrot.slane %v11098_v13, 1  ;;  %v4357_v6 = vmax.f32 %v4293_v28, %v13814_v37  ;;  %v3979_v1 = vmax.f32 %v3851_v30, %v3947_v12  ;;  %v4231_v19 = vmax.f32 %v4167_v55, %v10489_v31 }
 0x3b4   : > { %v5709_v0 = vpack.c.bf16 %v4276_v59, %v4276_v59  ;;  %vm13816_vm2 = vcmask 519424   ;;  %v3635_v17 = vrot.slane %v10945_v5, 1  ;;  %vm13817_vm12 = vcmp.lt.s32.totalorder %v6606_v25, 7  ;;  %3535 = vrot.lane.b32.xlu0 %v5707_v56, %s6382_s7 }
 0x3b5   : > { %2601 = vst.msk [vmem:[#allocation2 + $0x58] sm:$0xf] %vm13816_vm2, %v13815_v58  ;;  %v3637_v41 = vsel %vm13817_vm12, %v3633_v20, %v3634_v39  ;;  %vm13818_vm14 = vmmov %vm13817_vm12  ;;  %v5726_v3 = vpack.c.bf16 %v4357_v6, %v4357_v6  ;;  %v11226_v36 = vmax.f32 %v3979_v1, %v4028_v18  ;;  %v13822_v55 = vrot.slane %v13701_v34, 1 }
 0x3b6   : > { %v3639_v12 = vsel %vm13818_vm14, %v12417_v4, %v3632_v33  ;;  %vm13819_vm8 = vmmov %vm13817_vm12  ;;  %v3697_v58 = vsel %vm13444_vm4, %v3637_v41, -inf  ;;  %v12401_v28 = vrot.slane %v13795_v29, 7  ;;  %v12402_v41 = vrot.slane %v13810_v45, 7 }
 0x3b7   : > { %v3641_v24 = vsel %vm13819_vm8, %v12413_v8, %v12416_v26  ;;  %v3695_v30 = vsel %vm13416_vm15, %v3639_v12, -inf  ;;  %vm13823_vm10 = vmmov %vm13819_vm8  ;;  %4502 = vrot.lane.b32.xlu1 %v5726_v3, %s6383_s26  ;;  %v4295_v1 = vmax.f32 %v4231_v19, %v11226_v36  ;;  %v3729_v40 = vmax.f32 %v10922_v2, %v3697_v58 }
 0x3b8   : > { %v3693_v50 = vsel %vm13330_vm0, %v3641_v24, -inf  ;;  %v3667_v59 = vsel %vm13823_vm10, %v3635_v17, %v13822_v55  ;;  %v3727_v18 = vmax.f32 %v13813_v43, %v3695_v30  ;;  %v12404_v30 = vrot.slane %v13813_v43, 7  ;;  %4468 = vrot.lane.b32.xlu0 %v5709_v0, %s6383_s26 }
 0x3b9   : > { %v3725_v6 = vmax.f32 %v13810_v45, %v3693_v50  ;;  %v3699_v12 = vsel %vm13475_vm9, %v3667_v59, -inf  ;;  %v12403_v50 = vrot.slane %v13811_v49, 7  ;;  %v4359_v3 = vmax.f32 %v4295_v1, %v10000_v57 }
 0x3ba   : > { %v3731_v55 = vmax.f32 %v10945_v5, %v3699_v12  ;;  %v12411_v19 = vrot.slane %v11034_v32, 7  ;;  %v12412_v59 = vrot.slane %v10922_v2, 7  ;;  %v12405_v37 = vrot.slane %v11098_v13, 7 }
 0x3bb   : > { %vm13826_vm0 = vcmp.lt.s32.totalorder %v6606_v25, 1  ;;  %v12407_v58 = vrot.slane %v13810_v45, 2  ;;  %v12408_v1 = vrot.slane %v13811_v49, 2  ;;  %v5728_v24 = vpack.c.bf16 %v4359_v3, %v4359_v3 }
 0x3bc   : > { %v3768_v56 = vsel %vm13826_vm0, %v12403_v50, %v12404_v30  ;;  %vm13827_vm15 = vmmov %vm13826_vm0  ;;  %v13828_v12 = vrot.slane %v10945_v5, 7  ;;  %v12414_v50 = vrot.slane %v13813_v43, 2  ;;  %v12415_v30 = vrot.slane %v11034_v32, 2 }
 0x3bd   : > { %v3770_v57 = vsel %vm13827_vm15, %v12401_v28, %v12402_v41  ;;  %vm13829_vm4 = vmmov %vm13826_vm0  ;;  %v3855_v28 = vmax.f32 %v3727_v18, %v3768_v56  ;;  %4506 = vrot.lane.b32.xlu1 %v5728_v24, %s6383_s26  ;;  %v12418_v14 = vrot.slane %v10945_v5, 2  ;;  %vm13831_vm6 = vcmp.lt.s32.totalorder %v6606_v25, 6  ;;  %v11299_v18 = vpop.permute.xlu0 %3475  ;;  %v13836_v24 = vld [vmem:[#allocation101_spill] sm:$0xff] }
 0x3be   : > { %v3764_v46 = vsel %vm13829_vm4, %v12405_v37, %v13828_v12  ;;  %vm13830_vm9 = vmmov %vm13826_vm0  ;;  %v3853_v60 = vmax.f32 %v3725_v6, %v3770_v57  ;;  %v12409_v12 = vrot.slane %v10922_v2, 2  ;;  %v12410_v37 = vrot.slane %v11098_v13, 2 }
 0x3bf   : > { %v3766_v27 = vsel %vm13830_vm9, %v12411_v19, %v12412_v59  ;;  %v3859_v3 = vmax.f32 %v3731_v55, %v3764_v46  ;;  %v12419_v46 = vrot.slane %v13795_v29, 6  ;;  %v12420_v0 = vrot.slane %v13810_v45, 6  ;;  %vm13832_vm13 = vmmov %vm13831_vm6 }
 0x3c0   : > { %v3857_v41 = vmax.f32 %v3729_v40, %v3766_v27  ;;  %v3897_v27 = vsel %vm13831_vm6, %v12407_v58, %v12408_v1  ;;  %v4014_v6 = vrot.slane %v13811_v49, 6  ;;  %v3893_v40 = vsel %vm13832_vm13, %v12409_v12, %v12410_v37  ;;  %vm13833_vm2 = vmmov %vm13831_vm6  ;;  %v11321_v1 = vpop.permute.xlu1 %4490 }
 0x3c1   : > { %v3895_v55 = vsel %vm13833_vm2, %v12414_v50, %v12415_v30  ;;  %v13834_v56 = vrot.slane %v13701_v34, 2  ;;  %vm13835_vm12 = vmmov %vm13833_vm2  ;;  %vm13837_vm14 = vnez %v13836_v24  ;;  %v3953_v59 = vsel %vm13452_vm5, %v3893_v40, -inf }
 0x3c2   : > { %v3949_v58 = vsel %vm13837_vm14, %v3897_v27, -inf  ;;  %v3951_v37 = vsel %vm13418_vm11, %v3895_v55, -inf  ;;  %v3985_v26 = vmax.f32 %v3857_v41, %v3953_v59  ;;  %v4016_v24 = vrot.slane %v11034_v32, 6  ;;  %vm13845_vm5 = vmmov %vm13819_vm8 }
 0x3c3   : > { %v3923_v57 = vsel %vm13835_vm12, %v12418_v14, %v13834_v56  ;;  %v3981_v34 = vmax.f32 %v3853_v60, %v3949_v58  ;;  %v3983_v30 = vmax.f32 %v3855_v28, %v3951_v37  ;;  %v4015_v56 = vrot.slane %v13813_v43, 6  ;;  %vm13848_vm8 = vmmov %vm13826_vm0 }
 0x3c4   : > { %v3955_v50 = vsel %vm13482_vm3, %v3923_v57, -inf  ;;  %v4017_v27 = vrot.slane %v10922_v2, 6  ;;  %v4018_v14 = vrot.slane %v11098_v13, 6  ;;  %vm13841_vm11 = vcmp.lt.s32.totalorder %v6606_v25, 2  ;;  %vm13856_vm4 = vmmov %vm13833_vm2 }
 0x3c5   : > { %v3987_v4 = vmax.f32 %v3859_v3, %v3955_v50  ;;  %v4026_v8 = vsel %vm13841_vm11, %v12419_v46, %v12420_v0  ;;  %vm13842_vm3 = vmmov %vm13841_vm11  ;;  %v13843_v41 = vrot.slane %v13779_v53, 1  ;;  %v13844_v50 = vrot.slane %v10143_v22, 1 }
 0x3c6   : > { %v4024_v60 = vsel %vm13842_vm3, %v4014_v6, %v4015_v56  ;;  %v11345_v28 = vmax.f32 %v3981_v34, %v4026_v8  ;;  %v13846_v59 = vrot.slane %v10143_v22, 7  ;;  %v13847_v37 = vrot.slane %v13668_v61, 7  ;;  %vm13850_vm10 = vmmov %vm13842_vm3  ;;  %v3522_v34 = vpop.permute.xlu1 %3521  ;;  %v3516_v8 = vpop.permute.xlu0 %3515 }
 0x3c7   : > { %v3646_v19 = vsel %vm13845_vm5, %v13844_v50, %v13843_v41  ;;  %v13849_v3 = vrot.slane %v10945_v5, 6  ;;  %vm13851_vm0 = vmmov %vm13842_vm3  ;;  %v11371_v55 = vmax.f32 %v3983_v30, %v4024_v60  ;;  %v13855_v46 = vrot.slane %v10143_v22, 2  ;;  %3595 = vst.msk [vmem:[#allocation2 + $0x5c] sm:$0xf] %vm3571_vm1, %v3522_v34 }
 0x3c8   : > { %v3775_v58 = vsel %vm13848_vm8, %v13847_v37, %v13846_v59  ;;  %v4022_v40 = vsel %vm13851_vm0, %v4016_v24, %v4017_v27  ;;  %v3720_v57 = vmax.f32 %v10143_v22, %v3646_v19  ;;  %v13852_v59 = vld [vmem:[#allocation16_spill] sm:$0xff]  ;;  %3592 = vst.msk [vmem:[#allocation2 + $0x50] sm:$0xf] %vm3571_vm1, %v3516_v8  ;;  %vm13859_vm9 = vmmov %vm13851_vm0  ;;  %v4164_v19 = vmax.f32 %v10714_v54, %v10953_v44 }
 0x3c9   : > { %v4020_v12 = vsel %vm13850_vm10, %v4018_v14, %v13849_v3  ;;  %v11374_v41 = vmax.f32 %v3985_v26, %v4022_v40  ;;  %vm13853_vm15 = vnez %v13852_v59  ;;  %v13854_v3 = vrot.slane %v13779_v53, 2  ;;  %v13861_v40 = vld [vmem:[#allocation89_spill] sm:$0xff]  ;;  %vm13866_vm2 = vmmov %vm13845_vm5 }
 0x3ca   : > { %v11376_v50 = vmax.f32 %v3987_v4, %v4020_v12  ;;  %v3816_v37 = vsel %vm13853_vm15, %v3775_v58, -inf  ;;  %v13857_v26 = vrot.slane %v10143_v22, 6  ;;  %v13858_v4 = vrot.slane %v13668_v61, 6  ;;  %v13860_v58 = vld [vmem:[#allocation72_spill] sm:$0xff]  ;;  %vm13868_vm12 = vmmov %vm13848_vm8 }
 0x3cb   : > { %v3902_v0 = vsel %vm13856_vm4, %v13855_v46, %v13854_v3  ;;  %v3848_v30 = vmax.f32 %v3720_v57, %v3816_v37  ;;  %v5638_v12 = vpack.c.bf16 %v13860_v58, %v13860_v58  ;;  %vm13862_vm6 = vnez %v13861_v40  ;;  %v13863_v57 = vld [vmem:[#allocation23_spill] sm:$0xff]  ;;  %v13872_v58 = vld [vmem:[#allocation18_spill] sm:$0xff]  ;;  %vm13877_vm8 = vmmov %vm13856_vm4 }
 0x3cc   : > { %v4031_v60 = vsel %vm13859_vm9, %v13858_v4, %v13857_v26  ;;  %v4177_v46 = vmax.f32 %v11374_v41, %v11376_v50  ;;  %v5613_v22 = vpack.c.bf16 %v13863_v57, %v13863_v57  ;;  %v4169_v61 = vmax.f32 %v11169_v35, %v11226_v36  ;;  %v13874_v40 = vld [vmem:[#allocation122_spill] sm:$0xff]  ;;  %vm13879_vm10 = vmmov %vm13851_vm0 }
 0x3cd   : > { %v4072_v34 = vsel %vm13862_vm6, %v4031_v60, -inf  ;;  %v3976_v8 = vmax.f32 %v3848_v30, %v3902_v0  ;;  %v4228_v59 = vmax.f32 %v4164_v19, %v10592_v38  ;;  %vm13864_vm13 = vcmask 257024   ;;  %v13869_v30 = vld [vmem:[#allocation43_spill] sm:$0xff]  ;;  %vm13887_vm9 = vmmov %vm13866_vm2 }
 0x3ce   : > { %1351 = vst.msk [vmem:[#allocation2 + $0x64] sm:$0xf] %vm13864_vm13, %v5638_v12  ;;  %v13865_v37 = vrot.slane %v10250_v42, 1  ;;  %v13867_v26 = vrot.slane %v13779_v53, 7  ;;  %v4241_v0 = vmax.f32 %v4177_v46, %v11371_v55  ;;  %vm13870_vm14 = vcmask 519424   ;;  %vm13871_vm11 = vmmov %vm13864_vm13 }
 0x3cf   : > { %2604 = vst.msk [vmem:[#allocation2 + $0x64] sm:$0xf] %vm13870_vm14, %v13869_v30  ;;  %v4233_v60 = vmax.f32 %v4169_v61, %v10790_v11  ;;  %vm13873_vm3 = vnez %v13872_v58  ;;  %v11428_v12 = vmax.f32 %v3976_v8, %v4072_v34  ;;  %vm13875_vm5 = vmmov %vm13870_vm14  ;;  %v13878_v57 = vrot.slane %v13779_v53, 6  ;;  %v13880_v61 = vld [vmem:[#allocation65_spill] sm:$0xff]  ;;  %v3526_v8 = vpop.permute.xlu1 %3525 }
 0x3d0   : > { %v3644_v3 = vsel %vm13866_vm2, %v13865_v37, %v3627_v48  ;;  %v3773_v4 = vsel %vm13868_vm12, %v13867_v26, %v3754_v16  ;;  %1326 = vst.msk [vmem:[#allocation2] sm:$0xf] %vm13871_vm11, %v5613_v22  ;;  %v13876_v16 = vrot.slane %v10250_v42, 2  ;;  %v5644_v34 = vpack.c.bf16 %v13880_v61, %v13880_v61  ;;  %vm13883_vm15 = vmmov %vm13871_vm11 }
 0x3d1   : > { %v3722_v19 = vmax.f32 %v10250_v42, %v3644_v3  ;;  %v3818_v48 = vsel %vm13873_vm3, %v3773_v4, -inf  ;;  %2579 = vst.msk [vmem:[#allocation2] sm:$0xf] %vm13875_vm5, %v13874_v40  ;;  %v4029_v22 = vsel %vm13879_vm10, %v13878_v57, %v4010_v15  ;;  %v4369_v37 = vmax.f32 %v4241_v0, %v11345_v28  ;;  %v13881_v4 = vld [vmem:[#allocation92_spill] sm:$0xff]  ;;  %vm13886_vm4 = vmmov %vm13875_vm5 }
 0x3d2   : > { %v3900_v46 = vsel %vm13877_vm8, %v13876_v16, %v3883_v62  ;;  %v4297_v3 = vmax.f32 %v4233_v60, %v11345_v28  ;;  %vm13882_vm0 = vnez %v13881_v4  ;;  %3572 = vst.msk [vmem:[#allocation2] sm:$0xf] %vm3571_vm1, %v11299_v18  ;;  %3597 = vst.msk [vmem:[#allocation2 + $0x64] sm:$0xf] %vm3571_vm1, %v3526_v8  ;;  %v4292_v42 = vmax.f32 %v4228_v59, %v11428_v12  ;;  %v13884_v62 = vld [vmem:[#allocation21_spill] sm:$0xff]  ;;  %v13885_v18 = vld [vmem:[#allocation30_spill] sm:$0xff] }
 0x3d3   : > { %v3850_v26 = vmax.f32 %v3722_v19, %v3818_v48  ;;  %v4074_v30 = vsel %vm13882_vm0, %v4029_v22, -inf  ;;  %v4166_v53 = vmax.f32 %v10953_v44, %v11428_v12  ;;  %1357 = vst.msk [vmem:[#allocation2 + $0x7c] sm:$0xf] %vm13883_vm15, %v5644_v34  ;;  %v5615_v15 = vpack.c.bf16 %v13884_v62, %v13884_v62  ;;  %vm13888_vm6 = vmmov %vm13871_vm11 }
 0x3d4   : > { %v4171_v0 = vmax.f32 %v11226_v36, %v11345_v28  ;;  %v5738_v60 = vpack.c.bf16 %v4369_v37, %v4369_v37  ;;  %v4361_v19 = vmax.f32 %v4297_v3, %v10489_v31  ;;  %2610 = vst.msk [vmem:[#allocation2 + $0x7c] sm:$0xf] %vm13886_vm4, %v13885_v18  ;;  %v3636_v59 = vsel %vm13887_vm9, %v3634_v39, %v3635_v17  ;;  %vm13889_vm13 = vmmov %vm13866_vm2 }
 0x3d5   : > { %v3978_v58 = vmax.f32 %v3850_v26, %v3900_v46  ;;  %v4356_v48 = vmax.f32 %v4292_v42, %v10590_v47  ;;  %v4230_v40 = vmax.f32 %v4166_v53, %v10714_v54  ;;  %1328 = vst.msk [vmem:[#allocation2 + $0x8] sm:$0xf] %vm13888_vm6, %v5615_v15  ;;  %v3638_v31 = vsel %vm13889_vm13, %v3632_v33, %v3633_v20  ;;  %v3520_v46 = vpop.permute.xlu0 %3519  ;;  %v13890_v47 = vld [vmem:[#allocation67_spill] sm:$0xff]  ;;  %vm13891_vm2 = vmmov %vm13886_vm4 }
 0x3d6   : > { %v4235_v16 = vmax.f32 %v4171_v0, %v11169_v35  ;;  %4526 = vrot.lane.b32.xlu1 %v5738_v60, %s6383_s26  ;;  %v5730_v57 = vpack.c.bf16 %v4361_v19, %v4361_v19  ;;  %2581 = vst.msk [vmem:[#allocation2 + $0x8] sm:$0xf] %vm13891_vm2, %v13890_v47  ;;  %v13892_v17 = vrot.slane %v13813_v43, 1  ;;  %v13893_v22 = vrot.slane %v13811_v49, 1  ;;  %vm13894_vm12 = vmmov %vm13887_vm9 }
 0x3d7   : > { %v11481_v39 = vmax.f32 %v3978_v58, %v4074_v30  ;;  %v13895_v34 = vrot.slane %v13810_v45, 1  ;;  %v13896_v33 = vrot.slane %v13795_v29, 1  ;;  %vm13897_vm14 = vmmov %vm13887_vm9  ;;  %3594 = vst.msk [vmem:[#allocation2 + $0x58] sm:$0xf] %vm3571_vm1, %v3520_v46  ;;  %v5725_v8 = vpack.c.bf16 %v4356_v48, %v4356_v48 }
 0x3d8   : > { %v3640_v61 = vsel %vm13894_vm12, %v13893_v22, %v13892_v17  ;;  %v4299_v37 = vmax.f32 %v4235_v16, %v11371_v55  ;;  %v3728_v30 = vmax.f32 %v11034_v32, %v3638_v31  ;;  %v3730_v42 = vmax.f32 %v11098_v13, %v3636_v59  ;;  %v13911_v17 = vld [vmem:[#allocation99_spill] sm:$0xff] }
 0x3d9   : > { %v3642_v20 = vsel %vm13897_vm14, %v13896_v33, %v13895_v34  ;;  %v3726_v26 = vmax.f32 %v13811_v49, %v3640_v61  ;;  %v4294_v4 = vmax.f32 %v4230_v40, %v11481_v39  ;;  %v13898_v53 = vrot.slane %v11098_v13, 7  ;;  %4500 = vrot.lane.b32.xlu0 %v5725_v8, %s6383_s26  ;;  %v13913_v61 = vld [vmem:[#allocation104_spill] sm:$0xff] }
 0x3da   : > { %v3724_v3 = vmax.f32 %v13795_v29, %v3642_v20  ;;  %v13899_v62 = vrot.slane %v10922_v2, 7  ;;  %vm13900_vm11 = vcmp.lt.s32.totalorder %v6606_v25, 1  ;;  %v4363_v0 = vmax.f32 %v4299_v37, %v10790_v11  ;;  %4510 = vrot.lane.b32.xlu1 %v5730_v57, %s6383_s26  ;;  %v13915_v20 = vld [vmem:[#allocation111_spill] sm:$0xff] }
 0x3db   : > { %v13901_v60 = vrot.slane %v11034_v32, 7  ;;  %v13902_v19 = vrot.slane %v13813_v43, 7  ;;  %vm13903_vm3 = vmmov %vm13900_vm11  ;;  %v13904_v18 = vrot.slane %v13811_v49, 7  ;;  %v13905_v59 = vrot.slane %v13810_v45, 7 }
 0x3dc   : > { %v3765_v15 = vsel %vm13900_vm11, %v13899_v62, %v13898_v53  ;;  %vm13906_vm5 = vmmov %vm13903_vm3  ;;  %v13907_v40 = vrot.slane %v13795_v29, 7  ;;  %v13908_v16 = vrot.slane %v13794_v63, 7  ;;  %v4358_v31 = vmax.f32 %v4294_v4, %v10592_v38 }
 0x3dd   : > { %v3767_v58 = vsel %vm13903_vm3, %v13902_v19, %v13901_v60  ;;  %v3769_v48 = vsel %vm13906_vm5, %v13905_v59, %v13904_v18  ;;  %vm13909_vm8 = vmmov %vm13903_vm3  ;;  %vm13912_vm10 = vnez %v13911_v17  ;;  %vm13914_vm0 = vnez %v13913_v61 }
 0x3de   : > { %v3771_v11 = vsel %vm13909_vm8, %v13908_v16, %v13907_v40  ;;  %v3822_v22 = vsel %vm13912_vm10, %v3769_v48, -inf  ;;  %v3824_v34 = vsel %vm13914_vm0, %v3767_v58, -inf  ;;  %v5732_v33 = vpack.c.bf16 %v4363_v0, %v4363_v0 }
 0x3df   : > { %v3820_v47 = vsel %vm13426_vm7, %v3771_v11, -inf  ;;  %vm13916_vm15 = vnez %v13915_v20  ;;  %v3854_v53 = vmax.f32 %v3726_v26, %v3822_v22  ;;  %v5727_v62 = vpack.c.bf16 %v4358_v31, %v4358_v31  ;;  %v13930_v11 = vld [vmem:[#allocation34_spill] sm:$0xff]  ;;  %v13946_v20 = vld [vmem:[#allocation96_spill] sm:$0xff] }
 0x3e0   : > { %v3826_v8 = vsel %vm13916_vm15, %v3765_v15, -inf  ;;  %v3852_v37 = vmax.f32 %v3724_v3, %v3820_v47  ;;  %v3856_v60 = vmax.f32 %v3728_v30, %v3824_v34  ;;  %v13917_v38 = vrot.slane %v10945_v5, 2  ;;  %4514 = vrot.lane.b32.xlu1 %v5732_v33, %s6383_s26  ;;  %v13940_v22 = vld [vmem:[#allocation102_spill] sm:$0xff] }
 0x3e1   : > { %v3858_v57 = vmax.f32 %v3730_v42, %v3826_v8  ;;  %v13918_v4 = vrot.slane %v11098_v13, 2  ;;  %vm13919_vm7 = vcmp.lt.s32.totalorder %v6606_v25, 6  ;;  %v13920_v18 = vrot.slane %v10922_v2, 2  ;;  %4504 = vrot.lane.b32.xlu0 %v5727_v62, %s6383_s26  ;;  %v13947_v62 = vld [vmem:[#allocation83_spill] sm:$0xff] }
 0x3e2   : > { %v13921_v58 = vrot.slane %v11034_v32, 2  ;;  %vm13922_vm4 = vmmov %vm13919_vm7  ;;  %v13923_v3 = vrot.slane %v13813_v43, 2  ;;  %v13924_v26 = vrot.slane %v13811_v49, 2  ;;  %v13926_v5 = vrot.slane %v13810_v45, 2  ;;  %v13938_v32 = vld [vmem:[#allocation95_spill] sm:$0xff] }
 0x3e3   : > { %v3892_v19 = vsel %vm13919_vm7, %v13918_v4, %v13917_v38  ;;  %vm13925_vm9 = vmmov %vm13922_vm4  ;;  %v13927_v42 = vrot.slane %v13795_v29, 2  ;;  %vm13929_vm13 = vcmp.lt.s32.totalorder %v6606_v25, 2  ;;  %vm13931_vm2 = vnez %v13930_v11  ;;  %v13950_v4 = vld [vmem:[#allocation107_spill] sm:$0xff]  ;;  %v13957_v11 = vld [vmem:[#allocation53_spill] sm:$0xff] }
 0x3e4   : > { %v3894_v0 = vsel %vm13922_vm4, %v13921_v58, %v13920_v18  ;;  %v3896_v30 = vsel %vm13925_vm9, %v13924_v26, %v13923_v3  ;;  %vm13928_vm6 = vmmov %vm13922_vm4  ;;  %v4021_v59 = vsel %vm13929_vm13, %v4017_v27, %v4018_v14  ;;  %v3986_v46 = vmax.f32 %v3858_v57, %v3892_v19  ;;  %v13949_v57 = vld [vmem:[#allocation97_spill] sm:$0xff]  ;;  %v3530_v18 = vpop.permute.xlu1 %3529  ;;  %v3524_v58 = vpop.permute.xlu0 %3523 }
 0x3e5   : > { %v3898_v15 = vsel %vm13928_vm6, %v13927_v42, %v13926_v5  ;;  %v3982_v40 = vmax.f32 %v3854_v53, %v3896_v30  ;;  %v3984_v16 = vmax.f32 %v3856_v60, %v3894_v0  ;;  %v4082_v31 = vsel %vm13931_vm2, %v4021_v59, -inf  ;;  %vm13932_vm12 = vmmov %vm13929_vm13  ;;  %v13952_v5 = vld [vmem:[#allocation49_spill] sm:$0xff] }
 0x3e6   : > { %v3980_v48 = vmax.f32 %v3852_v37, %v3898_v15  ;;  %v4023_v2 = vsel %vm13932_vm12, %v4015_v56, %v4016_v24  ;;  %v13933_v14 = vrot.slane %v13810_v45, 6  ;;  %vm13934_vm14 = vmmov %vm13932_vm12  ;;  %v13935_v27 = vrot.slane %v13795_v29, 6  ;;  %v13942_v24 = vld [vmem:[#allocation106_spill] sm:$0xff]  ;;  %v13944_v45 = vld [vmem:[#allocation113_spill] sm:$0xff] }
 0x3e7   : > { %v13936_v47 = vrot.slane %v13794_v63, 6  ;;  %vm13937_vm11 = vmmov %vm13932_vm12  ;;  %vm13939_vm3 = vnez %v13938_v32  ;;  %vm13941_vm5 = vnez %v13940_v22  ;;  %vm13943_vm8 = vnez %v13942_v24  ;;  %v13956_v59 = vld [vmem:[#allocation109_spill] sm:$0xff] }
 0x3e8   : > { %v4025_v13 = vsel %vm13934_vm14, %v13933_v14, %v4014_v6  ;;  %v4080_v49 = vsel %vm13943_vm8, %v4023_v2, -inf  ;;  %v5642_v61 = vpack.c.bf16 %v13944_v45, %v13944_v45  ;;  %v11604_v63 = vmax.f32 %v3986_v46, %v4082_v31  ;;  %v13959_v31 = vld [vmem:[#allocation37_spill] sm:$0xff] }
 0x3e9   : > { %v4027_v17 = vsel %vm13937_vm11, %v13936_v47, %v13935_v27  ;;  %v4078_v56 = vsel %vm13941_vm5, %v4025_v13, -inf  ;;  %v11602_v29 = vmax.f32 %v3984_v16, %v4080_v49  ;;  %vm13945_vm10 = vcmask 257024   ;;  %v13962_v13 = vld [vmem:[#allocation62_spill] sm:$0xff] }
 0x3ea   : > { %v4076_v43 = vsel %vm13939_vm3, %v4027_v17, -inf  ;;  %v11600_v34 = vmax.f32 %v3982_v40, %v4078_v56  ;;  %1355 = vst.msk [vmem:[#allocation2 + $0x74] sm:$0xf] %vm13945_vm10, %v5642_v61  ;;  %v4173_v25 = vmax.f32 %v11345_v28, %v11371_v55  ;;  %v4168_v33 = vmax.f32 %v11428_v12, %v11481_v39  ;;  %vm13951_vm15 = vmmov %vm13945_vm10  ;;  %v13964_v56 = vld [vmem:[#allocation42_spill] sm:$0xff] }
 0x3eb   : > { %v4108_v6 = vmax.f32 %v3980_v48, %v4076_v43  ;;  %v5637_v8 = vpack.c.bf16 %v13946_v20, %v13946_v20  ;;  %v4175_v37 = vmax.f32 %v11371_v55, %v11374_v41  ;;  %v4176_v53 = vmax.f32 %v11602_v29, %v11604_v63  ;;  %vm13954_vm4 = vmmov %vm13945_vm10  ;;  %v13967_v20 = vld [vmem:[#allocation71_spill] sm:$0xff] }
 0x3ec   : > { %vm13948_vm0 = vcmask 519424   ;;  %v5640_v38 = vpack.c.bf16 %v13949_v57, %v13949_v57  ;;  %v5643_v19 = vpack.c.bf16 %v13950_v4, %v13950_v4  ;;  %v4237_v0 = vmax.f32 %v4173_v25, %v11226_v36  ;;  %vm13955_vm9 = vmmov %vm13954_vm4  ;;  %v13965_v25 = vld [vmem:[#allocation58_spill] sm:$0xff] }
 0x3ed   : > { %2608 = vst.msk [vmem:[#allocation2 + $0x74] sm:$0xf] %vm13948_vm0, %v13947_v62  ;;  %v4170_v60 = vmax.f32 %v11481_v39, %v4108_v6  ;;  %v4232_v3 = vmax.f32 %v4168_v33, %v10953_v44  ;;  %v4239_v26 = vmax.f32 %v4175_v37, %v11345_v28  ;;  %v4240_v30 = vmax.f32 %v4176_v53, %v11600_v34  ;;  %vm13953_vm7 = vmmov %vm13948_vm0 }
 0x3ee   : > { %1350 = vst.msk [vmem:[#allocation2 + $0x60] sm:$0xf] %vm13951_vm15, %v5637_v8  ;;  %v4172_v15 = vmax.f32 %v4108_v6, %v11600_v34  ;;  %v5641_v48 = vpack.c.bf16 %v13956_v59, %v13956_v59  ;;  %v4301_v40 = vmax.f32 %v4237_v0, %v11374_v41  ;;  %vm13958_vm6 = vmmov %vm13948_vm0  ;;  %v4151_v46 = vmax.f32 %v10695_v9, %v10360_v21  ;;  %v4487_v21 = vpop.permute.xlu1 %4486 }
 0x3ef   : > { %2603 = vst.msk [vmem:[#allocation2 + $0x60] sm:$0xf] %vm13953_vm7, %v13952_v5  ;;  %v4234_v42 = vmax.f32 %v4170_v60, %v11428_v12  ;;  %v4296_v16 = vmax.f32 %v4232_v3, %v4108_v6  ;;  %v4303_v28 = vmax.f32 %v4239_v26, %v11376_v50  ;;  %vm13960_vm13 = vmmov %vm13948_vm0  ;;  %v4368_v2 = vmax.f32 %v4240_v30, %v4108_v6 }
 0x3f0   : > { %1353 = vst.msk [vmem:[#allocation2 + $0x6c] sm:$0xf] %vm13954_vm4, %v5640_v38  ;;  %vm13961_vm2 = vmmov %vm13954_vm4  ;;  %v4365_v14 = vmax.f32 %v4301_v40, %v11169_v35  ;;  %v4236_v32 = vmax.f32 %v4172_v15, %v11481_v39  ;;  %v4215_v22 = vmax.f32 %v4151_v46, %v10877_v52  ;;  %v4174_v35 = vmax.f32 %v11600_v34, %v11602_v29  ;;  %v3528_v52 = vpop.permute.xlu0 %3527 }
 0x3f1   : > { %1356 = vst.msk [vmem:[#allocation2 + $0x78] sm:$0xf] %vm13955_vm9, %v5643_v19  ;;  %vm13963_vm12 = vmmov %vm13948_vm0  ;;  %v5737_v27 = vpack.c.bf16 %v4368_v2, %v4368_v2  ;;  %v4360_v47 = vmax.f32 %v4296_v16, %v10714_v54  ;;  %v4298_v17 = vmax.f32 %v4234_v42, %v11600_v34  ;;  %v4367_v43 = vmax.f32 %v4303_v28, %v11226_v36 }
 0x3f2   : > { %2606 = vst.msk [vmem:[#allocation2 + $0x6c] sm:$0xf] %vm13958_vm6, %v13957_v11  ;;  %v5734_v9 = vpack.c.bf16 %v4365_v14, %v4365_v14  ;;  %v5639_v54 = vpack.c.bf16 %v13964_v56, %v13964_v56  ;;  %vm4564_vm14 = vcmask 1044224   ;;  %v4300_v45 = vmax.f32 %v4236_v32, %v11602_v29  ;;  %vm13966_vm11 = vmmov %vm13961_vm2 }
 0x3f3   : > { %2609 = vst.msk [vmem:[#allocation2 + $0x78] sm:$0xf] %vm13960_vm13, %v13959_v31  ;;  %4524 = vrot.lane.b32.xlu0 %v5737_v27, %s6383_s26  ;;  %v5729_v24 = vpack.c.bf16 %v4360_v47, %v4360_v47  ;;  %v4362_v49 = vmax.f32 %v4298_v17, %v10953_v44  ;;  %v4238_v61 = vmax.f32 %v4174_v35, %v4108_v6  ;;  %vm13968_vm3 = vmmov %vm13948_vm0  ;;  %v4495_v44 = vpop.permute.xlu1 %4494 }
 0x3f4   : > { %3596 = vst.msk [vmem:[#allocation2 + $0x60] sm:$0xf] %vm3571_vm1, %v3524_v58  ;;  %3599 = vst.msk [vmem:[#allocation2 + $0x6c] sm:$0xf] %vm3571_vm1, %v3530_v18  ;;  %4518 = vrot.lane.b32.xlu1 %v5734_v9, %s6383_s26  ;;  %v5736_v36 = vpack.c.bf16 %v4367_v43, %v4367_v43  ;;  %v4279_v33 = vmax.f32 %v4215_v22, %v13965_v25  ;;  %v4243_v6 = vmax.f32 %v11376_v50, %v11374_v41 }
 0x3f5   : > { %1354 = vst.msk [vmem:[#allocation2 + $0x70] sm:$0xf] %vm13961_vm2, %v5641_v48  ;;  %v4364_v8 = vmax.f32 %v4300_v45, %v11428_v12  ;;  %v4302_v37 = vmax.f32 %v4238_v61, %v11604_v63  ;;  %v4150_v53 = vmax.f32 %v10903_v10, %v10808_v51  ;;  %v4242_v10 = vmax.f32 %v11604_v63, %v11602_v29 }
 0x3f6   : > { %2607 = vst.msk [vmem:[#allocation2 + $0x70] sm:$0xf] %vm13963_vm12, %v13962_v13  ;;  %v5712_v62 = vpack.c.bf16 %v4279_v33, %v4279_v33  ;;  %v4371_v60 = vmax.f32 %v4243_v6, %v11371_v55  ;;  %v4489_v55 = vpop.permute.xlu0 %4488 }
 0x3f7   : > { %4576 = vst.msk [vmem:[#allocation2 + $0x2c] sm:$0xf] %vm4564_vm14, %v11321_v1  ;;  %4574 = vst.msk [vmem:[#allocation2 + $0x24] sm:$0xf] %vm4564_vm14, %v4487_v21  ;;  %4508 = vrot.lane.b32.xlu0 %v5729_v24, %s6383_s26  ;;  %v5731_v1 = vpack.c.bf16 %v4362_v49, %v4362_v49  ;;  %v5733_v41 = vpack.c.bf16 %v4364_v8, %v4364_v8  ;;  %v4366_v50 = vmax.f32 %v4302_v37, %v11481_v39  ;;  %v4483_v39 = vpop.permute.xlu1 %4482 }
 0x3f8   : > { %1352 = vst.msk [vmem:[#allocation2 + $0x68] sm:$0xf] %vm13966_vm11, %v5639_v54  ;;  %4522 = vrot.lane.b32.xlu1 %v5736_v36, %s6383_s26  ;;  %v4214_v57 = vmax.f32 %v4150_v53, %v11048_v7  ;;  %v5740_v38 = vpack.c.bf16 %v4371_v60, %v4371_v60  ;;  %v4370_v19 = vmax.f32 %v4242_v10, %v11600_v34  ;;  %v11733_v53 = vld [vmem:[%s11923_s4] ss:$0 sm:$0xff] }
 0x3f9   : > { %2605 = vst.msk [vmem:[#allocation2 + $0x68] sm:$0xf] %vm13968_vm3, %v13967_v20  ;;  %v5735_v12 = vpack.c.bf16 %v4366_v50, %v4366_v50 }
 0x3fa   : > { %3598 = vst.msk [vmem:[#allocation2 + $0x68] sm:$0xf] %vm3571_vm1, %v3528_v52  ;;  %v4278_v51 = vmax.f32 %v4214_v57, %v10586_v23  ;;  %v5739_v7 = vpack.c.bf16 %v4370_v19, %v4370_v19  ;;  %v4493_v23 = vpop.permute.xlu0 %4492 }
 0x3fb   : > { %4578 = vst.msk [vmem:[#allocation2 + $0x34] sm:$0xf] %vm4564_vm14, %v4495_v44  ;;  %4512 = vrot.lane.b32.xlu0 %v5731_v1, %s6383_s26  ;;  %4575 = vst.msk [vmem:[#allocation2 + $0x28] sm:$0xf] %vm4564_vm14, %v4489_v55  ;;  %v4499_v29 = vpop.permute.xlu1 %4498 }
 0x3fc   : > { %4474 = vrot.lane.b32.xlu1 %v5712_v62, %s6383_s26  ;;  %v5711_v4 = vpack.c.bf16 %v4278_v51, %v4278_v51  ;;  %4572 = vst.msk [vmem:[#allocation2 + $0x1c] sm:$0xf] %vm4564_vm14, %v4483_v39  ;;  %4577 = vst.msk [vmem:[#allocation2 + $0x30] sm:$0xf] %vm4564_vm14, %v4493_v23 }
 0x3fd   : > { %4580 = vst.msk [vmem:[#allocation2 + $0x3c] sm:$0xf] %vm4564_vm14, %v4499_v29 }
 0x3fe   : > { %v4485_v63 = vpop.permute.xlu0 %4484 }
 0x3ff   : > { %4516 = vrot.lane.b32.xlu0 %v5733_v41, %s6383_s26  ;;  %4573 = vst.msk [vmem:[#allocation2 + $0x20] sm:$0xf] %vm4564_vm14, %v4485_v63 }
 0x400   : > { %4530 = vrot.lane.b32.xlu1 %v5740_v38, %s6383_s26 }
 0x402   : > { %v6111_v46 = vld [vmem:[#allocation2 + $0x28] sm:$0xff]  }
 0x403   : > { %4520 = vrot.lane.b32.xlu0 %v5735_v12, %s6383_s26  ;;  %v6112_v2 = vld [vmem:[#allocation2 + $0x30] sm:$0xff]  }
 0x404   : > { %v4479_v34 = vpop.permute.xlu1 %4478 }
 0x405   : > { %4570 = vst.msk [vmem:[#allocation2 + $0x14] sm:$0xf] %vm4564_vm14, %v4479_v34 }
 0x406   : > { %v6110_v40 = vld [vmem:[#allocation2 + $0x20] sm:$0xff]  }
 0x407   : > { %4472 = vrot.lane.b32.xlu0 %v5711_v4, %s6383_s26  ;;  %v4481_v18 = vpop.permute.xlu0 %4480 }
 0x408   : > { %4571 = vst.msk [vmem:[#allocation2 + $0x18] sm:$0xf] %vm4564_vm14, %v4481_v18  ;;  %v3534_v58 = vpop.permute.xlu1 %3533 }
 0x409   : > { %3601 = vst.msk [vmem:[#allocation2 + $0x74] sm:$0xf] %vm3571_vm1, %v3534_v58 }
 0x40b   : > { %4528 = vrot.lane.b32.xlu0 %v5739_v7, %s6383_s26 }
 0x40d   : > { %v3482_v0 = vpop.permute.xlu1 %3481 }
 0x40e   : > { %3575 = vst.msk [vmem:[#allocation2 + $0xc] sm:$0xf] %vm3571_vm1, %v3482_v0 }
 0x40f   : > { %v6109_v48 = vld [vmem:[#allocation2 + $0x18] sm:$0xff]  }
 0x411   : > { %v4497_v3 = vpop.permute.xlu0 %4496 }
 0x412   : > { %4579 = vst.msk [vmem:[#allocation2 + $0x38] sm:$0xf] %vm4564_vm14, %v4497_v3 }
 0x413   : > { %v3538_v26 = vpop.permute.xlu1 %3537 }
 0x414   : > { %3603 = vst.msk [vmem:[#allocation2 + $0x7c] sm:$0xf] %vm3571_vm1, %v3538_v26 }
 0x417   : > { %v4471_v5 = vpop.permute.xlu1 %4470 }
 0x418   : > { %4566 = vst.msk [vmem:[#allocation2 + $0x4] sm:$0xf] %vm4564_vm14, %v4471_v5 }
 0x419   : > { %v4477_v30 = vpop.permute.xlu0 %4476  ;;  %v6114_v13 = vld [vmem:[#allocation2 + $0x38] sm:$0xff]  }
 0x41a   : > { %4569 = vst.msk [vmem:[#allocation2 + $0x10] sm:$0xf] %vm4564_vm14, %v4477_v30 }
 0x41d   : > { %v3532_v42 = vpop.permute.xlu0 %3531 }
 0x41e   : > { %3600 = vst.msk [vmem:[#allocation2 + $0x70] sm:$0xf] %vm3571_vm1, %v3532_v42 }
 0x421   : > { %v6108_v59 = vld [vmem:[#allocation2 + $0x10] sm:$0xff]  }
 0x422   : > { %v3480_v15 = vpop.permute.xlu0 %3479  ;;  %5973 = vmatprep.mubr.bf16.mxu1 %v6108_v59 }
 0x423   : > { %3574 = vst.msk [vmem:[#allocation2 + $0x8] sm:$0xf] %vm3571_vm1, %v3480_v15  ;;  %5974 = vmatmul.mubr.bf16.vlgmr.msra.gmra.mxu1 %v6109_v48 }
 0x424   : > { %5977 = vmatprep.mubr.bf16.mxu1 %v6110_v40 }
 0x426   : > { %v3536_v28 = vpop.permute.xlu0 %3535 }
 0x427   : > { %3602 = vst.msk [vmem:[#allocation2 + $0x78] sm:$0xf] %vm3571_vm1, %v3536_v28 }
 0x429   : > { %v4503_v16 = vpop.permute.xlu1 %4502 }
 0x42a   : > { %4582 = vst.msk [vmem:[#allocation2 + $0x44] sm:$0xf] %vm4564_vm14, %v4503_v16  ;;  %v4469_v11 = vpop.permute.xlu0 %4468 }
 0x42b   : > { %4565 = vst.msk [vmem:[#allocation2] sm:$0xf] %vm4564_vm14, %v4469_v11  ;;  %5978 = vmatmul.mubr.bf16.gmra.mxu1 %v6111_v46 }
 0x42c   : > { %5981 = vmatprep.mubr.bf16.mxu1 %v6112_v2 }
 0x42f   : > { %v4507_v31 = vpop.permute.xlu1 %4506 }
 0x430   : > { %4584 = vst.msk [vmem:[#allocation2 + $0x4c] sm:$0xf] %vm4564_vm14, %v4507_v31 }
 0x432   : > { %v6113_v14 = vld [vmem:[#allocation2] sm:$0xff]  }
 0x433   : > { %5969 = vmatprep.mubr.bf16.mxu0 %v6113_v14  ;;  %5982 = vmatmul.mubr.bf16.gmra.mxu1 %v6114_v13 }
 0x448   : > { %v4527_v27 = vpop.permute.xlu1 %4526 }
 0x449   : > { %4594 = vst.msk [vmem:[#allocation2 + $0x74] sm:$0xf] %vm4564_vm14, %v4527_v27 }
 0x44b   : > { %v4501_v47 = vpop.permute.xlu0 %4500 }
 0x44c   : > { %4581 = vst.msk [vmem:[#allocation2 + $0x40] sm:$0xf] %vm4564_vm14, %v4501_v47  ;;  %v4511_v17 = vpop.permute.xlu1 %4510 }
 0x44d   : > { %4586 = vst.msk [vmem:[#allocation2 + $0x54] sm:$0xf] %vm4564_vm14, %v4511_v17 }
 0x452   : > { %v4515_v21 = vpop.permute.xlu1 %4514 }
 0x453   : > { %v4505_v32 = vpop.permute.xlu0 %4504  ;;  %4588 = vst.msk [vmem:[#allocation2 + $0x5c] sm:$0xf] %vm4564_vm14, %v4515_v21  ;;  %v6115_v9 = vld [vmem:[#allocation2 + $0x40] sm:$0xff]  }
 0x454   : > { %4583 = vst.msk [vmem:[#allocation2 + $0x48] sm:$0xf] %vm4564_vm14, %v4505_v32  ;;  %5985 = vmatprep.mubr.bf16.mxu1 %v6115_v9 }
 0x45b   : > { %v6116_v43 = vld [vmem:[#allocation2 + $0x48] sm:$0xff]  }
 0x45c   : > { %5986 = vmatmul.mubr.bf16.gmra.mxu1 %v6116_v43 }
 0x465   : > { %v4525_v22 = vpop.permute.xlu0 %4524 }
 0x466   : > { %4593 = vst.msk [vmem:[#allocation2 + $0x70] sm:$0xf] %vm4564_vm14, %v4525_v22  ;;  %v4519_v35 = vpop.permute.xlu1 %4518 }
 0x467   : > { %4590 = vst.msk [vmem:[#allocation2 + $0x64] sm:$0xf] %vm4564_vm14, %v4519_v35 }
 0x469   : > { %v4509_v56 = vpop.permute.xlu0 %4508 }
 0x46a   : > { %4585 = vst.msk [vmem:[#allocation2 + $0x50] sm:$0xf] %vm4564_vm14, %v4509_v56  ;;  %v4523_v54 = vpop.permute.xlu1 %4522 }
 0x46b   : > { %4592 = vst.msk [vmem:[#allocation2 + $0x6c] sm:$0xf] %vm4564_vm14, %v4523_v54 }
 0x46d   : > { %v4513_v24 = vpop.permute.xlu0 %4512  ;;  %v6121_v1 = vld [vmem:[#allocation2 + $0x70] sm:$0xff]  }
 0x46e   : > { %4587 = vst.msk [vmem:[#allocation2 + $0x58] sm:$0xf] %vm4564_vm14, %v4513_v24  ;;  %v4475_v49 = vpop.permute.xlu1 %4474 }
 0x46f   : > { %4568 = vst.msk [vmem:[#allocation2 + $0xc] sm:$0xf] %vm4564_vm14, %v4475_v49 }
 0x471   : > { %v4517_v45 = vpop.permute.xlu0 %4516  ;;  %v6117_v61 = vld [vmem:[#allocation2 + $0x50] sm:$0xff]  }
 0x472   : > { %4589 = vst.msk [vmem:[#allocation2 + $0x60] sm:$0xf] %vm4564_vm14, %v4517_v45  ;;  %v4531_v52 = vpop.permute.xlu1 %4530  ;;  %5989 = vmatprep.mubr.bf16.mxu1 %v6117_v61 }
 0x473   : > { %4596 = vst.msk [vmem:[#allocation2 + $0x7c] sm:$0xf] %vm4564_vm14, %v4531_v52 }
 0x475   : > { %v4521_v36 = vpop.permute.xlu0 %4520  ;;  %v6118_v25 = vld [vmem:[#allocation2 + $0x58] sm:$0xff]  }
 0x476   : > { %4591 = vst.msk [vmem:[#allocation2 + $0x68] sm:$0xf] %vm4564_vm14, %v4521_v36  ;;  %5990 = vmatmul.mubr.bf16.gmra.mxu1 %v6118_v25 }
 0x479   : > { %v4473_v33 = vpop.permute.xlu0 %4472  ;;  %v6119_v20 = vld [vmem:[#allocation2 + $0x60] sm:$0xff]  }
 0x47a   : > { %4567 = vst.msk [vmem:[#allocation2 + $0x8] sm:$0xf] %vm4564_vm14, %v4473_v33  ;;  %5993 = vmatprep.mubr.bf16.mxu1 %v6119_v20 }
 0x47d   : > { %v4529_v44 = vpop.permute.xlu0 %4528  ;;  %v6120_v6 = vld [vmem:[#allocation2 + $0x68] sm:$0xff]  }
 0x47e   : > { %4595 = vst.msk [vmem:[#allocation2 + $0x78] sm:$0xf] %vm4564_vm14, %v4529_v44  ;;  %5994 = vmatmul.mubr.bf16.gmra.mxu1 %v6120_v6 }
 0x47f   : > { %5997 = vmatprep.mubr.bf16.mxu1 %v6121_v1 }
 0x481   : > { %v6122_v8 = vld [vmem:[#allocation2 + $0x8] sm:$0xff]  }
 0x482   : > { %5970 = vmatmul.mubr.bf16.vlgmr.msra.gmra.mxu0 %v6122_v8 }
 0x485   : > { %v6123_v37 = vld [vmem:[#allocation2 + $0x78] sm:$0xff]  }
 0x486   : > { %5998 = vmatmul.mubr.bf16.gmra.mxu1 %v6123_v37 }
 0x4e3   : > { %v5975_v62 = vpop.f32.mrf.mxu1 }
 0x4e4   : > { %v4855_v60 = vadd.f32 %v5975_v62, %v11733_v53 }
 0x4e5   : > { %v4846_v41 = vpop.f32.mrf.mxu1 }
 0x4e6   : > { %v4963_v50 = vmul.f32 0.5, %v4855_v60  ;;  %v4847_v57 = vadd.f32 %v11733_v53, %v4846_v41 }
 0x4e7   : > { %v5976_v38 = vpop.f32.mrf.mxu1 }
 0x4e8   : > { %6188 = vtanh.f32 %v4963_v50  ;;  %v4961_v12 = vmul.f32 0.5, %v4847_v57  ;;  %v4858_v51 = vadd.f32 %v5976_v38, %v11733_v53 }
 0x4e9   : > { %v4849_v10 = vpop.f32.mrf.mxu1 }
 0x4ea   : > { %6190 = vtanh.f32 %v4961_v12  ;;  %v4964_v55 = vmul.f32 0.5, %v4858_v51  ;;  %v4850_v4 = vadd.f32 %v11733_v53, %v4849_v10 }
 0x4eb   : > { %v5979_v19 = vpop.f32.mrf.mxu1 }
 0x4ec   : > { %6192 = vtanh.f32 %v4964_v55  ;;  %v4962_v7 = vmul.f32 0.5, %v4850_v4  ;;  %v11740_v39 = vadd.f32 %v5979_v19, %v11733_v53 }
 0x4ed   : > { %v4862_v23 = vpop.f32.mrf.mxu1 }
 0x4ee   : > { %6194 = vtanh.f32 %v4962_v7  ;;  %v4967_v29 = vmul.f32 0.5, %v11740_v39  ;;  %v11744_v63 = vadd.f32 %v11733_v53, %v4862_v23 }
 0x4ef   : > { %v5980_v34 = vpop.f32.mrf.mxu1 }
 0x4f0   : > { %6196 = vtanh.f32 %v4967_v29  ;;  %v4965_v18 = vmul.f32 0.5, %v11744_v63  ;;  %v4874_v58 = vadd.f32 %v5980_v34, %v11733_v53 }
 0x4f1   : > { %v4865_v0 = vpop.f32.mrf.mxu1 }
 0x4f2   : > { %6198 = vtanh.f32 %v4965_v18  ;;  %v4968_v3 = vmul.f32 0.5, %v4874_v58  ;;  %v4866_v26 = vadd.f32 %v11733_v53, %v4865_v0 }
 0x4f3   : > { %v5983_v30 = vpop.f32.mrf.mxu1 }
 0x4f4   : > { %6200 = vtanh.f32 %v4968_v3  ;;  %v4966_v5 = vmul.f32 0.5, %v4866_v26  ;;  %v11750_v42 = vadd.f32 %v5983_v30, %v11733_v53 }
 0x4f5   : > { %v6189_v15 = vpop.eup %6188  ;;  %v4878_v59 = vpop.f32.mrf.mxu1 }
 0x4f6   : > { %v5027_v48 = vmul.f32 0.5, %v6189_v15  ;;  %6202 = vtanh.f32 %v4966_v5  ;;  %v4971_v40 = vmul.f32 0.5, %v11750_v42  ;;  %v11754_v16 = vadd.f32 %v11733_v53, %v4878_v59 }
 0x4f7   : > { %v6191_v28 = vpop.eup %6190  ;;  %v5984_v11 = vpop.f32.mrf.mxu1 }
 0x4f8   : > { %v5025_v31 = vmul.f32 0.5, %v6191_v28  ;;  %6204 = vtanh.f32 %v4971_v40  ;;  %v4969_v46 = vmul.f32 0.5, %v11754_v16  ;;  %v4890_v14 = vadd.f32 %v5984_v11, %v11733_v53 }
 0x4f9   : > { %v6193_v2 = vpop.eup %6192  ;;  %v4881_v13 = vpop.f32.mrf.mxu1  ;;  %v5059_v27 = vadd.f32 0.5, %v5027_v48 }
 0x4fa   : > { %v5028_v47 = vmul.f32 0.5, %v6193_v2  ;;  %6206 = vtanh.f32 %v4969_v46  ;;  %v4972_v32 = vmul.f32 0.5, %v4890_v14  ;;  %v4882_v21 = vadd.f32 %v11733_v53, %v4881_v13 }
 0x4fb   : > { %v6195_v17 = vpop.eup %6194  ;;  %v5057_v9 = vadd.f32 0.5, %v5025_v31  ;;  %v5091_v54 = vmul.f32 %v5059_v27, %v4855_v60 }
 0x4fc   : > { %v5060_v43 = vadd.f32 0.5, %v5028_v47  ;;  %v5026_v22 = vmul.f32 0.5, %v6195_v17  ;;  %6208 = vtanh.f32 %v4972_v32  ;;  %v4970_v56 = vmul.f32 0.5, %v4882_v21 }
 0x4fd   : > { %v6197_v35 = vpop.eup %6196  ;;  %v5089_v52 = vmul.f32 %v5057_v9, %v4847_v57 }
 0x4fe   : > { %v5092_v24 = vmul.f32 %v5060_v43, %v4858_v51  ;;  %v5058_v49 = vadd.f32 0.5, %v5026_v22  ;;  %v5031_v45 = vmul.f32 0.5, %v6197_v35  ;;  %6210 = vtanh.f32 %v4970_v56 }
 0x4ff   : > { %v6199_v61 = vpop.eup %6198 }
 0x500   : > { %v5792_v36 = vpack.c.bf16 %v5092_v24, %v5091_v54  ;;  %v5090_v25 = vmul.f32 %v5058_v49, %v4850_v4  ;;  %v5029_v33 = vmul.f32 0.5, %v6199_v61  ;;  %v5063_v6 = vadd.f32 0.5, %v5031_v45 }
 0x501   : > { %v6201_v20 = vpop.eup %6200 }
 0x502   : > { %5856 = vst [vmem:[%s11761_s6 + $0x18] sm:$0xff] %v5792_v36   ;;  %v5787_v44 = vpack.c.bf16 %v5090_v25, %v5089_v52  ;;  %v5032_v1 = vmul.f32 0.5, %v6201_v20  ;;  %v5061_v37 = vadd.f32 0.5, %v5029_v33  ;;  %v5095_v50 = vmul.f32 %v5063_v6, %v11740_v39 }
 0x503   : > { %v6203_v8 = vpop.eup %6202 }
 0x504   : > { %5855 = vst [vmem:[%s11761_s6 + $0x10] sm:$0xff] %v5787_v44   ;;  %v5064_v62 = vadd.f32 0.5, %v5032_v1  ;;  %v5030_v60 = vmul.f32 0.5, %v6203_v8  ;;  %v5093_v10 = vmul.f32 %v5061_v37, %v11744_v63 }
 0x505   : > { %v6205_v41 = vpop.eup %6204 }
 0x506   : > { %v5096_v57 = vmul.f32 %v5064_v62, %v4874_v58  ;;  %v5062_v38 = vadd.f32 0.5, %v5030_v60  ;;  %v5035_v51 = vmul.f32 0.5, %v6205_v41 }
 0x507   : > { %v6207_v12 = vpop.eup %6206 }
 0x508   : > { %v5802_v55 = vpack.c.bf16 %v5096_v57, %v5095_v50  ;;  %v5094_v4 = vmul.f32 %v5062_v38, %v4866_v26  ;;  %v5033_v19 = vmul.f32 0.5, %v6207_v12  ;;  %v5067_v29 = vadd.f32 0.5, %v5035_v51 }
 0x509   : > { %v6209_v7 = vpop.eup %6208 }
 0x50a   : > { %5858 = vst [vmem:[%s11761_s6 + $0x28] sm:$0xff] %v5802_v55   ;;  %v5797_v23 = vpack.c.bf16 %v5094_v4, %v5093_v10  ;;  %v5036_v34 = vmul.f32 0.5, %v6209_v7  ;;  %v5065_v0 = vadd.f32 0.5, %v5033_v19  ;;  %v5099_v5 = vmul.f32 %v5067_v29, %v11750_v42 }
 0x50b   : > { %v6211_v18 = vpop.eup %6210 }
 0x50c   : > { %5857 = vst [vmem:[%s11761_s6 + $0x20] sm:$0xff] %v5797_v23   ;;  %v5068_v3 = vadd.f32 0.5, %v5036_v34  ;;  %v5034_v30 = vmul.f32 0.5, %v6211_v18  ;;  %v5097_v40 = vmul.f32 %v5065_v0, %v11754_v16 }
 0x50e   : > { %v5100_v63 = vmul.f32 %v5068_v3, %v4890_v14  ;;  %v5066_v15 = vadd.f32 0.5, %v5034_v30 }
 0x510   : > { %v5812_v28 = vpack.c.bf16 %v5100_v63, %v5099_v5  ;;  %v5098_v11 = vmul.f32 %v5066_v15, %v4882_v21 }
 0x512   : > { %5860 = vst [vmem:[%s11761_s6 + $0x38] sm:$0xff] %v5812_v28   ;;  %v5807_v13 = vpack.c.bf16 %v5098_v11, %v5097_v40 }
 0x514   : > { %5859 = vst [vmem:[%s11761_s6 + $0x30] sm:$0xff] %v5807_v13  }
 0x51c   : > { %v5987_v39 = vpop.f32.mrf.mxu1 }
 0x51d   : > { %v4903_v58 = vadd.f32 %v5987_v39, %v11733_v53 }
 0x51e   : > { %v4894_v26 = vpop.f32.mrf.mxu1 }
 0x51f   : > { %v4975_v59 = vmul.f32 0.5, %v4903_v58  ;;  %v4895_v48 = vadd.f32 %v11733_v53, %v4894_v26 }
 0x520   : > { %v5988_v31 = vpop.f32.mrf.mxu1 }
 0x521   : > { %6212 = vtanh.f32 %v4975_v59  ;;  %v4973_v46 = vmul.f32 0.5, %v4895_v48  ;;  %v4906_v2 = vadd.f32 %v5988_v31, %v11733_v53 }
 0x522   : > { %v4897_v27 = vpop.f32.mrf.mxu1 }
 0x523   : > { %6214 = vtanh.f32 %v4973_v46  ;;  %v4976_v42 = vmul.f32 0.5, %v4906_v2  ;;  %v4898_v14 = vadd.f32 %v11733_v53, %v4897_v27 }
 0x525   : > { %6216 = vtanh.f32 %v4976_v42  ;;  %v4974_v47 = vmul.f32 0.5, %v4898_v14 }
 0x527   : > { %6218 = vtanh.f32 %v4974_v47 }
 0x52e   : > { %v6213_v17 = vpop.eup %6212 }
 0x52f   : > { %v5039_v16 = vmul.f32 0.5, %v6213_v17 }
 0x530   : > { %v6215_v32 = vpop.eup %6214 }
 0x531   : > { %v5037_v21 = vmul.f32 0.5, %v6215_v32  ;;  %v5071_v35 = vadd.f32 0.5, %v5039_v16 }
 0x532   : > { %v6217_v43 = vpop.eup %6216 }
 0x533   : > { %v5040_v56 = vmul.f32 0.5, %v6217_v43  ;;  %v5069_v61 = vadd.f32 0.5, %v5037_v21  ;;  %v5103_v44 = vmul.f32 %v5071_v35, %v4903_v58 }
 0x534   : > { %v6219_v24 = vpop.eup %6218 }
 0x535   : > { %v5072_v52 = vadd.f32 0.5, %v5040_v56  ;;  %v5038_v36 = vmul.f32 0.5, %v6219_v24  ;;  %v5101_v60 = vmul.f32 %v5069_v61, %v4895_v48 }
 0x536   : > { %v5991_v9 = vpop.f32.mrf.mxu1 }
 0x537   : > { %v11778_v22 = vadd.f32 %v5991_v9, %v11733_v53  ;;  %v5104_v6 = vmul.f32 %v5072_v52, %v4906_v2  ;;  %v5070_v1 = vadd.f32 0.5, %v5038_v36 }
 0x538   : > { %v4910_v54 = vpop.f32.mrf.mxu1 }
 0x539   : > { %v4979_v49 = vmul.f32 0.5, %v11778_v22  ;;  %v11782_v45 = vadd.f32 %v11733_v53, %v4910_v54  ;;  %v5822_v41 = vpack.c.bf16 %v5104_v6, %v5103_v44  ;;  %v5102_v50 = vmul.f32 %v5070_v1, %v4898_v14 }
 0x53a   : > { %v5992_v25 = vpop.f32.mrf.mxu1 }
 0x53b   : > { %6220 = vtanh.f32 %v4979_v49  ;;  %v4977_v33 = vmul.f32 0.5, %v11782_v45  ;;  %v11786_v20 = vadd.f32 %v5992_v25, %v11733_v53  ;;  %5862 = vst [vmem:[%s11761_s6 + $0x48] sm:$0xff] %v5822_v41   ;;  %v5817_v51 = vpack.c.bf16 %v5102_v50, %v5101_v60 }
 0x53c   : > { %v4913_v8 = vpop.f32.mrf.mxu1 }
 0x53d   : > { %6222 = vtanh.f32 %v4977_v33  ;;  %v4980_v37 = vmul.f32 0.5, %v11786_v20  ;;  %v11790_v62 = vadd.f32 %v11733_v53, %v4913_v8  ;;  %5861 = vst [vmem:[%s11761_s6 + $0x40] sm:$0xff] %v5817_v51  }
 0x53e   : > { %v5995_v57 = vpop.f32.mrf.mxu1 }
 0x53f   : > { %6224 = vtanh.f32 %v4980_v37  ;;  %v4978_v38 = vmul.f32 0.5, %v11790_v62  ;;  %v11794_v12 = vadd.f32 %v5995_v57, %v11733_v53 }
 0x540   : > { %v4926_v10 = vpop.f32.mrf.mxu1 }
 0x541   : > { %6226 = vtanh.f32 %v4978_v38  ;;  %v4983_v55 = vmul.f32 0.5, %v11794_v12  ;;  %v11799_v4 = vadd.f32 %v11733_v53, %v4926_v10 }
 0x542   : > { %v5971_v19 = vpop.f32.mrf.mxu0  ;;  %v5996_v7 = vpop.f32.mrf.mxu1 }
 0x543   : > { %6228 = vtanh.f32 %v4983_v55  ;;  %v4981_v23 = vmul.f32 0.5, %v11799_v4  ;;  %v11804_v29 = vadd.f32 %v5971_v19, %v11733_v53  ;;  %v11807_v34 = vadd.f32 %v5996_v7, %v11733_v53 }
 0x544   : > { %v4830_v18 = vpop.f32.mrf.mxu0  ;;  %v4929_v0 = vpop.f32.mrf.mxu1 }
 0x545   : > { %6230 = vtanh.f32 %v4981_v23  ;;  %v4959_v3 = vmul.f32 0.5, %v11804_v29  ;;  %v4984_v30 = vmul.f32 0.5, %v11807_v34  ;;  %v11812_v39 = vadd.f32 %v11733_v53, %v4830_v18 }
 0x546   : > { %v11815_v58 = vadd.f32 %v11733_v53, %v4929_v0  ;;  %v5972_v5 = vpop.f32.mrf.mxu0  ;;  %v5999_v63 = vpop.f32.mrf.mxu1 }
 0x547   : > { %6232 = vtanh.f32 %v4959_v3  ;;  %v4957_v15 = vmul.f32 0.5, %v11812_v39  ;;  %v11819_v26 = vadd.f32 %v5972_v5, %v11733_v53  ;;  %v11822_v59 = vadd.f32 %v5999_v63, %v11733_v53 }
 0x548   : > { %v6221_v48 = vpop.eup %6220  ;;  %6234 = vtanh.f32 %v4984_v30  ;;  %v4982_v40 = vmul.f32 0.5, %v11815_v58  ;;  %v4833_v28 = vpop.f32.mrf.mxu0 }
 0x549   : > { %v4942_v11 = vpop.f32.mrf.mxu1  ;;  %v5043_v31 = vmul.f32 0.5, %v6221_v48  ;;  %6236 = vtanh.f32 %v4957_v15  ;;  %v4960_v46 = vmul.f32 0.5, %v11819_v26  ;;  %v4987_v2 = vmul.f32 0.5, %v11822_v59 }
 0x54a   : > { %v6223_v13 = vpop.eup %6222  ;;  %6238 = vtanh.f32 %v4982_v40  ;;  %v11828_v27 = vadd.f32 %v11733_v53, %v4833_v28  ;;  %v11831_v42 = vadd.f32 %v11733_v53, %v4942_v11 }
 0x54b   : > { %v6000_v14 = vpop.f32.mrf.mxu1  ;;  %v5041_v47 = vmul.f32 0.5, %v6223_v13  ;;  %6240 = vtanh.f32 %v4960_v46  ;;  %v5075_v43 = vadd.f32 0.5, %v5043_v31 }
 0x54c   : > { %v11834_v17 = vadd.f32 %v6000_v14, %v11733_v53  ;;  %v6225_v16 = vpop.eup %6224  ;;  %6242 = vtanh.f32 %v4987_v2  ;;  %v4958_v32 = vmul.f32 0.5, %v11828_v27  ;;  %v4985_v21 = vmul.f32 0.5, %v11831_v42 }
 0x54d   : > { %v4945_v9 = vpop.f32.mrf.mxu1  ;;  %v5044_v35 = vmul.f32 0.5, %v6225_v16  ;;  %v5073_v49 = vadd.f32 0.5, %v5041_v47  ;;  %v5107_v33 = vmul.f32 %v5075_v43, %v11778_v22 }
 0x54e   : > { %v4988_v56 = vmul.f32 0.5, %v11834_v17  ;;  %v6227_v54 = vpop.eup %6226  ;;  %6244 = vtanh.f32 %v4958_v32  ;;  %v11840_v24 = vadd.f32 %v11733_v53, %v4945_v9 }
 0x54f   : > { %v5076_v61 = vadd.f32 0.5, %v5044_v35  ;;  %v5042_v52 = vmul.f32 0.5, %v6227_v54  ;;  %6246 = vtanh.f32 %v4985_v21  ;;  %v5105_v53 = vmul.f32 %v5073_v49, %v11782_v45 }
 0x550   : > { %v6229_v36 = vpop.eup %6228  ;;  %6248 = vtanh.f32 %v4988_v56  ;;  %v4986_v25 = vmul.f32 0.5, %v11840_v24 }
 0x551   : > { %v5108_v44 = vmul.f32 %v5076_v61, %v11786_v20  ;;  %v5074_v6 = vadd.f32 0.5, %v5042_v52  ;;  %v5047_v8 = vmul.f32 0.5, %v6229_v36 }
 0x552   : > { %v6231_v1 = vpop.eup %6230  ;;  %6250 = vtanh.f32 %v4986_v25 }
 0x553   : > { %v5832_v37 = vpack.c.bf16 %v5108_v44, %v5107_v33  ;;  %v5106_v60 = vmul.f32 %v5074_v6, %v11790_v62  ;;  %v5045_v50 = vmul.f32 0.5, %v6231_v1  ;;  %v5079_v22 = vadd.f32 0.5, %v5047_v8 }
 0x554   : > { %v6233_v41 = vpop.eup %6232 }
 0x555   : > { %v6235_v57 = vpop.eup %6234  ;;  %5864 = vst [vmem:[%s11761_s6 + $0x58] sm:$0xff] %v5832_v37   ;;  %v5827_v38 = vpack.c.bf16 %v5106_v60, %v5105_v53  ;;  %v5023_v51 = vmul.f32 0.5, %v6233_v41  ;;  %v5077_v23 = vadd.f32 0.5, %v5045_v50  ;;  %v5111_v62 = vmul.f32 %v5079_v22, %v11794_v12 }
 0x556   : > { %v6237_v10 = vpop.eup %6236  ;;  %v5048_v55 = vmul.f32 0.5, %v6235_v57 }
 0x557   : > { %v6239_v20 = vpop.eup %6238  ;;  %5863 = vst [vmem:[%s11761_s6 + $0x50] sm:$0xff] %v5827_v38   ;;  %v5021_v19 = vmul.f32 0.5, %v6237_v10  ;;  %v5055_v3 = vadd.f32 0.5, %v5023_v51  ;;  %v5109_v31 = vmul.f32 %v5077_v23, %v11799_v4 }
 0x558   : > { %v6241_v7 = vpop.eup %6240  ;;  %v5080_v18 = vadd.f32 0.5, %v5048_v55  ;;  %v5046_v0 = vmul.f32 0.5, %v6239_v20 }
 0x559   : > { %v6243_v45 = vpop.eup %6242  ;;  %v5024_v30 = vmul.f32 0.5, %v6241_v7  ;;  %v5053_v40 = vadd.f32 0.5, %v5021_v19  ;;  %v5087_v47 = vmul.f32 %v5055_v3, %v11804_v29 }
 0x55a   : > { %v5112_v5 = vmul.f32 %v5080_v18, %v11807_v34  ;;  %v5078_v63 = vadd.f32 0.5, %v5046_v0  ;;  %v5051_v15 = vmul.f32 0.5, %v6243_v45 }
 0x55b   : > { %v6245_v48 = vpop.eup %6244  ;;  %v5056_v28 = vadd.f32 0.5, %v5024_v30  ;;  %v5085_v43 = vmul.f32 %v5053_v40, %v11812_v39 }
 0x55c   : > { %v6247_v11 = vpop.eup %6246  ;;  %v5842_v46 = vpack.c.bf16 %v5112_v5, %v5111_v62  ;;  %v5110_v2 = vmul.f32 %v5078_v63, %v11815_v58  ;;  %v5022_v13 = vmul.f32 0.5, %v6245_v48  ;;  %v5083_v32 = vadd.f32 0.5, %v5051_v15 }
 0x55d   : > { %v6249_v14 = vpop.eup %6248  ;;  %v5088_v12 = vmul.f32 %v5056_v28, %v11819_v26  ;;  %v5049_v34 = vmul.f32 0.5, %v6247_v11 }
 0x55e   : > { %5866 = vst [vmem:[%s11761_s6 + $0x68] sm:$0xff] %v5842_v46   ;;  %v5837_v16 = vpack.c.bf16 %v5110_v2, %v5109_v31  ;;  %v5054_v21 = vadd.f32 0.5, %v5022_v13  ;;  %v5052_v9 = vmul.f32 0.5, %v6249_v14  ;;  %v5115_v54 = vmul.f32 %v5083_v32, %v11822_v59 }
 0x55f   : > { %v6251_v4 = vpop.eup %6250  ;;  %v5782_v58 = vpack.c.bf16 %v5088_v12, %v5087_v47  ;;  %v5081_v29 = vadd.f32 0.5, %v5049_v34 }
 0x560   : > { %5865 = vst [vmem:[%s11761_s6 + $0x60] sm:$0xff] %v5837_v16   ;;  %v5086_v35 = vmul.f32 %v5054_v21, %v11828_v27  ;;  %v5084_v56 = vadd.f32 0.5, %v5052_v9  ;;  %v5050_v26 = vmul.f32 0.5, %v6251_v4 }
 0x561   : > { %5854 = vst [vmem:[%s11761_s6 + $0x8] sm:$0xff] %v5782_v58   ;;  %v5113_v39 = vmul.f32 %v5081_v29, %v11831_v42 }
 0x562   : > { %v5777_v49 = vpack.c.bf16 %v5086_v35, %v5085_v43  ;;  %v5116_v61 = vmul.f32 %v5084_v56, %v11834_v17  ;;  %v5082_v52 = vadd.f32 0.5, %v5050_v26 }
 0x564   : > { %5778 = vst [vmem:[%s11761_s6] sm:$0xff] %v5777_v49   ;;  %v5852_v27 = vpack.c.bf16 %v5116_v61, %v5115_v54  ;;  %v5114_v36 = vmul.f32 %v5082_v52, %v11840_v24 }
 0x566   : > { %5868 = vst [vmem:[%s11761_s6 + $0x78] sm:$0xff] %v5852_v27   ;;  %v5847_v59 = vpack.c.bf16 %v5114_v36, %v5113_v39 }
 0x568   : > { %5867 = vst [vmem:[%s11761_s6 + $0x70] sm:$0xff] %v5847_v59  }
 0x569   : > { %6320 = shalt.err (!%p6317_p0)
}
 0x56a   : > { %s6321_s17 = scalar_lea.hbm %s11870_s27, 2048  ;;  %s6325_s29 = scalar_lea.hbm %s11924_s5, 4096 }
 0x56b   : > { %p6322_p5 = scmp.ne.s32.totalorder %s11870_s27, %s6321_s17  ;;  %p6326_p4 = scmp.lt.s32.totalorder %s11870_s27, %s11924_s5 }
 0x56c   : > { %p6327_p6 = scmp.lt.s32.totalorder %s6325_s29, %s6321_s17 }
 0x56d   : > { %p6323_p2 = pnand %p6322_p5, %p13969_p11 }
 0x56e   : > { %p6328_p8 = por %p6327_p6, %p6326_p4 }
 0x56f   : > { %p6324_p1 = pneg %p6323_p2 }
 0x571   : > { %p6329_p3 = pnand %p6328_p8, %p6324_p1 }
 0x573   : > { %6332 = shalt.err (!%p6329_p3)
}
 0x574   : > { %s6385_s8 = smov 4  }
 0x575   : > { %6023 = dma.vmem_to_hbm [thread:$0]  (%p13969_p11), %s11873_s24, 2048, %s11870_s27, %s5278_s22, %s6382_s7, %s6382_s7, %s6385_s8  }
 0x576 PF: > { %s5306_s23 = sand.u32 1, %s6363_s18   ;;  %p13970_p7 = scmp.ne.s32.totalorder %s12422_s25, 0 }
 0x577   : > { %p13971_p9 = scmp.ge.s32.totalorder %s6375_s21, 2  ;;  %s5307_s15 = scalar_lea.sflag [#allocation5], %s5306_s23 }
 0x579   : > { %p6034_p10 = pnand %p13971_p9, %p13970_p7 }
 0x57b   : > { %p6035_p12 = pneg %p6034_p10 }
 0x57d   : > { %6358 = dma.done.wait (%p6035_p12), %s5307_s15, 2048  }
 0x57e   : > { %6360 = vsyncadd (%p6035_p12), %s5307_s15, 4294965248  ;;  %p19_p13 = scmp.ge.s32.totalorder %s6470_s30, 4   ;;  %s13972_s18 = smov %s6367_s19 }
 0x57f   : > { %s13973_s19 = smov %s6371_s20  ;;  %s13974_s20 = smov %s6490_s13 }
 0x580   : > { %s13975_s21 = smov %s6470_s30  ;;  %21 = sbr.rel (!%p19_p13) target bundleno = 6 (0x6), region = 89 }
 0x585   :  { %5312 = vsyncpa [#allocation4], 1 }
 0x586   :  { %5314 = vsyncpa [#allocation4 + $0x1], 1 }
 0x587   :  { %5315 = vsyncpa [#allocation7], 1 }
 0x588   :  { %5316 = vsyncpa [#allocation5], 1 }
 0x589   :  { %5318 = vsyncpa [#allocation5 + $0x1], 1 }

</bundles_post_ra>
